<compile_context>
chip_gen: v6e
topology: v6e:2x2x1
jax: 0.10.0
libtpu: 0.0.40
codegen_flags: <defaults>
</compile_context>

<pallas_src>
import jax
import jax.numpy as jnp
from jax import lax
from jax.experimental import pallas as pl
from jax.experimental.pallas import tpu as pltpu

FC_IN = 1543                    # fc_in_dim in DKTModel.__init__
FC_IN_PAD = 1664                # 13 * 128  (lane-aligned K for the first matmul)
FC_HID = 1024
FC_OUT = 512                    # self.fc_out_dim


# ----------------------------------------------------------------------------
# Fused kernel:
#   Linear(1664, 1024) -> PReLU -> Dropout(identity) -> Linear(1024, 512)
#   -> ARD-RBF ScaleKernel prior covariance over the combined embeddings
# ----------------------------------------------------------------------------
def _dkt_fused_kernel(x_ref, w1_ref, b1_ref, w2_ref, b2_ref, ls_ref,
                      alpha_ref, os_ref, cov_ref):
    # ---- fc MLP (bf16 operands, f32 accumulation on the MXU) ----
    h = jnp.dot(x_ref[...], w1_ref[...], preferred_element_type=jnp.float32)
    h = h + b1_ref[...]                                   # (N, 1024) + (1, 1024)

    a = alpha_ref[0]                                      # shared PReLU alpha (SMEM scalar)
    h = jnp.where(h >= 0.0, h, a * h)
    # TODO(synk): nn.Dropout(0.1) is stochastic in PyTorch train mode; applied
    # as identity here (eval semantics) since the torch RNG stream cannot be
    # reproduced.

    emb = jnp.dot(h.astype(jnp.bfloat16), w2_ref[...],
                  preferred_element_type=jnp.float32)
    emb = emb + b2_ref[...]                               # (N, 512) f32

    # ---- exact-GP prior covariance: outputscale * exp(-0.5 * d2) ----
    z = emb / ls_ref[...]                                 # ARD lengthscale (1, 512)
    sq = jnp.sum(z * z, axis=-1, keepdims=True)           # (N, 1)
    # Contract the shared last dim directly (no transpose of the 512-lane tile).
    gram = lax.dot_general(z, z, (((1,), (1,)), ((), ())),
                           preferred_element_type=jnp.float32)   # (N, N)
    d2 = jnp.maximum(sq + sq.T - 2.0 * gram, 0.0)         # clamp_min(0), as gpytorch

    # Force the diagonal distance to exactly 0 so cov[i,i] == outputscale
    # (keeps the matrix clean for any downstream Cholesky).
    n = cov_ref.shape[0]
    row = lax.broadcasted_iota(jnp.int32, (n, n), 0)
    col = lax.broadcasted_iota(jnp.int32, (n, n), 1)
    d2 = jnp.where(row == col, 0.0, d2)

    cov_ref[...] = os_ref[0] * jnp.exp(-0.5 * d2)


def dkt_fused(x_pad, w1, b1, w2, b2, lengthscale, alpha, outputscale):
    n = x_pad.shape[0]

    def vspec(shape):
        return pl.BlockSpec(shape, lambda i: tuple(0 for _ in shape))

    sspec = pl.BlockSpec(memory_space=pltpu.MemorySpace.SMEM)

    return pl.pallas_call(
        _dkt_fused_kernel,
        grid=(1,),
        in_specs=[
            vspec(x_pad.shape),        # (N, 1664) bf16
            vspec(w1.shape),           # (1664, 1024) bf16
            vspec(b1.shape),           # (1, 1024) f32
            vspec(w2.shape),           # (1024, 512) bf16
            vspec(b2.shape),           # (1, 512) f32
            vspec(lengthscale.shape),  # (1, 512) f32
            sspec,                     # alpha (1,) f32 in SMEM
            sspec,                     # outputscale (1,) f32 in SMEM
        ],
        out_specs=vspec((n, n)),
        out_shape=jax.ShapeDtypeStruct((n, n), jnp.float32),
        compiler_params=pltpu.CompilerParams(
            dimension_semantics=("arbitrary",),
            vmem_limit_bytes=32 * 1024 * 1024,   # fits v7x's 64 MiB VMEM
        ),
    )(x_pad, w1, b1, w2, b2, lengthscale, alpha, outputscale)


# ----------------------------------------------------------------------------
# DKTModel.forward, training branch:
#   fc(support ++ query) -> gp_model(combined)  (prior MVN: mean, covariance)
# The eval branch (GP posterior via Cholesky solve + optional scipy refit) has
# no clean Pallas equivalent and is not implemented here.
# ----------------------------------------------------------------------------
def dkt_forward_train(batch, params):
    support_features, support_target, query_features, query_target = batch
    (w1, b1, alpha, w2, b2, lengthscale, outputscale, mean_const) = params

    # Concatenate BEFORE the MLP: one kernel call, fc weights streamed once.
    x = jnp.concatenate([support_features, query_features], axis=0)
    combined_labels = jnp.concatenate([support_target, query_target])

    n_total = x.shape[0]
    # Pad K (1543 -> 1664) with zeros and cast activations to bf16.
    x_pad = jnp.zeros((n_total, FC_IN_PAD), jnp.bfloat16)
    x_pad = x_pad.at[:, :FC_IN].set(x.astype(jnp.bfloat16))

    cov = dkt_fused(x_pad, w1, b1, w2, b2, lengthscale, alpha, outputscale)

    # ConstantMean: a constant fill, done in the wrapper (no lane-sparse output).
    mean = jnp.full((n_total,), mean_const[0], jnp.float32)
    return mean, cov, combined_labels


if __name__ == "__main__":
    key = jax.random.PRNGKey(0)
    ks = jax.random.split(key, 8)

    n_support, n_query = 16, 16
    support_features = jax.random.normal(ks[0], (n_support, FC_IN), jnp.float32)
    query_features = jax.random.normal(ks[1], (n_query, FC_IN), jnp.float32)
    support_target = jax.random.normal(ks[2], (n_support,), jnp.float32)
    query_target = jax.random.normal(ks[3], (n_query,), jnp.float32)

    # fc parameters (PyTorch Linear.weight is (out,in); stored transposed here).
    # w1 is zero-padded along its K dim to 1664 and cast to bf16 "offline".
    w1_f32 = jax.random.normal(ks[4], (FC_IN, FC_HID), jnp.float32) / jnp.sqrt(jnp.float32(FC_IN))
    w1 = jnp.zeros((FC_IN_PAD, FC_HID), jnp.float32).at[:FC_IN].set(w1_f32).astype(jnp.bfloat16)
    b1 = jnp.zeros((1, FC_HID), jnp.float32)
    alpha = jnp.full((1,), 0.25, jnp.float32)            # nn.PReLU() default init
    w2 = (jax.random.normal(ks[5], (FC_HID, FC_OUT), jnp.float32)
          / jnp.sqrt(jnp.float32(FC_HID))).astype(jnp.bfloat16)
    b2 = jnp.zeros((1, FC_OUT), jnp.float32)

    # GP hyperparameters (raw params = 0 -> softplus(0) ~= 0.6931), ARD over 512 dims.
    lengthscale = jnp.full((1, FC_OUT), 0.6931472, jnp.float32)
    outputscale = jnp.full((1,), 0.6931472, jnp.float32)
    mean_const = jnp.zeros((1,), jnp.float32)

    batch = (support_features, support_target, query_features, query_target)
    params = (w1, b1, alpha, w2, b2, lengthscale, outputscale, mean_const)

    mean, cov, targets = dkt_forward_train(batch, params)
    jax.block_until_ready((mean, cov, targets))

    n_total = n_support + n_query
    assert mean.shape == (n_total,)
    assert cov.shape == (n_total, n_total)
    assert targets.shape == (n_total,)
    assert bool(jnp.all(jnp.isfinite(cov)))
    print("KERNEL_OK")
</pallas_src>

<mosaic_0001>
module attributes {stable_mosaic.version = 11 : i64} {
  func.func @_dkt_fused_kernel(%arg0: i32, %arg1: memref<32x1664xbf16, #tpu.memory_space<vmem>>, %arg2: memref<1664x1024xbf16, #tpu.memory_space<vmem>>, %arg3: memref<1x1024xf32, #tpu.memory_space<vmem>>, %arg4: memref<1024x512xbf16, #tpu.memory_space<vmem>>, %arg5: memref<1x512xf32, #tpu.memory_space<vmem>>, %arg6: memref<1x512xf32, #tpu.memory_space<vmem>>, %arg7: memref<1xf32, #tpu.memory_space<smem>>, %arg8: memref<1xf32, #tpu.memory_space<smem>>, %arg9: memref<32x32xf32, #tpu.memory_space<vmem>>) attributes {dimension_semantics = [#tpu.dimension_semantics<arbitrary>], iteration_bounds = array<i64: 1>, scalar_prefetch = 0 : i64, scratch_operands = 0 : i64, tpu.core_type = #tpu.core_type<tc>, window_params = [{pipeline_mode = #tpu.pipeline_mode<synchronous>, transform_indices = @transform_0, window_bounds = array<i64: 32, 1664>}, {pipeline_mode = #tpu.pipeline_mode<synchronous>, transform_indices = @transform_1, window_bounds = array<i64: 1664, 1024>}, {pipeline_mode = #tpu.pipeline_mode<synchronous>, transform_indices = @transform_2, window_bounds = array<i64: 1, 1024>}, {pipeline_mode = #tpu.pipeline_mode<synchronous>, transform_indices = @transform_3, window_bounds = array<i64: 1024, 512>}, {pipeline_mode = #tpu.pipeline_mode<synchronous>, transform_indices = @transform_4, window_bounds = array<i64: 1, 512>}, {pipeline_mode = #tpu.pipeline_mode<synchronous>, transform_indices = @transform_5, window_bounds = array<i64: 1, 512>}, {transform_indices = @transform_6, window_bounds = array<i64: 1>}, {transform_indices = @transform_7, window_bounds = array<i64: 1>}, {pipeline_mode = #tpu.pipeline_mode<synchronous>, transform_indices = @transform_8, window_bounds = array<i64: 32, 32>}]} {
    %c0 = arith.constant 0 : index
    %c0_0 = arith.constant 0 : index
    %0 = vector.load %arg1[%c0, %c0_0] : memref<32x1664xbf16, #tpu.memory_space<vmem>>, vector<32x1664xbf16>
    %c0_1 = arith.constant 0 : index
    %c0_2 = arith.constant 0 : index
    %1 = vector.load %arg2[%c0_1, %c0_2] : memref<1664x1024xbf16, #tpu.memory_space<vmem>>, vector<1664x1024xbf16>
    %cst = arith.constant dense<0.000000e+00> : vector<32x1024xf32>
    %2 = tpu.matmul %0, %1, %cst {dimension_numbers = #tpu.dot_dimension_numbers<[1], [0], [0], [1], [0, 0, 1, 1], [], []>} : vector<32x1664xbf16>, vector<1664x1024xbf16>, vector<32x1024xf32> -> vector<32x1024xf32>
    %c0_3 = arith.constant 0 : index
    %c0_4 = arith.constant 0 : index
    %3 = vector.load %arg3[%c0_3, %c0_4] : memref<1x1024xf32, #tpu.memory_space<vmem>>, vector<1x1024xf32>
    %4 = vector.broadcast %3 : vector<1x1024xf32> to vector<32x1024xf32>
    %5 = arith.addf %2, %4 : vector<32x1024xf32>
    %c0_5 = arith.constant 0 : index
    %6 = memref.load %arg7[%c0_5] : memref<1xf32, #tpu.memory_space<smem>>
    %cst_6 = arith.constant 0.000000e+00 : f32
    %7 = vector.broadcast %cst_6 : f32 to vector<32x1024xf32>
    %8 = arith.cmpf oge, %5, %7 : vector<32x1024xf32>
    %9 = vector.broadcast %6 : f32 to vector<32x1024xf32>
    %10 = arith.mulf %9, %5 : vector<32x1024xf32>
    %11 = arith.select %8, %5, %10 : vector<32x1024xi1>, vector<32x1024xf32>
    %12 = arith.truncf %11 : vector<32x1024xf32> to vector<32x1024xbf16>
    %c0_7 = arith.constant 0 : index
    %c0_8 = arith.constant 0 : index
    %13 = vector.load %arg4[%c0_7, %c0_8] : memref<1024x512xbf16, #tpu.memory_space<vmem>>, vector<1024x512xbf16>
    %cst_9 = arith.constant dense<0.000000e+00> : vector<32x512xf32>
    %14 = tpu.matmul %12, %13, %cst_9 {dimension_numbers = #tpu.dot_dimension_numbers<[1], [0], [0], [1], [0, 0, 1, 1], [], []>} : vector<32x1024xbf16>, vector<1024x512xbf16>, vector<32x512xf32> -> vector<32x512xf32>
    %c0_10 = arith.constant 0 : index
    %c0_11 = arith.constant 0 : index
    %15 = vector.load %arg5[%c0_10, %c0_11] : memref<1x512xf32, #tpu.memory_space<vmem>>, vector<1x512xf32>
    %16 = vector.broadcast %15 : vector<1x512xf32> to vector<32x512xf32>
    %17 = arith.addf %14, %16 : vector<32x512xf32>
    %c0_12 = arith.constant 0 : index
    %c0_13 = arith.constant 0 : index
    %18 = vector.load %arg6[%c0_12, %c0_13] : memref<1x512xf32, #tpu.memory_space<vmem>>, vector<1x512xf32>
    %19 = vector.broadcast %18 : vector<1x512xf32> to vector<32x512xf32>
    %20 = arith.divf %17, %19 : vector<32x512xf32>
    %21 = arith.mulf %20, %20 : vector<32x512xf32>
    %cst_14 = arith.constant dense<0.000000e+00> : vector<32xf32>
    %22 = vector.multi_reduction <add>, %21, %cst_14 [1] : vector<32x512xf32> to vector<32xf32>
    %23 = vector.shape_cast %22 : vector<32xf32> to vector<32x1xf32>
    %cst_15 = arith.constant dense<0.000000e+00> : vector<32x32xf32>
    %24 = tpu.matmul %20, %20, %cst_15 {dimension_numbers = #tpu.dot_dimension_numbers<[1], [1], [0], [0], [0, 0, 1, 0], [], []>} : vector<32x512xf32>, vector<32x512xf32>, vector<32x32xf32> -> vector<32x32xf32>
    %25 = tpu.transpose %23, [1, 0] : vector<32x1xf32> -> vector<1x32xf32>
    %26 = vector.broadcast %23 : vector<32x1xf32> to vector<32x32xf32>
    %27 = vector.broadcast %25 : vector<1x32xf32> to vector<32x32xf32>
    %28 = arith.addf %26, %27 : vector<32x32xf32>
    %cst_16 = arith.constant 2.000000e+00 : f32
    %29 = vector.broadcast %cst_16 : f32 to vector<32x32xf32>
    %30 = arith.mulf %29, %24 : vector<32x32xf32>
    %31 = arith.subf %28, %30 : vector<32x32xf32>
    %cst_17 = arith.constant 0.000000e+00 : f32
    %32 = vector.broadcast %cst_17 : f32 to vector<32x32xf32>
    %33 = arith.maximumf %31, %32 : vector<32x32xf32>
    %34 = tpu.iota {dimensions = array<i32: 0>} : vector<32x32xi32>
    %35 = tpu.iota {dimensions = array<i32: 1>} : vector<32x32xi32>
    %36 = arith.cmpi eq, %34, %35 : vector<32x32xi32>
    %cst_18 = arith.constant 0.000000e+00 : f32
    %37 = vector.broadcast %cst_18 : f32 to vector<32x32xf32>
    %38 = arith.select %36, %37, %33 : vector<32x32xi1>, vector<32x32xf32>
    %c0_19 = arith.constant 0 : index
    %39 = memref.load %arg8[%c0_19] : memref<1xf32, #tpu.memory_space<smem>>
    %cst_20 = arith.constant -5.000000e-01 : f32
    %40 = vector.broadcast %cst_20 : f32 to vector<32x32xf32>
    %41 = arith.mulf %40, %38 : vector<32x32xf32>
    %42 = math.exp %41 : vector<32x32xf32>
    %43 = vector.broadcast %39 : f32 to vector<32x32xf32>
    %44 = arith.mulf %43, %42 : vector<32x32xf32>
    %c0_21 = arith.constant 0 : index
    %c0_22 = arith.constant 0 : index
    %45 = vector.load %arg9[%c0_21, %c0_22] : memref<32x32xf32, #tpu.memory_space<vmem>>, vector<32x32xf32>
    tpu.vector_store %arg9[%c0_21, %c0_22], %44 {strides = array<i32>} : memref<32x32xf32, #tpu.memory_space<vmem>>, vector<32x32xf32>,
    return
  }
  func.func @transform_0(%arg0: i32) -> (i32, i32) {
    %c0_i32 = arith.constant 0 : i32
    %c0_i32_0 = arith.constant 0 : i32
    %c0_i32_1 = arith.constant 0 : i32
    return %c0_i32, %c0_i32_0 : i32, i32
  }
  func.func @transform_1(%arg0: i32) -> (i32, i32) {
    %c0_i32 = arith.constant 0 : i32
    %c0_i32_0 = arith.constant 0 : i32
    %c0_i32_1 = arith.constant 0 : i32
    return %c0_i32, %c0_i32_0 : i32, i32
  }
  func.func @transform_2(%arg0: i32) -> (i32, i32) {
    %c0_i32 = arith.constant 0 : i32
    %c0_i32_0 = arith.constant 0 : i32
    %c0_i32_1 = arith.constant 0 : i32
    return %c0_i32, %c0_i32_0 : i32, i32
  }
  func.func @transform_3(%arg0: i32) -> (i32, i32) {
    %c0_i32 = arith.constant 0 : i32
    %c0_i32_0 = arith.constant 0 : i32
    %c0_i32_1 = arith.constant 0 : i32
    return %c0_i32, %c0_i32_0 : i32, i32
  }
  func.func @transform_4(%arg0: i32) -> (i32, i32) {
    %c0_i32 = arith.constant 0 : i32
    %c0_i32_0 = arith.constant 0 : i32
    %c0_i32_1 = arith.constant 0 : i32
    return %c0_i32, %c0_i32_0 : i32, i32
  }
  func.func @transform_5(%arg0: i32) -> (i32, i32) {
    %c0_i32 = arith.constant 0 : i32
    %c0_i32_0 = arith.constant 0 : i32
    %c0_i32_1 = arith.constant 0 : i32
    return %c0_i32, %c0_i32_0 : i32, i32
  }
  func.func @transform_6(%arg0: i32) -> i32 {
    %c0_i32 = arith.constant 0 : i32
    %c0_i32_0 = arith.constant 0 : i32
    return %c0_i32 : i32
  }
  func.func @transform_7(%arg0: i32) -> i32 {
    %c0_i32 = arith.constant 0 : i32
    %c0_i32_0 = arith.constant 0 : i32
    return %c0_i32 : i32
  }
  func.func @transform_8(%arg0: i32) -> (i32, i32) {
    %c0_i32 = arith.constant 0 : i32
    %c0_i32_0 = arith.constant 0 : i32
    %c0_i32_1 = arith.constant 0 : i32
    return %c0_i32, %c0_i32_0 : i32, i32
  }
}

</mosaic_0001>

<bundles_post_ra>
// kernel: tpu_custom_call.1
= control target key start
LH: loop header
LB: loop body
LE: loop exit
PB: predicated region body
PF: predicated region fallthrough
CT: control target
= control target key end

     0   :  { %15 = vsyncpa [#allocation5], 0  ;;  %s11783_s0 = inlined_call_operand.hbm [shape: bf16[32,1664], index: 0, kind: input, shape index: {}]   ;;  %s11784_s1 = inlined_call_operand.hbm [shape: bf16[1664,1024], index: 1, kind: input, shape index: {}]   ;;  %s11785_s2 = inlined_call_operand.hbm [shape: f32[1,1024], index: 2, kind: input, shape index: {}]   ;;  %s11786_s3 = inlined_call_operand.hbm [shape: bf16[1024,512], index: 3, kind: input, shape index: {}]   ;;  %s11787_s4 = inlined_call_operand.hbm [shape: f32[1,512], index: 4, kind: input, shape index: {}]   ;;  %s11788_s5 = inlined_call_operand.hbm [shape: f32[1,512], index: 5, kind: input, shape index: {}]   ;;  %s11789_s6 = inlined_call_operand.<no memory space> [shape: f32[1], index: 6, kind: input, shape index: {}]   ;;  %s11790_s7 = inlined_call_operand.<no memory space> [shape: f32[1], index: 7, kind: input, shape index: {}]   ;;  %s11791_s8 = inlined_call_operand.hbm [shape: f32[32,32], index: 8, kind: output, shape index: {}]  }
   0x1   :  { %16 = vsyncpa [#allocation8], 0 }
   0x2   :  { %17 = vsyncpa [#allocation11], 0 }
   0x3   :  { %18 = vsyncpa [#allocation14], 0 }
   0x4   :  { %19 = vsyncpa [#allocation6], 0  ;;  %s11042_s27 = smov [#allocation7]  }
   0x5   :  { %s37_s28 = sshll.u32 %s11042_s27, 4  ;;  %s38_s28 = int_to_ptr.vmem [resolvable:$true] %s37_s28 }
   0x6   :  { %s10900_s29 = scalar_lea.vmem %s38_s28, 106496  ;;  %p10905_p1 = scmp.lt.s32.totalorder %s38_s28, %s38_s28 }
   0x7   :  { %p10901_p0 = scmp.ne.s32.totalorder %s38_s28, %s10900_s29  ;;  %p10906_p2 = scmp.lt.s32.totalorder %s10900_s29, %s10900_s29 }
   0x9   :  { %p10907_p3 = por %p10906_p2, %p10905_p1 }
   0xb   :  { %p10908_p4 = pnand %p10907_p3, %p10901_p0 }
   0xd   :  { %10911 = shalt.err (!%p10908_p4)
}
   0xe   :  { %s11043_s30 = smov 512   ;;  %s11044_s9 = smov 32  }
   0xf   :  { %43 = dma.hbm_to_vmem [thread:$0]  %s11784_s1, 106496, %s38_s28, [#allocation8], %s11043_s30, %s11043_s30, %s11044_s9  }
  0x10   :  { %s11045_s12 = smov [#allocation10]  }
  0x11   :  { %s59_s13 = sshll.u32 %s11045_s12, 4  ;;  %s60_s13 = int_to_ptr.vmem [resolvable:$true] %s59_s13 }
  0x12   :  { %s10920_s14 = scalar_lea.vmem %s60_s13, 32768  ;;  %p10925_p6 = scmp.lt.s32.totalorder %s60_s13, %s60_s13 }
  0x13   :  { %p10921_p5 = scmp.ne.s32.totalorder %s60_s13, %s10920_s14  ;;  %p10926_p7 = scmp.lt.s32.totalorder %s10920_s14, %s10920_s14 }
  0x15   :  { %p10927_p8 = por %p10926_p7, %p10925_p6 }
  0x17   :  { %p10928_p9 = pnand %p10927_p8, %p10921_p5 }
  0x19   :  { %10931 = shalt.err (!%p10928_p9)
}
  0x1a   :  { %s11046_s15 = smov 256   ;;  %s11047_s16 = smov 16  }
  0x1b   :  { %65 = dma.hbm_to_vmem [thread:$0]  %s11786_s3, 32768, %s60_s13, [#allocation11], %s11046_s15, %s11046_s15, %s11047_s16  }
  0x1c   :  { %s11048_s19 = smov [#allocation4]  }
  0x1d   :  { %s25_s20 = sshll.u32 %s11048_s19, 4  ;;  %s26_s20 = int_to_ptr.vmem [resolvable:$true] %s25_s20 }
  0x1e   :  { %s10940_s1 = scalar_lea.vmem %s26_s20, 3328  ;;  %p10945_p11 = scmp.lt.s32.totalorder %s26_s20, %s26_s20 }
  0x1f   :  { %p10941_p10 = scmp.ne.s32.totalorder %s26_s20, %s10940_s1  ;;  %p10946_p12 = scmp.lt.s32.totalorder %s10940_s1, %s10940_s1 }
  0x21   :  { %p10947_p13 = por %p10946_p12, %p10945_p11 }
  0x23   :  { %p10948_p0 = pnand %p10947_p13, %p10941_p10 }
  0x25   :  { %10951 = shalt.err (!%p10948_p0)
}
  0x26   :  { %s11049_s21 = smov 832   ;;  %s11050_s22 = smov 52  }
  0x27   :  { %31 = dma.hbm_to_vmem [thread:$0]  %s11783_s0, 3328, %s26_s20, [#allocation5], %s11049_s21, %s11049_s21, %s11050_s22  }
  0x28   :  { %s11051_s25 = smov [#allocation9]   ;;  %s11052_s3 = smov [#allocation12]  }
  0x29   :  { %s50_s26 = sshll.u32 %s11051_s25, 4  ;;  %s72_s27 = sshll.u32 %s11052_s3, 4  ;;  %s51_s26 = int_to_ptr.vmem [resolvable:$true] %s50_s26  ;;  %s73_s27 = int_to_ptr.vmem [resolvable:$true] %s72_s27 }
  0x2a   :  { %s10960_s28 = scalar_lea.vmem %s51_s26, 128  ;;  %p10965_p2 = scmp.lt.s32.totalorder %s51_s26, %s51_s26 }
  0x2b   :  { %p10961_p1 = scmp.ne.s32.totalorder %s51_s26, %s10960_s28  ;;  %p10966_p3 = scmp.lt.s32.totalorder %s10960_s28, %s10960_s28 }
  0x2d   :  { %p10967_p4 = por %p10966_p3, %p10965_p2 }
  0x2f   :  { %p10968_p5 = pnand %p10967_p4, %p10961_p1 }
  0x31   :  { %10971 = shalt.err (!%p10968_p5)
}
  0x32   :  { %53 = dma.hbm_to_vmem [thread:$0]  %s11785_s2, 128, %s51_s26, [#allocation8]  }
  0x33   :  { %s10980_s9 = scalar_lea.vmem %s73_s27, 64  ;;  %p10985_p7 = scmp.lt.s32.totalorder %s73_s27, %s73_s27 }
  0x34   :  { %p10981_p6 = scmp.ne.s32.totalorder %s73_s27, %s10980_s9  ;;  %p10986_p8 = scmp.lt.s32.totalorder %s10980_s9, %s10980_s9 }
  0x36   :  { %p10987_p9 = por %p10986_p8, %p10985_p7 }
  0x38   :  { %p10988_p10 = pnand %p10987_p9, %p10981_p6 }
  0x3a   :  { %10991 = shalt.err (!%p10988_p10)
}
  0x3b   :  { %75 = dma.hbm_to_vmem [thread:$0]  %s11787_s4, 64, %s73_s27, [#allocation11]  }
  0x3c   :  { %s11053_s11 = smov [#allocation13]  }
  0x3d   :  { %s82_s12 = sshll.u32 %s11053_s11, 4  ;;  %s83_s12 = int_to_ptr.vmem [resolvable:$true] %s82_s12 }
  0x3e   :  { %s11000_s13 = scalar_lea.vmem %s83_s12, 64  ;;  %p11005_p12 = scmp.lt.s32.totalorder %s83_s12, %s83_s12 }
  0x3f   :  { %p11001_p11 = scmp.ne.s32.totalorder %s83_s12, %s11000_s13  ;;  %p11006_p13 = scmp.lt.s32.totalorder %s11000_s13, %s11000_s13 }
  0x41   :  { %p11007_p0 = por %p11006_p13, %p11005_p12 }
  0x43   :  { %p11008_p1 = pnand %p11007_p0, %p11001_p11 }
  0x45   :  { %11011 = shalt.err (!%p11008_p1)
}
  0x46   :  { %85 = dma.hbm_to_vmem [thread:$0]  %s11788_s5, 64, %s83_s12, [#allocation14]  }
  0x47   :  { %11032 = dma.done.wait [#allocation5], 3328  }
  0x48   :  { %11033 = vsyncadd [#allocation5], 4294963968 }
  0x49   :  { %11034 = dma.done.wait [#allocation8], 106624  }
  0x4a   :  { %11035 = vsyncadd [#allocation8], 4294860672 }
  0x4b   :  { %11036 = dma.done.wait [#allocation11], 32832  }
  0x4c   :  { %11037 = vsyncadd [#allocation11], 4294934464 }
  0x4d   :  { %11038 = dma.done.wait [#allocation14], 64  }
  0x4e   :  { %11039 = vsyncadd [#allocation14], 4294967232  ;;  %v193_v0 = vld [vmem:[#allocation7 + $0x1c0] sm:$0xff]  ;;  %v10372_v56 = vld [vmem:[#allocation4 + $0x4] ss:$52 sps:$4 sm:$0xff]   ;;  %s11055_s16 = smov [#allocation15]  }
  0x4f   :  { %v197_v1 = vld [vmem:[#allocation7 + $0x1e0] sm:$0xff]  ;;  %v10374_v59 = vld [vmem:[#allocation4 + $0xc] ss:$52 sps:$4 sm:$0xff]   ;;  %5335 = vmatprep.mubr.bf16.mxu0 %v10372_v56  ;;  %s9226_s17 = sshll.u32 %s11055_s16, 4  ;;  %s9227_s17 = int_to_ptr.vmem [resolvable:$true] %s9226_s17 }
  0x50   :  { %v321_v2 = vld [vmem:[#allocation7 + $0x5c0] sm:$0xff]  ;;  %v9324_v3 = vcombine.high %v193_v0, %v197_v1  ;;  %v9323_v5 = vcombine.low %v193_v0, %v197_v1  ;;  %5388 = vmatprep.mubr.bf16.mxu1 %v10374_v59  ;;  %s11012_s18 = scalar_lea.vmem %s9227_s17, 512  ;;  %p11017_p3 = scmp.lt.s32.totalorder %s9227_s17, %s9227_s17 }
  0x51   :  { %v325_v4 = vld [vmem:[#allocation7 + $0x5e0] sm:$0xff]  ;;  %p11013_p2 = scmp.ne.s32.totalorder %s9227_s17, %s11012_s18  ;;  %p11018_p4 = scmp.lt.s32.totalorder %s11012_s18, %s11012_s18 }
  0x52   :  { %v185_v6 = vld [vmem:[#allocation7 + $0x180] sm:$0xff]  ;;  %v9452_v8 = vcombine.high %v321_v2, %v325_v4  ;;  %v9451_v9 = vcombine.low %v321_v2, %v325_v4  ;;  %5303 = vmatprep.subr.bf16.mxu0 %v9324_v3 }
  0x53   :  { %v189_v7 = vld [vmem:[#allocation7 + $0x1a0] sm:$0xff]  ;;  %5304 = vmatpush1.bf16.msra.mxu0 %v9323_v5  ;;  %p11019_p5 = por %p11018_p4, %p11017_p3 }
  0x54   :  { %v9316_v10 = vcombine.high %v185_v6, %v189_v7  ;;  %v313_v11 = vld [vmem:[#allocation7 + $0x580] sm:$0xff]  ;;  %5356 = vmatprep.subr.bf16.mxu1 %v9452_v8  ;;  %v9315_v18 = vcombine.low %v185_v6, %v189_v7 }
  0x55   :  { %v317_v12 = vld [vmem:[#allocation7 + $0x5a0] sm:$0xff]  ;;  %5357 = vmatpush1.bf16.msra.mxu1 %v9451_v9  ;;  %p11020_p6 = pnand %p11019_p5, %p11013_p2 }
  0x56   :  { %v177_v13 = vld [vmem:[#allocation7 + $0x140] sm:$0xff]  ;;  %v9444_v14 = vcombine.high %v313_v11, %v317_v12  ;;  %5305 = vmatprep.subr.bf16.mxu0 %v9316_v10  ;;  %v9443_v19 = vcombine.low %v313_v11, %v317_v12 }
  0x57   :  { %v181_v15 = vld [vmem:[#allocation7 + $0x160] sm:$0xff]  ;;  %5306 = vmatpush1.bf16.msra.mxu0 %v9315_v18 }
  0x58   :  { %v305_v16 = vld [vmem:[#allocation7 + $0x540] sm:$0xff]  ;;  %v9308_v20 = vcombine.high %v177_v13, %v181_v15  ;;  %5358 = vmatprep.subr.bf16.mxu1 %v9444_v14  ;;  %v9307_v26 = vcombine.low %v177_v13, %v181_v15 }
  0x59   :  { %v309_v17 = vld [vmem:[#allocation7 + $0x560] sm:$0xff]  ;;  %5359 = vmatpush1.bf16.msra.mxu1 %v9443_v19 }
  0x5a   :  { %v9436_v21 = vcombine.high %v305_v16, %v309_v17  ;;  %v169_v22 = vld [vmem:[#allocation7 + $0x100] sm:$0xff]  ;;  %5307 = vmatprep.subr.bf16.mxu0 %v9308_v20  ;;  %v9435_v27 = vcombine.low %v305_v16, %v309_v17 }
  0x5b   :  { %v173_v23 = vld [vmem:[#allocation7 + $0x120] sm:$0xff]  ;;  %5308 = vmatpush1.bf16.msra.mxu0 %v9307_v26 }
  0x5c   :  { %v297_v24 = vld [vmem:[#allocation7 + $0x500] sm:$0xff]  ;;  %v9300_v28 = vcombine.high %v169_v22, %v173_v23  ;;  %5360 = vmatprep.subr.bf16.mxu1 %v9436_v21  ;;  %v9299_v34 = vcombine.low %v169_v22, %v173_v23 }
  0x5d   :  { %v301_v25 = vld [vmem:[#allocation7 + $0x520] sm:$0xff]  ;;  %5361 = vmatpush1.bf16.msra.mxu1 %v9435_v27 }
  0x5e   :  { %v9428_v29 = vcombine.high %v297_v24, %v301_v25  ;;  %v161_v30 = vld [vmem:[#allocation7 + $0xc0] sm:$0xff]  ;;  %5309 = vmatprep.subr.bf16.mxu0 %v9300_v28  ;;  %v9427_v35 = vcombine.low %v297_v24, %v301_v25 }
  0x5f   :  { %v165_v31 = vld [vmem:[#allocation7 + $0xe0] sm:$0xff]  ;;  %5310 = vmatpush1.bf16.msra.mxu0 %v9299_v34 }
  0x60   :  { %v289_v32 = vld [vmem:[#allocation7 + $0x4c0] sm:$0xff]  ;;  %v9292_v36 = vcombine.high %v161_v30, %v165_v31  ;;  %5362 = vmatprep.subr.bf16.mxu1 %v9428_v29  ;;  %v9291_v42 = vcombine.low %v161_v30, %v165_v31 }
  0x61   :  { %v293_v33 = vld [vmem:[#allocation7 + $0x4e0] sm:$0xff]  ;;  %5363 = vmatpush1.bf16.msra.mxu1 %v9427_v35 }
  0x62   :  { %v9420_v37 = vcombine.high %v289_v32, %v293_v33  ;;  %v153_v38 = vld [vmem:[#allocation7 + $0x80] sm:$0xff]  ;;  %5311 = vmatprep.subr.bf16.mxu0 %v9292_v36  ;;  %v9419_v43 = vcombine.low %v289_v32, %v293_v33 }
  0x63   :  { %v157_v39 = vld [vmem:[#allocation7 + $0xa0] sm:$0xff]  ;;  %5312 = vmatpush1.bf16.msra.mxu0 %v9291_v42 }
  0x64   :  { %v281_v40 = vld [vmem:[#allocation7 + $0x480] sm:$0xff]  ;;  %v9284_v44 = vcombine.high %v153_v38, %v157_v39  ;;  %5364 = vmatprep.subr.bf16.mxu1 %v9420_v37  ;;  %v9283_v50 = vcombine.low %v153_v38, %v157_v39 }
  0x65   :  { %v285_v41 = vld [vmem:[#allocation7 + $0x4a0] sm:$0xff]  ;;  %5365 = vmatpush1.bf16.msra.mxu1 %v9419_v43 }
  0x66   :  { %v9412_v45 = vcombine.high %v281_v40, %v285_v41  ;;  %v145_v46 = vld [vmem:[#allocation7 + $0x40] sm:$0xff]  ;;  %5313 = vmatprep.subr.bf16.mxu0 %v9284_v44  ;;  %v9411_v52 = vcombine.low %v281_v40, %v285_v41 }
  0x67   :  { %v149_v47 = vld [vmem:[#allocation7 + $0x60] sm:$0xff]  ;;  %5314 = vmatpush1.bf16.msra.mxu0 %v9283_v50 }
  0x68   :  { %v273_v48 = vld [vmem:[#allocation7 + $0x440] sm:$0xff]  ;;  %v9276_v53 = vcombine.high %v145_v46, %v149_v47  ;;  %5366 = vmatprep.subr.bf16.mxu1 %v9412_v45  ;;  %v9275_v60 = vcombine.low %v145_v46, %v149_v47 }
  0x69   :  { %v277_v49 = vld [vmem:[#allocation7 + $0x460] sm:$0xff]  ;;  %5367 = vmatpush1.bf16.msra.mxu1 %v9411_v52 }
  0x6a   :  { %v137_v51 = vld [vmem:[#allocation7] sm:$0xff]  ;;  %v9404_v55 = vcombine.high %v273_v48, %v277_v49  ;;  %5315 = vmatprep.subr.bf16.mxu0 %v9276_v53  ;;  %v9403_v61 = vcombine.low %v273_v48, %v277_v49 }
  0x6b   :  { %v141_v54 = vld [vmem:[#allocation7 + $0x20] sm:$0xff]  ;;  %5316 = vmatpush1.bf16.msra.mxu0 %v9275_v60 }
  0x6c   :  { %v265_v57 = vld [vmem:[#allocation7 + $0x400] sm:$0xff]  ;;  %v9268_v62 = vcombine.high %v137_v51, %v141_v54  ;;  %5368 = vmatprep.subr.bf16.mxu1 %v9404_v55  ;;  %v9267_v4 = vcombine.low %v137_v51, %v141_v54 }
  0x6d   :  { %v269_v58 = vld [vmem:[#allocation7 + $0x420] sm:$0xff]  ;;  %5369 = vmatpush1.bf16.msra.mxu1 %v9403_v61 }
  0x6e   :  { %v9396_v63 = vcombine.high %v265_v57, %v269_v58  ;;  %v257_v0 = vld [vmem:[#allocation7 + $0x3c0] sm:$0xff]  ;;  %5317 = vmatprep.subr.bf16.mxu0 %v9268_v62  ;;  %v9395_v5 = vcombine.low %v265_v57, %v269_v58 }
  0x6f   :  { %v261_v1 = vld [vmem:[#allocation7 + $0x3e0] sm:$0xff]  ;;  %5318 = vmatpush1.bf16.msra.mxu0 %v9267_v4 }
  0x70   :  { %v385_v2 = vld [vmem:[#allocation7 + $0x7c0] sm:$0xff]  ;;  %v9388_v6 = vcombine.high %v257_v0, %v261_v1  ;;  %5370 = vmatprep.subr.bf16.mxu1 %v9396_v63  ;;  %v9387_v12 = vcombine.low %v257_v0, %v261_v1 }
  0x71   :  { %v389_v3 = vld [vmem:[#allocation7 + $0x7e0] sm:$0xff]  ;;  %5371 = vmatpush1.bf16.msra.mxu1 %v9395_v5 }
  0x72   :  { %v9516_v7 = vcombine.high %v385_v2, %v389_v3  ;;  %v249_v8 = vld [vmem:[#allocation7 + $0x380] sm:$0xff]  ;;  %5319 = vmatprep.subr.bf16.mxu0 %v9388_v6  ;;  %v9515_v13 = vcombine.low %v385_v2, %v389_v3 }
  0x73   :  { %v253_v9 = vld [vmem:[#allocation7 + $0x3a0] sm:$0xff]  ;;  %5320 = vmatpush2.bf16.msra.mxu0 %v9387_v12 }
  0x74   :  { %v377_v10 = vld [vmem:[#allocation7 + $0x780] sm:$0xff]  ;;  %v9380_v14 = vcombine.high %v249_v8, %v253_v9  ;;  %5372 = vmatprep.subr.bf16.mxu1 %v9516_v7  ;;  %v9379_v20 = vcombine.low %v249_v8, %v253_v9 }
  0x75   :  { %v381_v11 = vld [vmem:[#allocation7 + $0x7a0] sm:$0xff]  ;;  %5373 = vmatpush2.bf16.msra.mxu1 %v9515_v13  ;;  %v10377_v13 = vld [vmem:[#allocation4 + $0x8] ss:$52 sps:$4 sm:$0xff]  }
  0x76   :  { %v9508_v15 = vcombine.high %v377_v10, %v381_v11  ;;  %v241_v16 = vld [vmem:[#allocation7 + $0x340] sm:$0xff]  ;;  %5321 = vmatprep.subr.bf16.mxu0 %v9380_v14  ;;  %v9507_v21 = vcombine.low %v377_v10, %v381_v11 }
  0x77   :  { %v245_v17 = vld [vmem:[#allocation7 + $0x360] sm:$0xff]  ;;  %5322 = vmatpush2.bf16.msra.mxu0 %v9379_v20  ;;  %v10378_v20 = vld [vmem:[#allocation4 + $0x6c] ss:$52 sps:$4 sm:$0xff]  }
  0x78   :  { %v369_v18 = vld [vmem:[#allocation7 + $0x740] sm:$0xff]  ;;  %v9372_v22 = vcombine.high %v241_v16, %v245_v17  ;;  %5374 = vmatprep.subr.bf16.mxu1 %v9508_v15  ;;  %v9371_v28 = vcombine.low %v241_v16, %v245_v17 }
  0x79   :  { %v373_v19 = vld [vmem:[#allocation7 + $0x760] sm:$0xff]  ;;  %5375 = vmatpush2.bf16.msra.mxu1 %v9507_v21 }
  0x7a   :  { %v9500_v23 = vcombine.high %v369_v18, %v373_v19  ;;  %v233_v24 = vld [vmem:[#allocation7 + $0x300] sm:$0xff]  ;;  %5323 = vmatprep.subr.bf16.mxu0 %v9372_v22  ;;  %v9499_v29 = vcombine.low %v369_v18, %v373_v19 }
  0x7b   :  { %v237_v25 = vld [vmem:[#allocation7 + $0x320] sm:$0xff]  ;;  %5324 = vmatpush2.bf16.msra.mxu0 %v9371_v28 }
  0x7c   :  { %v361_v26 = vld [vmem:[#allocation7 + $0x700] sm:$0xff]  ;;  %v9364_v30 = vcombine.high %v233_v24, %v237_v25  ;;  %5376 = vmatprep.subr.bf16.mxu1 %v9500_v23  ;;  %v9363_v36 = vcombine.low %v233_v24, %v237_v25 }
  0x7d   :  { %v365_v27 = vld [vmem:[#allocation7 + $0x720] sm:$0xff]  ;;  %5377 = vmatpush2.bf16.msra.mxu1 %v9499_v29 }
  0x7e   :  { %v9492_v31 = vcombine.high %v361_v26, %v365_v27  ;;  %v225_v32 = vld [vmem:[#allocation7 + $0x2c0] sm:$0xff]  ;;  %5325 = vmatprep.subr.bf16.mxu0 %v9364_v30  ;;  %v9491_v37 = vcombine.low %v361_v26, %v365_v27 }
  0x7f   :  { %v229_v33 = vld [vmem:[#allocation7 + $0x2e0] sm:$0xff]  ;;  %5326 = vmatpush2.bf16.msra.mxu0 %v9363_v36 }
  0x80   :  { %v353_v34 = vld [vmem:[#allocation7 + $0x6c0] sm:$0xff]  ;;  %v9356_v38 = vcombine.high %v225_v32, %v229_v33  ;;  %5378 = vmatprep.subr.bf16.mxu1 %v9492_v31  ;;  %v9355_v44 = vcombine.low %v225_v32, %v229_v33  ;;  %v10380_v32 = vld [vmem:[#allocation4 + $0x68] ss:$52 sps:$4 sm:$0xff]  }
  0x81   :  { %v357_v35 = vld [vmem:[#allocation7 + $0x6e0] sm:$0xff]  ;;  %5379 = vmatpush2.bf16.msra.mxu1 %v9491_v37 }
  0x82   :  { %v9484_v39 = vcombine.high %v353_v34, %v357_v35  ;;  %v217_v40 = vld [vmem:[#allocation7 + $0x280] sm:$0xff]  ;;  %5327 = vmatprep.subr.bf16.mxu0 %v9356_v38  ;;  %v9483_v45 = vcombine.low %v353_v34, %v357_v35 }
  0x83   :  { %v221_v41 = vld [vmem:[#allocation7 + $0x2a0] sm:$0xff]  ;;  %5328 = vmatpush2.bf16.msra.mxu0 %v9355_v44 }
  0x84   :  { %v345_v42 = vld [vmem:[#allocation7 + $0x680] sm:$0xff]  ;;  %v9348_v46 = vcombine.high %v217_v40, %v221_v41  ;;  %5380 = vmatprep.subr.bf16.mxu1 %v9484_v39  ;;  %v9347_v52 = vcombine.low %v217_v40, %v221_v41 }
  0x85   :  { %v349_v43 = vld [vmem:[#allocation7 + $0x6a0] sm:$0xff]  ;;  %5381 = vmatpush2.bf16.msra.mxu1 %v9483_v45 }
  0x86   :  { %v9476_v47 = vcombine.high %v345_v42, %v349_v43  ;;  %v209_v48 = vld [vmem:[#allocation7 + $0x240] sm:$0xff]  ;;  %5329 = vmatprep.subr.bf16.mxu0 %v9348_v46  ;;  %v9475_v53 = vcombine.low %v345_v42, %v349_v43 }
  0x87   :  { %v213_v49 = vld [vmem:[#allocation7 + $0x260] sm:$0xff]  ;;  %5330 = vmatpush2.bf16.msra.mxu0 %v9347_v52 }
  0x88   :  { %v337_v50 = vld [vmem:[#allocation7 + $0x640] sm:$0xff]  ;;  %v9340_v54 = vcombine.high %v209_v48, %v213_v49  ;;  %5382 = vmatprep.subr.bf16.mxu1 %v9476_v47  ;;  %v9339_v60 = vcombine.low %v209_v48, %v213_v49 }
  0x89   :  { %v341_v51 = vld [vmem:[#allocation7 + $0x660] sm:$0xff]  ;;  %5383 = vmatpush2.bf16.msra.mxu1 %v9475_v53 }
  0x8a   :  { %v9468_v55 = vcombine.high %v337_v50, %v341_v51  ;;  %v201_v56 = vld [vmem:[#allocation7 + $0x200] sm:$0xff]  ;;  %5331 = vmatprep.subr.bf16.mxu0 %v9340_v54  ;;  %v9467_v61 = vcombine.low %v337_v50, %v341_v51 }
  0x8b   :  { %v205_v57 = vld [vmem:[#allocation7 + $0x220] sm:$0xff]  ;;  %5332 = vmatpush2.bf16.msra.mxu0 %v9339_v60 }
  0x8c   :  { %v329_v58 = vld [vmem:[#allocation7 + $0x600] sm:$0xff]  ;;  %v9332_v62 = vcombine.high %v201_v56, %v205_v57  ;;  %5384 = vmatprep.subr.bf16.mxu1 %v9468_v55  ;;  %v9331_v4 = vcombine.low %v201_v56, %v205_v57 }
  0x8d   :  { %v333_v59 = vld [vmem:[#allocation7 + $0x620] sm:$0xff]  ;;  %5385 = vmatpush2.bf16.msra.mxu1 %v9467_v61 }
  0x8e   :  { %v9460_v63 = vcombine.high %v329_v58, %v333_v59  ;;  %v449_v0 = vld [vmem:[#allocation7 + $0x9c0] sm:$0xff]  ;;  %5333 = vmatprep.subr.bf16.mxu0 %v9332_v62  ;;  %v9459_v5 = vcombine.low %v329_v58, %v333_v59 }
  0x8f   :  { %v453_v1 = vld [vmem:[#allocation7 + $0x9e0] sm:$0xff]  ;;  %5334 = vmatpush2.bf16.msra.mxu0 %v9331_v4 }
  0x90   :  { %v577_v2 = vld [vmem:[#allocation7 + $0xdc0] sm:$0xff]  ;;  %v9580_v6 = vcombine.high %v449_v0, %v453_v1  ;;  %5386 = vmatprep.subr.bf16.mxu1 %v9460_v63  ;;  %v9579_v14 = vcombine.low %v449_v0, %v453_v1 }
  0x91   :  { %v581_v3 = vld [vmem:[#allocation7 + $0xde0] sm:$0xff]  ;;  %5387 = vmatpush2.bf16.msra.mxu1 %v9459_v5 }
  0x92   :  { %v9708_v7 = vcombine.high %v577_v2, %v581_v3  ;;  %v441_v8 = vld [vmem:[#allocation7 + $0x980] sm:$0xff]  ;;  %5409 = vmatprep.subr.bf16.mxu0 %v9580_v6  ;;  %v9707_v15 = vcombine.low %v577_v2, %v581_v3 }
  0x93   :  { %v445_v9 = vld [vmem:[#allocation7 + $0x9a0] sm:$0xff] }
  0x94   :  { %v10376_v10 = vld [vmem:[#allocation4] ss:$52 sps:$4 sm:$0xff]   ;;  %v9572_v16 = vcombine.high %v441_v8, %v445_v9  ;;  %5462 = vmatprep.subr.bf16.mxu1 %v9708_v7  ;;  %5389 = vmatmul.mubr.bf16.vlgmr.msra.gmra.mxu1 %v10377_v13  ;;  %v9571_v24 = vcombine.low %v441_v8, %v445_v9  ;;  %v10383_v34 = vld [vmem:[#allocation4 + $0x70] ss:$52 sps:$4 sm:$0xff]  }
  0x95   :  { %v569_v11 = vld [vmem:[#allocation7 + $0xd80] sm:$0xff]  ;;  %5336 = vmatmul.mubr.bf16.vlgmr.msra.gmra.mxu0 %v10376_v10  ;;  %5463 = vmatpush1.bf16.msra.mxu1 %v9707_v15 }
  0x96   :  { %v573_v12 = vld [vmem:[#allocation7 + $0xda0] sm:$0xff]  ;;  %5410 = vmatpush1.bf16.msra.mxu0 %v9579_v14  ;;  %5345 = vmatprep.mubr.bf16.mxu0 %v10378_v20 }
  0x97   :  { %v9700_v17 = vcombine.high %v569_v11, %v573_v12  ;;  %v433_v18 = vld [vmem:[#allocation7 + $0x940] sm:$0xff]  ;;  %5411 = vmatprep.subr.bf16.mxu0 %v9572_v16  ;;  %v9699_v25 = vcombine.low %v569_v11, %v573_v12 }
  0x98   :  { %v437_v19 = vld [vmem:[#allocation7 + $0x960] sm:$0xff] }
  0x99   :  { %v561_v21 = vld [vmem:[#allocation7 + $0xd40] sm:$0xff]  ;;  %v9564_v26 = vcombine.high %v433_v18, %v437_v19  ;;  %5464 = vmatprep.subr.bf16.mxu1 %v9700_v17  ;;  %v9563_v33 = vcombine.low %v433_v18, %v437_v19 }
  0x9a   :  { %v565_v22 = vld [vmem:[#allocation7 + $0xd60] sm:$0xff]  ;;  %5412 = vmatpush1.bf16.msra.mxu0 %v9571_v24  ;;  %5465 = vmatpush1.bf16.msra.mxu1 %v9699_v25 }
  0x9b   :  { %v10381_v23 = vld [vmem:[#allocation4 + $0x74] ss:$52 sps:$4 sm:$0xff]   ;;  %v9692_v27 = vcombine.high %v561_v21, %v565_v22  ;;  %5413 = vmatprep.subr.bf16.mxu0 %v9564_v26  ;;  %v9691_v35 = vcombine.low %v561_v21, %v565_v22  ;;  %v10389_v43 = vld [vmem:[#allocation4 + $0x1c] ss:$52 sps:$4 sm:$0xff]  }
  0x9c   :  { %v425_v28 = vld [vmem:[#allocation7 + $0x900] sm:$0xff]  ;;  %5398 = vmatprep.mubr.bf16.mxu1 %v10381_v23 }
  0x9d   :  { %v429_v29 = vld [vmem:[#allocation7 + $0x920] sm:$0xff]  ;;  %5466 = vmatprep.subr.bf16.mxu1 %v9692_v27  ;;  %5346 = vmatmul.mubr.bf16.gmra.mxu0 %v10380_v32 }
  0x9e   :  { %v553_v30 = vld [vmem:[#allocation7 + $0xd00] sm:$0xff]  ;;  %v9556_v36 = vcombine.high %v425_v28, %v429_v29  ;;  %5414 = vmatpush1.bf16.msra.mxu0 %v9563_v33  ;;  %v9555_v44 = vcombine.low %v425_v28, %v429_v29  ;;  %5399 = vmatmul.mubr.bf16.gmra.mxu1 %v10383_v34 }
  0x9f   :  { %v557_v31 = vld [vmem:[#allocation7 + $0xd20] sm:$0xff]  ;;  %5467 = vmatpush1.bf16.msra.mxu1 %v9691_v35  ;;  %5494 = vmatprep.mubr.bf16.mxu1 %v10389_v43 }
  0xa0   :  { %v417_v37 = vld [vmem:[#allocation7 + $0x8c0] sm:$0xff]  ;;  %v9684_v39 = vcombine.high %v553_v30, %v557_v31  ;;  %5415 = vmatprep.subr.bf16.mxu0 %v9556_v36  ;;  %v9683_v45 = vcombine.low %v553_v30, %v557_v31 }
  0xa1   :  { %v421_v38 = vld [vmem:[#allocation7 + $0x8e0] sm:$0xff] }
  0xa2   :  { %v545_v40 = vld [vmem:[#allocation7 + $0xcc0] sm:$0xff]  ;;  %v9548_v46 = vcombine.high %v417_v37, %v421_v38  ;;  %5468 = vmatprep.subr.bf16.mxu1 %v9684_v39  ;;  %5416 = vmatpush1.bf16.msra.mxu0 %v9555_v44  ;;  %v9547_v52 = vcombine.low %v417_v37, %v421_v38 }
  0xa3   :  { %v10386_v41 = vld [vmem:[#allocation4 + $0x14] ss:$52 sps:$4 sm:$0xff]   ;;  %5469 = vmatpush1.bf16.msra.mxu1 %v9683_v45 }
  0xa4   :  { %v549_v42 = vld [vmem:[#allocation7 + $0xce0] sm:$0xff]  ;;  %5441 = vmatprep.mubr.bf16.mxu0 %v10386_v41  ;;  %5417 = vmatprep.subr.bf16.mxu0 %v9548_v46 }
  0xa5   :  { %v9676_v47 = vcombine.high %v545_v40, %v549_v42  ;;  %v409_v48 = vld [vmem:[#allocation7 + $0x880] sm:$0xff]  ;;  %v9675_v53 = vcombine.low %v545_v40, %v549_v42 }
  0xa6   :  { %v413_v49 = vld [vmem:[#allocation7 + $0x8a0] sm:$0xff]  ;;  %5418 = vmatpush1.bf16.msra.mxu0 %v9547_v52 }
  0xa7   :  { %v537_v50 = vld [vmem:[#allocation7 + $0xc80] sm:$0xff]  ;;  %v9540_v54 = vcombine.high %v409_v48, %v413_v49  ;;  %5470 = vmatprep.subr.bf16.mxu1 %v9676_v47  ;;  %v9539_v60 = vcombine.low %v409_v48, %v413_v49 }
  0xa8   :  { %v541_v51 = vld [vmem:[#allocation7 + $0xca0] sm:$0xff]  ;;  %5471 = vmatpush1.bf16.msra.mxu1 %v9675_v53 }
  0xa9   :  { %v9668_v55 = vcombine.high %v537_v50, %v541_v51  ;;  %v401_v56 = vld [vmem:[#allocation7 + $0x840] sm:$0xff]  ;;  %5419 = vmatprep.subr.bf16.mxu0 %v9540_v54  ;;  %v9667_v61 = vcombine.low %v537_v50, %v541_v51 }
  0xaa   :  { %v405_v57 = vld [vmem:[#allocation7 + $0x860] sm:$0xff]  ;;  %5420 = vmatpush1.bf16.msra.mxu0 %v9539_v60 }
  0xab   :  { %v529_v58 = vld [vmem:[#allocation7 + $0xc40] sm:$0xff]  ;;  %v9532_v62 = vcombine.high %v401_v56, %v405_v57  ;;  %5472 = vmatprep.subr.bf16.mxu1 %v9668_v55  ;;  %v9531_v4 = vcombine.low %v401_v56, %v405_v57 }
  0xac   :  { %v533_v59 = vld [vmem:[#allocation7 + $0xc60] sm:$0xff]  ;;  %5473 = vmatpush1.bf16.msra.mxu1 %v9667_v61 }
  0xad   :  { %v9660_v63 = vcombine.high %v529_v58, %v533_v59  ;;  %v393_v0 = vld [vmem:[#allocation7 + $0x800] sm:$0xff]  ;;  %5421 = vmatprep.subr.bf16.mxu0 %v9532_v62  ;;  %v9659_v5 = vcombine.low %v529_v58, %v533_v59 }
  0xae   :  { %v397_v1 = vld [vmem:[#allocation7 + $0x820] sm:$0xff]  ;;  %5422 = vmatpush1.bf16.msra.mxu0 %v9531_v4 }
  0xaf   :  { %v521_v2 = vld [vmem:[#allocation7 + $0xc00] sm:$0xff]  ;;  %v9524_v6 = vcombine.high %v393_v0, %v397_v1  ;;  %5474 = vmatprep.subr.bf16.mxu1 %v9660_v63  ;;  %v9523_v12 = vcombine.low %v393_v0, %v397_v1 }
  0xb0   :  { %v525_v3 = vld [vmem:[#allocation7 + $0xc20] sm:$0xff]  ;;  %5475 = vmatpush1.bf16.msra.mxu1 %v9659_v5 }
  0xb1   :  { %v513_v7 = vld [vmem:[#allocation7 + $0xbc0] sm:$0xff]  ;;  %v9652_v10 = vcombine.high %v521_v2, %v525_v3  ;;  %5423 = vmatprep.subr.bf16.mxu0 %v9524_v6  ;;  %v9651_v13 = vcombine.low %v521_v2, %v525_v3 }
  0xb2   :  { %v517_v8 = vld [vmem:[#allocation7 + $0xbe0] sm:$0xff]  ;;  %5424 = vmatpush1.bf16.msra.mxu0 %v9523_v12 }
  0xb3   :  { %v641_v9 = vld [vmem:[#allocation7 + $0xfc0] sm:$0xff]  ;;  %v9644_v14 = vcombine.high %v513_v7, %v517_v8  ;;  %5476 = vmatprep.subr.bf16.mxu1 %v9652_v10  ;;  %v9643_v20 = vcombine.low %v513_v7, %v517_v8 }
  0xb4   :  { %v645_v11 = vld [vmem:[#allocation7 + $0xfe0] sm:$0xff]  ;;  %5477 = vmatpush1.bf16.msra.mxu1 %v9651_v13 }
  0xb5   :  { %v505_v15 = vld [vmem:[#allocation7 + $0xb80] sm:$0xff]  ;;  %v9772_v18 = vcombine.high %v641_v9, %v645_v11  ;;  %5425 = vmatprep.subr.bf16.mxu0 %v9644_v14  ;;  %v9771_v21 = vcombine.low %v641_v9, %v645_v11 }
  0xb6   :  { %v509_v16 = vld [vmem:[#allocation7 + $0xba0] sm:$0xff]  ;;  %5426 = vmatpush2.bf16.msra.mxu0 %v9643_v20 }
  0xb7   :  { %v633_v17 = vld [vmem:[#allocation7 + $0xf80] sm:$0xff]  ;;  %v9636_v22 = vcombine.high %v505_v15, %v509_v16  ;;  %5478 = vmatprep.subr.bf16.mxu1 %v9772_v18  ;;  %v9635_v28 = vcombine.low %v505_v15, %v509_v16 }
  0xb8   :  { %v637_v19 = vld [vmem:[#allocation7 + $0xfa0] sm:$0xff]  ;;  %5479 = vmatpush2.bf16.msra.mxu1 %v9771_v21 }
  0xb9   :  { %v497_v23 = vld [vmem:[#allocation7 + $0xb40] sm:$0xff]  ;;  %v9764_v25 = vcombine.high %v633_v17, %v637_v19  ;;  %5427 = vmatprep.subr.bf16.mxu0 %v9636_v22  ;;  %v9763_v29 = vcombine.low %v633_v17, %v637_v19  ;;  %v10387_v19 = vld [vmem:[#allocation4 + $0x18] ss:$52 sps:$4 sm:$0xff]  }
  0xba   :  { %v501_v24 = vld [vmem:[#allocation7 + $0xb60] sm:$0xff]  ;;  %5428 = vmatpush2.bf16.msra.mxu0 %v9635_v28 }
  0xbb   :  { %v625_v26 = vld [vmem:[#allocation7 + $0xf40] sm:$0xff]  ;;  %v9628_v30 = vcombine.high %v497_v23, %v501_v24  ;;  %5480 = vmatprep.subr.bf16.mxu1 %v9764_v25  ;;  %v9627_v36 = vcombine.low %v497_v23, %v501_v24 }
  0xbc   :  { %v629_v27 = vld [vmem:[#allocation7 + $0xf60] sm:$0xff]  ;;  %5481 = vmatpush2.bf16.msra.mxu1 %v9763_v29 }
  0xbd   :  { %v489_v31 = vld [vmem:[#allocation7 + $0xb00] sm:$0xff]  ;;  %v9756_v34 = vcombine.high %v625_v26, %v629_v27  ;;  %5429 = vmatprep.subr.bf16.mxu0 %v9628_v30  ;;  %v9755_v37 = vcombine.low %v625_v26, %v629_v27 }
  0xbe   :  { %v493_v32 = vld [vmem:[#allocation7 + $0xb20] sm:$0xff]  ;;  %5430 = vmatpush2.bf16.msra.mxu0 %v9627_v36 }
  0xbf   :  { %v617_v33 = vld [vmem:[#allocation7 + $0xf00] sm:$0xff]  ;;  %v9620_v38 = vcombine.high %v489_v31, %v493_v32  ;;  %5482 = vmatprep.subr.bf16.mxu1 %v9756_v34  ;;  %v9619_v44 = vcombine.low %v489_v31, %v493_v32  ;;  %v10393_v31 = vld [vmem:[#allocation4 + $0x84] ss:$52 sps:$4 sm:$0xff]  }
  0xc0   :  { %v621_v35 = vld [vmem:[#allocation7 + $0xf20] sm:$0xff]  ;;  %5483 = vmatpush2.bf16.msra.mxu1 %v9755_v37  ;;  %v10392_v34 = vld [vmem:[#allocation4 + $0x78] ss:$52 sps:$4 sm:$0xff]  }
  0xc1   :  { %v481_v39 = vld [vmem:[#allocation7 + $0xac0] sm:$0xff]  ;;  %v9748_v41 = vcombine.high %v617_v33, %v621_v35  ;;  %5431 = vmatprep.subr.bf16.mxu0 %v9620_v38  ;;  %v9747_v45 = vcombine.low %v617_v33, %v621_v35 }
  0xc2   :  { %v485_v40 = vld [vmem:[#allocation7 + $0xae0] sm:$0xff]  ;;  %5432 = vmatpush2.bf16.msra.mxu0 %v9619_v44 }
  0xc3   :  { %v609_v42 = vld [vmem:[#allocation7 + $0xec0] sm:$0xff]  ;;  %v9612_v46 = vcombine.high %v481_v39, %v485_v40  ;;  %5484 = vmatprep.subr.bf16.mxu1 %v9748_v41  ;;  %v9611_v52 = vcombine.low %v481_v39, %v485_v40 }
  0xc4   :  { %v613_v43 = vld [vmem:[#allocation7 + $0xee0] sm:$0xff]  ;;  %5485 = vmatpush2.bf16.msra.mxu1 %v9747_v45 }
  0xc5   :  { %v473_v47 = vld [vmem:[#allocation7 + $0xa80] sm:$0xff]  ;;  %v9740_v50 = vcombine.high %v609_v42, %v613_v43  ;;  %5433 = vmatprep.subr.bf16.mxu0 %v9612_v46  ;;  %v9739_v53 = vcombine.low %v609_v42, %v613_v43 }
  0xc6   :  { %v477_v48 = vld [vmem:[#allocation7 + $0xaa0] sm:$0xff]  ;;  %5434 = vmatpush2.bf16.msra.mxu0 %v9611_v52 }
  0xc7   :  { %v601_v49 = vld [vmem:[#allocation7 + $0xe80] sm:$0xff]  ;;  %v9604_v54 = vcombine.high %v473_v47, %v477_v48  ;;  %5486 = vmatprep.subr.bf16.mxu1 %v9740_v50  ;;  %v9603_v60 = vcombine.low %v473_v47, %v477_v48 }
  0xc8   :  { %v605_v51 = vld [vmem:[#allocation7 + $0xea0] sm:$0xff]  ;;  %5487 = vmatpush2.bf16.msra.mxu1 %v9739_v53 }
  0xc9   :  { %v465_v55 = vld [vmem:[#allocation7 + $0xa40] sm:$0xff]  ;;  %v9732_v58 = vcombine.high %v601_v49, %v605_v51  ;;  %5435 = vmatprep.subr.bf16.mxu0 %v9604_v54  ;;  %v9731_v61 = vcombine.low %v601_v49, %v605_v51  ;;  %v10398_v49 = vld [vmem:[#allocation4 + $0x24] ss:$52 sps:$4 sm:$0xff]   ;;  %v10401_v51 = vld [vmem:[#allocation4 + $0x2c] ss:$52 sps:$4 sm:$0xff]  }
  0xca   :  { %v469_v56 = vld [vmem:[#allocation7 + $0xa60] sm:$0xff]  ;;  %5436 = vmatpush2.bf16.msra.mxu0 %v9603_v60 }
  0xcb   :  { %v593_v57 = vld [vmem:[#allocation7 + $0xe40] sm:$0xff]  ;;  %v9596_v62 = vcombine.high %v465_v55, %v469_v56  ;;  %5488 = vmatprep.subr.bf16.mxu1 %v9732_v58  ;;  %v9595_v4 = vcombine.low %v465_v55, %v469_v56 }
  0xcc   :  { %v597_v59 = vld [vmem:[#allocation7 + $0xe60] sm:$0xff]  ;;  %5489 = vmatpush2.bf16.msra.mxu1 %v9731_v61 }
  0xcd   :  { %v457_v63 = vld [vmem:[#allocation7 + $0xa00] sm:$0xff]  ;;  %v9724_v2 = vcombine.high %v593_v57, %v597_v59  ;;  %5437 = vmatprep.subr.bf16.mxu0 %v9596_v62  ;;  %v9723_v5 = vcombine.low %v593_v57, %v597_v59 }
  0xce   :  { %v461_v0 = vld [vmem:[#allocation7 + $0xa20] sm:$0xff]  ;;  %5438 = vmatpush2.bf16.msra.mxu0 %v9595_v4 }
  0xcf   :  { %v585_v1 = vld [vmem:[#allocation7 + $0xe00] sm:$0xff]  ;;  %v9588_v6 = vcombine.high %v457_v63, %v461_v0  ;;  %5490 = vmatprep.subr.bf16.mxu1 %v9724_v2  ;;  %v9587_v12 = vcombine.low %v457_v63, %v461_v0 }
  0xd0   :  { %v589_v3 = vld [vmem:[#allocation7 + $0xe20] sm:$0xff]  ;;  %5491 = vmatpush2.bf16.msra.mxu1 %v9723_v5 }
  0xd1   :  { %v705_v7 = vld [vmem:[#allocation7 + $0x11c0] sm:$0xff]  ;;  %v9716_v10 = vcombine.high %v585_v1, %v589_v3  ;;  %5439 = vmatprep.subr.bf16.mxu0 %v9588_v6  ;;  %v9715_v13 = vcombine.low %v585_v1, %v589_v3 }
  0xd2   :  { %v709_v8 = vld [vmem:[#allocation7 + $0x11e0] sm:$0xff]  ;;  %5440 = vmatpush2.bf16.msra.mxu0 %v9587_v12 }
  0xd3   :  { %v833_v9 = vld [vmem:[#allocation7 + $0x15c0] sm:$0xff]  ;;  %v9836_v15 = vcombine.high %v705_v7, %v709_v8  ;;  %5492 = vmatprep.subr.bf16.mxu1 %v9716_v10  ;;  %v9835_v22 = vcombine.low %v705_v7, %v709_v8 }
  0xd4   :  { %v837_v11 = vld [vmem:[#allocation7 + $0x15e0] sm:$0xff]  ;;  %5493 = vmatpush2.bf16.msra.mxu1 %v9715_v13 }
  0xd5   :  { %v10384_v14 = vld [vmem:[#allocation4 + $0x10] ss:$52 sps:$4 sm:$0xff]   ;;  %v9964_v20 = vcombine.high %v833_v9, %v837_v11  ;;  %5515 = vmatprep.subr.bf16.mxu0 %v9836_v15  ;;  %v9963_v24 = vcombine.low %v833_v9, %v837_v11  ;;  %v10395_v39 = vld [vmem:[#allocation4 + $0x80] ss:$52 sps:$4 sm:$0xff]  }
  0xd6   :  { %v697_v16 = vld [vmem:[#allocation7 + $0x1180] sm:$0xff]  ;;  %5442 = vmatmul.mubr.bf16.vlgmr.msra.gmra.mxu0 %v10384_v14 }
  0xd7   :  { %v701_v17 = vld [vmem:[#allocation7 + $0x11a0] sm:$0xff]  ;;  %5568 = vmatprep.subr.bf16.mxu1 %v9964_v20  ;;  %5495 = vmatmul.mubr.bf16.vlgmr.msra.gmra.mxu1 %v10387_v19 }
  0xd8   :  { %v825_v18 = vld [vmem:[#allocation7 + $0x1580] sm:$0xff]  ;;  %v9828_v25 = vcombine.high %v697_v16, %v701_v17  ;;  %5516 = vmatpush1.bf16.msra.mxu0 %v9835_v22  ;;  %v9827_v32 = vcombine.low %v697_v16, %v701_v17  ;;  %5569 = vmatpush1.bf16.msra.mxu1 %v9963_v24 }
  0xd9   :  { %v829_v21 = vld [vmem:[#allocation7 + $0x15a0] sm:$0xff]  ;;  %5504 = vmatprep.mubr.bf16.mxu1 %v10393_v31 }
  0xda   :  { %v10390_v23 = vld [vmem:[#allocation4 + $0x7c] ss:$52 sps:$4 sm:$0xff]   ;;  %v9956_v29 = vcombine.high %v825_v18, %v829_v21  ;;  %5517 = vmatprep.subr.bf16.mxu0 %v9828_v25  ;;  %v9955_v33 = vcombine.low %v825_v18, %v829_v21 }
  0xdb   :  { %v689_v26 = vld [vmem:[#allocation7 + $0x1140] sm:$0xff]  ;;  %5451 = vmatprep.mubr.bf16.mxu0 %v10390_v23 }
  0xdc   :  { %v693_v27 = vld [vmem:[#allocation7 + $0x1160] sm:$0xff]  ;;  %5570 = vmatprep.subr.bf16.mxu1 %v9956_v29  ;;  %5518 = vmatpush1.bf16.msra.mxu0 %v9827_v32 }
  0xdd   :  { %v817_v28 = vld [vmem:[#allocation7 + $0x1540] sm:$0xff]  ;;  %v9820_v35 = vcombine.high %v689_v26, %v693_v27  ;;  %v9819_v42 = vcombine.low %v689_v26, %v693_v27  ;;  %5571 = vmatpush1.bf16.msra.mxu1 %v9955_v33 }
  0xde   :  { %v821_v30 = vld [vmem:[#allocation7 + $0x1560] sm:$0xff]  ;;  %5452 = vmatmul.mubr.bf16.gmra.mxu0 %v10392_v34 }
  0xdf   :  { %v681_v36 = vld [vmem:[#allocation7 + $0x1100] sm:$0xff]  ;;  %v9948_v38 = vcombine.high %v817_v28, %v821_v30  ;;  %5519 = vmatprep.subr.bf16.mxu0 %v9820_v35  ;;  %v9947_v45 = vcombine.low %v817_v28, %v821_v30  ;;  %5505 = vmatmul.mubr.bf16.gmra.mxu1 %v10395_v39 }
  0xe0   :  { %v685_v37 = vld [vmem:[#allocation7 + $0x1120] sm:$0xff]  ;;  %5520 = vmatpush1.bf16.msra.mxu0 %v9819_v42  ;;  %5547 = vmatprep.mubr.bf16.mxu0 %v10398_v49 }
  0xe1   :  { %v809_v40 = vld [vmem:[#allocation7 + $0x1500] sm:$0xff]  ;;  %v9812_v46 = vcombine.high %v681_v36, %v685_v37  ;;  %5572 = vmatprep.subr.bf16.mxu1 %v9948_v38  ;;  %v9811_v52 = vcombine.low %v681_v36, %v685_v37  ;;  %5600 = vmatprep.mubr.bf16.mxu1 %v10401_v51 }
  0xe2   :  { %v813_v41 = vld [vmem:[#allocation7 + $0x1520] sm:$0xff]  ;;  %5573 = vmatpush1.bf16.msra.mxu1 %v9947_v45 }
  0xe3   :  { %v673_v43 = vld [vmem:[#allocation7 + $0x10c0] sm:$0xff]  ;;  %v9940_v50 = vcombine.high %v809_v40, %v813_v41  ;;  %5521 = vmatprep.subr.bf16.mxu0 %v9812_v46  ;;  %v9939_v53 = vcombine.low %v809_v40, %v813_v41 }
  0xe4   :  { %v677_v44 = vld [vmem:[#allocation7 + $0x10e0] sm:$0xff]  ;;  %5522 = vmatpush1.bf16.msra.mxu0 %v9811_v52 }
  0xe5   :  { %v801_v47 = vld [vmem:[#allocation7 + $0x14c0] sm:$0xff]  ;;  %v9804_v54 = vcombine.high %v673_v43, %v677_v44  ;;  %5574 = vmatprep.subr.bf16.mxu1 %v9940_v50  ;;  %v9803_v60 = vcombine.low %v673_v43, %v677_v44 }
  0xe6   :  { %v805_v48 = vld [vmem:[#allocation7 + $0x14e0] sm:$0xff]  ;;  %5575 = vmatpush1.bf16.msra.mxu1 %v9939_v53 }
  0xe7   :  { %v665_v55 = vld [vmem:[#allocation7 + $0x1080] sm:$0xff]  ;;  %v9932_v58 = vcombine.high %v801_v47, %v805_v48  ;;  %5523 = vmatprep.subr.bf16.mxu0 %v9804_v54  ;;  %v9931_v61 = vcombine.low %v801_v47, %v805_v48 }
  0xe8   :  { %v669_v56 = vld [vmem:[#allocation7 + $0x10a0] sm:$0xff]  ;;  %5524 = vmatpush1.bf16.msra.mxu0 %v9803_v60 }
  0xe9   :  { %v793_v57 = vld [vmem:[#allocation7 + $0x1480] sm:$0xff]  ;;  %v9796_v62 = vcombine.high %v665_v55, %v669_v56  ;;  %5576 = vmatprep.subr.bf16.mxu1 %v9932_v58  ;;  %v9795_v4 = vcombine.low %v665_v55, %v669_v56 }
  0xea   :  { %v797_v59 = vld [vmem:[#allocation7 + $0x14a0] sm:$0xff]  ;;  %5577 = vmatpush1.bf16.msra.mxu1 %v9931_v61 }
  0xeb   :  { %v657_v63 = vld [vmem:[#allocation7 + $0x1040] sm:$0xff]  ;;  %v9924_v2 = vcombine.high %v793_v57, %v797_v59  ;;  %5525 = vmatprep.subr.bf16.mxu0 %v9796_v62  ;;  %v9923_v5 = vcombine.low %v793_v57, %v797_v59 }
  0xec   :  { %v661_v0 = vld [vmem:[#allocation7 + $0x1060] sm:$0xff]  ;;  %5526 = vmatpush1.bf16.msra.mxu0 %v9795_v4 }
  0xed   :  { %v785_v1 = vld [vmem:[#allocation7 + $0x1440] sm:$0xff]  ;;  %v9788_v6 = vcombine.high %v657_v63, %v661_v0  ;;  %5578 = vmatprep.subr.bf16.mxu1 %v9924_v2  ;;  %v9787_v12 = vcombine.low %v657_v63, %v661_v0 }
  0xee   :  { %v789_v3 = vld [vmem:[#allocation7 + $0x1460] sm:$0xff]  ;;  %5579 = vmatpush1.bf16.msra.mxu1 %v9923_v5 }
  0xef   :  { %v649_v7 = vld [vmem:[#allocation7 + $0x1000] sm:$0xff]  ;;  %v9916_v10 = vcombine.high %v785_v1, %v789_v3  ;;  %5527 = vmatprep.subr.bf16.mxu0 %v9788_v6  ;;  %v9915_v13 = vcombine.low %v785_v1, %v789_v3 }
  0xf0   :  { %v653_v8 = vld [vmem:[#allocation7 + $0x1020] sm:$0xff]  ;;  %5528 = vmatpush1.bf16.msra.mxu0 %v9787_v12 }
  0xf1   :  { %v777_v9 = vld [vmem:[#allocation7 + $0x1400] sm:$0xff]  ;;  %v9780_v14 = vcombine.high %v649_v7, %v653_v8  ;;  %5580 = vmatprep.subr.bf16.mxu1 %v9916_v10  ;;  %v9779_v20 = vcombine.low %v649_v7, %v653_v8 }
  0xf2   :  { %v781_v11 = vld [vmem:[#allocation7 + $0x1420] sm:$0xff]  ;;  %5581 = vmatpush1.bf16.msra.mxu1 %v9915_v13 }
  0xf3   :  { %v769_v15 = vld [vmem:[#allocation7 + $0x13c0] sm:$0xff]  ;;  %v9908_v18 = vcombine.high %v777_v9, %v781_v11  ;;  %5529 = vmatprep.subr.bf16.mxu0 %v9780_v14  ;;  %v9907_v21 = vcombine.low %v777_v9, %v781_v11 }
  0xf4   :  { %v773_v16 = vld [vmem:[#allocation7 + $0x13e0] sm:$0xff]  ;;  %5530 = vmatpush1.bf16.msra.mxu0 %v9779_v20 }
  0xf5   :  { %v897_v17 = vld [vmem:[#allocation7 + $0x17c0] sm:$0xff]  ;;  %v9900_v22 = vcombine.high %v769_v15, %v773_v16  ;;  %5582 = vmatprep.subr.bf16.mxu1 %v9908_v18  ;;  %v9899_v28 = vcombine.low %v769_v15, %v773_v16 }
  0xf6   :  { %v901_v19 = vld [vmem:[#allocation7 + $0x17e0] sm:$0xff]  ;;  %5583 = vmatpush1.bf16.msra.mxu1 %v9907_v21 }
  0xf7   :  { %v761_v23 = vld [vmem:[#allocation7 + $0x1380] sm:$0xff]  ;;  %v10028_v26 = vcombine.high %v897_v17, %v901_v19  ;;  %5531 = vmatprep.subr.bf16.mxu0 %v9900_v22  ;;  %v10027_v29 = vcombine.low %v897_v17, %v901_v19  ;;  %v194_v17 = vld [vmem:[#allocation7 + $0x1c8] sm:$0xff] }
  0xf8   :  { %v765_v24 = vld [vmem:[#allocation7 + $0x13a0] sm:$0xff]  ;;  %5532 = vmatpush2.bf16.msra.mxu0 %v9899_v28  ;;  %v198_v19 = vld [vmem:[#allocation7 + $0x1e8] sm:$0xff] }
  0xf9   :  { %v889_v25 = vld [vmem:[#allocation7 + $0x1780] sm:$0xff]  ;;  %v9892_v30 = vcombine.high %v761_v23, %v765_v24  ;;  %5584 = vmatprep.subr.bf16.mxu1 %v10028_v26  ;;  %v9891_v36 = vcombine.low %v761_v23, %v765_v24  ;;  %v186_v26 = vld [vmem:[#allocation7 + $0x188] sm:$0xff]  ;;  %v9326_v28 = vcombine.high %v194_v17, %v198_v19 }
  0xfa   :  { %v893_v27 = vld [vmem:[#allocation7 + $0x17a0] sm:$0xff]  ;;  %5585 = vmatpush2.bf16.msra.mxu1 %v10027_v29  ;;  %v190_v29 = vld [vmem:[#allocation7 + $0x1a8] sm:$0xff] }
  0xfb   :  { %v753_v31 = vld [vmem:[#allocation7 + $0x1340] sm:$0xff]  ;;  %v10020_v34 = vcombine.high %v889_v25, %v893_v27  ;;  %5533 = vmatprep.subr.bf16.mxu0 %v9892_v30  ;;  %v10019_v37 = vcombine.low %v889_v25, %v893_v27  ;;  %v10399_v27 = vld [vmem:[#allocation4 + $0x28] ss:$52 sps:$4 sm:$0xff]  }
  0xfc   :  { %v757_v32 = vld [vmem:[#allocation7 + $0x1360] sm:$0xff]  ;;  %5534 = vmatpush2.bf16.msra.mxu0 %v9891_v36  ;;  %v178_v36 = vld [vmem:[#allocation7 + $0x148] sm:$0xff] }
  0xfd   :  { %v881_v33 = vld [vmem:[#allocation7 + $0x1740] sm:$0xff]  ;;  %v9884_v38 = vcombine.high %v753_v31, %v757_v32  ;;  %5586 = vmatprep.subr.bf16.mxu1 %v10020_v34  ;;  %v9883_v44 = vcombine.low %v753_v31, %v757_v32  ;;  %v10402_v31 = vld [vmem:[#allocation4 + $0x8c] ss:$52 sps:$4 sm:$0xff]  }
  0xfe   :  { %v885_v35 = vld [vmem:[#allocation7 + $0x1760] sm:$0xff]  ;;  %5587 = vmatpush2.bf16.msra.mxu1 %v10019_v37  ;;  %v182_v37 = vld [vmem:[#allocation7 + $0x168] sm:$0xff] }
  0xff   :  { %v745_v39 = vld [vmem:[#allocation7 + $0x1300] sm:$0xff]  ;;  %v10012_v42 = vcombine.high %v881_v33, %v885_v35  ;;  %5535 = vmatprep.subr.bf16.mxu0 %v9884_v38  ;;  %v10011_v45 = vcombine.low %v881_v33, %v885_v35  ;;  %v9325_v33 = vcombine.low %v194_v17, %v198_v19  ;;  %v9318_v38 = vcombine.high %v186_v26, %v190_v29  ;;  %v138_v17 = vld [vmem:[#allocation7 + $0x8] sm:$0xff] }
 0x100   :  { %v749_v40 = vld [vmem:[#allocation7 + $0x1320] sm:$0xff]  ;;  %5536 = vmatpush2.bf16.msra.mxu0 %v9883_v44  ;;  %v142_v19 = vld [vmem:[#allocation7 + $0x28] sm:$0xff] }
 0x101   :  { %v873_v41 = vld [vmem:[#allocation7 + $0x1700] sm:$0xff]  ;;  %v9876_v46 = vcombine.high %v745_v39, %v749_v40  ;;  %5588 = vmatprep.subr.bf16.mxu1 %v10012_v42  ;;  %v9875_v52 = vcombine.low %v745_v39, %v749_v40  ;;  %v10404_v42 = vld [vmem:[#allocation4 + $0x88] ss:$52 sps:$4 sm:$0xff]  }
 0x102   :  { %v877_v43 = vld [vmem:[#allocation7 + $0x1720] sm:$0xff]  ;;  %5589 = vmatpush2.bf16.msra.mxu1 %v10011_v45 }
 0x103   :  { %v737_v47 = vld [vmem:[#allocation7 + $0x12c0] sm:$0xff]  ;;  %v10004_v50 = vcombine.high %v873_v41, %v877_v43  ;;  %5537 = vmatprep.subr.bf16.mxu0 %v9876_v46  ;;  %v10003_v53 = vcombine.low %v873_v41, %v877_v43  ;;  %v9317_v41 = vcombine.low %v186_v26, %v190_v29  ;;  %v170_v46 = vld [vmem:[#allocation7 + $0x108] sm:$0xff]  ;;  %v9270_v26 = vcombine.high %v138_v17, %v142_v19 }
 0x104   :  { %v741_v48 = vld [vmem:[#allocation7 + $0x12e0] sm:$0xff]  ;;  %5538 = vmatpush2.bf16.msra.mxu0 %v9875_v52  ;;  %v9269_v29 = vcombine.low %v138_v17, %v142_v19  ;;  %v11792_v17 = vlaneseq }
 0x105   :  { %v865_v49 = vld [vmem:[#allocation7 + $0x16c0] sm:$0xff]  ;;  %v9868_v54 = vcombine.high %v737_v47, %v741_v48  ;;  %5590 = vmatprep.subr.bf16.mxu1 %v10004_v50  ;;  %v9867_v60 = vcombine.low %v737_v47, %v741_v48  ;;  %v9310_v47 = vcombine.high %v178_v36, %v182_v37 }
 0x106   :  { %v869_v51 = vld [vmem:[#allocation7 + $0x16e0] sm:$0xff]  ;;  %5591 = vmatpush2.bf16.msra.mxu1 %v10003_v53 }
 0x107   :  { %v729_v55 = vld [vmem:[#allocation7 + $0x1280] sm:$0xff]  ;;  %v9996_v58 = vcombine.high %v865_v49, %v869_v51  ;;  %5539 = vmatprep.subr.bf16.mxu0 %v9868_v54  ;;  %v9995_v61 = vcombine.low %v865_v49, %v869_v51  ;;  %v174_v49 = vld [vmem:[#allocation7 + $0x128] sm:$0xff]  ;;  %v9309_v51 = vcombine.low %v178_v36, %v182_v37 }
 0x108   :  { %v733_v56 = vld [vmem:[#allocation7 + $0x12a0] sm:$0xff]  ;;  %5540 = vmatpush2.bf16.msra.mxu0 %v9867_v60  ;;  %v254_v36 = vld [vmem:[#allocation7 + $0x3a8] sm:$0xff] }
 0x109   :  { %v857_v57 = vld [vmem:[#allocation7 + $0x1680] sm:$0xff]  ;;  %v9860_v62 = vcombine.high %v729_v55, %v733_v56  ;;  %5592 = vmatprep.subr.bf16.mxu1 %v9996_v58  ;;  %v9859_v4 = vcombine.low %v729_v55, %v733_v56  ;;  %v162_v55 = vld [vmem:[#allocation7 + $0xc8] sm:$0xff]  ;;  %v9302_v56 = vcombine.high %v170_v46, %v174_v49 }
 0x10a   :  { %v861_v59 = vld [vmem:[#allocation7 + $0x16a0] sm:$0xff]  ;;  %5593 = vmatpush2.bf16.msra.mxu1 %v9995_v61 }
 0x10b   :  { %v721_v63 = vld [vmem:[#allocation7 + $0x1240] sm:$0xff]  ;;  %v9988_v2 = vcombine.high %v857_v57, %v861_v59  ;;  %5541 = vmatprep.subr.bf16.mxu0 %v9860_v62  ;;  %v9987_v5 = vcombine.low %v857_v57, %v861_v59  ;;  %v166_v57 = vld [vmem:[#allocation7 + $0xe8] sm:$0xff]  ;;  %v9301_v59 = vcombine.low %v170_v46, %v174_v49 }
 0x10c   :  { %v725_v0 = vld [vmem:[#allocation7 + $0x1260] sm:$0xff]  ;;  %5542 = vmatpush2.bf16.msra.mxu0 %v9859_v4  ;;  %v298_v49 = vld [vmem:[#allocation7 + $0x508] sm:$0xff] }
 0x10d   :  { %v849_v1 = vld [vmem:[#allocation7 + $0x1640] sm:$0xff]  ;;  %v9852_v6 = vcombine.high %v721_v63, %v725_v0  ;;  %5594 = vmatprep.subr.bf16.mxu1 %v9988_v2  ;;  %v9851_v12 = vcombine.low %v721_v63, %v725_v0  ;;  %v154_v63 = vld [vmem:[#allocation7 + $0x88] sm:$0xff]  ;;  %v9294_v0 = vcombine.high %v162_v55, %v166_v57  ;;  %v11793_v2 = vmov 0  }
 0x10e   :  { %v853_v3 = vld [vmem:[#allocation7 + $0x1660] sm:$0xff]  ;;  %5595 = vmatpush2.bf16.msra.mxu1 %v9987_v5  ;;  %v9293_v5 = vcombine.low %v162_v55, %v166_v57 }
 0x10f   :  { %v713_v7 = vld [vmem:[#allocation7 + $0x1200] sm:$0xff]  ;;  %v9980_v10 = vcombine.high %v849_v1, %v853_v3  ;;  %5543 = vmatprep.subr.bf16.mxu0 %v9852_v6  ;;  %v9979_v13 = vcombine.low %v849_v1, %v853_v3  ;;  %v158_v1 = vld [vmem:[#allocation7 + $0xa8] sm:$0xff] }
 0x110   :  { %v717_v8 = vld [vmem:[#allocation7 + $0x1220] sm:$0xff]  ;;  %5544 = vmatpush2.bf16.msra.mxu0 %v9851_v12  ;;  %v10810_v3 = vld [vmem:[#allocation4 + $0x4] ss:$52 sps:$4 sm:$0xff]  }
 0x111   :  { %v841_v9 = vld [vmem:[#allocation7 + $0x1600] sm:$0xff]  ;;  %v9844_v14 = vcombine.high %v713_v7, %v717_v8  ;;  %5596 = vmatprep.subr.bf16.mxu1 %v9980_v10  ;;  %v9843_v20 = vcombine.low %v713_v7, %v717_v8  ;;  %v9286_v10 = vcombine.high %v154_v63, %v158_v1 }
 0x112   :  { %v845_v11 = vld [vmem:[#allocation7 + $0x1620] sm:$0xff]  ;;  %5597 = vmatpush2.bf16.msra.mxu1 %v9979_v13  ;;  %v9285_v13 = vcombine.low %v154_v63, %v158_v1  ;;  %v10811_v63 = vld [vmem:[#allocation4 + $0xc] ss:$52 sps:$4 sm:$0xff]  }
 0x113   :  { %v961_v15 = vld [vmem:[#allocation7 + $0x19c0] sm:$0xff]  ;;  %v9972_v18 = vcombine.high %v841_v9, %v845_v11  ;;  %5545 = vmatprep.subr.bf16.mxu0 %v9844_v14  ;;  %v9971_v21 = vcombine.low %v841_v9, %v845_v11  ;;  %v146_v9 = vld [vmem:[#allocation7 + $0x48] sm:$0xff] }
 0x114   :  { %v965_v16 = vld [vmem:[#allocation7 + $0x19e0] sm:$0xff]  ;;  %5546 = vmatpush2.bf16.msra.mxu0 %v9843_v20  ;;  %v150_v11 = vld [vmem:[#allocation7 + $0x68] sm:$0xff] }
 0x115   :  { %v10396_v22 = vld [vmem:[#allocation4 + $0x20] ss:$52 sps:$4 sm:$0xff]   ;;  %v10092_v23 = vcombine.high %v961_v15, %v965_v16  ;;  %5598 = vmatprep.subr.bf16.mxu1 %v9972_v18  ;;  %v10091_v30 = vcombine.low %v961_v15, %v965_v16  ;;  %v10407_v48 = vld [vmem:[#allocation4 + $0x90] ss:$52 sps:$4 sm:$0xff]   ;;  %v9278_v18 = vcombine.high %v146_v9, %v150_v11 }
 0x116   :  { %v953_v24 = vld [vmem:[#allocation7 + $0x1980] sm:$0xff]  ;;  %5599 = vmatpush2.bf16.msra.mxu1 %v9971_v21  ;;  %v9277_v21 = vcombine.low %v146_v9, %v150_v11 }
 0x117   :  { %v957_v25 = vld [vmem:[#allocation7 + $0x19a0] sm:$0xff]  ;;  %5621 = vmatprep.subr.bf16.mxu0 %v10092_v23  ;;  %5674 = vmatprep.subr.bf16.mxu1 %v9326_v28  ;;  %v258_v23 = vld [vmem:[#allocation7 + $0x3c8] sm:$0xff] }
 0x118   :  { %v945_v32 = vld [vmem:[#allocation7 + $0x1940] sm:$0xff]  ;;  %v10084_v34 = vcombine.high %v953_v24, %v957_v25  ;;  %5548 = vmatmul.mubr.bf16.vlgmr.msra.gmra.mxu0 %v10396_v22  ;;  %v10083_v40 = vcombine.low %v953_v24, %v957_v25  ;;  %v262_v24 = vld [vmem:[#allocation7 + $0x3e8] sm:$0xff] }
 0x119   :  { %v949_v35 = vld [vmem:[#allocation7 + $0x1960] sm:$0xff]  ;;  %5601 = vmatmul.mubr.bf16.vlgmr.msra.gmra.mxu1 %v10399_v27  ;;  %5622 = vmatpush1.bf16.msra.mxu0 %v10091_v30  ;;  %v322_v25 = vld [vmem:[#allocation7 + $0x5c8] sm:$0xff] }
 0x11a   :  { %v10405_v39 = vld [vmem:[#allocation4 + $0x94] ss:$52 sps:$4 sm:$0xff]   ;;  %5675 = vmatpush1.bf16.msra.mxu1 %v9325_v33  ;;  %5623 = vmatprep.subr.bf16.mxu0 %v10084_v34  ;;  %v10076_v43 = vcombine.high %v945_v32, %v949_v35  ;;  %v10075_v50 = vcombine.low %v945_v32, %v949_v35  ;;  %v326_v27 = vld [vmem:[#allocation7 + $0x5e8] sm:$0xff]  ;;  %v10408_v34 = vld [vmem:[#allocation4 + $0x30] ss:$52 sps:$4 sm:$0xff]  }
 0x11b   :  { %v937_v44 = vld [vmem:[#allocation7 + $0x1900] sm:$0xff]  ;;  %5676 = vmatprep.subr.bf16.mxu1 %v9318_v38  ;;  %5557 = vmatprep.mubr.bf16.mxu0 %v10402_v31  ;;  %v9454_v30 = vcombine.high %v322_v25, %v326_v27  ;;  %v9390_v31 = vcombine.high %v258_v23, %v262_v24  ;;  %v314_v32 = vld [vmem:[#allocation7 + $0x588] sm:$0xff]  ;;  %v9453_v37 = vcombine.low %v322_v25, %v326_v27 }
 0x11c   :  { %v941_v45 = vld [vmem:[#allocation7 + $0x1920] sm:$0xff]  ;;  %5610 = vmatprep.mubr.bf16.mxu1 %v10405_v39  ;;  %v318_v33 = vld [vmem:[#allocation7 + $0x5a8] sm:$0xff]  ;;  %v9389_v38 = vcombine.low %v258_v23, %v262_v24 }
 0x11d   :  { %5624 = vmatpush1.bf16.msra.mxu0 %v10083_v40  ;;  %v10068_v52 = vcombine.high %v937_v44, %v941_v45  ;;  %v929_v53 = vld [vmem:[#allocation7 + $0x18c0] sm:$0xff]  ;;  %v10067_v58 = vcombine.low %v937_v44, %v941_v45  ;;  %v250_v35 = vld [vmem:[#allocation7 + $0x388] sm:$0xff]  ;;  %v9446_v39 = vcombine.high %v314_v32, %v318_v33  ;;  %v9445_v45 = vcombine.low %v314_v32, %v318_v33 }
 0x11e   :  { %5677 = vmatpush1.bf16.msra.mxu1 %v9317_v41  ;;  %5625 = vmatprep.subr.bf16.mxu0 %v10076_v43  ;;  %v933_v54 = vld [vmem:[#allocation7 + $0x18e0] sm:$0xff]  ;;  %v9382_v40 = vcombine.high %v250_v35, %v254_v36  ;;  %v306_v41 = vld [vmem:[#allocation7 + $0x548] sm:$0xff]  ;;  %v9381_v46 = vcombine.low %v250_v35, %v254_v36 }
 0x11f   :  { %5678 = vmatprep.subr.bf16.mxu1 %v9310_v47  ;;  %v10060_v60 = vcombine.high %v929_v53, %v933_v54  ;;  %v921_v61 = vld [vmem:[#allocation7 + $0x1880] sm:$0xff]  ;;  %v10059_v4 = vcombine.low %v929_v53, %v933_v54  ;;  %v242_v43 = vld [vmem:[#allocation7 + $0x348] sm:$0xff] }
 0x120   :  { %5558 = vmatmul.mubr.bf16.gmra.mxu0 %v10404_v42  ;;  %v925_v62 = vld [vmem:[#allocation7 + $0x18a0] sm:$0xff]  ;;  %v310_v42 = vld [vmem:[#allocation7 + $0x568] sm:$0xff] }
 0x121   :  { %5626 = vmatpush1.bf16.msra.mxu0 %v10075_v50  ;;  %5611 = vmatmul.mubr.bf16.gmra.mxu1 %v10407_v48  ;;  %v10052_v6 = vcombine.high %v921_v61, %v925_v62  ;;  %v913_v7 = vld [vmem:[#allocation7 + $0x1840] sm:$0xff]  ;;  %v10051_v12 = vcombine.low %v921_v61, %v925_v62  ;;  %v246_v44 = vld [vmem:[#allocation7 + $0x368] sm:$0xff]  ;;  %v9438_v47 = vcombine.high %v306_v41, %v310_v42 }
 0x122   :  { %5679 = vmatpush1.bf16.msra.mxu1 %v9309_v51  ;;  %5627 = vmatprep.subr.bf16.mxu0 %v10068_v52  ;;  %v917_v8 = vld [vmem:[#allocation7 + $0x1860] sm:$0xff]  ;;  %v9374_v48 = vcombine.high %v242_v43, %v246_v44  ;;  %v302_v50 = vld [vmem:[#allocation7 + $0x528] sm:$0xff]  ;;  %v9437_v54 = vcombine.low %v306_v41, %v310_v42  ;;  %v9373_v55 = vcombine.low %v242_v43, %v246_v44 }
 0x123   :  { %5680 = vmatprep.subr.bf16.mxu1 %v9302_v56  ;;  %5653 = vmatprep.mubr.bf16.mxu0 %v11793_v2  ;;  %v10044_v14 = vcombine.high %v913_v7, %v917_v8  ;;  %v905_v15 = vld [vmem:[#allocation7 + $0x1800] sm:$0xff]  ;;  %v10043_v20 = vcombine.low %v913_v7, %v917_v8  ;;  %v10409_v51 = vld [vmem:[#allocation4 + $0x98] ss:$52 sps:$4 sm:$0xff]   ;;  %v9430_v56 = vcombine.high %v298_v49, %v302_v50 }
 0x124   :  { %5706 = vmatprep.mubr.bf16.mxu1 %v10810_v3  ;;  %v909_v16 = vld [vmem:[#allocation7 + $0x1820] sm:$0xff]  ;;  %v234_v52 = vld [vmem:[#allocation7 + $0x308] sm:$0xff]  ;;  %v9429_v62 = vcombine.low %v298_v49, %v302_v50 }
 0x125   :  { %5628 = vmatpush1.bf16.msra.mxu0 %v10067_v58  ;;  %v10036_v22 = vcombine.high %v905_v15, %v909_v16  ;;  %v10035_v28 = vcombine.low %v905_v15, %v909_v16  ;;  %v238_v53 = vld [vmem:[#allocation7 + $0x328] sm:$0xff] }
 0x126   :  { %5681 = vmatpush1.bf16.msra.mxu1 %v9301_v59  ;;  %5629 = vmatprep.subr.bf16.mxu0 %v10060_v60  ;;  %v9366_v57 = vcombine.high %v234_v52, %v238_v53  ;;  %v290_v58 = vld [vmem:[#allocation7 + $0x4c8] sm:$0xff] }
 0x127   :  { %5682 = vmatprep.subr.bf16.mxu1 %v9294_v0  ;;  %v294_v59 = vld [vmem:[#allocation7 + $0x4e8] sm:$0xff]  ;;  %v9365_v0 = vcombine.low %v234_v52, %v238_v53 }
 0x128   :  { %v226_v60 = vld [vmem:[#allocation7 + $0x2c8] sm:$0xff]  ;;  %v9422_v1 = vcombine.high %v290_v58, %v294_v59  ;;  %v9421_v8 = vcombine.low %v290_v58, %v294_v59  ;;  %v10812_v58 = vld [vmem:[#allocation4] ss:$52 sps:$4 sm:$0xff]  }
 0x129   :  { %5630 = vmatpush1.bf16.msra.mxu0 %v10059_v4  ;;  %v230_v61 = vld [vmem:[#allocation7 + $0x2e8] sm:$0xff] }
 0x12a   :  { %5683 = vmatpush1.bf16.msra.mxu1 %v9293_v5  ;;  %5631 = vmatprep.subr.bf16.mxu0 %v10052_v6  ;;  %v9358_v3 = vcombine.high %v226_v60, %v230_v61  ;;  %v282_v4 = vld [vmem:[#allocation7 + $0x488] sm:$0xff]  ;;  %v9357_v9 = vcombine.low %v226_v60, %v230_v61 }
 0x12b   :  { %5684 = vmatprep.subr.bf16.mxu1 %v9286_v10  ;;  %v286_v5 = vld [vmem:[#allocation7 + $0x4a8] sm:$0xff] }
 0x12c   :  { %v218_v6 = vld [vmem:[#allocation7 + $0x288] sm:$0xff]  ;;  %v9414_v10 = vcombine.high %v282_v4, %v286_v5  ;;  %v9413_v16 = vcombine.low %v282_v4, %v286_v5 }
 0x12d   :  { %5632 = vmatpush1.bf16.msra.mxu0 %v10051_v12  ;;  %v222_v7 = vld [vmem:[#allocation7 + $0x2a8] sm:$0xff] }
 0x12e   :  { %5685 = vmatpush1.bf16.msra.mxu1 %v9285_v13  ;;  %5633 = vmatprep.subr.bf16.mxu0 %v10044_v14  ;;  %v9350_v11 = vcombine.high %v218_v6, %v222_v7  ;;  %v274_v12 = vld [vmem:[#allocation7 + $0x448] sm:$0xff] }
 0x12f   :  { %5686 = vmatprep.subr.bf16.mxu1 %v9278_v18  ;;  %v278_v13 = vld [vmem:[#allocation7 + $0x468] sm:$0xff]  ;;  %v9349_v18 = vcombine.low %v218_v6, %v222_v7  ;;  %v10813_v6 = vld [vmem:[#allocation4 + $0x6c] ss:$52 sps:$4 sm:$0xff]  }
 0x130   :  { %v210_v14 = vld [vmem:[#allocation7 + $0x248] sm:$0xff]  ;;  %v9406_v19 = vcombine.high %v274_v12, %v278_v13  ;;  %v9405_v25 = vcombine.low %v274_v12, %v278_v13 }
 0x131   :  { %5634 = vmatpush1.bf16.msra.mxu0 %v10043_v20  ;;  %v214_v15 = vld [vmem:[#allocation7 + $0x268] sm:$0xff] }
 0x132   :  { %5687 = vmatpush1.bf16.msra.mxu1 %v9277_v21  ;;  %5635 = vmatprep.subr.bf16.mxu0 %v10036_v22  ;;  %v9342_v20 = vcombine.high %v210_v14, %v214_v15  ;;  %v266_v21 = vld [vmem:[#allocation7 + $0x408] sm:$0xff]  ;;  %v9341_v27 = vcombine.low %v210_v14, %v214_v15 }
 0x133   :  { %5688 = vmatprep.subr.bf16.mxu1 %v9270_v26  ;;  %v270_v22 = vld [vmem:[#allocation7 + $0x428] sm:$0xff]  ;;  %v11124_v26 = vshrl.u32 %v11792_v17, 7 }
 0x134   :  { %v202_v23 = vld [vmem:[#allocation7 + $0x208] sm:$0xff] }
 0x135   :  { %5636 = vmatpush1.bf16.msra.mxu0 %v10035_v28  ;;  %v206_v24 = vld [vmem:[#allocation7 + $0x228] sm:$0xff]  ;;  %11813 = vst [vmem:[#allocation21_spill] sm:$0xff] %v11124_v26  ;;  %v9398_v28 = vcombine.high %v266_v21, %v270_v22  ;;  %v11127_v35 = vsub.s32 0, %v11124_v26 }
 0x136   :  { %5689 = vmatpush1.bf16.msra.mxu1 %v9269_v29  ;;  %5727 = vmatprep.subr.bf16.mxu0 %v9454_v30  ;;  %v9334_v29 = vcombine.high %v202_v23, %v206_v24  ;;  %v386_v30 = vld [vmem:[#allocation7 + $0x7c8] sm:$0xff]  ;;  %v9333_v36 = vcombine.low %v202_v23, %v206_v24 }
 0x137   :  { %5690 = vmatprep.subr.bf16.mxu1 %v9390_v31  ;;  %v390_v31 = vld [vmem:[#allocation7 + $0x7e8] sm:$0xff]  ;;  %11814 = vst [vmem:[#allocation22_spill] sm:$0xff] %v11127_v35 }
 0x138   :  { %5654 = vmatmul.mubr.bf16.vlgmr.msra.gmra.mxu0 %v10408_v34  ;;  %v450_v32 = vld [vmem:[#allocation7 + $0x9c8] sm:$0xff]  ;;  %v9397_v34 = vcombine.low %v266_v21, %v270_v22 }
 0x139   :  { %5728 = vmatpush1.bf16.msra.mxu0 %v9453_v37  ;;  %5663 = vmatprep.mubr.bf16.mxu0 %v11793_v2  ;;  %v454_v33 = vld [vmem:[#allocation7 + $0x9e8] sm:$0xff]  ;;  %v969_v37 = vld [vmem:[#allocation9] sm:$0xff] }
 0x13a   :  { %5691 = vmatpush2.bf16.msra.mxu1 %v9389_v38  ;;  %5729 = vmatprep.subr.bf16.mxu0 %v9446_v39  ;;  %v9518_v38 = vcombine.high %v386_v30, %v390_v31  ;;  %v9582_v39 = vcombine.high %v450_v32, %v454_v33  ;;  %v378_v41 = vld [vmem:[#allocation7 + $0x788] sm:$0xff] }
 0x13b   :  { %5692 = vmatprep.subr.bf16.mxu1 %v9382_v40  ;;  %v11130_v40 = vsub.s32 1, %v11124_v26  ;;  %v382_v42 = vld [vmem:[#allocation7 + $0x7a8] sm:$0xff] }
 0x13c   :  { %v442_v43 = vld [vmem:[#allocation7 + $0x988] sm:$0xff]  ;;  %v9509_v59 = vcombine.low %v378_v41, %v382_v42 }
 0x13d   :  { %5730 = vmatpush1.bf16.msra.mxu0 %v9445_v45  ;;  %11815 = vst [vmem:[#allocation23_spill] sm:$0xff] %v11130_v40  ;;  %v446_v44 = vld [vmem:[#allocation7 + $0x9a8] sm:$0xff]  ;;  %v11133_v45 = vrot.slane %v969_v37, %v11127_v35  ;;  %v11136_v49 = vrot.slane %v969_v37, %v11130_v40  ;;  %v807_v40 = vld [vmem:[#allocation7 + $0x14f0] sm:$0xff] }
 0x13e   :  { %5693 = vmatpush2.bf16.msra.mxu1 %v9381_v46  ;;  %5731 = vmatprep.subr.bf16.mxu0 %v9438_v47  ;;  %v9517_v46 = vcombine.low %v386_v30, %v390_v31  ;;  %v9581_v47 = vcombine.low %v450_v32, %v454_v33  ;;  %v9574_v50 = vcombine.high %v442_v43, %v446_v44  ;;  %v374_v52 = vld [vmem:[#allocation7 + $0x768] sm:$0xff]  ;;  %v795_v35 = vld [vmem:[#allocation7 + $0x1490] sm:$0xff] }
 0x13f   :  { %5694 = vmatprep.subr.bf16.mxu1 %v9374_v48  ;;  %v9510_v48 = vcombine.high %v378_v41, %v382_v42  ;;  %v9573_v61 = vcombine.low %v442_v43, %v446_v44  ;;  %v362_v4 = vld [vmem:[#allocation7 + $0x708] sm:$0xff]  ;;  %v10815_v42 = vld [vmem:[#allocation4 + $0x14] ss:$52 sps:$4 sm:$0xff]  }
 0x140   :  { %5664 = vmatmul.mubr.bf16.gmra.mxu0 %v10409_v51  ;;  %v370_v51 = vld [vmem:[#allocation7 + $0x748] sm:$0xff] }
 0x141   :  { %5732 = vmatpush1.bf16.msra.mxu0 %v9437_v54  ;;  %5759 = vmatprep.mubr.bf16.mxu0 %v10811_v63  ;;  %v434_v54 = vld [vmem:[#allocation7 + $0x948] sm:$0xff]  ;;  %v9501_v13 = vcombine.low %v370_v51, %v374_v52 }
 0x142   :  { %5695 = vmatpush2.bf16.msra.mxu1 %v9373_v55  ;;  %5733 = vmatprep.subr.bf16.mxu0 %v9430_v56  ;;  %v438_v55 = vld [vmem:[#allocation7 + $0x968] sm:$0xff] }
 0x143   :  { %5696 = vmatprep.subr.bf16.mxu1 %v9366_v57  ;;  %v366_v5 = vld [vmem:[#allocation7 + $0x728] sm:$0xff]  ;;  %v9565_v15 = vcombine.low %v434_v54, %v438_v55 }
 0x144   :  { %v354_v21 = vld [vmem:[#allocation7 + $0x6c8] sm:$0xff] }
 0x145   :  { %5734 = vmatpush1.bf16.msra.mxu0 %v9429_v62  ;;  %v9502_v62 = vcombine.high %v370_v51, %v374_v52  ;;  %v358_v22 = vld [vmem:[#allocation7 + $0x6e8] sm:$0xff] }
 0x146   :  { %5697 = vmatpush2.bf16.msra.mxu1 %v9365_v0  ;;  %5735 = vmatprep.subr.bf16.mxu0 %v9422_v1  ;;  %v418_v23 = vld [vmem:[#allocation7 + $0x8c8] sm:$0xff]  ;;  %v9486_v32 = vcombine.high %v354_v21, %v358_v22 }
 0x147   :  { %5698 = vmatprep.subr.bf16.mxu1 %v9358_v3  ;;  %v9566_v3 = vcombine.high %v434_v54, %v438_v55  ;;  %v422_v24 = vld [vmem:[#allocation7 + $0x8e8] sm:$0xff] }
 0x148   :  { %v10814_v30 = vld [vmem:[#allocation4 + $0x68] ss:$52 sps:$4 sm:$0xff]   ;;  %v9549_v51 = vcombine.low %v418_v23, %v422_v24 }
 0x149   :  { %5736 = vmatpush1.bf16.msra.mxu0 %v9421_v8  ;;  %v426_v8 = vld [vmem:[#allocation7 + $0x908] sm:$0xff] }
 0x14a   :  { %5699 = vmatpush2.bf16.msra.mxu1 %v9357_v9  ;;  %5737 = vmatprep.subr.bf16.mxu0 %v9414_v10  ;;  %v430_v9 = vld [vmem:[#allocation7 + $0x928] sm:$0xff] }
 0x14b   :  { %5700 = vmatprep.subr.bf16.mxu1 %v9350_v11  ;;  %v9557_v31 = vcombine.low %v426_v8, %v430_v9  ;;  %v350_v37 = vld [vmem:[#allocation7 + $0x6a8] sm:$0xff] }
 0x14c   :  { %v410_v43 = vld [vmem:[#allocation7 + $0x888] sm:$0xff] }
 0x14d   :  { %5738 = vmatpush1.bf16.msra.mxu0 %v9413_v16  ;;  %v9494_v16 = vcombine.high %v362_v4, %v366_v5  ;;  %v414_v44 = vld [vmem:[#allocation7 + $0x8a8] sm:$0xff] }
 0x14e   :  { %5701 = vmatpush2.bf16.msra.mxu1 %v9349_v18  ;;  %5739 = vmatprep.subr.bf16.mxu0 %v9406_v19  ;;  %v9542_v54 = vcombine.high %v410_v43, %v414_v44  ;;  %v338_v55 = vld [vmem:[#allocation7 + $0x648] sm:$0xff] }
 0x14f   :  { %5702 = vmatprep.subr.bf16.mxu1 %v9342_v20  ;;  %v9558_v20 = vcombine.high %v426_v8, %v430_v9  ;;  %v578_v9 = vld [vmem:[#allocation7 + $0xdc8] sm:$0xff] }
 0x151   :  { %5740 = vmatpush1.bf16.msra.mxu0 %v9405_v25 }
 0x152   :  { %5703 = vmatpush2.bf16.msra.mxu1 %v9341_v27  ;;  %5741 = vmatprep.subr.bf16.mxu0 %v9398_v28  ;;  %v9493_v27 = vcombine.low %v362_v4, %v366_v5  ;;  %v398_v4 = vld [vmem:[#allocation7 + $0x828] sm:$0xff] }
 0x153   :  { %5704 = vmatprep.subr.bf16.mxu1 %v9334_v29 }
 0x154   :  { %v5390_v57 = vpop.f32.mrf.mxu1 }
 0x155   :  { %5742 = vmatpush1.bf16.msra.mxu0 %v9397_v34  ;;  %v5337_v53 = vpop.f32.mrf.mxu0  ;;  %v9550_v34 = vcombine.high %v418_v23, %v422_v24  ;;  %v574_v23 = vld [vmem:[#allocation7 + $0xda8] sm:$0xff] }
 0x156   :  { %5705 = vmatpush2.bf16.msra.mxu1 %v9333_v36  ;;  %5743 = vmatprep.subr.bf16.mxu0 %v9518_v38  ;;  %v5338_v56 = vadd.f32 %v5337_v53, %v11133_v45  ;;  %v5392_v1 = vpop.f32.mrf.mxu1  ;;  %v346_v36 = vld [vmem:[#allocation7 + $0x688] sm:$0xff] }
 0x157   :  { %5780 = vmatprep.subr.bf16.mxu1 %v9582_v39  ;;  %v5339_v60 = vpop.f32.mrf.mxu0  ;;  %v9478_v52 = vcombine.high %v346_v36, %v350_v37  ;;  %v506_v24 = vld [vmem:[#allocation7 + $0xb88] sm:$0xff] }
 0x158   :  { %v11139_v63 = vadd.f32 %v5390_v57, %v5338_v56  ;;  %v5340_v0 = vadd.f32 %v5339_v60, %v11136_v49  ;;  %v5394_v12 = vpop.f32.mrf.mxu1  ;;  %v342_v56 = vld [vmem:[#allocation7 + $0x668] sm:$0xff]  ;;  %v9477_v60 = vcombine.low %v346_v36, %v350_v37 }
 0x159   :  { %5707 = vmatmul.mubr.bf16.vlgmr.msra.gmra.mxu1 %v10812_v58  ;;  %5744 = vmatpush2.bf16.msra.mxu0 %v9517_v46  ;;  %v5341_v7 = vpop.f32.mrf.mxu0  ;;  %v402_v58 = vld [vmem:[#allocation7 + $0x848] sm:$0xff]  ;;  %v9469_v5 = vcombine.low %v338_v55, %v342_v56 }
 0x15a   :  { %5781 = vmatpush1.bf16.msra.mxu1 %v9581_v47  ;;  %5745 = vmatprep.subr.bf16.mxu0 %v9510_v48  ;;  %v11142_v10 = vadd.f32 %v5392_v1, %v5340_v0  ;;  %v5342_v11 = vadd.f32 %v5341_v7, %v11133_v45  ;;  %v11149_v19 = vpop.f32.mrf.mxu1  ;;  %v9485_v47 = vcombine.low %v354_v21, %v358_v22  ;;  %v330_v0 = vld [vmem:[#allocation7 + $0x608] sm:$0xff] }
 0x15b   :  { %5782 = vmatprep.subr.bf16.mxu1 %v9574_v50  ;;  %5716 = vmatprep.mubr.bf16.mxu1 %v10813_v6  ;;  %v11145_v14 = vpop.f32.mrf.mxu0  ;;  %v334_v1 = vld [vmem:[#allocation7 + $0x628] sm:$0xff] }
 0x15c   :  { %v11147_v18 = vadd.f32 %v5394_v12, %v5342_v11  ;;  %v9462_v7 = vcombine.high %v330_v0, %v334_v1  ;;  %v582_v11 = vld [vmem:[#allocation7 + $0xde8] sm:$0xff] }
 0x15d   :  { %5746 = vmatpush2.bf16.msra.mxu0 %v9509_v59  ;;  %v5347_v25 = vpop.f32.mrf.mxu0  ;;  %v406_v59 = vld [vmem:[#allocation7 + $0x868] sm:$0xff] }
 0x15e   :  { %5783 = vmatpush1.bf16.msra.mxu1 %v9573_v61  ;;  %5747 = vmatprep.subr.bf16.mxu0 %v9502_v62  ;;  %v5348_v28 = vadd.f32 %v5347_v25, %v11133_v45  ;;  %v5400_v29 = vpop.f32.mrf.mxu1  ;;  %v9470_v61 = vcombine.high %v338_v55, %v342_v56  ;;  %v9534_v62 = vcombine.high %v402_v58, %v406_v59  ;;  %v514_v12 = vld [vmem:[#allocation7 + $0xbc8] sm:$0xff] }
 0x15f   :  { %5784 = vmatprep.subr.bf16.mxu1 %v9566_v3  ;;  %v5349_v33 = vpop.f32.mrf.mxu0  ;;  %v394_v3 = vld [vmem:[#allocation7 + $0x808] sm:$0xff]  ;;  %v9533_v6 = vcombine.low %v402_v58, %v406_v59 }
 0x160   :  { %v5350_v38 = vadd.f32 %v5349_v33, %v11136_v49  ;;  %v11153_v39 = vadd.f32 %v5400_v29, %v5348_v28  ;;  %v5402_v41 = vpop.f32.mrf.mxu1  ;;  %v9526_v8 = vcombine.high %v394_v3, %v398_v4  ;;  %v570_v22 = vld [vmem:[#allocation7 + $0xd88] sm:$0xff] }
 0x161   :  { %5748 = vmatpush2.bf16.msra.mxu0 %v9501_v13  ;;  %5717 = vmatmul.mubr.bf16.gmra.mxu1 %v10814_v30  ;;  %v5351_v46 = vpop.f32.mrf.mxu0  ;;  %v518_v13 = vld [vmem:[#allocation7 + $0xbe8] sm:$0xff]  ;;  %v9702_v29 = vcombine.high %v570_v22, %v574_v23  ;;  %v9701_v37 = vcombine.low %v570_v22, %v574_v23 }
 0x162   :  { %5785 = vmatpush1.bf16.msra.mxu1 %v9565_v15  ;;  %5749 = vmatprep.subr.bf16.mxu0 %v9494_v16  ;;  %v5352_v48 = vadd.f32 %v5351_v46, %v11133_v45  ;;  %v11156_v50 = vadd.f32 %v5402_v41, %v5350_v38  ;;  %v5404_v53 = vpop.f32.mrf.mxu1  ;;  %v9541_v45 = vcombine.low %v410_v43, %v414_v44  ;;  %v510_v25 = vld [vmem:[#allocation7 + $0xba8] sm:$0xff]  ;;  %v10817_v38 = vld [vmem:[#allocation4 + $0x74] ss:$52 sps:$4 sm:$0xff]  }
 0x163   :  { %5786 = vmatprep.subr.bf16.mxu1 %v9558_v20  ;;  %5812 = vmatprep.mubr.bf16.mxu1 %v10815_v42  ;;  %v9461_v15 = vcombine.low %v330_v0, %v334_v1  ;;  %v9525_v16 = vcombine.low %v394_v3, %v398_v4  ;;  %v9710_v20 = vcombine.high %v578_v9, %v582_v11  ;;  %v10816_v33 = vld [vmem:[#allocation4 + $0x8] ss:$52 sps:$4 sm:$0xff]  }
 0x164   :  { %v11158_v57 = vadd.f32 %v5404_v53, %v5352_v48  ;;  %v9646_v21 = vcombine.high %v514_v12, %v518_v13  ;;  %v9645_v28 = vcombine.low %v514_v12, %v518_v13  ;;  %v9638_v30 = vcombine.high %v506_v24, %v510_v25  ;;  %v502_v36 = vld [vmem:[#allocation7 + $0xb68] sm:$0xff] }
 0x165   :  { %5750 = vmatpush2.bf16.msra.mxu0 %v9493_v27  ;;  %v9709_v27 = vcombine.low %v578_v9, %v582_v11  ;;  %v9637_v41 = vcombine.low %v506_v24, %v510_v25  ;;  %v554_v44 = vld [vmem:[#allocation7 + $0xd08] sm:$0xff] }
 0x166   :  { %5787 = vmatpush1.bf16.msra.mxu1 %v9557_v31  ;;  %5751 = vmatprep.subr.bf16.mxu0 %v9486_v32  ;;  %v562_v31 = vld [vmem:[#allocation7 + $0xd48] sm:$0xff] }
 0x167   :  { %5788 = vmatprep.subr.bf16.mxu1 %v9550_v34  ;;  %v566_v32 = vld [vmem:[#allocation7 + $0xd68] sm:$0xff] }
 0x168   :  { %v498_v34 = vld [vmem:[#allocation7 + $0xb48] sm:$0xff]  ;;  %v9694_v42 = vcombine.high %v562_v31, %v566_v32 }
 0x169   :  { %5752 = vmatpush2.bf16.msra.mxu0 %v9485_v47  ;;  %v9630_v43 = vcombine.high %v498_v34, %v502_v36  ;;  %v558_v46 = vld [vmem:[#allocation7 + $0xd28] sm:$0xff] }
 0x16a   :  { %5789 = vmatpush1.bf16.msra.mxu1 %v9549_v51  ;;  %5753 = vmatprep.subr.bf16.mxu0 %v9478_v52  ;;  %v490_v47 = vld [vmem:[#allocation7 + $0xb08] sm:$0xff]  ;;  %v9693_v51 = vcombine.low %v562_v31, %v566_v32  ;;  %v9629_v52 = vcombine.low %v498_v34, %v502_v36  ;;  %v9686_v53 = vcombine.high %v554_v44, %v558_v46 }
 0x16b   :  { %5790 = vmatprep.subr.bf16.mxu1 %v9542_v54  ;;  %v494_v48 = vld [vmem:[#allocation7 + $0xb28] sm:$0xff] }
 0x16c   :  { %v9622_v54 = vcombine.high %v490_v47, %v494_v48  ;;  %v546_v55 = vld [vmem:[#allocation7 + $0xcc8] sm:$0xff] }
 0x16d   :  { %5754 = vmatpush2.bf16.msra.mxu0 %v9477_v60  ;;  %v550_v56 = vld [vmem:[#allocation7 + $0xce8] sm:$0xff]  ;;  %v10818_v60 = vld [vmem:[#allocation4 + $0x70] ss:$52 sps:$4 sm:$0xff]  }
 0x16e   :  { %5791 = vmatpush1.bf16.msra.mxu1 %v9541_v45  ;;  %5755 = vmatprep.subr.bf16.mxu0 %v9470_v61  ;;  %v482_v58 = vld [vmem:[#allocation7 + $0xac8] sm:$0xff]  ;;  %v9685_v45 = vcombine.low %v554_v44, %v558_v46  ;;  %v9678_v0 = vcombine.high %v546_v55, %v550_v56 }
 0x16f   :  { %5792 = vmatprep.subr.bf16.mxu1 %v9534_v62  ;;  %v486_v59 = vld [vmem:[#allocation7 + $0xae8] sm:$0xff]  ;;  %v9621_v62 = vcombine.low %v490_v47, %v494_v48 }
 0x170   :  { %v10819_v61 = vld [vmem:[#allocation4 + $0x1c] ss:$52 sps:$4 sm:$0xff]   ;;  %v9614_v1 = vcombine.high %v482_v58, %v486_v59 }
 0x171   :  { %5756 = vmatpush2.bf16.msra.mxu0 %v9469_v5  ;;  %v538_v3 = vld [vmem:[#allocation7 + $0xc88] sm:$0xff] }
 0x172   :  { %5793 = vmatpush1.bf16.msra.mxu1 %v9533_v6  ;;  %5757 = vmatprep.subr.bf16.mxu0 %v9462_v7  ;;  %v542_v4 = vld [vmem:[#allocation7 + $0xca8] sm:$0xff]  ;;  %v9677_v7 = vcombine.low %v546_v55, %v550_v56  ;;  %v11162_v55 = vpop.f32.mrf.mxu1 }
 0x173   :  { %5794 = vmatprep.subr.bf16.mxu1 %v9526_v8  ;;  %v474_v5 = vld [vmem:[#allocation7 + $0xa88] sm:$0xff]  ;;  %v9613_v8 = vcombine.low %v482_v58, %v486_v59  ;;  %v9670_v9 = vcombine.high %v538_v3, %v542_v4 }
 0x174   :  { %v478_v6 = vld [vmem:[#allocation7 + $0xaa8] sm:$0xff] }
 0x175   :  { %5758 = vmatpush2.bf16.msra.mxu0 %v9461_v15  ;;  %v9606_v11 = vcombine.high %v474_v5, %v478_v6  ;;  %v530_v12 = vld [vmem:[#allocation7 + $0xc48] sm:$0xff] }
 0x176   :  { %5795 = vmatpush1.bf16.msra.mxu1 %v9525_v16  ;;  %5833 = vmatprep.subr.bf16.mxu0 %v9710_v20  ;;  %v534_v13 = vld [vmem:[#allocation7 + $0xc68] sm:$0xff]  ;;  %v9669_v20 = vcombine.low %v538_v3, %v542_v4 }
 0x177   :  { %5796 = vmatprep.subr.bf16.mxu1 %v9646_v21  ;;  %v466_v15 = vld [vmem:[#allocation7 + $0xa48] sm:$0xff]  ;;  %v9605_v21 = vcombine.low %v474_v5, %v478_v6  ;;  %v9662_v22 = vcombine.high %v530_v12, %v534_v13 }
 0x178   :  { %5760 = vmatmul.mubr.bf16.vlgmr.msra.gmra.mxu0 %v10816_v33  ;;  %v470_v16 = vld [vmem:[#allocation7 + $0xa68] sm:$0xff] }
 0x179   :  { %5834 = vmatpush1.bf16.msra.mxu0 %v9709_v27  ;;  %5769 = vmatprep.mubr.bf16.mxu0 %v10817_v38  ;;  %v9598_v23 = vcombine.high %v466_v15, %v470_v16  ;;  %v522_v24 = vld [vmem:[#allocation7 + $0xc08] sm:$0xff] }
 0x17a   :  { %5797 = vmatpush2.bf16.msra.mxu1 %v9645_v28  ;;  %5835 = vmatprep.subr.bf16.mxu0 %v9702_v29  ;;  %v526_v25 = vld [vmem:[#allocation7 + $0xc28] sm:$0xff]  ;;  %v9661_v29 = vcombine.low %v530_v12, %v534_v13 }
 0x17b   :  { %5798 = vmatprep.subr.bf16.mxu1 %v9638_v30  ;;  %v458_v27 = vld [vmem:[#allocation7 + $0xa08] sm:$0xff]  ;;  %v9597_v30 = vcombine.low %v466_v15, %v470_v16  ;;  %v9654_v31 = vcombine.high %v522_v24, %v526_v25  ;;  %v9653_v38 = vcombine.low %v522_v24, %v526_v25 }
 0x17c   :  { %v462_v28 = vld [vmem:[#allocation7 + $0xa28] sm:$0xff] }
 0x17d   :  { %5836 = vmatpush1.bf16.msra.mxu0 %v9701_v37  ;;  %v9590_v32 = vcombine.high %v458_v27, %v462_v28  ;;  %v642_v33 = vld [vmem:[#allocation7 + $0xfc8] sm:$0xff] }
 0x17e   :  { %5799 = vmatpush2.bf16.msra.mxu1 %v9637_v41  ;;  %5837 = vmatprep.subr.bf16.mxu0 %v9694_v42  ;;  %v646_v34 = vld [vmem:[#allocation7 + $0xfe8] sm:$0xff]  ;;  %v9589_v41 = vcombine.low %v458_v27, %v462_v28 }
 0x17f   :  { %5800 = vmatprep.subr.bf16.mxu1 %v9630_v43  ;;  %v706_v36 = vld [vmem:[#allocation7 + $0x11c8] sm:$0xff]  ;;  %v9774_v42 = vcombine.high %v642_v33, %v646_v34 }
 0x180   :  { %5770 = vmatmul.mubr.bf16.gmra.mxu0 %v10818_v60  ;;  %v710_v37 = vld [vmem:[#allocation7 + $0x11e8] sm:$0xff] }
 0x181   :  { %5838 = vmatpush1.bf16.msra.mxu0 %v9693_v51  ;;  %5865 = vmatprep.mubr.bf16.mxu0 %v10819_v61  ;;  %v9838_v43 = vcombine.high %v706_v36, %v710_v37  ;;  %v634_v44 = vld [vmem:[#allocation7 + $0xf88] sm:$0xff]  ;;  %v9773_v51 = vcombine.low %v642_v33, %v646_v34 }
 0x182   :  { %5801 = vmatpush2.bf16.msra.mxu1 %v9629_v52  ;;  %5839 = vmatprep.subr.bf16.mxu0 %v9686_v53  ;;  %v638_v46 = vld [vmem:[#allocation7 + $0xfa8] sm:$0xff]  ;;  %v11160_v52 = vpop.f32.mrf.mxu0  ;;  %v9837_v53 = vcombine.low %v706_v36, %v710_v37 }
 0x183   :  { %5802 = vmatprep.subr.bf16.mxu1 %v9622_v54  ;;  %v698_v47 = vld [vmem:[#allocation7 + $0x1188] sm:$0xff]  ;;  %v9766_v54 = vcombine.high %v634_v44, %v638_v46  ;;  %v9765_v3 = vcombine.low %v634_v44, %v638_v46 }
 0x184   :  { %v702_v48 = vld [vmem:[#allocation7 + $0x11a8] sm:$0xff] }
 0x185   :  { %5840 = vmatpush1.bf16.msra.mxu0 %v9685_v45  ;;  %v9830_v56 = vcombine.high %v698_v47, %v702_v48  ;;  %v626_v58 = vld [vmem:[#allocation7 + $0xf48] sm:$0xff]  ;;  %v9829_v5 = vcombine.low %v698_v47, %v702_v48 }
 0x186   :  { %5803 = vmatpush2.bf16.msra.mxu1 %v9621_v62  ;;  %5841 = vmatprep.subr.bf16.mxu0 %v9678_v0  ;;  %v630_v59 = vld [vmem:[#allocation7 + $0xf68] sm:$0xff] }
 0x187   :  { %5804 = vmatprep.subr.bf16.mxu1 %v9614_v1  ;;  %v690_v45 = vld [vmem:[#allocation7 + $0x1148] sm:$0xff]  ;;  %v10820_v1 = vld [vmem:[#allocation4 + $0x10] ss:$52 sps:$4 sm:$0xff]   ;;  %v9758_v6 = vcombine.high %v626_v58, %v630_v59  ;;  %v9757_v24 = vcombine.low %v626_v58, %v630_v59 }
 0x188   :  { %v694_v61 = vld [vmem:[#allocation7 + $0x1168] sm:$0xff] }
 0x189   :  { %5842 = vmatpush1.bf16.msra.mxu0 %v9677_v7  ;;  %v9822_v12 = vcombine.high %v690_v45, %v694_v61  ;;  %v622_v13 = vld [vmem:[#allocation7 + $0xf28] sm:$0xff] }
 0x18a   :  { %5805 = vmatpush2.bf16.msra.mxu1 %v9613_v8  ;;  %5843 = vmatprep.subr.bf16.mxu0 %v9670_v9  ;;  %v682_v16 = vld [vmem:[#allocation7 + $0x1108] sm:$0xff] }
 0x18b   :  { %5806 = vmatprep.subr.bf16.mxu1 %v9606_v11  ;;  %v10821_v11 = vld [vmem:[#allocation4 + $0x7c] ss:$52 sps:$4 sm:$0xff]   ;;  %v10822_v37 = vld [vmem:[#allocation4 + $0x78] ss:$52 sps:$4 sm:$0xff]  }
 0x18c   :  { %v674_v34 = vld [vmem:[#allocation7 + $0x10c8] sm:$0xff] }
 0x18d   :  { %5844 = vmatpush1.bf16.msra.mxu0 %v9669_v20  ;;  %v686_v20 = vld [vmem:[#allocation7 + $0x1128] sm:$0xff] }
 0x18e   :  { %5807 = vmatpush2.bf16.msra.mxu1 %v9605_v21  ;;  %5845 = vmatprep.subr.bf16.mxu0 %v9662_v22  ;;  %v666_v58 = vld [vmem:[#allocation7 + $0x1088] sm:$0xff] }
 0x18f   :  { %5808 = vmatprep.subr.bf16.mxu1 %v9598_v23  ;;  %v670_v59 = vld [vmem:[#allocation7 + $0x10a8] sm:$0xff] }
 0x191   :  { %5846 = vmatpush1.bf16.msra.mxu0 %v9661_v29 }
 0x192   :  { %5809 = vmatpush2.bf16.msra.mxu1 %v9597_v30  ;;  %5847 = vmatprep.subr.bf16.mxu0 %v9654_v31  ;;  %v9814_v30 = vcombine.high %v682_v16, %v686_v20  ;;  %v610_v31 = vld [vmem:[#allocation7 + $0xec8] sm:$0xff] }
 0x193   :  { %5810 = vmatprep.subr.bf16.mxu1 %v9590_v32  ;;  %v614_v32 = vld [vmem:[#allocation7 + $0xee8] sm:$0xff] }
 0x194   :  { %v9742_v44 = vcombine.high %v610_v31, %v614_v32 }
 0x195   :  { %5848 = vmatpush1.bf16.msra.mxu0 %v9653_v38 }
 0x196   :  { %5811 = vmatpush2.bf16.msra.mxu1 %v9589_v41  ;;  %5849 = vmatprep.subr.bf16.mxu0 %v9774_v42  ;;  %v5443_v60 = vpop.f32.mrf.mxu0 }
 0x197   :  { %5886 = vmatprep.subr.bf16.mxu1 %v9838_v43  ;;  %v5444_v62 = vadd.f32 %v5443_v60, %v11139_v63  ;;  %v5496_v0 = vpop.f32.mrf.mxu1  ;;  %v618_v63 = vld [vmem:[#allocation7 + $0xf08] sm:$0xff]  ;;  %v9813_v43 = vcombine.low %v682_v16, %v686_v20 }
 0x198   :  { %v5445_v4 = vpop.f32.mrf.mxu0  ;;  %v9750_v27 = vcombine.high %v618_v63, %v622_v13  ;;  %v9749_v41 = vcombine.low %v618_v63, %v622_v13  ;;  %v586_v63 = vld [vmem:[#allocation7 + $0xe08] sm:$0xff] }
 0x199   :  { %5813 = vmatmul.mubr.bf16.vlgmr.msra.gmra.mxu1 %v10820_v1  ;;  %5850 = vmatpush2.bf16.msra.mxu0 %v9773_v51  ;;  %v11165_v7 = vadd.f32 %v5496_v0, %v5444_v62  ;;  %v5446_v8 = vadd.f32 %v5445_v4, %v11142_v10  ;;  %v5498_v9 = vpop.f32.mrf.mxu1  ;;  %v9821_v10 = vcombine.low %v690_v45, %v694_v61  ;;  %v594_v4 = vld [vmem:[#allocation7 + $0xe48] sm:$0xff] }
 0x19a   :  { %5887 = vmatpush1.bf16.msra.mxu1 %v9837_v53  ;;  %5851 = vmatprep.subr.bf16.mxu0 %v9766_v54  ;;  %v5447_v15 = vpop.f32.mrf.mxu0  ;;  %v602_v53 = vld [vmem:[#allocation7 + $0xe88] sm:$0xff]  ;;  %v9741_v62 = vcombine.low %v610_v31, %v614_v32 }
 0x19b   :  { %5888 = vmatprep.subr.bf16.mxu1 %v9830_v56  ;;  %5822 = vmatprep.mubr.bf16.mxu1 %v10821_v11  ;;  %v11168_v21 = vadd.f32 %v5498_v9, %v5446_v8  ;;  %v5448_v22 = vadd.f32 %v5447_v15, %v11147_v18  ;;  %v5500_v23 = vpop.f32.mrf.mxu1  ;;  %v678_v18 = vld [vmem:[#allocation7 + $0x10e8] sm:$0xff] }
 0x19c   :  { %v11171_v25 = vpop.f32.mrf.mxu0  ;;  %v9806_v51 = vcombine.high %v674_v34, %v678_v18  ;;  %v606_v54 = vld [vmem:[#allocation7 + $0xea8] sm:$0xff] }
 0x19d   :  { %5852 = vmatpush2.bf16.msra.mxu0 %v9765_v3  ;;  %v11173_v28 = vadd.f32 %v5500_v23, %v5448_v22  ;;  %v11175_v29 = vpop.f32.mrf.mxu1  ;;  %v9734_v0 = vcombine.high %v602_v53, %v606_v54  ;;  %v9798_v3 = vcombine.high %v666_v58, %v670_v59  ;;  %v662_v8 = vld [vmem:[#allocation7 + $0x1068] sm:$0xff]  ;;  %v9733_v9 = vcombine.low %v602_v53, %v606_v54 }
 0x19e   :  { %5889 = vmatpush1.bf16.msra.mxu1 %v9829_v5  ;;  %5853 = vmatprep.subr.bf16.mxu0 %v9758_v6  ;;  %v5453_v33 = vpop.f32.mrf.mxu0  ;;  %v598_v5 = vld [vmem:[#allocation7 + $0xe68] sm:$0xff] }
 0x19f   :  { %5890 = vmatprep.subr.bf16.mxu1 %v9822_v12  ;;  %v5454_v36 = vadd.f32 %v5453_v33, %v11153_v39  ;;  %v5506_v38 = vpop.f32.mrf.mxu1  ;;  %v10823_v39 = vld [vmem:[#allocation4 + $0x24] ss:$52 sps:$4 sm:$0xff]   ;;  %v9726_v11 = vcombine.high %v594_v4, %v598_v5  ;;  %v9725_v20 = vcombine.low %v594_v4, %v598_v5 }
 0x1a0   :  { %v5455_v42 = vpop.f32.mrf.mxu0  ;;  %v658_v6 = vld [vmem:[#allocation7 + $0x1048] sm:$0xff] }
 0x1a1   :  { %5823 = vmatmul.mubr.bf16.gmra.mxu1 %v10822_v37  ;;  %5854 = vmatpush2.bf16.msra.mxu0 %v9757_v24  ;;  %v5456_v46 = vadd.f32 %v5455_v42, %v11156_v50  ;;  %v11179_v47 = vadd.f32 %v5506_v38, %v5454_v36  ;;  %v5508_v48 = vpop.f32.mrf.mxu1  ;;  %v9805_v50 = vcombine.low %v674_v34, %v678_v18  ;;  %v590_v13 = vld [vmem:[#allocation7 + $0xe28] sm:$0xff] }
 0x1a2   :  { %5891 = vmatpush1.bf16.msra.mxu1 %v9821_v10  ;;  %5855 = vmatprep.subr.bf16.mxu0 %v9750_v27  ;;  %v5457_v56 = vpop.f32.mrf.mxu0  ;;  %v9790_v12 = vcombine.high %v658_v6, %v662_v8  ;;  %v650_v15 = vld [vmem:[#allocation7 + $0x1008] sm:$0xff]  ;;  %v9789_v22 = vcombine.low %v658_v6, %v662_v8  ;;  %v9718_v23 = vcombine.high %v586_v63, %v590_v13 }
 0x1a3   :  { %5892 = vmatprep.subr.bf16.mxu1 %v9814_v30  ;;  %5918 = vmatprep.mubr.bf16.mxu1 %v10823_v39  ;;  %v5458_v60 = vadd.f32 %v5457_v56, %v11158_v57  ;;  %v11182_v45 = vadd.f32 %v5508_v48, %v5456_v46  ;;  %v5510_v61 = vpop.f32.mrf.mxu1  ;;  %v9797_v57 = vcombine.low %v666_v58, %v670_v59  ;;  %v654_v16 = vld [vmem:[#allocation7 + $0x1028] sm:$0xff] }
 0x1a4   :  { %v9782_v24 = vcombine.high %v650_v15, %v654_v16  ;;  %v834_v10 = vld [vmem:[#allocation7 + $0x15c8] sm:$0xff]  ;;  %v9717_v32 = vcombine.low %v586_v63, %v590_v13  ;;  %v9781_v33 = vcombine.low %v650_v15, %v654_v16  ;;  %v10827_v15 = vld [vmem:[#allocation4 + $0x2c] ss:$52 sps:$4 sm:$0xff]  }
 0x1a5   :  { %5856 = vmatpush2.bf16.msra.mxu0 %v9749_v41  ;;  %v11184_v1 = vadd.f32 %v5510_v61, %v5458_v60  ;;  %v838_v27 = vld [vmem:[#allocation7 + $0x15e8] sm:$0xff] }
 0x1a6   :  { %5893 = vmatpush1.bf16.msra.mxu1 %v9813_v43  ;;  %5857 = vmatprep.subr.bf16.mxu0 %v9742_v44  ;;  %v770_v30 = vld [vmem:[#allocation7 + $0x13c8] sm:$0xff]  ;;  %v9966_v34 = vcombine.high %v834_v10, %v838_v27  ;;  %v9965_v42 = vcombine.low %v834_v10, %v838_v27 }
 0x1a7   :  { %5894 = vmatprep.subr.bf16.mxu1 %v9806_v51  ;;  %v774_v31 = vld [vmem:[#allocation7 + $0x13e8] sm:$0xff] }
 0x1a8   :  { %v9902_v18 = vcombine.high %v770_v30, %v774_v31  ;;  %v826_v36 = vld [vmem:[#allocation7 + $0x1588] sm:$0xff]  ;;  %v9901_v43 = vcombine.low %v770_v30, %v774_v31 }
 0x1a9   :  { %5858 = vmatpush2.bf16.msra.mxu0 %v9741_v62  ;;  %v830_v37 = vld [vmem:[#allocation7 + $0x15a8] sm:$0xff] }
 0x1aa   :  { %5895 = vmatpush1.bf16.msra.mxu1 %v9805_v50  ;;  %5859 = vmatprep.subr.bf16.mxu0 %v9734_v0  ;;  %v762_v38 = vld [vmem:[#allocation7 + $0x1388] sm:$0xff]  ;;  %v9958_v44 = vcombine.high %v826_v36, %v830_v37  ;;  %v9957_v56 = vcombine.low %v826_v36, %v830_v37 }
 0x1ab   :  { %5896 = vmatprep.subr.bf16.mxu1 %v9798_v3  ;;  %v766_v41 = vld [vmem:[#allocation7 + $0x13a8] sm:$0xff] }
 0x1ac   :  { %v9894_v46 = vcombine.high %v762_v38, %v766_v41  ;;  %v818_v48 = vld [vmem:[#allocation7 + $0x1548] sm:$0xff]  ;;  %v9893_v59 = vcombine.low %v762_v38, %v766_v41 }
 0x1ad   :  { %5860 = vmatpush2.bf16.msra.mxu0 %v9733_v9  ;;  %v822_v51 = vld [vmem:[#allocation7 + $0x1568] sm:$0xff] }
 0x1ae   :  { %5897 = vmatpush1.bf16.msra.mxu1 %v9797_v57  ;;  %5861 = vmatprep.subr.bf16.mxu0 %v9726_v11  ;;  %v10824_v53 = vld [vmem:[#allocation4 + $0x18] ss:$52 sps:$4 sm:$0xff]   ;;  %v9950_v60 = vcombine.high %v818_v48, %v822_v51  ;;  %v9949_v4 = vcombine.low %v818_v48, %v822_v51  ;;  %v10826_v11 = vld [vmem:[#allocation4 + $0x80] ss:$52 sps:$4 sm:$0xff]  }
 0x1af   :  { %5898 = vmatprep.subr.bf16.mxu1 %v9790_v12  ;;  %v754_v54 = vld [vmem:[#allocation7 + $0x1348] sm:$0xff] }
 0x1b0   :  { %v758_v39 = vld [vmem:[#allocation7 + $0x1368] sm:$0xff] }
 0x1b1   :  { %5862 = vmatpush2.bf16.msra.mxu0 %v9725_v20  ;;  %v10825_v58 = vld [vmem:[#allocation4 + $0x84] ss:$52 sps:$4 sm:$0xff]   ;;  %v9886_v61 = vcombine.high %v754_v54, %v758_v39  ;;  %v9885_v5 = vcombine.low %v754_v54, %v758_v39 }
 0x1b2   :  { %5899 = vmatpush1.bf16.msra.mxu1 %v9789_v22  ;;  %5863 = vmatprep.subr.bf16.mxu0 %v9718_v23  ;;  %v810_v62 = vld [vmem:[#allocation7 + $0x1508] sm:$0xff] }
 0x1b3   :  { %5900 = vmatprep.subr.bf16.mxu1 %v9782_v24  ;;  %v814_v50 = vld [vmem:[#allocation7 + $0x1528] sm:$0xff] }
 0x1b4   :  { %v746_v0 = vld [vmem:[#allocation7 + $0x1308] sm:$0xff]  ;;  %v9942_v6 = vcombine.high %v810_v62, %v814_v50  ;;  %v9941_v13 = vcombine.low %v810_v62, %v814_v50 }
 0x1b5   :  { %5864 = vmatpush2.bf16.msra.mxu0 %v9717_v32  ;;  %v750_v3 = vld [vmem:[#allocation7 + $0x1328] sm:$0xff] }
 0x1b6   :  { %5901 = vmatpush1.bf16.msra.mxu1 %v9781_v33  ;;  %5939 = vmatprep.subr.bf16.mxu0 %v9966_v34  ;;  %v9878_v8 = vcombine.high %v746_v0, %v750_v3  ;;  %v802_v9 = vld [vmem:[#allocation7 + $0x14c8] sm:$0xff]  ;;  %v9877_v16 = vcombine.low %v746_v0, %v750_v3 }
 0x1b7   :  { %5902 = vmatprep.subr.bf16.mxu1 %v9902_v18  ;;  %v806_v57 = vld [vmem:[#allocation7 + $0x14e8] sm:$0xff] }
 0x1b8   :  { %5866 = vmatmul.mubr.bf16.vlgmr.msra.gmra.mxu0 %v10824_v53  ;;  %v738_v12 = vld [vmem:[#allocation7 + $0x12c8] sm:$0xff]  ;;  %v9934_v20 = vcombine.high %v802_v9, %v806_v57  ;;  %v9933_v30 = vcombine.low %v802_v9, %v806_v57  ;;  %v11186_v57 = vpop.f32.mrf.mxu0 }
 0x1b9   :  { %5940 = vmatpush1.bf16.msra.mxu0 %v9965_v42  ;;  %5875 = vmatprep.mubr.bf16.mxu0 %v10825_v58  ;;  %v742_v63 = vld [vmem:[#allocation7 + $0x12e8] sm:$0xff] }
 0x1ba   :  { %5903 = vmatpush2.bf16.msra.mxu1 %v9901_v43  ;;  %5941 = vmatprep.subr.bf16.mxu0 %v9958_v44  ;;  %v9870_v22 = vcombine.high %v738_v12, %v742_v63  ;;  %v794_v23 = vld [vmem:[#allocation7 + $0x1488] sm:$0xff]  ;;  %v9869_v31 = vcombine.low %v738_v12, %v742_v63  ;;  %v11188_v63 = vpop.f32.mrf.mxu1 }
 0x1bb   :  { %5904 = vmatprep.subr.bf16.mxu1 %v9894_v46  ;;  %v798_v24 = vld [vmem:[#allocation7 + $0x14a8] sm:$0xff]  ;;  %11816 = vst [vmem:[#allocation24_spill] sm:$0xff] %v11188_v63 }
 0x1bc   :  { %v730_v10 = vld [vmem:[#allocation7 + $0x1288] sm:$0xff]  ;;  %v9926_v32 = vcombine.high %v794_v23, %v798_v24  ;;  %v9925_v38 = vcombine.low %v794_v23, %v798_v24 }
 0x1bd   :  { %5942 = vmatpush1.bf16.msra.mxu0 %v9957_v56  ;;  %v734_v27 = vld [vmem:[#allocation7 + $0x12a8] sm:$0xff] }
 0x1be   :  { %5905 = vmatpush2.bf16.msra.mxu1 %v9893_v59  ;;  %5943 = vmatprep.subr.bf16.mxu0 %v9950_v60  ;;  %v9862_v33 = vcombine.high %v730_v10, %v734_v27  ;;  %v786_v34 = vld [vmem:[#allocation7 + $0x1448] sm:$0xff]  ;;  %v9861_v41 = vcombine.low %v730_v10, %v734_v27  ;;  %v10828_v27 = vld [vmem:[#allocation4 + $0x20] ss:$52 sps:$4 sm:$0xff]  }
 0x1bf   :  { %5906 = vmatprep.subr.bf16.mxu1 %v9886_v61  ;;  %v790_v18 = vld [vmem:[#allocation7 + $0x1468] sm:$0xff] }
 0x1c0   :  { %5876 = vmatmul.mubr.bf16.gmra.mxu0 %v10826_v11  ;;  %v722_v36 = vld [vmem:[#allocation7 + $0x1248] sm:$0xff]  ;;  %v9918_v42 = vcombine.high %v786_v34, %v790_v18  ;;  %v9917_v53 = vcombine.low %v786_v34, %v790_v18 }
 0x1c1   :  { %5944 = vmatpush1.bf16.msra.mxu0 %v9949_v4  ;;  %5971 = vmatprep.mubr.bf16.mxu0 %v10827_v15  ;;  %v726_v37 = vld [vmem:[#allocation7 + $0x1268] sm:$0xff] }
 0x1c2   :  { %5907 = vmatpush2.bf16.msra.mxu1 %v9885_v5  ;;  %5945 = vmatprep.subr.bf16.mxu0 %v9942_v6  ;;  %v9854_v43 = vcombine.high %v722_v36, %v726_v37  ;;  %v778_v44 = vld [vmem:[#allocation7 + $0x1408] sm:$0xff]  ;;  %v9853_v54 = vcombine.low %v722_v36, %v726_v37  ;;  %v10829_v37 = vld [vmem:[#allocation4 + $0x8c] ss:$52 sps:$4 sm:$0xff]  }
 0x1c3   :  { %5908 = vmatprep.subr.bf16.mxu1 %v9878_v8  ;;  %v782_v46 = vld [vmem:[#allocation7 + $0x1428] sm:$0xff] }
 0x1c4   :  { %v714_v48 = vld [vmem:[#allocation7 + $0x1208] sm:$0xff]  ;;  %v9910_v39 = vcombine.high %v778_v44, %v782_v46  ;;  %v9909_v62 = vcombine.low %v778_v44, %v782_v46 }
 0x1c5   :  { %5946 = vmatpush1.bf16.msra.mxu0 %v9941_v13  ;;  %v718_v51 = vld [vmem:[#allocation7 + $0x1228] sm:$0xff] }
 0x1c6   :  { %5909 = vmatpush2.bf16.msra.mxu1 %v9877_v16  ;;  %5947 = vmatprep.subr.bf16.mxu0 %v9934_v20  ;;  %v9846_v56 = vcombine.high %v714_v48, %v718_v51  ;;  %v898_v58 = vld [vmem:[#allocation7 + $0x17c8] sm:$0xff]  ;;  %v9845_v50 = vcombine.low %v714_v48, %v718_v51 }
 0x1c7   :  { %5910 = vmatprep.subr.bf16.mxu1 %v9870_v22  ;;  %v902_v59 = vld [vmem:[#allocation7 + $0x17e8] sm:$0xff] }
 0x1c8   :  { %v962_v60 = vld [vmem:[#allocation7 + $0x19c8] sm:$0xff]  ;;  %v10030_v0 = vcombine.high %v898_v58, %v902_v59  ;;  %v10029_v9 = vcombine.low %v898_v58, %v902_v59 }
 0x1c9   :  { %5948 = vmatpush1.bf16.msra.mxu0 %v9933_v30  ;;  %v966_v61 = vld [vmem:[#allocation7 + $0x19e8] sm:$0xff] }
 0x1ca   :  { %5911 = vmatpush2.bf16.msra.mxu1 %v9869_v31  ;;  %5949 = vmatprep.subr.bf16.mxu0 %v9926_v32  ;;  %v10094_v3 = vcombine.high %v962_v60, %v966_v61  ;;  %v890_v4 = vld [vmem:[#allocation7 + $0x1788] sm:$0xff]  ;;  %v10093_v11 = vcombine.low %v962_v60, %v966_v61 }
 0x1cb   :  { %5912 = vmatprep.subr.bf16.mxu1 %v9862_v33  ;;  %v894_v5 = vld [vmem:[#allocation7 + $0x17a8] sm:$0xff] }
 0x1cc   :  { %v954_v6 = vld [vmem:[#allocation7 + $0x1988] sm:$0xff]  ;;  %v10022_v12 = vcombine.high %v890_v4, %v894_v5  ;;  %v10021_v30 = vcombine.low %v890_v4, %v894_v5 }
 0x1cd   :  { %5950 = vmatpush1.bf16.msra.mxu0 %v9925_v38  ;;  %v958_v8 = vld [vmem:[#allocation7 + $0x19a8] sm:$0xff] }
 0x1ce   :  { %5913 = vmatpush2.bf16.msra.mxu1 %v9861_v41  ;;  %5951 = vmatprep.subr.bf16.mxu0 %v9918_v42  ;;  %v10086_v13 = vcombine.high %v954_v6, %v958_v8  ;;  %v882_v15 = vld [vmem:[#allocation7 + $0x1748] sm:$0xff]  ;;  %v10085_v32 = vcombine.low %v954_v6, %v958_v8 }
 0x1cf   :  { %5914 = vmatprep.subr.bf16.mxu1 %v9854_v43  ;;  %v886_v16 = vld [vmem:[#allocation7 + $0x1768] sm:$0xff] }
 0x1d0   :  { %v946_v22 = vld [vmem:[#allocation7 + $0x1948] sm:$0xff]  ;;  %v10014_v33 = vcombine.high %v882_v15, %v886_v16 }
 0x1d1   :  { %5952 = vmatpush1.bf16.msra.mxu0 %v9917_v53  ;;  %v950_v23 = vld [vmem:[#allocation7 + $0x1968] sm:$0xff]  ;;  %v10013_v53 = vcombine.low %v882_v15, %v886_v16 }
 0x1d2   :  { %5915 = vmatpush2.bf16.msra.mxu1 %v9853_v54  ;;  %5953 = vmatprep.subr.bf16.mxu0 %v9910_v39  ;;  %v10078_v38 = vcombine.high %v946_v22, %v950_v23  ;;  %v878_v41 = vld [vmem:[#allocation7 + $0x1728] sm:$0xff] }
 0x1d3   :  { %5916 = vmatprep.subr.bf16.mxu1 %v9846_v56  ;;  %v938_v43 = vld [vmem:[#allocation7 + $0x1908] sm:$0xff] }
 0x1d4   :  { %v942_v44 = vld [vmem:[#allocation7 + $0x1928] sm:$0xff] }
 0x1d5   :  { %5954 = vmatpush1.bf16.msra.mxu0 %v9909_v62  ;;  %v10070_v59 = vcombine.high %v938_v43, %v942_v44  ;;  %v866_v60 = vld [vmem:[#allocation7 + $0x16c8] sm:$0xff]  ;;  %v10069_v8 = vcombine.low %v938_v43, %v942_v44 }
 0x1d6   :  { %5917 = vmatpush2.bf16.msra.mxu1 %v9845_v50  ;;  %5955 = vmatprep.subr.bf16.mxu0 %v10030_v0  ;;  %v870_v61 = vld [vmem:[#allocation7 + $0x16e8] sm:$0xff] }
 0x1d7   :  { %5992 = vmatprep.subr.bf16.mxu1 %v10094_v3  ;;  %v930_v50 = vld [vmem:[#allocation7 + $0x18c8] sm:$0xff] }
 0x1d8   :  { %v5549_v20 = vpop.f32.mrf.mxu0  ;;  %v10830_v3 = vld [vmem:[#allocation4 + $0x88] ss:$52 sps:$4 sm:$0xff]  }
 0x1d9   :  { %v5550_v24 = vadd.f32 %v5549_v20, %v11165_v7  ;;  %v5602_v10 = vpop.f32.mrf.mxu1  ;;  %5919 = vmatmul.mubr.bf16.vlgmr.msra.gmra.mxu1 %v10828_v27  ;;  %5956 = vmatpush2.bf16.msra.mxu0 %v10029_v9  ;;  %v874_v7 = vld [vmem:[#allocation7 + $0x1708] sm:$0xff]  ;;  %v9998_v9 = vcombine.high %v866_v60, %v870_v61 }
 0x1da   :  { %5993 = vmatpush1.bf16.msra.mxu1 %v10093_v11  ;;  %v5551_v31 = vpop.f32.mrf.mxu0  ;;  %5957 = vmatprep.subr.bf16.mxu0 %v10022_v12  ;;  %v10006_v39 = vcombine.high %v874_v7, %v878_v41  ;;  %v10005_v5 = vcombine.low %v874_v7, %v878_v41  ;;  %v858_v16 = vld [vmem:[#allocation7 + $0x1688] sm:$0xff] }
 0x1db   :  { %v11191_v34 = vadd.f32 %v5602_v10, %v5550_v24  ;;  %v5552_v18 = vadd.f32 %v5551_v31, %v11168_v21  ;;  %v5604_v36 = vpop.f32.mrf.mxu1  ;;  %5994 = vmatprep.subr.bf16.mxu1 %v10086_v13  ;;  %5928 = vmatprep.mubr.bf16.mxu1 %v10829_v37  ;;  %v10077_v21 = vcombine.low %v946_v22, %v950_v23  ;;  %v862_v20 = vld [vmem:[#allocation7 + $0x16a8] sm:$0xff] }
 0x1dc   :  { %v5553_v42 = vpop.f32.mrf.mxu0  ;;  %v922_v22 = vld [vmem:[#allocation7 + $0x1888] sm:$0xff]  ;;  %v9990_v31 = vcombine.high %v858_v16, %v862_v20  ;;  %v9989_v7 = vcombine.low %v858_v16, %v862_v20 }
 0x1dd   :  { %v11194_v46 = vadd.f32 %v5604_v36, %v5552_v18  ;;  %v5554_v48 = vadd.f32 %v5553_v42, %v11173_v28  ;;  %v5606_v51 = vpop.f32.mrf.mxu1  ;;  %5958 = vmatpush2.bf16.msra.mxu0 %v10021_v30  ;;  %v934_v28 = vld [vmem:[#allocation7 + $0x18e8] sm:$0xff]  ;;  %v9997_v30 = vcombine.low %v866_v60, %v870_v61  ;;  %v195_v60 = vld [vmem:[#allocation7 + $0x1d0] sm:$0xff] }
 0x1de   :  { %5995 = vmatpush1.bf16.msra.mxu1 %v10085_v32  ;;  %v11197_v54 = vpop.f32.mrf.mxu0  ;;  %5959 = vmatprep.subr.bf16.mxu0 %v10014_v33  ;;  %v10062_v15 = vcombine.high %v930_v50, %v934_v28  ;;  %v926_v23 = vld [vmem:[#allocation7 + $0x18a8] sm:$0xff]  ;;  %v199_v61 = vld [vmem:[#allocation7 + $0x1f0] sm:$0xff] }
 0x1df   :  { %v11199_v56 = vadd.f32 %v5606_v51, %v5554_v48  ;;  %v11201_v58 = vpop.f32.mrf.mxu1  ;;  %5996 = vmatprep.subr.bf16.mxu1 %v10078_v38  ;;  %v10054_v33 = vcombine.high %v922_v22, %v926_v23  ;;  %v850_v18 = vld [vmem:[#allocation7 + $0x1648] sm:$0xff] }
 0x1e0   :  { %v5559_v62 = vpop.f32.mrf.mxu0  ;;  %v854_v36 = vld [vmem:[#allocation7 + $0x1668] sm:$0xff] }
 0x1e1   :  { %v5560_v0 = vadd.f32 %v5559_v62, %v11179_v47  ;;  %5929 = vmatmul.mubr.bf16.gmra.mxu1 %v10830_v3  ;;  %5960 = vmatpush2.bf16.msra.mxu0 %v10013_v53  ;;  %v5612_v4 = vpop.f32.mrf.mxu1  ;;  %v914_v37 = vld [vmem:[#allocation7 + $0x1848] sm:$0xff]  ;;  %v9982_v41 = vcombine.high %v850_v18, %v854_v36  ;;  %v9981_v53 = vcombine.low %v850_v18, %v854_v36  ;;  %v323_v62 = vld [vmem:[#allocation7 + $0x5d0] sm:$0xff]  ;;  %v11219_v18 = vstv %s11789_s6 }
 0x1e2   :  { %5997 = vmatpush1.bf16.msra.mxu1 %v10077_v21  ;;  %v5561_v6 = vpop.f32.mrf.mxu0  ;;  %5961 = vmatprep.subr.bf16.mxu0 %v10006_v39  ;;  %v918_v38 = vld [vmem:[#allocation7 + $0x1868] sm:$0xff]  ;;  %v9328_v3 = vcombine.high %v195_v60, %v199_v61 }
 0x1e3   :  { %v5562_v11 = vadd.f32 %v5561_v6, %v11182_v45  ;;  %v11205_v12 = vadd.f32 %v5612_v4, %v5560_v0  ;;  %v5614_v13 = vpop.f32.mrf.mxu1  ;;  %5998 = vmatprep.subr.bf16.mxu1 %v10070_v59  ;;  %6024 = vmatprep.mubr.bf16.mxu1 %v11793_v2  ;;  %v10061_v45 = vcombine.low %v930_v50, %v934_v28  ;;  %v842_v43 = vld [vmem:[#allocation7 + $0x1608] sm:$0xff]  ;;  %v327_v50 = vld [vmem:[#allocation7 + $0x5f0] sm:$0xff] }
 0x1e4   :  { %v5563_v47 = vpop.f32.mrf.mxu0  ;;  %v10046_v42 = vcombine.high %v914_v37, %v918_v38  ;;  %v846_v44 = vld [vmem:[#allocation7 + $0x1628] sm:$0xff]  ;;  %v10045_v21 = vcombine.low %v914_v37, %v918_v38  ;;  %v9456_v4 = vcombine.high %v323_v62, %v327_v50  ;;  %v191_v6 = vld [vmem:[#allocation7 + $0x1b0] sm:$0xff] }
 0x1e5   :  { %v5564_v24 = vadd.f32 %v5563_v47, %v11184_v1  ;;  %v11209_v10 = vadd.f32 %v5614_v13, %v5562_v11  ;;  %5962 = vmatpush2.bf16.msra.mxu0 %v10005_v5  ;;  %v5616_v27 = vpop.f32.mrf.mxu1  ;;  %v10053_v1 = vcombine.low %v922_v22, %v926_v23  ;;  %v906_v48 = vld [vmem:[#allocation7 + $0x1808] sm:$0xff]  ;;  %v9974_v39 = vcombine.high %v842_v43, %v846_v44  ;;  %v187_v5 = vld [vmem:[#allocation7 + $0x190] sm:$0xff] }
 0x1e6   :  { %5999 = vmatpush1.bf16.msra.mxu1 %v10069_v8  ;;  %5963 = vmatprep.subr.bf16.mxu0 %v9998_v9  ;;  %v910_v51 = vld [vmem:[#allocation7 + $0x1828] sm:$0xff]  ;;  %v9973_v28 = vcombine.low %v842_v43, %v846_v44  ;;  %v315_v8 = vld [vmem:[#allocation7 + $0x590] sm:$0xff]  ;;  %v9327_v11 = vcombine.low %v195_v60, %v199_v61  ;;  %v11213_v13 = vpop.f32.mrf.mxu0  ;;  %v9320_v16 = vcombine.high %v187_v5, %v191_v6 }
 0x1e7   :  { %v11211_v32 = vadd.f32 %v5616_v27, %v5564_v24  ;;  %6000 = vmatprep.subr.bf16.mxu1 %v10062_v15  ;;  %v10038_v59 = vcombine.high %v906_v48, %v910_v51  ;;  %v10037_v0 = vcombine.low %v906_v48, %v910_v51  ;;  %v319_v9 = vld [vmem:[#allocation7 + $0x5b0] sm:$0xff]  ;;  %11817 = vst [vmem:[#allocation25_spill] sm:$0xff] %v11213_v13  ;;  %v10831_v24 = vld [vmem:[#allocation4 + $0x28] ss:$52 sps:$4 sm:$0xff]  }
 0x1e8   :  { %v9455_v15 = vcombine.low %v323_v62, %v327_v50  ;;  %v9448_v20 = vcombine.high %v315_v8, %v319_v9  ;;  %v179_v47 = vld [vmem:[#allocation7 + $0x150] sm:$0xff]  ;;  %v9447_v37 = vcombine.low %v315_v8, %v319_v9  ;;  %v10835_v9 = vld [vmem:[#allocation4 + $0x98] ss:$52 sps:$4 sm:$0xff]  }
 0x1e9   :  { %5964 = vmatpush2.bf16.msra.mxu0 %v9997_v30  ;;  %v183_v22 = vld [vmem:[#allocation7 + $0x170] sm:$0xff] }
 0x1ea   :  { %6001 = vmatpush1.bf16.msra.mxu1 %v10061_v45  ;;  %5965 = vmatprep.subr.bf16.mxu0 %v9990_v31  ;;  %v307_v27 = vld [vmem:[#allocation7 + $0x550] sm:$0xff]  ;;  %v9312_v38 = vcombine.high %v179_v47, %v183_v22 }
 0x1eb   :  { %6002 = vmatprep.subr.bf16.mxu1 %v10054_v33  ;;  %v311_v30 = vld [vmem:[#allocation7 + $0x570] sm:$0xff]  ;;  %v9319_v33 = vcombine.low %v187_v5, %v191_v6 }
 0x1ec   :  { %v10832_v31 = vld [vmem:[#allocation4 + $0x30] ss:$52 sps:$4 sm:$0xff]  }
 0x1ed   :  { %5966 = vmatpush2.bf16.msra.mxu0 %v9989_v7  ;;  %v10833_v7 = vld [vmem:[#allocation4 + $0x94] ss:$52 sps:$4 sm:$0xff]   ;;  %v299_v43 = vld [vmem:[#allocation7 + $0x510] sm:$0xff] }
 0x1ee   :  { %6003 = vmatpush1.bf16.msra.mxu1 %v10053_v1  ;;  %5967 = vmatprep.subr.bf16.mxu0 %v9982_v41  ;;  %v9440_v1 = vcombine.high %v307_v27, %v311_v30  ;;  %v175_v41 = vld [vmem:[#allocation7 + $0x130] sm:$0xff] }
 0x1ef   :  { %6004 = vmatprep.subr.bf16.mxu1 %v10046_v42  ;;  %v303_v44 = vld [vmem:[#allocation7 + $0x530] sm:$0xff] }
 0x1f0   :  { %v9432_v61 = vcombine.high %v299_v43, %v303_v44  ;;  %v163_v62 = vld [vmem:[#allocation7 + $0xd0] sm:$0xff] }
 0x1f1   :  { %5968 = vmatpush2.bf16.msra.mxu0 %v9981_v53  ;;  %v9311_v53 = vcombine.low %v179_v47, %v183_v22  ;;  %v167_v50 = vld [vmem:[#allocation7 + $0xf0] sm:$0xff] }
 0x1f2   :  { %6005 = vmatpush1.bf16.msra.mxu1 %v10045_v21  ;;  %5969 = vmatprep.subr.bf16.mxu0 %v9974_v39  ;;  %v9439_v39 = vcombine.low %v307_v27, %v311_v30  ;;  %v10836_v27 = vld [vmem:[#allocation4 + $0x4] ss:$52 sps:$4 sm:$0xff]  }
 0x1f3   :  { %6006 = vmatprep.subr.bf16.mxu1 %v10038_v59  ;;  %v283_v30 = vld [vmem:[#allocation7 + $0x490] sm:$0xff] }
 0x1f4   :  { %v935_v13 = vld [vmem:[#allocation7 + $0x18f0] sm:$0xff] }
 0x1f5   :  { %5970 = vmatpush2.bf16.msra.mxu0 %v9973_v28 }
 0x1f6   :  { %6007 = vmatpush1.bf16.msra.mxu1 %v10037_v0  ;;  %6045 = vmatprep.subr.bf16.mxu0 %v9328_v3  ;;  %v10834_v0 = vld [vmem:[#allocation4 + $0x90] ss:$52 sps:$4 sm:$0xff]  }
 0x1f7   :  { %6098 = vmatprep.subr.bf16.mxu1 %v9456_v4  ;;  %v291_v3 = vld [vmem:[#allocation7 + $0x4d0] sm:$0xff] }
 0x1f8   :  { %v5655_v23 = vpop.f32.mrf.mxu0  ;;  %5972 = vmatmul.mubr.bf16.vlgmr.msra.gmra.mxu0 %v10831_v24  ;;  %v295_v4 = vld [vmem:[#allocation7 + $0x4f0] sm:$0xff] }
 0x1f9   :  { %v5656_v45 = vadd.f32 %v5655_v23, %v11191_v34  ;;  %6025 = vmatmul.mubr.bf16.vlgmr.msra.gmra.mxu1 %v10832_v31  ;;  %6046 = vmatpush1.bf16.msra.mxu0 %v9327_v11  ;;  %v171_v34 = vld [vmem:[#allocation7 + $0x110] sm:$0xff]  ;;  %v9424_v22 = vcombine.high %v291_v3, %v295_v4 }
 0x1fa   :  { %6099 = vmatpush1.bf16.msra.mxu1 %v9455_v15  ;;  %v11221_v36 = vpop.f32.mrf.mxu0  ;;  %6047 = vmatprep.subr.bf16.mxu0 %v9320_v16  ;;  %v9304_v59 = vcombine.high %v171_v34, %v175_v41  ;;  %v9431_v16 = vcombine.low %v299_v43, %v303_v44  ;;  %v155_v23 = vld [vmem:[#allocation7 + $0x90] sm:$0xff] }
 0x1fb   :  { %6100 = vmatprep.subr.bf16.mxu1 %v9448_v20  ;;  %5981 = vmatprep.mubr.bf16.mxu0 %v10833_v7  ;;  %v6821_v48 = vmul.f32 %v11219_v18, %v5656_v45  ;;  %vm6788_vm0 = vcmp.ge.f32.partialorder %v5656_v45, 0.0  ;;  %v9296_v20 = vcombine.high %v163_v62, %v167_v50  ;;  %v159_v24 = vld [vmem:[#allocation7 + $0xb0] sm:$0xff] }
 0x1fc   :  { %v5659_v42 = vpop.f32.mrf.mxu0  ;;  %6034 = vmatprep.mubr.bf16.mxu1 %v11793_v2  ;;  %v10837_v31 = vld [vmem:[#allocation4 + $0xc] ss:$52 sps:$4 sm:$0xff]   ;;  %v9288_v7 = vcombine.high %v155_v23, %v159_v24 }
 0x1fd   :  { %v5660_v51 = vadd.f32 %v5659_v42, %v11199_v56  ;;  %6048 = vmatpush1.bf16.msra.mxu0 %v9319_v33  ;;  %v9303_v56 = vcombine.low %v171_v34, %v175_v41  ;;  %v6853_v5 = vsel %vm6788_vm0, %v5656_v45, %v6821_v48  ;;  %v287_v45 = vld [vmem:[#allocation7 + $0x4b0] sm:$0xff] }
 0x1fe   :  { %6101 = vmatpush1.bf16.msra.mxu1 %v9447_v37  ;;  %v11226_v21 = vpop.f32.mrf.mxu0  ;;  %6049 = vmatprep.subr.bf16.mxu0 %v9312_v38  ;;  %v9295_v38 = vcombine.low %v163_v62, %v167_v50  ;;  %v9416_v34 = vcombine.high %v283_v30, %v287_v45  ;;  %v147_v41 = vld [vmem:[#allocation7 + $0x50] sm:$0xff] }
 0x1ff   :  { %vm6796_vm1 = vcmp.ge.f32.partialorder %v5660_v51, 0.0  ;;  %v6829_v60 = vmul.f32 %v11219_v18, %v5660_v51  ;;  %6102 = vmatprep.subr.bf16.mxu1 %v9440_v1  ;;  %v151_v42 = vld [vmem:[#allocation7 + $0x70] sm:$0xff] }
 0x200   :  { %v5665_v28 = vpop.f32.mrf.mxu0  ;;  %5982 = vmatmul.mubr.bf16.gmra.mxu0 %v10834_v0  ;;  %v275_v43 = vld [vmem:[#allocation7 + $0x450] sm:$0xff]  ;;  %v9279_v0 = vcombine.low %v147_v41, %v151_v42 }
 0x201   :  { %v6861_v6 = vsel %vm6796_vm1, %v5660_v51, %v6829_v60  ;;  %v5666_v8 = vadd.f32 %v5665_v28, %v11205_v12  ;;  %6050 = vmatpush1.bf16.msra.mxu0 %v9311_v53  ;;  %6035 = vmatmul.mubr.bf16.gmra.mxu1 %v10835_v9  ;;  %v279_v44 = vld [vmem:[#allocation7 + $0x470] sm:$0xff] }
 0x202   :  { %v11231_v11 = vpack.c.bf16 %v6861_v6, %v6853_v5  ;;  %6103 = vmatpush1.bf16.msra.mxu1 %v9439_v39  ;;  %v5667_v15 = vpop.f32.mrf.mxu0  ;;  %6051 = vmatprep.subr.bf16.mxu0 %v9304_v59  ;;  %v9415_v39 = vcombine.low %v283_v30, %v287_v45  ;;  %v9280_v59 = vcombine.high %v147_v41, %v151_v42  ;;  %v143_v62 = vld [vmem:[#allocation7 + $0x30] sm:$0xff] }
 0x203   :  { %v11234_v47 = vadd.f32 %v5667_v15, %v11209_v10  ;;  %6104 = vmatprep.subr.bf16.mxu1 %v9432_v61  ;;  %6077 = vmatprep.mubr.bf16.mxu0 %v10836_v27  ;;  %v6837_v33 = vmul.f32 %v11219_v18, %v5666_v8  ;;  %vm6804_vm2 = vcmp.ge.f32.partialorder %v5666_v8, 0.0  ;;  %v9423_v10 = vcombine.low %v291_v3, %v295_v4  ;;  %v139_v61 = vld [vmem:[#allocation7 + $0x10] sm:$0xff] }
 0x204   :  { %11818 = vst [vmem:[#allocation26_spill] sm:$0xff] %v11231_v11  ;;  %v5669_v12 = vpop.f32.mrf.mxu0  ;;  %6130 = vmatprep.mubr.bf16.mxu1 %v10837_v31  ;;  %v9408_v60 = vcombine.high %v275_v43, %v279_v44  ;;  %v267_v50 = vld [vmem:[#allocation7 + $0x410] sm:$0xff]  ;;  %v9272_v3 = vcombine.high %v139_v61, %v143_v62  ;;  %v9271_v15 = vcombine.low %v139_v61, %v143_v62 }
 0x205   :  { %11819 = vst [vmem:[#allocation27_spill] sm:$0xff] %v11234_v47  ;;  %v5670_v37 = vadd.f32 %v5669_v12, %v11211_v32  ;;  %6052 = vmatpush1.bf16.msra.mxu0 %v9303_v56  ;;  %v6869_v48 = vsel %vm6804_vm2, %v5666_v8, %v6837_v33  ;;  %v9287_v32 = vcombine.low %v155_v23, %v159_v24  ;;  %v271_v28 = vld [vmem:[#allocation7 + $0x430] sm:$0xff] }
 0x206   :  { %6105 = vmatpush1.bf16.msra.mxu1 %v9431_v16  ;;  %6053 = vmatprep.subr.bf16.mxu0 %v9296_v20  ;;  %v9407_v56 = vcombine.low %v275_v43, %v279_v44  ;;  %v9400_v4 = vcombine.high %v267_v50, %v271_v28  ;;  %v259_v5 = vld [vmem:[#allocation7 + $0x3d0] sm:$0xff]  ;;  %v9399_v16 = vcombine.low %v267_v50, %v271_v28 }
 0x207   :  { %vm6812_vm3 = vcmp.ge.f32.partialorder %v5670_v37, 0.0  ;;  %v6845_v1 = vmul.f32 %v11219_v18, %v5670_v37  ;;  %6106 = vmatprep.subr.bf16.mxu1 %v9424_v22  ;;  %v263_v6 = vld [vmem:[#allocation7 + $0x3f0] sm:$0xff] }
 0x208   :  { %v387_v8 = vld [vmem:[#allocation7 + $0x7d0] sm:$0xff]  ;;  %v9392_v20 = vcombine.high %v259_v5, %v263_v6  ;;  %v9391_v30 = vcombine.low %v259_v5, %v263_v6 }
 0x209   :  { %v6877_v51 = vsel %vm6812_vm3, %v5670_v37, %v6845_v1  ;;  %6054 = vmatpush1.bf16.msra.mxu0 %v9295_v38  ;;  %v391_v9 = vld [vmem:[#allocation7 + $0x7f0] sm:$0xff] }
 0x20a   :  { %v11239_v53 = vpack.c.bf16 %v6877_v51, %v6869_v48  ;;  %6107 = vmatpush1.bf16.msra.mxu1 %v9423_v10  ;;  %6055 = vmatprep.subr.bf16.mxu0 %v9288_v7  ;;  %v9520_v22 = vcombine.high %v387_v8, %v391_v9  ;;  %v251_v23 = vld [vmem:[#allocation7 + $0x390] sm:$0xff]  ;;  %v9519_v45 = vcombine.low %v387_v8, %v391_v9 }
 0x20b   :  { %6108 = vmatprep.subr.bf16.mxu1 %v9416_v34  ;;  %v255_v24 = vld [vmem:[#allocation7 + $0x3b0] sm:$0xff] }
 0x20c   :  { %11820 = vst [vmem:[#allocation28_spill] sm:$0xff] %v11239_v53  ;;  %v379_v27 = vld [vmem:[#allocation7 + $0x790] sm:$0xff]  ;;  %v9384_v31 = vcombine.high %v251_v23, %v255_v24  ;;  %v9383_v1 = vcombine.low %v251_v23, %v255_v24 }
 0x20d   :  { %6056 = vmatpush1.bf16.msra.mxu0 %v9287_v32  ;;  %v383_v12 = vld [vmem:[#allocation7 + $0x7b0] sm:$0xff] }
 0x20e   :  { %6109 = vmatpush1.bf16.msra.mxu1 %v9415_v39  ;;  %6057 = vmatprep.subr.bf16.mxu0 %v9280_v59  ;;  %v9512_v33 = vcombine.high %v379_v27, %v383_v12  ;;  %v243_v37 = vld [vmem:[#allocation7 + $0x350] sm:$0xff]  ;;  %v9511_v34 = vcombine.low %v379_v27, %v383_v12  ;;  %v11241_v27 = vpop.f32.mrf.mxu1 }
 0x20f   :  { %6110 = vmatprep.subr.bf16.mxu1 %v9408_v60  ;;  %v247_v38 = vld [vmem:[#allocation7 + $0x370] sm:$0xff]  ;;  %11821 = vst [vmem:[#allocation29_spill] sm:$0xff] %v11241_v27 }
 0x210   :  { %v371_v10 = vld [vmem:[#allocation7 + $0x750] sm:$0xff]  ;;  %v9376_v41 = vcombine.high %v243_v37, %v247_v38  ;;  %v9375_v32 = vcombine.low %v243_v37, %v247_v38 }
 0x211   :  { %6058 = vmatpush1.bf16.msra.mxu0 %v9279_v0  ;;  %v375_v7 = vld [vmem:[#allocation7 + $0x770] sm:$0xff] }
 0x212   :  { %6111 = vmatpush1.bf16.msra.mxu1 %v9407_v56  ;;  %6059 = vmatprep.subr.bf16.mxu0 %v9272_v3  ;;  %v9504_v42 = vcombine.high %v371_v10, %v375_v7  ;;  %v235_v43 = vld [vmem:[#allocation7 + $0x310] sm:$0xff]  ;;  %v9503_v39 = vcombine.low %v371_v10, %v375_v7 }
 0x213   :  { %6112 = vmatprep.subr.bf16.mxu1 %v9400_v4  ;;  %v239_v44 = vld [vmem:[#allocation7 + $0x330] sm:$0xff] }
 0x214   :  { %v363_v48 = vld [vmem:[#allocation7 + $0x710] sm:$0xff]  ;;  %v9368_v59 = vcombine.high %v235_v43, %v239_v44  ;;  %v9367_v0 = vcombine.low %v235_v43, %v239_v44 }
 0x215   :  { %6060 = vmatpush1.bf16.msra.mxu0 %v9271_v15  ;;  %v367_v51 = vld [vmem:[#allocation7 + $0x730] sm:$0xff] }
 0x216   :  { %6113 = vmatpush1.bf16.msra.mxu1 %v9399_v16  ;;  %6061 = vmatprep.subr.bf16.mxu0 %v9392_v20  ;;  %v9496_v60 = vcombine.high %v363_v48, %v367_v51  ;;  %v227_v61 = vld [vmem:[#allocation7 + $0x2d0] sm:$0xff]  ;;  %v9495_v56 = vcombine.low %v363_v48, %v367_v51  ;;  %v11246_v48 = vsub.s32 2, %v11124_v26 }
 0x217   :  { %6114 = vmatprep.subr.bf16.mxu1 %v9520_v22  ;;  %v231_v62 = vld [vmem:[#allocation7 + $0x2f0] sm:$0xff] }
 0x218   :  { %v355_v50 = vld [vmem:[#allocation7 + $0x6d0] sm:$0xff]  ;;  %v9360_v3 = vcombine.high %v227_v61, %v231_v62  ;;  %v9359_v15 = vcombine.low %v227_v61, %v231_v62  ;;  %11822 = vst [vmem:[#allocation30_spill] sm:$0xff] %v11246_v48 }
 0x219   :  { %6062 = vmatpush2.bf16.msra.mxu0 %v9391_v30  ;;  %v359_v28 = vld [vmem:[#allocation7 + $0x6f0] sm:$0xff] }
 0x21a   :  { %6115 = vmatpush2.bf16.msra.mxu1 %v9519_v45  ;;  %6063 = vmatprep.subr.bf16.mxu0 %v9384_v31  ;;  %v9488_v4 = vcombine.high %v355_v50, %v359_v28  ;;  %v219_v5 = vld [vmem:[#allocation7 + $0x290] sm:$0xff]  ;;  %v9487_v16 = vcombine.low %v355_v50, %v359_v28  ;;  %v5708_v31 = vpop.f32.mrf.mxu1 }
 0x21b   :  { %6116 = vmatprep.subr.bf16.mxu1 %v9512_v33  ;;  %v223_v6 = vld [vmem:[#allocation7 + $0x2b0] sm:$0xff] }
 0x21c   :  { %v347_v8 = vld [vmem:[#allocation7 + $0x690] sm:$0xff]  ;;  %v9352_v20 = vcombine.high %v219_v5, %v223_v6  ;;  %v9351_v45 = vcombine.low %v219_v5, %v223_v6 }
 0x21d   :  { %6064 = vmatpush2.bf16.msra.mxu0 %v9383_v1  ;;  %v351_v9 = vld [vmem:[#allocation7 + $0x6b0] sm:$0xff] }
 0x21e   :  { %6117 = vmatpush2.bf16.msra.mxu1 %v9511_v34  ;;  %6065 = vmatprep.subr.bf16.mxu0 %v9376_v41  ;;  %v9480_v22 = vcombine.high %v347_v8, %v351_v9  ;;  %v211_v23 = vld [vmem:[#allocation7 + $0x250] sm:$0xff]  ;;  %v9479_v33 = vcombine.low %v347_v8, %v351_v9 }
 0x21f   :  { %6118 = vmatprep.subr.bf16.mxu1 %v9504_v42  ;;  %v215_v24 = vld [vmem:[#allocation7 + $0x270] sm:$0xff]  ;;  %v11243_v42 = vpop.f32.mrf.mxu1 }
 0x220   :  { %v339_v12 = vld [vmem:[#allocation7 + $0x650] sm:$0xff]  ;;  %v9344_v37 = vcombine.high %v211_v23, %v215_v24  ;;  %v9343_v41 = vcombine.low %v211_v23, %v215_v24 }
 0x221   :  { %6066 = vmatpush2.bf16.msra.mxu0 %v9375_v32  ;;  %v343_v30 = vld [vmem:[#allocation7 + $0x670] sm:$0xff]  ;;  %v5712_v62 = vpop.f32.mrf.mxu1 }
 0x222   :  { %6119 = vmatpush2.bf16.msra.mxu1 %v9503_v39  ;;  %6067 = vmatprep.subr.bf16.mxu0 %v9368_v59  ;;  %v9472_v38 = vcombine.high %v339_v12, %v343_v30  ;;  %v203_v10 = vld [vmem:[#allocation7 + $0x210] sm:$0xff]  ;;  %v9471_v43 = vcombine.low %v339_v12, %v343_v30 }
 0x223   :  { %6120 = vmatprep.subr.bf16.mxu1 %v9496_v60  ;;  %v207_v7 = vld [vmem:[#allocation7 + $0x230] sm:$0xff] }
 0x224   :  { %v331_v1 = vld [vmem:[#allocation7 + $0x610] sm:$0xff]  ;;  %v9336_v44 = vcombine.high %v203_v10, %v207_v7  ;;  %v9335_v61 = vcombine.low %v203_v10, %v207_v7 }
 0x225   :  { %6068 = vmatpush2.bf16.msra.mxu0 %v9367_v0  ;;  %v335_v34 = vld [vmem:[#allocation7 + $0x630] sm:$0xff]  ;;  %v10838_v0 = vld [vmem:[#allocation9] sm:$0xff] }
 0x226   :  { %6121 = vmatpush2.bf16.msra.mxu1 %v9495_v56  ;;  %6069 = vmatprep.subr.bf16.mxu0 %v9360_v3  ;;  %v9464_v51 = vcombine.high %v331_v1, %v335_v34  ;;  %v451_v32 = vld [vmem:[#allocation7 + $0x9d0] sm:$0xff]  ;;  %v9463_v50 = vcombine.low %v331_v1, %v335_v34  ;;  %v11249_v56 = vrot.slane %v10838_v0, %v11246_v48  ;;  %v10840_v1 = vld [vmem:[#allocation4 + $0x8] ss:$52 sps:$4 sm:$0xff]  }
 0x227   :  { %6122 = vmatprep.subr.bf16.mxu1 %v9488_v4  ;;  %v455_v39 = vld [vmem:[#allocation7 + $0x9f0] sm:$0xff]  ;;  %v10842_v0 = vld [vmem:[#allocation4 + $0x74] ss:$52 sps:$4 sm:$0xff]  }
 0x228   :  { %v579_v59 = vld [vmem:[#allocation7 + $0xdd0] sm:$0xff]  ;;  %v9584_v28 = vcombine.high %v451_v32, %v455_v39  ;;  %v9583_v9 = vcombine.low %v451_v32, %v455_v39  ;;  %v5709_v23 = vadd.f32 %v5708_v31, %v11249_v56 }
 0x229   :  { %6070 = vmatpush2.bf16.msra.mxu0 %v9359_v15  ;;  %v583_v60 = vld [vmem:[#allocation7 + $0xdf0] sm:$0xff]  ;;  %v11251_v15 = vpop.f32.mrf.mxu0 }
 0x22a   :  { %6123 = vmatpush2.bf16.msra.mxu1 %v9487_v16  ;;  %6071 = vmatprep.subr.bf16.mxu0 %v9352_v20  ;;  %v9712_v3 = vcombine.high %v579_v59, %v583_v60  ;;  %v443_v4 = vld [vmem:[#allocation7 + $0x990] sm:$0xff]  ;;  %11823 = vst [vmem:[#allocation31_spill] sm:$0xff] %v11251_v15  ;;  %v11253_v16 = vpop.f32.mrf.mxu1  ;;  %v9711_v20 = vcombine.low %v579_v59, %v583_v60 }
 0x22b   :  { %6124 = vmatprep.subr.bf16.mxu1 %v9480_v22  ;;  %v447_v5 = vld [vmem:[#allocation7 + $0x9b0] sm:$0xff] }
 0x22c   :  { %v571_v6 = vld [vmem:[#allocation7 + $0xd90] sm:$0xff]  ;;  %v9576_v22 = vcombine.high %v443_v4, %v447_v5  ;;  %v5718_v10 = vpop.f32.mrf.mxu1  ;;  %v9575_v34 = vcombine.low %v443_v4, %v447_v5 }
 0x22d   :  { %6072 = vmatpush2.bf16.msra.mxu0 %v9351_v45  ;;  %v575_v8 = vld [vmem:[#allocation7 + $0xdb0] sm:$0xff]  ;;  %v5719_v5 = vadd.f32 %v5718_v10, %v11249_v56 }
 0x22e   :  { %6125 = vmatpush2.bf16.msra.mxu1 %v9479_v33  ;;  %6073 = vmatprep.subr.bf16.mxu0 %v9344_v37  ;;  %v9704_v24 = vcombine.high %v571_v6, %v575_v8  ;;  %v435_v12 = vld [vmem:[#allocation7 + $0x950] sm:$0xff]  ;;  %v9703_v31 = vcombine.low %v571_v6, %v575_v8 }
 0x22f   :  { %6126 = vmatprep.subr.bf16.mxu1 %v9472_v38  ;;  %v439_v30 = vld [vmem:[#allocation7 + $0x970] sm:$0xff] }
 0x230   :  { %v10839_v33 = vld [vmem:[#allocation4] ss:$52 sps:$4 sm:$0xff]   ;;  %v9567_v4 = vcombine.low %v435_v12, %v439_v30  ;;  %v10850_v48 = vld [vmem:[#allocation4 + $0x84] ss:$52 sps:$4 sm:$0xff]  }
 0x231   :  { %6074 = vmatpush2.bf16.msra.mxu0 %v9343_v41  ;;  %v563_v37 = vld [vmem:[#allocation7 + $0xd50] sm:$0xff] }
 0x232   :  { %6127 = vmatpush2.bf16.msra.mxu1 %v9471_v43  ;;  %6075 = vmatprep.subr.bf16.mxu0 %v9336_v44  ;;  %v567_v38 = vld [vmem:[#allocation7 + $0xd70] sm:$0xff]  ;;  %v9568_v43 = vcombine.high %v435_v12, %v439_v30  ;;  %v5713_v44 = vadd.f32 %v5712_v62, %v11249_v56 }
 0x233   :  { %6128 = vmatprep.subr.bf16.mxu1 %v9464_v51  ;;  %v9696_v51 = vcombine.high %v563_v37, %v567_v38  ;;  %v427_v32 = vld [vmem:[#allocation7 + $0x910] sm:$0xff]  ;;  %v9695_v6 = vcombine.low %v563_v37, %v567_v38 }
 0x234   :  { %v431_v39 = vld [vmem:[#allocation7 + $0x930] sm:$0xff] }
 0x235   :  { %6076 = vmatpush2.bf16.msra.mxu0 %v9335_v61  ;;  %v10841_v59 = vld [vmem:[#allocation4 + $0x6c] ss:$52 sps:$4 sm:$0xff]   ;;  %v9560_v8 = vcombine.high %v427_v32, %v431_v39  ;;  %v9559_v12 = vcombine.low %v427_v32, %v431_v39 }
 0x236   :  { %6129 = vmatpush2.bf16.msra.mxu1 %v9463_v50  ;;  %6151 = vmatprep.subr.bf16.mxu0 %v9584_v28  ;;  %v555_v61 = vld [vmem:[#allocation7 + $0xd10] sm:$0xff]  ;;  %v11261_v28 = vpop.f32.mrf.mxu1 }
 0x237   :  { %6204 = vmatprep.subr.bf16.mxu1 %v9712_v3  ;;  %v559_v50 = vld [vmem:[#allocation7 + $0xd30] sm:$0xff] }
 0x238   :  { %v5761_v45 = vpop.f32.mrf.mxu0  ;;  %6078 = vmatmul.mubr.bf16.vlgmr.msra.gmra.mxu0 %v10839_v33  ;;  %v5722_v33 = vpop.f32.mrf.mxu1  ;;  %v9687_v37 = vcombine.low %v555_v61, %v559_v50  ;;  %v543_v32 = vld [vmem:[#allocation7 + $0xcb0] sm:$0xff] }
 0x239   :  { %v11256_v7 = vadd.f32 %v5761_v45, %v5709_v23  ;;  %6131 = vmatmul.mubr.bf16.vlgmr.msra.gmra.mxu1 %v10840_v1  ;;  %6152 = vmatpush1.bf16.msra.mxu0 %v9583_v9  ;;  %v9688_v9 = vcombine.high %v555_v61, %v559_v50  ;;  %v547_v23 = vld [vmem:[#allocation7 + $0xcd0] sm:$0xff]  ;;  %v10843_v1 = vld [vmem:[#allocation4 + $0x68] ss:$52 sps:$4 sm:$0xff]   ;;  %v5723_v10 = vadd.f32 %v5722_v33, %v11249_v56 }
 0x23a   :  { %6205 = vmatpush1.bf16.msra.mxu1 %v9711_v20  ;;  %v11258_v41 = vpop.f32.mrf.mxu0  ;;  %6153 = vmatprep.subr.bf16.mxu0 %v9576_v22  ;;  %v419_v20 = vld [vmem:[#allocation7 + $0x8d0] sm:$0xff] }
 0x23b   :  { %6206 = vmatprep.subr.bf16.mxu1 %v9704_v24  ;;  %6087 = vmatprep.mubr.bf16.mxu0 %v10841_v59  ;;  %v423_v22 = vld [vmem:[#allocation7 + $0x8f0] sm:$0xff]  ;;  %v10845_v59 = vld [vmem:[#allocation4 + $0x14] ss:$52 sps:$4 sm:$0xff]  }
 0x23c   :  { %v5765_v60 = vpop.f32.mrf.mxu0  ;;  %6140 = vmatprep.mubr.bf16.mxu1 %v10842_v0  ;;  %v551_v24 = vld [vmem:[#allocation7 + $0xcf0] sm:$0xff]  ;;  %v9552_v38 = vcombine.high %v419_v20, %v423_v22  ;;  %v10846_v0 = vld [vmem:[#allocation4 + $0x1c] ss:$52 sps:$4 sm:$0xff]   ;;  %v9551_v56 = vcombine.low %v419_v20, %v423_v22 }
 0x23d   :  { %v11263_v3 = vadd.f32 %v5765_v60, %v5713_v44  ;;  %6154 = vmatpush1.bf16.msra.mxu0 %v9575_v34  ;;  %v10844_v34 = vld [vmem:[#allocation4 + $0x70] ss:$52 sps:$4 sm:$0xff]   ;;  %v9679_v61 = vcombine.low %v547_v23, %v551_v24 }
 0x23e   :  { %6207 = vmatpush1.bf16.msra.mxu1 %v9703_v31  ;;  %v11266_v62 = vpop.f32.mrf.mxu0  ;;  %6155 = vmatprep.subr.bf16.mxu0 %v9568_v43  ;;  %v9680_v43 = vcombine.high %v547_v23, %v551_v24  ;;  %v411_v44 = vld [vmem:[#allocation7 + $0x890] sm:$0xff] }
 0x23f   :  { %6208 = vmatprep.subr.bf16.mxu1 %v9696_v51  ;;  %v415_v51 = vld [vmem:[#allocation7 + $0x8b0] sm:$0xff] }
 0x240   :  { %v5771_v45 = vpop.f32.mrf.mxu0  ;;  %6088 = vmatmul.mubr.bf16.gmra.mxu0 %v10843_v1  ;;  %v539_v60 = vld [vmem:[#allocation7 + $0xc90] sm:$0xff]  ;;  %v9544_v50 = vcombine.high %v411_v44, %v415_v51  ;;  %v9543_v33 = vcombine.low %v411_v44, %v415_v51 }
 0x241   :  { %6156 = vmatpush1.bf16.msra.mxu0 %v9567_v4  ;;  %v11268_v30 = vadd.f32 %v5771_v45, %v5719_v5  ;;  %6141 = vmatmul.mubr.bf16.gmra.mxu1 %v10844_v34  ;;  %v9672_v5 = vcombine.high %v539_v60, %v543_v32  ;;  %v535_v45 = vld [vmem:[#allocation7 + $0xc70] sm:$0xff]  ;;  %v9671_v1 = vcombine.low %v539_v60, %v543_v32 }
 0x242   :  { %6209 = vmatpush1.bf16.msra.mxu1 %v9695_v6  ;;  %6157 = vmatprep.subr.bf16.mxu0 %v9560_v8  ;;  %v11271_v31 = vpop.f32.mrf.mxu0  ;;  %v403_v6 = vld [vmem:[#allocation7 + $0x850] sm:$0xff] }
 0x243   :  { %11824 = vst [vmem:[#allocation32_spill] sm:$0xff] %v11271_v31  ;;  %6210 = vmatprep.subr.bf16.mxu1 %v9688_v9  ;;  %6183 = vmatprep.mubr.bf16.mxu0 %v10845_v59  ;;  %v407_v8 = vld [vmem:[#allocation7 + $0x870] sm:$0xff] }
 0x244   :  { %v5775_v39 = vpop.f32.mrf.mxu0  ;;  %6236 = vmatprep.mubr.bf16.mxu1 %v10846_v0  ;;  %v531_v9 = vld [vmem:[#allocation7 + $0xc50] sm:$0xff]  ;;  %v9536_v34 = vcombine.high %v403_v6, %v407_v8  ;;  %v9535_v23 = vcombine.low %v403_v6, %v407_v8 }
 0x245   :  { %6158 = vmatpush1.bf16.msra.mxu0 %v9559_v12  ;;  %v11273_v4 = vadd.f32 %v5775_v39, %v5723_v10  ;;  %v9664_v20 = vcombine.high %v531_v9, %v535_v45  ;;  %v395_v22 = vld [vmem:[#allocation7 + $0x810] sm:$0xff]  ;;  %v9663_v24 = vcombine.low %v531_v9, %v535_v45 }
 0x246   :  { %6211 = vmatpush1.bf16.msra.mxu1 %v9687_v37  ;;  %6159 = vmatprep.subr.bf16.mxu0 %v9552_v38  ;;  %v399_v12 = vld [vmem:[#allocation7 + $0x830] sm:$0xff] }
 0x247   :  { %6212 = vmatprep.subr.bf16.mxu1 %v9680_v43  ;;  %v523_v10 = vld [vmem:[#allocation7 + $0xc10] sm:$0xff]  ;;  %v9528_v38 = vcombine.high %v395_v22, %v399_v12  ;;  %v9527_v60 = vcombine.low %v395_v22, %v399_v12 }
 0x248   :  { %v527_v37 = vld [vmem:[#allocation7 + $0xc30] sm:$0xff] }
 0x249   :  { %6160 = vmatpush1.bf16.msra.mxu0 %v9551_v56  ;;  %v9656_v43 = vcombine.high %v523_v10, %v527_v37  ;;  %v515_v59 = vld [vmem:[#allocation7 + $0xbd0] sm:$0xff]  ;;  %v9655_v32 = vcombine.low %v523_v10, %v527_v37 }
 0x24a   :  { %6213 = vmatpush1.bf16.msra.mxu1 %v9679_v61  ;;  %6161 = vmatprep.subr.bf16.mxu0 %v9544_v50  ;;  %v519_v44 = vld [vmem:[#allocation7 + $0xbf0] sm:$0xff] }
 0x24b   :  { %6214 = vmatprep.subr.bf16.mxu1 %v9672_v5  ;;  %v643_v51 = vld [vmem:[#allocation7 + $0xfd0] sm:$0xff]  ;;  %v9648_v0 = vcombine.high %v515_v59, %v519_v44  ;;  %v9647_v8 = vcombine.low %v515_v59, %v519_v44 }
 0x24c   :  { %v647_v39 = vld [vmem:[#allocation7 + $0xff0] sm:$0xff] }
 0x24d   :  { %6162 = vmatpush1.bf16.msra.mxu0 %v9543_v33  ;;  %v9776_v56 = vcombine.high %v643_v51, %v647_v39  ;;  %v507_v61 = vld [vmem:[#allocation7 + $0xb90] sm:$0xff]  ;;  %v9775_v9 = vcombine.low %v643_v51, %v647_v39  ;;  %v11275_v33 = vpop.f32.mrf.mxu1 }
 0x24e   :  { %6215 = vmatpush1.bf16.msra.mxu1 %v9671_v1  ;;  %6163 = vmatprep.subr.bf16.mxu0 %v9536_v34  ;;  %v511_v50 = vld [vmem:[#allocation7 + $0xbb0] sm:$0xff] }
 0x24f   :  { %6216 = vmatprep.subr.bf16.mxu1 %v9664_v20  ;;  %v635_v5 = vld [vmem:[#allocation7 + $0xf90] sm:$0xff]  ;;  %v9640_v45 = vcombine.high %v507_v61, %v511_v50  ;;  %v9639_v37 = vcombine.low %v507_v61, %v511_v50 }
 0x250   :  { %v639_v6 = vld [vmem:[#allocation7 + $0xfb0] sm:$0xff] }
 0x251   :  { %6164 = vmatpush1.bf16.msra.mxu0 %v9535_v23  ;;  %v9768_v1 = vcombine.high %v635_v5, %v639_v6  ;;  %v499_v34 = vld [vmem:[#allocation7 + $0xb50] sm:$0xff] }
 0x252   :  { %6217 = vmatpush1.bf16.msra.mxu1 %v9663_v24  ;;  %6165 = vmatprep.subr.bf16.mxu0 %v9528_v38  ;;  %v503_v20 = vld [vmem:[#allocation7 + $0xb70] sm:$0xff]  ;;  %v9767_v24 = vcombine.low %v635_v5, %v639_v6 }
 0x253   :  { %6218 = vmatprep.subr.bf16.mxu1 %v9656_v43  ;;  %v627_v22 = vld [vmem:[#allocation7 + $0xf50] sm:$0xff]  ;;  %v9632_v38 = vcombine.high %v499_v34, %v503_v20 }
 0x254   :  { %v631_v12 = vld [vmem:[#allocation7 + $0xf70] sm:$0xff] }
 0x255   :  { %6166 = vmatpush1.bf16.msra.mxu0 %v9527_v60  ;;  %v9760_v59 = vcombine.high %v627_v22, %v631_v12  ;;  %v491_v44 = vld [vmem:[#allocation7 + $0xb10] sm:$0xff] }
 0x256   :  { %6219 = vmatpush1.bf16.msra.mxu1 %v9655_v32  ;;  %6167 = vmatprep.subr.bf16.mxu0 %v9648_v0  ;;  %v495_v51 = vld [vmem:[#allocation7 + $0xb30] sm:$0xff]  ;;  %v9631_v0 = vcombine.low %v499_v34, %v503_v20 }
 0x257   :  { %6220 = vmatprep.subr.bf16.mxu1 %v9776_v56  ;;  %v619_v39 = vld [vmem:[#allocation7 + $0xf10] sm:$0xff]  ;;  %v9624_v61 = vcombine.high %v491_v44, %v495_v51 }
 0x258   :  { %v623_v60 = vld [vmem:[#allocation7 + $0xf30] sm:$0xff] }
 0x259   :  { %v5814_v10 = vpop.f32.mrf.mxu1  ;;  %6168 = vmatpush2.bf16.msra.mxu0 %v9647_v8  ;;  %v9752_v5 = vcombine.high %v619_v39, %v623_v60  ;;  %v483_v6 = vld [vmem:[#allocation7 + $0xad0] sm:$0xff] }
 0x25a   :  { %v11278_v23 = vadd.f32 %v5814_v10, %v11256_v7  ;;  %6221 = vmatpush2.bf16.msra.mxu1 %v9775_v9  ;;  %6169 = vmatprep.subr.bf16.mxu0 %v9640_v45  ;;  %v9759_v7 = vcombine.low %v627_v22, %v631_v12  ;;  %v487_v8 = vld [vmem:[#allocation7 + $0xaf0] sm:$0xff]  ;;  %v9623_v10 = vcombine.low %v491_v44, %v495_v51 }
 0x25b   :  { %v11280_v43 = vpop.f32.mrf.mxu1  ;;  %6222 = vmatprep.subr.bf16.mxu1 %v9768_v1  ;;  %v611_v9 = vld [vmem:[#allocation7 + $0xed0] sm:$0xff]  ;;  %v9616_v20 = vcombine.high %v483_v6, %v487_v8  ;;  %v9615_v17 = vcombine.low %v483_v6, %v487_v8 }
 0x25c   :  { %v615_v45 = vld [vmem:[#allocation7 + $0xef0] sm:$0xff] }
 0x25d   :  { %v5818_v32 = vpop.f32.mrf.mxu1  ;;  %6170 = vmatpush2.bf16.msra.mxu0 %v9639_v37  ;;  %v9744_v12 = vcombine.high %v611_v9, %v615_v45  ;;  %v475_v37 = vld [vmem:[#allocation7 + $0xa90] sm:$0xff] }
 0x25e   :  { %v11283_v56 = vadd.f32 %v5818_v32, %v11263_v3  ;;  %6223 = vmatpush2.bf16.msra.mxu1 %v9767_v24  ;;  %6171 = vmatprep.subr.bf16.mxu0 %v9632_v38  ;;  %v9751_v3 = vcombine.low %v619_v39, %v623_v60  ;;  %v479_v24 = vld [vmem:[#allocation7 + $0xab0] sm:$0xff] }
 0x25f   :  { %v11285_v50 = vpop.f32.mrf.mxu1  ;;  %6224 = vmatprep.subr.bf16.mxu1 %v9760_v59  ;;  %v603_v38 = vld [vmem:[#allocation7 + $0xe90] sm:$0xff]  ;;  %v9608_v51 = vcombine.high %v475_v37, %v479_v24 }
 0x260   :  { %v607_v59 = vld [vmem:[#allocation7 + $0xeb0] sm:$0xff] }
 0x261   :  { %v5824_v1 = vpop.f32.mrf.mxu1  ;;  %6172 = vmatpush2.bf16.msra.mxu0 %v9631_v0  ;;  %v9736_v39 = vcombine.high %v603_v38, %v607_v59  ;;  %v467_v60 = vld [vmem:[#allocation7 + $0xa50] sm:$0xff] }
 0x262   :  { %v11288_v34 = vadd.f32 %v5824_v1, %v11268_v30  ;;  %6225 = vmatpush2.bf16.msra.mxu1 %v9759_v7  ;;  %6173 = vmatprep.subr.bf16.mxu0 %v9624_v61  ;;  %v9743_v30 = vcombine.low %v611_v9, %v615_v45  ;;  %v471_v0 = vld [vmem:[#allocation7 + $0xa70] sm:$0xff]  ;;  %v9735_v1 = vcombine.low %v603_v38, %v607_v59 }
 0x263   :  { %v11290_v22 = vpop.f32.mrf.mxu1  ;;  %6226 = vmatprep.subr.bf16.mxu1 %v9752_v5  ;;  %v595_v7 = vld [vmem:[#allocation7 + $0xe50] sm:$0xff]  ;;  %v9607_v5 = vcombine.low %v475_v37, %v479_v24  ;;  %v9599_v9 = vcombine.low %v467_v60, %v471_v0 }
 0x264   :  { %11825 = vst [vmem:[#allocation33_spill] sm:$0xff] %v11290_v22  ;;  %v599_v61 = vld [vmem:[#allocation7 + $0xe70] sm:$0xff] }
 0x265   :  { %v5828_v32 = vpop.f32.mrf.mxu1  ;;  %6174 = vmatpush2.bf16.msra.mxu0 %v9623_v10  ;;  %v9600_v10 = vcombine.high %v467_v60, %v471_v0  ;;  %v9728_v6 = vcombine.high %v595_v7, %v599_v61  ;;  %v463_v8 = vld [vmem:[#allocation7 + $0xa30] sm:$0xff]  ;;  %v9727_v45 = vcombine.low %v595_v7, %v599_v61  ;;  %v11295_v61 = vpop.f32.mrf.mxu0 }
 0x266   :  { %v11293_v44 = vadd.f32 %v5828_v32, %v11273_v4  ;;  %6227 = vmatpush2.bf16.msra.mxu1 %v9751_v3  ;;  %6175 = vmatprep.subr.bf16.mxu0 %v9616_v20  ;;  %v459_v4 = vld [vmem:[#allocation7 + $0xa10] sm:$0xff]  ;;  %11826 = vst [vmem:[#allocation34_spill] sm:$0xff] %v11295_v61 }
 0x267   :  { %6228 = vmatprep.subr.bf16.mxu1 %v9744_v12  ;;  %v587_v3 = vld [vmem:[#allocation7 + $0xe10] sm:$0xff]  ;;  %v9592_v12 = vcombine.high %v459_v4, %v463_v8  ;;  %v9591_v38 = vcombine.low %v459_v4, %v463_v8 }
 0x268   :  { %v591_v20 = vld [vmem:[#allocation7 + $0xe30] sm:$0xff] }
 0x269   :  { %6176 = vmatpush2.bf16.msra.mxu0 %v9615_v17  ;;  %v9720_v32 = vcombine.high %v587_v3, %v591_v20  ;;  %v707_v17 = vld [vmem:[#allocation7 + $0x11d0] sm:$0xff]  ;;  %v9719_v59 = vcombine.low %v587_v3, %v591_v20 }
 0x26a   :  { %6229 = vmatpush2.bf16.msra.mxu1 %v9743_v30  ;;  %6177 = vmatprep.subr.bf16.mxu0 %v9608_v51  ;;  %v711_v37 = vld [vmem:[#allocation7 + $0x11f0] sm:$0xff] }
 0x26b   :  { %6230 = vmatprep.subr.bf16.mxu1 %v9736_v39  ;;  %v835_v24 = vld [vmem:[#allocation7 + $0x15d0] sm:$0xff]  ;;  %v9840_v51 = vcombine.high %v707_v17, %v711_v37  ;;  %v9839_v7 = vcombine.low %v707_v17, %v711_v37 }
 0x26c   :  { %v839_v30 = vld [vmem:[#allocation7 + $0x15f0] sm:$0xff] }
 0x26d   :  { %6178 = vmatpush2.bf16.msra.mxu0 %v9607_v5  ;;  %v9968_v39 = vcombine.high %v835_v24, %v839_v30  ;;  %v699_v5 = vld [vmem:[#allocation7 + $0x1190] sm:$0xff] }
 0x26e   :  { %6231 = vmatpush2.bf16.msra.mxu1 %v9735_v1  ;;  %6179 = vmatprep.subr.bf16.mxu0 %v9600_v10  ;;  %v703_v60 = vld [vmem:[#allocation7 + $0x11b0] sm:$0xff]  ;;  %v9967_v10 = vcombine.low %v835_v24, %v839_v30 }
 0x26f   :  { %6232 = vmatprep.subr.bf16.mxu1 %v9728_v6  ;;  %v827_v0 = vld [vmem:[#allocation7 + $0x1590] sm:$0xff]  ;;  %v9832_v6 = vcombine.high %v699_v5, %v703_v60  ;;  %v9831_v17 = vcombine.low %v699_v5, %v703_v60 }
 0x270   :  { %v831_v1 = vld [vmem:[#allocation7 + $0x15b0] sm:$0xff] }
 0x271   :  { %6180 = vmatpush2.bf16.msra.mxu0 %v9599_v9  ;;  %v9960_v4 = vcombine.high %v827_v0, %v831_v1  ;;  %v691_v8 = vld [vmem:[#allocation7 + $0x1150] sm:$0xff]  ;;  %v9959_v24 = vcombine.low %v827_v0, %v831_v1 }
 0x272   :  { %6233 = vmatpush2.bf16.msra.mxu1 %v9727_v45  ;;  %6181 = vmatprep.subr.bf16.mxu0 %v9592_v12  ;;  %v695_v9 = vld [vmem:[#allocation7 + $0x1170] sm:$0xff] }
 0x273   :  { %6234 = vmatprep.subr.bf16.mxu1 %v9720_v32  ;;  %v10847_v20 = vld [vmem:[#allocation4 + $0x10] ss:$52 sps:$4 sm:$0xff]   ;;  %v9824_v30 = vcombine.high %v691_v8, %v695_v9  ;;  %v9823_v5 = vcombine.low %v691_v8, %v695_v9 }
 0x274   :  { %v819_v45 = vld [vmem:[#allocation7 + $0x1550] sm:$0xff] }
 0x275   :  { %6182 = vmatpush2.bf16.msra.mxu0 %v9591_v38  ;;  %v823_v12 = vld [vmem:[#allocation7 + $0x1570] sm:$0xff]  ;;  %v10848_v38 = vld [vmem:[#allocation4 + $0x18] ss:$52 sps:$4 sm:$0xff]  }
 0x276   :  { %6235 = vmatpush2.bf16.msra.mxu1 %v9719_v59  ;;  %6257 = vmatprep.subr.bf16.mxu0 %v9840_v51  ;;  %v10849_v59 = vld [vmem:[#allocation4 + $0x7c] ss:$52 sps:$4 sm:$0xff]   ;;  %v9952_v51 = vcombine.high %v819_v45, %v823_v12  ;;  %v9951_v0 = vcombine.low %v819_v45, %v823_v12 }
 0x277   :  { %6310 = vmatprep.subr.bf16.mxu1 %v9968_v39  ;;  %v683_v39 = vld [vmem:[#allocation7 + $0x1110] sm:$0xff] }
 0x278   :  { %v5867_v3 = vpop.f32.mrf.mxu0  ;;  %6184 = vmatmul.mubr.bf16.vlgmr.msra.gmra.mxu0 %v10847_v20  ;;  %v687_v20 = vld [vmem:[#allocation7 + $0x1130] sm:$0xff] }
 0x279   :  { %v11298_v32 = vadd.f32 %v5867_v3, %v11278_v23  ;;  %6237 = vmatmul.mubr.bf16.vlgmr.msra.gmra.mxu1 %v10848_v38  ;;  %6258 = vmatpush1.bf16.msra.mxu0 %v9839_v7  ;;  %v811_v23 = vld [vmem:[#allocation7 + $0x1510] sm:$0xff]  ;;  %v9816_v1 = vcombine.high %v683_v39, %v687_v20  ;;  %v9815_v8 = vcombine.low %v683_v39, %v687_v20 }
 0x27a   :  { %6311 = vmatpush1.bf16.msra.mxu1 %v9967_v10  ;;  %v11300_v37 = vpop.f32.mrf.mxu0  ;;  %6259 = vmatprep.subr.bf16.mxu0 %v9832_v6  ;;  %v815_v3 = vld [vmem:[#allocation7 + $0x1530] sm:$0xff] }
 0x27b   :  { %6312 = vmatprep.subr.bf16.mxu1 %v9960_v4  ;;  %6193 = vmatprep.mubr.bf16.mxu0 %v10849_v59  ;;  %v9944_v10 = vcombine.high %v811_v23, %v815_v3  ;;  %v675_v6 = vld [vmem:[#allocation7 + $0x10d0] sm:$0xff]  ;;  %v10851_v59 = vld [vmem:[#allocation4 + $0x78] ss:$52 sps:$4 sm:$0xff]   ;;  %v9943_v45 = vcombine.low %v811_v23, %v815_v3 }
 0x27c   :  { %v5871_v2 = vpop.f32.mrf.mxu0  ;;  %6246 = vmatprep.mubr.bf16.mxu1 %v10850_v48  ;;  %v679_v4 = vld [vmem:[#allocation7 + $0x10f0] sm:$0xff] }
 0x27d   :  { %v11303_v7 = vadd.f32 %v5871_v2, %v11283_v56  ;;  %6260 = vmatpush1.bf16.msra.mxu0 %v9831_v17  ;;  %v803_v48 = vld [vmem:[#allocation7 + $0x14d0] sm:$0xff]  ;;  %v9808_v12 = vcombine.high %v675_v6, %v679_v4  ;;  %v9807_v39 = vcombine.low %v675_v6, %v679_v4 }
 0x27e   :  { %6313 = vmatpush1.bf16.msra.mxu1 %v9959_v24  ;;  %v11305_v60 = vpop.f32.mrf.mxu0  ;;  %6261 = vmatprep.subr.bf16.mxu0 %v9824_v30  ;;  %v10852_v56 = vld [vmem:[#allocation4 + $0x80] ss:$52 sps:$4 sm:$0xff]   ;;  %v9936_v17 = vcombine.high %v803_v48, %v807_v40  ;;  %v9935_v20 = vcombine.low %v803_v48, %v807_v40 }
 0x27f   :  { %6314 = vmatprep.subr.bf16.mxu1 %v9952_v51  ;;  %v667_v24 = vld [vmem:[#allocation7 + $0x1090] sm:$0xff] }
 0x280   :  { %v5877_v38 = vpop.f32.mrf.mxu0  ;;  %6194 = vmatmul.mubr.bf16.gmra.mxu0 %v10851_v59  ;;  %v671_v30 = vld [vmem:[#allocation7 + $0x10b0] sm:$0xff] }
 0x281   :  { %v11308_v2 = vadd.f32 %v5877_v38, %v11288_v34  ;;  %6262 = vmatpush1.bf16.msra.mxu0 %v9823_v5  ;;  %6247 = vmatmul.mubr.bf16.gmra.mxu1 %v10852_v56  ;;  %v10853_v51 = vld [vmem:[#allocation4 + $0x24] ss:$52 sps:$4 sm:$0xff]   ;;  %v10854_v38 = vld [vmem:[#allocation4 + $0x2c] ss:$52 sps:$4 sm:$0xff]   ;;  %v9800_v23 = vcombine.high %v667_v24, %v671_v30 }
 0x282   :  { %6315 = vmatpush1.bf16.msra.mxu1 %v9951_v0  ;;  %v11310_v9 = vpop.f32.mrf.mxu0  ;;  %6263 = vmatprep.subr.bf16.mxu0 %v9816_v1  ;;  %v799_v34 = vld [vmem:[#allocation7 + $0x14b0] sm:$0xff] }
 0x283   :  { %11827 = vst [vmem:[#allocation35_spill] sm:$0xff] %v11310_v9  ;;  %6316 = vmatprep.subr.bf16.mxu1 %v9944_v10  ;;  %6289 = vmatprep.mubr.bf16.mxu0 %v10853_v51  ;;  %v9928_v3 = vcombine.high %v795_v35, %v799_v34  ;;  %v659_v0 = vld [vmem:[#allocation7 + $0x1050] sm:$0xff]  ;;  %v9799_v51 = vcombine.low %v667_v24, %v671_v30  ;;  %v10858_v9 = vld [vmem:[#allocation4 + $0x94] ss:$52 sps:$4 sm:$0xff]  }
 0x284   :  { %v5881_v59 = vpop.f32.mrf.mxu0  ;;  %6342 = vmatprep.mubr.bf16.mxu1 %v10854_v38  ;;  %v663_v1 = vld [vmem:[#allocation7 + $0x1070] sm:$0xff]  ;;  %v9927_v38 = vcombine.low %v795_v35, %v799_v34 }
 0x285   :  { %v11313_v5 = vadd.f32 %v5881_v59, %v11293_v44  ;;  %6264 = vmatpush1.bf16.msra.mxu0 %v9815_v8  ;;  %v787_v10 = vld [vmem:[#allocation7 + $0x1450] sm:$0xff]  ;;  %v9792_v53 = vcombine.high %v659_v0, %v663_v1  ;;  %v9791_v40 = vcombine.low %v659_v0, %v663_v1 }
 0x286   :  { %6317 = vmatpush1.bf16.msra.mxu1 %v9943_v45  ;;  %6265 = vmatprep.subr.bf16.mxu0 %v9808_v12  ;;  %v791_v56 = vld [vmem:[#allocation7 + $0x1470] sm:$0xff] }
 0x287   :  { %6318 = vmatprep.subr.bf16.mxu1 %v9936_v17  ;;  %v9920_v44 = vcombine.high %v787_v10, %v791_v56  ;;  %v651_v8 = vld [vmem:[#allocation7 + $0x1010] sm:$0xff]  ;;  %v9919_v48 = vcombine.low %v787_v10, %v791_v56 }
 0x288   :  { %v655_v6 = vld [vmem:[#allocation7 + $0x1030] sm:$0xff] }
 0x289   :  { %6266 = vmatpush1.bf16.msra.mxu0 %v9807_v39  ;;  %v779_v4 = vld [vmem:[#allocation7 + $0x1410] sm:$0xff]  ;;  %v9784_v12 = vcombine.high %v651_v8, %v655_v6  ;;  %v9783_v35 = vcombine.low %v651_v8, %v655_v6 }
 0x28a   :  { %6319 = vmatpush1.bf16.msra.mxu1 %v9935_v20  ;;  %6267 = vmatprep.subr.bf16.mxu0 %v9800_v23  ;;  %v783_v45 = vld [vmem:[#allocation7 + $0x1430] sm:$0xff] }
 0x28b   :  { %6320 = vmatprep.subr.bf16.mxu1 %v9928_v3  ;;  %v9912_v17 = vcombine.high %v779_v4, %v783_v45  ;;  %v771_v59 = vld [vmem:[#allocation7 + $0x13d0] sm:$0xff]  ;;  %v9911_v34 = vcombine.low %v779_v4, %v783_v45 }
 0x28c   :  { %v775_v24 = vld [vmem:[#allocation7 + $0x13f0] sm:$0xff] }
 0x28d   :  { %6268 = vmatpush1.bf16.msra.mxu0 %v9799_v51  ;;  %v899_v30 = vld [vmem:[#allocation7 + $0x17d0] sm:$0xff]  ;;  %v9904_v20 = vcombine.high %v771_v59, %v775_v24  ;;  %v9903_v10 = vcombine.low %v771_v59, %v775_v24 }
 0x28e   :  { %6321 = vmatpush1.bf16.msra.mxu1 %v9927_v38  ;;  %6269 = vmatprep.subr.bf16.mxu0 %v9792_v53  ;;  %v903_v39 = vld [vmem:[#allocation7 + $0x17f0] sm:$0xff]  ;;  %v11315_v38 = vpop.f32.mrf.mxu1 }
 0x28f   :  { %6322 = vmatprep.subr.bf16.mxu1 %v9920_v44  ;;  %v10032_v23 = vcombine.high %v899_v30, %v903_v39  ;;  %v763_v3 = vld [vmem:[#allocation7 + $0x1390] sm:$0xff]  ;;  %v10031_v56 = vcombine.low %v899_v30, %v903_v39  ;;  %11828 = vst [vmem:[#allocation36_spill] sm:$0xff] %v11315_v38 }
 0x290   :  { %v767_v0 = vld [vmem:[#allocation7 + $0x13b0] sm:$0xff] }
 0x291   :  { %6270 = vmatpush1.bf16.msra.mxu0 %v9791_v40  ;;  %v891_v1 = vld [vmem:[#allocation7 + $0x1790] sm:$0xff]  ;;  %v9896_v51 = vcombine.high %v763_v3, %v767_v0 }
 0x292   :  { %6323 = vmatpush1.bf16.msra.mxu1 %v9919_v48  ;;  %6271 = vmatprep.subr.bf16.mxu0 %v9784_v12  ;;  %v895_v53 = vld [vmem:[#allocation7 + $0x17b0] sm:$0xff]  ;;  %v9895_v48 = vcombine.low %v763_v3, %v767_v0 }
 0x293   :  { %6324 = vmatprep.subr.bf16.mxu1 %v9912_v17  ;;  %v10024_v44 = vcombine.high %v891_v1, %v895_v53  ;;  %v755_v8 = vld [vmem:[#allocation7 + $0x1350] sm:$0xff]  ;;  %v10023_v17 = vcombine.low %v891_v1, %v895_v53 }
 0x294   :  { %v759_v6 = vld [vmem:[#allocation7 + $0x1370] sm:$0xff] }
 0x295   :  { %6272 = vmatpush1.bf16.msra.mxu0 %v9783_v35  ;;  %v883_v4 = vld [vmem:[#allocation7 + $0x1750] sm:$0xff]  ;;  %v9888_v59 = vcombine.high %v755_v8, %v759_v6  ;;  %v9887_v11 = vcombine.low %v755_v8, %v759_v6 }
 0x296   :  { %6325 = vmatpush1.bf16.msra.mxu1 %v9911_v34  ;;  %6273 = vmatprep.subr.bf16.mxu0 %v9904_v20  ;;  %v887_v45 = vld [vmem:[#allocation7 + $0x1770] sm:$0xff] }
 0x297   :  { %6326 = vmatprep.subr.bf16.mxu1 %v10032_v23  ;;  %v10016_v30 = vcombine.high %v883_v4, %v887_v45  ;;  %v747_v39 = vld [vmem:[#allocation7 + $0x1310] sm:$0xff] }
 0x298   :  { %v751_v35 = vld [vmem:[#allocation7 + $0x1330] sm:$0xff] }
 0x299   :  { %v5920_v40 = vpop.f32.mrf.mxu1  ;;  %6274 = vmatpush2.bf16.msra.mxu0 %v9903_v10  ;;  %v875_v34 = vld [vmem:[#allocation7 + $0x1710] sm:$0xff]  ;;  %v9880_v0 = vcombine.high %v747_v39, %v751_v35  ;;  %v9879_v47 = vcombine.low %v747_v39, %v751_v35 }
 0x29a   :  { %v11318_v12 = vadd.f32 %v5920_v40, %v11298_v32  ;;  %6327 = vmatpush2.bf16.msra.mxu1 %v10031_v56  ;;  %6275 = vmatprep.subr.bf16.mxu0 %v9896_v51  ;;  %v879_v20 = vld [vmem:[#allocation7 + $0x1730] sm:$0xff]  ;;  %v10015_v32 = vcombine.low %v883_v4, %v887_v45 }
 0x29b   :  { %v11320_v24 = vpop.f32.mrf.mxu1  ;;  %6328 = vmatprep.subr.bf16.mxu1 %v10024_v44  ;;  %v10008_v53 = vcombine.high %v875_v34, %v879_v20  ;;  %v739_v10 = vld [vmem:[#allocation7 + $0x12d0] sm:$0xff] }
 0x29c   :  { %v743_v56 = vld [vmem:[#allocation7 + $0x12f0] sm:$0xff] }
 0x29d   :  { %v5924_v23 = vpop.f32.mrf.mxu1  ;;  %6276 = vmatpush2.bf16.msra.mxu0 %v9895_v48  ;;  %v867_v51 = vld [vmem:[#allocation7 + $0x16d0] sm:$0xff]  ;;  %v9872_v6 = vcombine.high %v739_v10, %v743_v56  ;;  %v9871_v15 = vcombine.low %v739_v10, %v743_v56 }
 0x29e   :  { %v11323_v3 = vadd.f32 %v5924_v23, %v11303_v7  ;;  %6329 = vmatpush2.bf16.msra.mxu1 %v10023_v17  ;;  %6277 = vmatprep.subr.bf16.mxu0 %v9888_v59  ;;  %v871_v44 = vld [vmem:[#allocation7 + $0x16f0] sm:$0xff]  ;;  %v10007_v7 = vcombine.low %v875_v34, %v879_v20 }
 0x29f   :  { %v11325_v1 = vpop.f32.mrf.mxu1  ;;  %6330 = vmatprep.subr.bf16.mxu1 %v10016_v30  ;;  %v10000_v45 = vcombine.high %v867_v51, %v871_v44  ;;  %v731_v48 = vld [vmem:[#allocation7 + $0x1290] sm:$0xff] }
 0x2a0   :  { %v735_v17 = vld [vmem:[#allocation7 + $0x12b0] sm:$0xff] }
 0x2a1   :  { %v5930_v40 = vpop.f32.mrf.mxu1  ;;  %6278 = vmatpush2.bf16.msra.mxu0 %v9887_v11  ;;  %v859_v59 = vld [vmem:[#allocation7 + $0x1690] sm:$0xff]  ;;  %v9864_v39 = vcombine.high %v731_v48, %v735_v17 }
 0x2a2   :  { %v11328_v8 = vadd.f32 %v5930_v40, %v11308_v2  ;;  %6331 = vmatpush2.bf16.msra.mxu1 %v10015_v32  ;;  %6279 = vmatprep.subr.bf16.mxu0 %v9880_v0  ;;  %v863_v30 = vld [vmem:[#allocation7 + $0x16b0] sm:$0xff]  ;;  %v9999_v2 = vcombine.low %v867_v51, %v871_v44 }
 0x2a3   :  { %v11330_v4 = vpop.f32.mrf.mxu1  ;;  %6332 = vmatprep.subr.bf16.mxu1 %v10008_v53  ;;  %v9992_v35 = vcombine.high %v859_v59, %v863_v30  ;;  %v723_v34 = vld [vmem:[#allocation7 + $0x1250] sm:$0xff]  ;;  %v9863_v53 = vcombine.low %v731_v48, %v735_v17  ;;  %v9991_v40 = vcombine.low %v859_v59, %v863_v30  ;;  %v196_v17 = vld [vmem:[#allocation7 + $0x1d8] sm:$0xff] }
 0x2a4   :  { %11829 = vst [vmem:[#allocation37_spill] sm:$0xff] %v11330_v4  ;;  %v727_v20 = vld [vmem:[#allocation7 + $0x1270] sm:$0xff] }
 0x2a5   :  { %v5934_v23 = vpop.f32.mrf.mxu1  ;;  %6280 = vmatpush2.bf16.msra.mxu0 %v9879_v47  ;;  %v851_v32 = vld [vmem:[#allocation7 + $0x1650] sm:$0xff]  ;;  %v9856_v47 = vcombine.high %v723_v34, %v727_v20  ;;  %v9855_v51 = vcombine.low %v723_v34, %v727_v20  ;;  %v188_v20 = vld [vmem:[#allocation7 + $0x198] sm:$0xff] }
 0x2a6   :  { %v11333_v11 = vadd.f32 %v5934_v23, %v11313_v5  ;;  %6333 = vmatpush2.bf16.msra.mxu1 %v10007_v7  ;;  %6281 = vmatprep.subr.bf16.mxu0 %v9872_v6  ;;  %v855_v0 = vld [vmem:[#allocation7 + $0x1670] sm:$0xff] }
 0x2a7   :  { %6334 = vmatprep.subr.bf16.mxu1 %v10000_v45  ;;  %v9984_v10 = vcombine.high %v851_v32, %v855_v0  ;;  %v715_v5 = vld [vmem:[#allocation7 + $0x1210] sm:$0xff]  ;;  %v9983_v44 = vcombine.low %v851_v32, %v855_v0  ;;  %v11335_v0 = vpop.f32.mrf.mxu0 }
 0x2a8   :  { %v719_v56 = vld [vmem:[#allocation7 + $0x1230] sm:$0xff]  ;;  %11830 = vst [vmem:[#allocation38_spill] sm:$0xff] %v11335_v0 }
 0x2a9   :  { %6282 = vmatpush2.bf16.msra.mxu0 %v9871_v15  ;;  %v843_v7 = vld [vmem:[#allocation7 + $0x1610] sm:$0xff]  ;;  %v9848_v45 = vcombine.high %v715_v5, %v719_v56  ;;  %v9847_v59 = vcombine.low %v715_v5, %v719_v56 }
 0x2aa   :  { %6335 = vmatpush2.bf16.msra.mxu1 %v9999_v2  ;;  %6283 = vmatprep.subr.bf16.mxu0 %v9864_v39  ;;  %v847_v6 = vld [vmem:[#allocation7 + $0x1630] sm:$0xff]  ;;  %v200_v2 = vld [vmem:[#allocation7 + $0x1f8] sm:$0xff] }
 0x2ab   :  { %6336 = vmatprep.subr.bf16.mxu1 %v9992_v35  ;;  %v9976_v23 = vcombine.high %v843_v7, %v847_v6  ;;  %v963_v15 = vld [vmem:[#allocation7 + $0x19d0] sm:$0xff]  ;;  %v9975_v30 = vcombine.low %v843_v7, %v847_v6  ;;  %v9330_v35 = vcombine.high %v196_v17, %v200_v2 }
 0x2ac   :  { %v967_v48 = vld [vmem:[#allocation7 + $0x19f0] sm:$0xff] }
 0x2ad   :  { %6284 = vmatpush2.bf16.msra.mxu0 %v9863_v53  ;;  %v10096_v39 = vcombine.high %v963_v15, %v967_v48  ;;  %v955_v53 = vld [vmem:[#allocation7 + $0x1990] sm:$0xff]  ;;  %v10095_v32 = vcombine.low %v963_v15, %v967_v48  ;;  %v10856_v48 = vld [vmem:[#allocation4 + $0x28] ss:$52 sps:$4 sm:$0xff]  }
 0x2ae   :  { %6337 = vmatpush2.bf16.msra.mxu1 %v9991_v40  ;;  %6285 = vmatprep.subr.bf16.mxu0 %v9856_v47  ;;  %v959_v34 = vld [vmem:[#allocation7 + $0x19b0] sm:$0xff]  ;;  %v192_v40 = vld [vmem:[#allocation7 + $0x1b8] sm:$0xff]  ;;  %v9329_v47 = vcombine.low %v196_v17, %v200_v2 }
 0x2af   :  { %6338 = vmatprep.subr.bf16.mxu1 %v9984_v10  ;;  %v10088_v10 = vcombine.high %v955_v53, %v959_v34  ;;  %v9322_v5 = vcombine.high %v188_v20, %v192_v40  ;;  %v947_v56 = vld [vmem:[#allocation7 + $0x1950] sm:$0xff]  ;;  %v9321_v2 = vcombine.low %v188_v20, %v192_v40 }
 0x2b0   :  { %v951_v7 = vld [vmem:[#allocation7 + $0x1970] sm:$0xff] }
 0x2b1   :  { %6286 = vmatpush2.bf16.msra.mxu0 %v9855_v51  ;;  %v11337_v51 = vpop.f32.mrf.mxu1  ;;  %v10079_v20 = vcombine.low %v947_v56, %v951_v7  ;;  %v923_v38 = vld [vmem:[#allocation7 + $0x1890] sm:$0xff] }
 0x2b2   :  { %6339 = vmatpush2.bf16.msra.mxu1 %v9983_v44  ;;  %6287 = vmatprep.subr.bf16.mxu0 %v9848_v45  ;;  %11831 = vst [vmem:[#allocation39_spill] sm:$0xff] %v11337_v51  ;;  %v10855_v44 = vld [vmem:[#allocation4 + $0x20] ss:$52 sps:$4 sm:$0xff]   ;;  %v180_v45 = vld [vmem:[#allocation7 + $0x158] sm:$0xff] }
 0x2b3   :  { %6340 = vmatprep.subr.bf16.mxu1 %v9976_v23  ;;  %v184_v23 = vld [vmem:[#allocation7 + $0x178] sm:$0xff]  ;;  %v939_v51 = vld [vmem:[#allocation7 + $0x1910] sm:$0xff] }
 0x2b4   :  { %v9314_v4 = vcombine.high %v180_v45, %v184_v23 }
 0x2b5   :  { %6288 = vmatpush2.bf16.msra.mxu0 %v9847_v59 }
 0x2b6   :  { %6341 = vmatpush2.bf16.msra.mxu1 %v9975_v30  ;;  %6363 = vmatprep.subr.bf16.mxu0 %v10096_v39  ;;  %v10087_v30 = vcombine.low %v955_v53, %v959_v34  ;;  %v10080_v39 = vcombine.high %v947_v56, %v951_v7  ;;  %v176_v53 = vld [vmem:[#allocation7 + $0x138] sm:$0xff] }
 0x2b7   :  { %6416 = vmatprep.subr.bf16.mxu1 %v9330_v35  ;;  %v164_v56 = vld [vmem:[#allocation7 + $0xd8] sm:$0xff] }
 0x2b8   :  { %v5973_v6 = vpop.f32.mrf.mxu0  ;;  %6290 = vmatmul.mubr.bf16.vlgmr.msra.gmra.mxu0 %v10855_v44  ;;  %v10857_v44 = vld [vmem:[#allocation4 + $0x8c] ss:$52 sps:$4 sm:$0xff]  }
 0x2b9   :  { %v5974_v59 = vadd.f32 %v5973_v6, %v11318_v12  ;;  %v6026_v15 = vpop.f32.mrf.mxu1  ;;  %6343 = vmatmul.mubr.bf16.vlgmr.msra.gmra.mxu1 %v10856_v48  ;;  %6364 = vmatpush1.bf16.msra.mxu0 %v10095_v32  ;;  %v943_v12 = vld [vmem:[#allocation7 + $0x1930] sm:$0xff]  ;;  %v172_v32 = vld [vmem:[#allocation7 + $0x118] sm:$0xff] }
 0x2ba   :  { %6417 = vmatpush1.bf16.msra.mxu1 %v9329_v47  ;;  %v11340_v17 = vpop.f32.mrf.mxu0  ;;  %6365 = vmatprep.subr.bf16.mxu0 %v10088_v10  ;;  %v9313_v10 = vcombine.low %v180_v45, %v184_v23  ;;  %v168_v7 = vld [vmem:[#allocation7 + $0xf8] sm:$0xff] }
 0x2bb   :  { %v6027_v35 = vadd.f32 %v6026_v15, %v5974_v59  ;;  %v11342_v27 = vpop.f32.mrf.mxu1  ;;  %6418 = vmatprep.subr.bf16.mxu1 %v9322_v5  ;;  %6299 = vmatprep.mubr.bf16.mxu0 %v10857_v44  ;;  %v10072_v5 = vcombine.high %v939_v51, %v943_v12  ;;  %v931_v44 = vld [vmem:[#allocation7 + $0x18d0] sm:$0xff]  ;;  %v9298_v63 = vcombine.high %v164_v56, %v168_v7 }
 0x2bc   :  { %v5977_v6 = vpop.f32.mrf.mxu0  ;;  %6352 = vmatprep.mubr.bf16.mxu1 %v10858_v9  ;;  %v9306_v9 = vcombine.high %v172_v32, %v176_v53 }
 0x2bd   :  { %v5978_v34 = vadd.f32 %v5977_v6, %v11323_v3  ;;  %v6030_v47 = vpop.f32.mrf.mxu1  ;;  %6366 = vmatpush1.bf16.msra.mxu0 %v10087_v30  ;;  %v6823_v59 = vmul.f32 %v11219_v18, %v6027_v35  ;;  %vm6790_vm4 = vcmp.ge.f32.partialorder %v6027_v35, 0.0  ;;  %v10859_v6 = vld [vmem:[#allocation4 + $0x88] ss:$52 sps:$4 sm:$0xff]  }
 0x2be   :  { %6419 = vmatpush1.bf16.msra.mxu1 %v9321_v2  ;;  %v11345_v40 = vpop.f32.mrf.mxu0  ;;  %6367 = vmatprep.subr.bf16.mxu0 %v10080_v39  ;;  %v10860_v2 = vld [vmem:[#allocation4 + $0x90] ss:$52 sps:$4 sm:$0xff]   ;;  %v10071_v39 = vcombine.low %v939_v51, %v943_v12 }
 0x2bf   :  { %v6031_v15 = vadd.f32 %v6030_v47, %v5978_v34  ;;  %v11348_v48 = vpop.f32.mrf.mxu1  ;;  %6420 = vmatprep.subr.bf16.mxu1 %v9314_v4  ;;  %v9305_v34 = vcombine.low %v172_v32, %v176_v53  ;;  %v10064_v47 = vcombine.high %v931_v44, %v935_v13  ;;  %v10063_v53 = vcombine.low %v931_v44, %v935_v13 }
 0x2c0   :  { %v5983_v3 = vpop.f32.mrf.mxu0  ;;  %6300 = vmatmul.mubr.bf16.gmra.mxu0 %v10859_v6  ;;  %v6855_v6 = vsel %vm6790_vm4, %v6027_v35, %v6823_v59  ;;  %v9297_v59 = vcombine.low %v164_v56, %v168_v7  ;;  %v907_v56 = vld [vmem:[#allocation7 + $0x1810] sm:$0xff] }
 0x2c1   :  { %vm6798_vm5 = vcmp.ge.f32.partialorder %v6031_v15, 0.0  ;;  %v6831_v30 = vmul.f32 %v11219_v18, %v6031_v15  ;;  %v5984_v45 = vadd.f32 %v5983_v3, %v11328_v8  ;;  %6368 = vmatpush1.bf16.msra.mxu0 %v10079_v20  ;;  %v6036_v23 = vpop.f32.mrf.mxu1  ;;  %6353 = vmatmul.mubr.bf16.gmra.mxu1 %v10860_v2  ;;  %v927_v8 = vld [vmem:[#allocation7 + $0x18b0] sm:$0xff]  ;;  %v11834_v20 = vmov 0   ;;  %v160_v2 = vld [vmem:[#allocation7 + $0xb8] sm:$0xff] }
 0x2c2   :  { %6421 = vmatpush1.bf16.msra.mxu1 %v9313_v10  ;;  %v11352_v4 = vpop.f32.mrf.mxu0  ;;  %6369 = vmatprep.subr.bf16.mxu0 %v10072_v5  ;;  %v156_v10 = vld [vmem:[#allocation7 + $0x98] sm:$0xff]  ;;  %v10861_v5 = vld [vmem:[#allocation4 + $0x4] ss:$52 sps:$4 sm:$0xff]  }
 0x2c3   :  { %11832 = vst [vmem:[#allocation40_spill] sm:$0xff] %v11352_v4  ;;  %v6863_v0 = vsel %vm6798_vm5, %v6031_v15, %v6831_v30  ;;  %v11355_v22 = vpop.f32.mrf.mxu1  ;;  %6422 = vmatprep.subr.bf16.mxu1 %v9306_v9  ;;  %6395 = vmatprep.mubr.bf16.mxu0 %v11834_v20  ;;  %v6037_v51 = vadd.f32 %v6036_v23, %v5984_v45  ;;  %v915_v30 = vld [vmem:[#allocation7 + $0x1850] sm:$0xff]  ;;  %v356_v4 = vld [vmem:[#allocation7 + $0x6d8] sm:$0xff] }
 0x2c4   :  { %11833 = vst [vmem:[#allocation41_spill] sm:$0xff] %v11355_v22  ;;  %v11358_v3 = vpack.c.bf16 %v6863_v0, %v6855_v6  ;;  %v5987_v12 = vpop.f32.mrf.mxu0  ;;  %6448 = vmatprep.mubr.bf16.mxu1 %v10861_v5  ;;  %v10056_v15 = vcombine.high %v923_v38, %v927_v8  ;;  %v9290_v9 = vcombine.high %v156_v10, %v160_v2  ;;  %v919_v0 = vld [vmem:[#allocation7 + $0x1870] sm:$0xff]  ;;  %v148_v6 = vld [vmem:[#allocation7 + $0x58] sm:$0xff] }
 0x2c5   :  { %v5988_v32 = vadd.f32 %v5987_v12, %v11333_v11  ;;  %6370 = vmatpush1.bf16.msra.mxu0 %v10071_v39  ;;  %v6040_v35 = vpop.f32.mrf.mxu1  ;;  %v6839_v45 = vmul.f32 %v11219_v18, %v6037_v51  ;;  %vm6806_vm6 = vcmp.ge.f32.partialorder %v6037_v51, 0.0  ;;  %v10055_v5 = vcombine.low %v923_v38, %v927_v8  ;;  %v911_v7 = vld [vmem:[#allocation7 + $0x1830] sm:$0xff]  ;;  %v144_v12 = vld [vmem:[#allocation7 + $0x38] sm:$0xff] }
 0x2c6   :  { %11835 = vst [vmem:[#allocation42_spill] sm:$0xff] %v11358_v3  ;;  %6423 = vmatpush1.bf16.msra.mxu1 %v9305_v34  ;;  %6371 = vmatprep.subr.bf16.mxu0 %v10064_v47  ;;  %v152_v3 = vld [vmem:[#allocation7 + $0x78] sm:$0xff]  ;;  %v9289_v13 = vcombine.low %v156_v10, %v160_v2  ;;  %v10048_v44 = vcombine.high %v915_v30, %v919_v0 }
 0x2c7   :  { %6424 = vmatprep.subr.bf16.mxu1 %v9298_v63  ;;  %v6041_v23 = vadd.f32 %v6040_v35, %v5988_v32  ;;  %v9282_v63 = vcombine.high %v148_v6, %v152_v3  ;;  %v6871_v39 = vsel %vm6806_vm6, %v6037_v51, %v6839_v45  ;;  %v140_v47 = vld [vmem:[#allocation7 + $0x18] sm:$0xff]  ;;  %v10047_v35 = vcombine.low %v915_v30, %v919_v0 }
 0x2c8   :  { %v9281_v38 = vcombine.low %v148_v6, %v152_v3  ;;  %v10040_v8 = vcombine.high %v907_v56, %v911_v7  ;;  %v324_v10 = vld [vmem:[#allocation7 + $0x5d8] sm:$0xff]  ;;  %v9273_v51 = vcombine.low %v140_v47, %v144_v12 }
 0x2c9   :  { %6372 = vmatpush1.bf16.msra.mxu0 %v10063_v53  ;;  %vm6814_vm7 = vcmp.ge.f32.partialorder %v6041_v23, 0.0  ;;  %v6847_v11 = vmul.f32 %v11219_v18, %v6041_v23  ;;  %v9274_v53 = vcombine.high %v140_v47, %v144_v12  ;;  %v328_v2 = vld [vmem:[#allocation7 + $0x5f8] sm:$0xff] }
 0x2ca   :  { %6425 = vmatpush1.bf16.msra.mxu1 %v9297_v59  ;;  %6373 = vmatprep.subr.bf16.mxu0 %v10056_v15  ;;  %v260_v59 = vld [vmem:[#allocation7 + $0x3d8] sm:$0xff]  ;;  %v9458_v45 = vcombine.high %v324_v10, %v328_v2  ;;  %v9457_v3 = vcombine.low %v324_v10, %v328_v2 }
 0x2cb   :  { %6426 = vmatprep.subr.bf16.mxu1 %v9290_v9  ;;  %v6879_v34 = vsel %vm6814_vm7, %v6041_v23, %v6847_v11  ;;  %v264_v15 = vld [vmem:[#allocation7 + $0x3f8] sm:$0xff]  ;;  %v10039_v9 = vcombine.low %v907_v56, %v911_v7  ;;  %v10862_v7 = vld [vmem:[#allocation4 + $0x30] ss:$52 sps:$4 sm:$0xff]  }
 0x2cc   :  { %v11363_v32 = vpack.c.bf16 %v6879_v34, %v6871_v39  ;;  %v9394_v23 = vcombine.high %v260_v59, %v264_v15  ;;  %v320_v30 = vld [vmem:[#allocation7 + $0x5b8] sm:$0xff]  ;;  %v9393_v6 = vcombine.low %v260_v59, %v264_v15 }
 0x2cd   :  { %6374 = vmatpush1.bf16.msra.mxu0 %v10055_v5  ;;  %v316_v5 = vld [vmem:[#allocation7 + $0x598] sm:$0xff] }
 0x2ce   :  { %11836 = vst [vmem:[#allocation43_spill] sm:$0xff] %v11363_v32  ;;  %6427 = vmatpush1.bf16.msra.mxu1 %v9289_v13  ;;  %6375 = vmatprep.subr.bf16.mxu0 %v10048_v44  ;;  %v252_v0 = vld [vmem:[#allocation7 + $0x398] sm:$0xff]  ;;  %v9450_v13 = vcombine.high %v316_v5, %v320_v30  ;;  %v9449_v47 = vcombine.low %v316_v5, %v320_v30 }
 0x2cf   :  { %6428 = vmatprep.subr.bf16.mxu1 %v9282_v63  ;;  %v256_v11 = vld [vmem:[#allocation7 + $0x3b8] sm:$0xff] }
 0x2d0   :  { %v9386_v44 = vcombine.high %v252_v0, %v256_v11  ;;  %v308_v63 = vld [vmem:[#allocation7 + $0x558] sm:$0xff]  ;;  %v9385_v12 = vcombine.low %v252_v0, %v256_v11 }
 0x2d1   :  { %6376 = vmatpush1.bf16.msra.mxu0 %v10047_v35  ;;  %v312_v56 = vld [vmem:[#allocation7 + $0x578] sm:$0xff] }
 0x2d2   :  { %6429 = vmatpush1.bf16.msra.mxu1 %v9281_v38  ;;  %6377 = vmatprep.subr.bf16.mxu0 %v10040_v8  ;;  %v244_v39 = vld [vmem:[#allocation7 + $0x358] sm:$0xff]  ;;  %v9442_v35 = vcombine.high %v308_v63, %v312_v56  ;;  %v9441_v59 = vcombine.low %v308_v63, %v312_v56 }
 0x2d3   :  { %6430 = vmatprep.subr.bf16.mxu1 %v9274_v53  ;;  %v248_v34 = vld [vmem:[#allocation7 + $0x378] sm:$0xff] }
 0x2d4   :  { %v9378_v38 = vcombine.high %v244_v39, %v248_v34  ;;  %v300_v8 = vld [vmem:[#allocation7 + $0x518] sm:$0xff]  ;;  %v9377_v15 = vcombine.low %v244_v39, %v248_v34 }
 0x2d5   :  { %6378 = vmatpush1.bf16.msra.mxu0 %v10039_v9  ;;  %v304_v53 = vld [vmem:[#allocation7 + $0x538] sm:$0xff] }
 0x2d6   :  { %6431 = vmatpush1.bf16.msra.mxu1 %v9273_v51  ;;  %6469 = vmatprep.subr.bf16.mxu0 %v9458_v45  ;;  %v236_v10 = vld [vmem:[#allocation7 + $0x318] sm:$0xff]  ;;  %v9434_v9 = vcombine.high %v300_v8, %v304_v53  ;;  %v9433_v11 = vcombine.low %v300_v8, %v304_v53 }
 0x2d7   :  { %6432 = vmatprep.subr.bf16.mxu1 %v9394_v23  ;;  %v240_v2 = vld [vmem:[#allocation7 + $0x338] sm:$0xff] }
 0x2d8   :  { %6396 = vmatmul.mubr.bf16.vlgmr.msra.gmra.mxu0 %v10862_v7  ;;  %v9370_v51 = vcombine.high %v236_v10, %v240_v2  ;;  %v292_v45 = vld [vmem:[#allocation7 + $0x4d8] sm:$0xff] }
 0x2d9   :  { %6470 = vmatpush1.bf16.msra.mxu0 %v9457_v3  ;;  %6405 = vmatprep.mubr.bf16.mxu0 %v11834_v20  ;;  %v296_v23 = vld [vmem:[#allocation7 + $0x4f8] sm:$0xff] }
 0x2da   :  { %6433 = vmatpush2.bf16.msra.mxu1 %v9393_v6  ;;  %6471 = vmatprep.subr.bf16.mxu0 %v9450_v13  ;;  %v10863_v5 = vld [vmem:[#allocation4 + $0x98] ss:$52 sps:$4 sm:$0xff]   ;;  %v9369_v6 = vcombine.low %v236_v10, %v240_v2  ;;  %v9426_v13 = vcombine.high %v292_v45, %v296_v23  ;;  %v9425_v34 = vcombine.low %v292_v45, %v296_v23 }
 0x2db   :  { %6434 = vmatprep.subr.bf16.mxu1 %v9386_v44  ;;  %v228_v30 = vld [vmem:[#allocation7 + $0x2d8] sm:$0xff] }
 0x2dc   :  { %v232_v0 = vld [vmem:[#allocation7 + $0x2f8] sm:$0xff] }
 0x2dd   :  { %6472 = vmatpush1.bf16.msra.mxu0 %v9449_v47  ;;  %v10864_v3 = vld [vmem:[#allocation4 + $0xc] ss:$52 sps:$4 sm:$0xff]   ;;  %v9362_v44 = vcombine.high %v228_v30, %v232_v0  ;;  %v9361_v47 = vcombine.low %v228_v30, %v232_v0 }
 0x2de   :  { %6435 = vmatpush2.bf16.msra.mxu1 %v9385_v12  ;;  %6473 = vmatprep.subr.bf16.mxu0 %v9442_v35  ;;  %v284_v63 = vld [vmem:[#allocation7 + $0x498] sm:$0xff] }
 0x2df   :  { %6436 = vmatprep.subr.bf16.mxu1 %v9378_v38  ;;  %v288_v56 = vld [vmem:[#allocation7 + $0x4b8] sm:$0xff] }
 0x2e0   :  { %6406 = vmatmul.mubr.bf16.gmra.mxu0 %v10863_v5  ;;  %v220_v7 = vld [vmem:[#allocation7 + $0x298] sm:$0xff]  ;;  %v9418_v12 = vcombine.high %v284_v63, %v288_v56  ;;  %v9417_v2 = vcombine.low %v284_v63, %v288_v56 }
 0x2e1   :  { %6474 = vmatpush1.bf16.msra.mxu0 %v9441_v59  ;;  %6501 = vmatprep.mubr.bf16.mxu0 %v10864_v3  ;;  %v224_v39 = vld [vmem:[#allocation7 + $0x2b8] sm:$0xff] }
 0x2e2   :  { %6437 = vmatpush2.bf16.msra.mxu1 %v9377_v15  ;;  %6475 = vmatprep.subr.bf16.mxu0 %v9434_v9  ;;  %v9354_v35 = vcombine.high %v220_v7, %v224_v39  ;;  %v276_v38 = vld [vmem:[#allocation7 + $0x458] sm:$0xff]  ;;  %v9353_v59 = vcombine.low %v220_v7, %v224_v39  ;;  %v989_v7 = vsub.s32 4, %v11124_v26 }
 0x2e3   :  { %6438 = vmatprep.subr.bf16.mxu1 %v9370_v51  ;;  %v280_v8 = vld [vmem:[#allocation7 + $0x478] sm:$0xff] }
 0x2e4   :  { %v212_v53 = vld [vmem:[#allocation7 + $0x258] sm:$0xff]  ;;  %v9410_v15 = vcombine.high %v276_v38, %v280_v8  ;;  %v9409_v30 = vcombine.low %v276_v38, %v280_v8 }
 0x2e5   :  { %6476 = vmatpush1.bf16.msra.mxu0 %v9433_v11  ;;  %v216_v10 = vld [vmem:[#allocation7 + $0x278] sm:$0xff] }
 0x2e6   :  { %6439 = vmatpush2.bf16.msra.mxu1 %v9369_v6  ;;  %6477 = vmatprep.subr.bf16.mxu0 %v9426_v13  ;;  %v9346_v9 = vcombine.high %v212_v53, %v216_v10  ;;  %v268_v51 = vld [vmem:[#allocation7 + $0x418] sm:$0xff]  ;;  %v9345_v0 = vcombine.low %v212_v53, %v216_v10  ;;  %v10865_v53 = vld [vmem:[#allocation9] sm:$0xff] }
 0x2e7   :  { %6440 = vmatprep.subr.bf16.mxu1 %v9362_v44  ;;  %v272_v45 = vld [vmem:[#allocation7 + $0x438] sm:$0xff]  ;;  %v11367_v10 = vrot.slane %v10865_v53, %v989_v7  ;;  %v10866_v7 = vld [vmem:[#allocation4] ss:$52 sps:$4 sm:$0xff]  }
 0x2e8   :  { %v204_v23 = vld [vmem:[#allocation7 + $0x218] sm:$0xff]  ;;  %v9402_v11 = vcombine.high %v268_v51, %v272_v45  ;;  %v9401_v56 = vcombine.low %v268_v51, %v272_v45  ;;  %v11371_v51 = vpop.f32.mrf.mxu1 }
 0x2e9   :  { %6478 = vmatpush1.bf16.msra.mxu0 %v9425_v34  ;;  %v208_v5 = vld [vmem:[#allocation7 + $0x238] sm:$0xff]  ;;  %11838 = vst [vmem:[#allocation45_spill] sm:$0xff] %v11371_v51 }
 0x2ea   :  { %6441 = vmatpush2.bf16.msra.mxu1 %v9361_v47  ;;  %6479 = vmatprep.subr.bf16.mxu0 %v9418_v12  ;;  %v9338_v3 = vcombine.high %v204_v23, %v208_v5  ;;  %v388_v6 = vld [vmem:[#allocation7 + $0x7d8] sm:$0xff]  ;;  %v9337_v39 = vcombine.low %v204_v23, %v208_v5 }
 0x2eb   :  { %6442 = vmatprep.subr.bf16.mxu1 %v9354_v35  ;;  %v392_v13 = vld [vmem:[#allocation7 + $0x7f8] sm:$0xff] }
 0x2ec   :  { %v452_v44 = vld [vmem:[#allocation7 + $0x9d8] sm:$0xff]  ;;  %v9522_v34 = vcombine.high %v388_v6, %v392_v13 }
 0x2ed   :  { %6480 = vmatpush1.bf16.msra.mxu0 %v9417_v2  ;;  %v456_v63 = vld [vmem:[#allocation7 + $0x9f8] sm:$0xff]  ;;  %v9521_v2 = vcombine.low %v388_v6, %v392_v13 }
 0x2ee   :  { %6443 = vmatpush2.bf16.msra.mxu1 %v9353_v59  ;;  %6481 = vmatprep.subr.bf16.mxu0 %v9410_v15  ;;  %v9586_v47 = vcombine.high %v452_v44, %v456_v63  ;;  %v380_v12 = vld [vmem:[#allocation7 + $0x798] sm:$0xff]  ;;  %v11369_v59 = vpop.f32.mrf.mxu0  ;;  %v9585_v15 = vcombine.low %v452_v44, %v456_v63 }
 0x2ef   :  { %6444 = vmatprep.subr.bf16.mxu1 %v9346_v9  ;;  %v384_v35 = vld [vmem:[#allocation7 + $0x7b8] sm:$0xff]  ;;  %11837 = vst [vmem:[#allocation44_spill] sm:$0xff] %v11369_v59 }
 0x2f0   :  { %v444_v38 = vld [vmem:[#allocation7 + $0x998] sm:$0xff]  ;;  %v9514_v9 = vcombine.high %v380_v12, %v384_v35  ;;  %v9513_v6 = vcombine.low %v380_v12, %v384_v35  ;;  %v993_v12 = vsub.s32 5, %v11124_v26 }
 0x2f1   :  { %6482 = vmatpush1.bf16.msra.mxu0 %v9409_v30  ;;  %v448_v8 = vld [vmem:[#allocation7 + $0x9b8] sm:$0xff] }
 0x2f2   :  { %6445 = vmatpush2.bf16.msra.mxu1 %v9345_v0  ;;  %6483 = vmatprep.subr.bf16.mxu0 %v9402_v11  ;;  %v9578_v45 = vcombine.high %v444_v38, %v448_v8  ;;  %v372_v23 = vld [vmem:[#allocation7 + $0x758] sm:$0xff]  ;;  %v9577_v44 = vcombine.low %v444_v38, %v448_v8  ;;  %v11388_v31 = vrot.slane %v10865_v53, %v993_v12 }
 0x2f3   :  { %6446 = vmatprep.subr.bf16.mxu1 %v9338_v3  ;;  %v376_v5 = vld [vmem:[#allocation7 + $0x778] sm:$0xff] }
 0x2f4   :  { %v436_v0 = vld [vmem:[#allocation7 + $0x958] sm:$0xff]  ;;  %v9506_v63 = vcombine.high %v372_v23, %v376_v5  ;;  %v9505_v38 = vcombine.low %v372_v23, %v376_v5  ;;  %11843 = vst [vmem:[#allocation50_spill] sm:$0xff] %v11388_v31 }
 0x2f5   :  { %6484 = vmatpush1.bf16.msra.mxu0 %v9401_v56  ;;  %v440_v11 = vld [vmem:[#allocation7 + $0x978] sm:$0xff] }
 0x2f6   :  { %6447 = vmatpush2.bf16.msra.mxu1 %v9337_v39  ;;  %6485 = vmatprep.subr.bf16.mxu0 %v9522_v34  ;;  %v364_v32 = vld [vmem:[#allocation7 + $0x718] sm:$0xff] }
 0x2f7   :  { %6522 = vmatprep.subr.bf16.mxu1 %v9586_v47  ;;  %v9570_v47 = vcombine.high %v436_v0, %v440_v11  ;;  %v368_v22 = vld [vmem:[#allocation7 + $0x738] sm:$0xff] }
 0x2f8   :  { %v6079_v30 = vpop.f32.mrf.mxu0  ;;  %v360_v59 = vld [vmem:[#allocation7 + $0x6f8] sm:$0xff]  ;;  %v9497_v23 = vcombine.low %v364_v32, %v368_v22 }
 0x2f9   :  { %v6080_v3 = vadd.f32 %v6079_v30, %v11367_v10  ;;  %v6132_v56 = vpop.f32.mrf.mxu1  ;;  %6449 = vmatmul.mubr.bf16.vlgmr.msra.gmra.mxu1 %v10866_v7  ;;  %6486 = vmatpush2.bf16.msra.mxu0 %v9521_v2  ;;  %v10867_v30 = vld [vmem:[#allocation4 + $0x6c] ss:$52 sps:$4 sm:$0xff]  }
 0x2fa   :  { %6523 = vmatpush1.bf16.msra.mxu1 %v9585_v15  ;;  %v11374_v13 = vpop.f32.mrf.mxu0  ;;  %6487 = vmatprep.subr.bf16.mxu0 %v9514_v9  ;;  %v428_v7 = vld [vmem:[#allocation7 + $0x918] sm:$0xff]  ;;  %v9569_v9 = vcombine.low %v436_v0, %v440_v11 }
 0x2fb   :  { %11839 = vst [vmem:[#allocation46_spill] sm:$0xff] %v11374_v13  ;;  %v11376_v39 = vadd.f32 %v6132_v56, %v6080_v3  ;;  %v11378_v34 = vpop.f32.mrf.mxu1  ;;  %6524 = vmatprep.subr.bf16.mxu1 %v9578_v45  ;;  %6458 = vmatprep.mubr.bf16.mxu1 %v10867_v30  ;;  %v432_v2 = vld [vmem:[#allocation7 + $0x938] sm:$0xff]  ;;  %v9498_v45 = vcombine.high %v364_v32, %v368_v22 }
 0x2fc   :  { %11840 = vst [vmem:[#allocation47_spill] sm:$0xff] %v11378_v34  ;;  %v6083_v51 = vpop.f32.mrf.mxu0  ;;  %v9562_v30 = vcombine.high %v428_v7, %v432_v2  ;;  %v420_v34 = vld [vmem:[#allocation7 + $0x8d8] sm:$0xff]  ;;  %v9561_v11 = vcombine.low %v428_v7, %v432_v2 }
 0x2fd   :  { %v6084_v35 = vadd.f32 %v6083_v51, %v11367_v10  ;;  %v6136_v15 = vpop.f32.mrf.mxu1  ;;  %6488 = vmatpush2.bf16.msra.mxu0 %v9513_v6  ;;  %v424_v13 = vld [vmem:[#allocation7 + $0x8f8] sm:$0xff] }
 0x2fe   :  { %6525 = vmatpush1.bf16.msra.mxu1 %v9577_v44  ;;  %v11382_v8 = vpop.f32.mrf.mxu0  ;;  %6489 = vmatprep.subr.bf16.mxu0 %v9506_v63  ;;  %v10868_v0 = vld [vmem:[#allocation4 + $0x68] ss:$52 sps:$4 sm:$0xff]   ;;  %v9490_v44 = vcombine.high %v356_v4, %v360_v59 }
 0x2ff   :  { %11841 = vst [vmem:[#allocation48_spill] sm:$0xff] %v11382_v8  ;;  %v11384_v3 = vadd.f32 %v6136_v15, %v6084_v35  ;;  %v11386_v56 = vpop.f32.mrf.mxu1  ;;  %6526 = vmatprep.subr.bf16.mxu1 %v9570_v47  ;;  %v9554_v47 = vcombine.high %v420_v34, %v424_v13  ;;  %v348_v35 = vld [vmem:[#allocation7 + $0x698] sm:$0xff] }
 0x300   :  { %11842 = vst [vmem:[#allocation49_spill] sm:$0xff] %v11386_v56  ;;  %v6089_v51 = vpop.f32.mrf.mxu0  ;;  %v352_v15 = vld [vmem:[#allocation7 + $0x6b8] sm:$0xff] }
 0x301   :  { %6490 = vmatpush2.bf16.msra.mxu0 %v9505_v38  ;;  %v6090_v5 = vadd.f32 %v6089_v51, %v11367_v10  ;;  %v6142_v6 = vpop.f32.mrf.mxu1  ;;  %6459 = vmatmul.mubr.bf16.gmra.mxu1 %v10868_v0  ;;  %v10869_v22 = vld [vmem:[#allocation4 + $0x14] ss:$52 sps:$4 sm:$0xff]   ;;  %v9482_v0 = vcombine.high %v348_v35, %v352_v15 }
 0x302   :  { %6527 = vmatpush1.bf16.msra.mxu1 %v9569_v9  ;;  %6491 = vmatprep.subr.bf16.mxu0 %v9498_v45  ;;  %v6091_v63 = vpop.f32.mrf.mxu0  ;;  %v412_v32 = vld [vmem:[#allocation7 + $0x898] sm:$0xff]  ;;  %v9489_v9 = vcombine.low %v356_v4, %v360_v59 }
 0x303   :  { %6528 = vmatprep.subr.bf16.mxu1 %v9562_v30  ;;  %v6092_v56 = vadd.f32 %v6091_v63, %v11388_v31  ;;  %v11392_v53 = vadd.f32 %v6142_v6, %v6090_v5  ;;  %v6144_v12 = vpop.f32.mrf.mxu1  ;;  %6554 = vmatprep.mubr.bf16.mxu1 %v10869_v22  ;;  %v416_v38 = vld [vmem:[#allocation7 + $0x8b8] sm:$0xff]  ;;  %v9553_v30 = vcombine.low %v420_v34, %v424_v13 }
 0x304   :  { %v6093_v51 = vpop.f32.mrf.mxu0  ;;  %v9546_v5 = vcombine.high %v412_v32, %v416_v38  ;;  %v340_v6 = vld [vmem:[#allocation7 + $0x658] sm:$0xff]  ;;  %v9545_v13 = vcombine.low %v412_v32, %v416_v38 }
 0x305   :  { %6492 = vmatpush2.bf16.msra.mxu0 %v9497_v23  ;;  %v6094_v7 = vadd.f32 %v6093_v51, %v11367_v10  ;;  %v11395_v2 = vadd.f32 %v6144_v12, %v6092_v56  ;;  %v6146_v45 = vpop.f32.mrf.mxu1  ;;  %v344_v8 = vld [vmem:[#allocation7 + $0x678] sm:$0xff]  ;;  %v9481_v10 = vcombine.low %v348_v35, %v352_v15 }
 0x306   :  { %6529 = vmatpush1.bf16.msra.mxu1 %v9561_v11  ;;  %6493 = vmatprep.subr.bf16.mxu0 %v9490_v44  ;;  %v6095_v63 = vpop.f32.mrf.mxu0  ;;  %v404_v4 = vld [vmem:[#allocation7 + $0x858] sm:$0xff]  ;;  %v9474_v34 = vcombine.high %v340_v6, %v344_v8 }
 0x307   :  { %6530 = vmatprep.subr.bf16.mxu1 %v9554_v47  ;;  %v6096_v22 = vadd.f32 %v6095_v63, %v11388_v31  ;;  %v11398_v61 = vadd.f32 %v6146_v45, %v6094_v7  ;;  %v6148_v23 = vpop.f32.mrf.mxu1  ;;  %v408_v59 = vld [vmem:[#allocation7 + $0x878] sm:$0xff]  ;;  %v9473_v7 = vcombine.low %v340_v6, %v344_v8 }
 0x308   :  { %v9538_v11 = vcombine.high %v404_v4, %v408_v59  ;;  %v332_v44 = vld [vmem:[#allocation7 + $0x618] sm:$0xff]  ;;  %v9537_v45 = vcombine.low %v404_v4, %v408_v59 }
 0x309   :  { %6494 = vmatpush2.bf16.msra.mxu0 %v9489_v9  ;;  %v11400_v56 = vadd.f32 %v6148_v23, %v6096_v22  ;;  %v336_v47 = vld [vmem:[#allocation7 + $0x638] sm:$0xff] }
 0x30a   :  { %6531 = vmatpush1.bf16.msra.mxu1 %v9553_v30  ;;  %6495 = vmatprep.subr.bf16.mxu0 %v9482_v0  ;;  %v396_v12 = vld [vmem:[#allocation7 + $0x818] sm:$0xff]  ;;  %v9466_v63 = vcombine.high %v332_v44, %v336_v47  ;;  %v9465_v32 = vcombine.low %v332_v44, %v336_v47 }
 0x30b   :  { %6532 = vmatprep.subr.bf16.mxu1 %v9546_v5  ;;  %v400_v51 = vld [vmem:[#allocation7 + $0x838] sm:$0xff] }
 0x30c   :  { %v9530_v35 = vcombine.high %v396_v12, %v400_v51  ;;  %v580_v15 = vld [vmem:[#allocation7 + $0xdd8] sm:$0xff]  ;;  %v9529_v38 = vcombine.low %v396_v12, %v400_v51 }
 0x30d   :  { %6496 = vmatpush2.bf16.msra.mxu0 %v9481_v10  ;;  %v584_v9 = vld [vmem:[#allocation7 + $0xdf8] sm:$0xff] }
 0x30e   :  { %6533 = vmatpush1.bf16.msra.mxu1 %v9545_v13  ;;  %6497 = vmatprep.subr.bf16.mxu0 %v9474_v34  ;;  %v516_v30 = vld [vmem:[#allocation7 + $0xbd8] sm:$0xff]  ;;  %v9714_v5 = vcombine.high %v580_v15, %v584_v9  ;;  %v9713_v4 = vcombine.low %v580_v15, %v584_v9 }
 0x30f   :  { %6534 = vmatprep.subr.bf16.mxu1 %v9538_v11  ;;  %v520_v0 = vld [vmem:[#allocation7 + $0xbf8] sm:$0xff] }
 0x310   :  { %v9650_v22 = vcombine.high %v516_v30, %v520_v0  ;;  %v572_v23 = vld [vmem:[#allocation7 + $0xd98] sm:$0xff]  ;;  %v9649_v59 = vcombine.low %v516_v30, %v520_v0 }
 0x311   :  { %6498 = vmatpush2.bf16.msra.mxu0 %v9473_v7  ;;  %v576_v8 = vld [vmem:[#allocation7 + $0xdb8] sm:$0xff] }
 0x312   :  { %6535 = vmatpush1.bf16.msra.mxu1 %v9537_v45  ;;  %6499 = vmatprep.subr.bf16.mxu0 %v9466_v63  ;;  %v508_v6 = vld [vmem:[#allocation7 + $0xb98] sm:$0xff]  ;;  %v9706_v13 = vcombine.high %v572_v23, %v576_v8  ;;  %v9705_v7 = vcombine.low %v572_v23, %v576_v8 }
 0x313   :  { %6536 = vmatprep.subr.bf16.mxu1 %v9530_v35  ;;  %v512_v10 = vld [vmem:[#allocation7 + $0xbb8] sm:$0xff] }
 0x314   :  { %v9642_v34 = vcombine.high %v508_v6, %v512_v10  ;;  %v564_v11 = vld [vmem:[#allocation7 + $0xd58] sm:$0xff]  ;;  %v9641_v63 = vcombine.low %v508_v6, %v512_v10  ;;  %v10872_v10 = vld [vmem:[#allocation4 + $0x70] ss:$52 sps:$4 sm:$0xff]  }
 0x315   :  { %6500 = vmatpush2.bf16.msra.mxu0 %v9465_v32  ;;  %v568_v44 = vld [vmem:[#allocation7 + $0xd78] sm:$0xff] }
 0x316   :  { %6537 = vmatpush1.bf16.msra.mxu1 %v9529_v38  ;;  %6575 = vmatprep.subr.bf16.mxu0 %v9714_v5  ;;  %v10870_v47 = vld [vmem:[#allocation4 + $0x8] ss:$52 sps:$4 sm:$0xff]   ;;  %v9698_v35 = vcombine.high %v564_v11, %v568_v44  ;;  %v9697_v38 = vcombine.low %v564_v11, %v568_v44 }
 0x317   :  { %6538 = vmatprep.subr.bf16.mxu1 %v9650_v22  ;;  %v500_v12 = vld [vmem:[#allocation7 + $0xb58] sm:$0xff] }
 0x318   :  { %6502 = vmatmul.mubr.bf16.vlgmr.msra.gmra.mxu0 %v10870_v47  ;;  %v504_v51 = vld [vmem:[#allocation7 + $0xb78] sm:$0xff] }
 0x319   :  { %6576 = vmatpush1.bf16.msra.mxu0 %v9713_v4  ;;  %v10871_v45 = vld [vmem:[#allocation4 + $0x74] ss:$52 sps:$4 sm:$0xff]   ;;  %v9634_v15 = vcombine.high %v500_v12, %v504_v51  ;;  %v9633_v5 = vcombine.low %v500_v12, %v504_v51 }
 0x31a   :  { %6511 = vmatprep.mubr.bf16.mxu0 %v10871_v45  ;;  %6539 = vmatpush2.bf16.msra.mxu1 %v9649_v59  ;;  %v556_v9 = vld [vmem:[#allocation7 + $0xd18] sm:$0xff] }
 0x31b   :  { %6577 = vmatprep.subr.bf16.mxu0 %v9706_v13  ;;  %6540 = vmatprep.subr.bf16.mxu1 %v9642_v34  ;;  %v560_v30 = vld [vmem:[#allocation7 + $0xd38] sm:$0xff]  ;;  %v10873_v34 = vld [vmem:[#allocation4 + $0x1c] ss:$52 sps:$4 sm:$0xff]  }
 0x31c   :  { %v492_v0 = vld [vmem:[#allocation7 + $0xb18] sm:$0xff]  ;;  %v9690_v22 = vcombine.high %v556_v9, %v560_v30  ;;  %v9689_v13 = vcombine.low %v556_v9, %v560_v30 }
 0x31d   :  { %v496_v32 = vld [vmem:[#allocation7 + $0xb38] sm:$0xff]  ;;  %6578 = vmatpush1.bf16.msra.mxu0 %v9705_v7 }
 0x31e   :  { %6541 = vmatpush2.bf16.msra.mxu1 %v9641_v63  ;;  %6579 = vmatprep.subr.bf16.mxu0 %v9698_v35  ;;  %v9626_v23 = vcombine.high %v492_v0, %v496_v32  ;;  %v548_v8 = vld [vmem:[#allocation7 + $0xcd8] sm:$0xff]  ;;  %v9625_v47 = vcombine.low %v492_v0, %v496_v32 }
 0x31f   :  { %6542 = vmatprep.subr.bf16.mxu1 %v9634_v15  ;;  %v552_v4 = vld [vmem:[#allocation7 + $0xcf8] sm:$0xff] }
 0x320   :  { %v484_v59 = vld [vmem:[#allocation7 + $0xad8] sm:$0xff]  ;;  %6512 = vmatmul.mubr.bf16.gmra.mxu0 %v10872_v10  ;;  %v9682_v11 = vcombine.high %v548_v8, %v552_v4  ;;  %v9681_v63 = vcombine.low %v548_v8, %v552_v4 }
 0x321   :  { %v488_v6 = vld [vmem:[#allocation7 + $0xaf8] sm:$0xff]  ;;  %6580 = vmatpush1.bf16.msra.mxu0 %v9697_v38  ;;  %6607 = vmatprep.mubr.bf16.mxu0 %v10873_v34 }
 0x322   :  { %6543 = vmatpush2.bf16.msra.mxu1 %v9633_v5  ;;  %6581 = vmatprep.subr.bf16.mxu0 %v9690_v22  ;;  %v9618_v44 = vcombine.high %v484_v59, %v488_v6  ;;  %v540_v12 = vld [vmem:[#allocation7 + $0xc98] sm:$0xff]  ;;  %v9617_v35 = vcombine.low %v484_v59, %v488_v6 }
 0x323   :  { %6544 = vmatprep.subr.bf16.mxu1 %v9626_v23  ;;  %v544_v51 = vld [vmem:[#allocation7 + $0xcb8] sm:$0xff] }
 0x324   :  { %v476_v7 = vld [vmem:[#allocation7 + $0xa98] sm:$0xff]  ;;  %v9674_v15 = vcombine.high %v540_v12, %v544_v51  ;;  %v9673_v32 = vcombine.low %v540_v12, %v544_v51 }
 0x325   :  { %v480_v45 = vld [vmem:[#allocation7 + $0xab8] sm:$0xff]  ;;  %6582 = vmatpush1.bf16.msra.mxu0 %v9689_v13 }
 0x326   :  { %6545 = vmatpush2.bf16.msra.mxu1 %v9625_v47  ;;  %6583 = vmatprep.subr.bf16.mxu0 %v9682_v11  ;;  %v9610_v9 = vcombine.high %v476_v7, %v480_v45  ;;  %v532_v30 = vld [vmem:[#allocation7 + $0xc58] sm:$0xff]  ;;  %v9609_v22 = vcombine.low %v476_v7, %v480_v45 }
 0x327   :  { %6546 = vmatprep.subr.bf16.mxu1 %v9618_v44  ;;  %v536_v38 = vld [vmem:[#allocation7 + $0xc78] sm:$0xff] }
 0x328   :  { %v468_v5 = vld [vmem:[#allocation7 + $0xa58] sm:$0xff]  ;;  %v9666_v23 = vcombine.high %v532_v30, %v536_v38  ;;  %v9665_v6 = vcombine.low %v532_v30, %v536_v38 }
 0x329   :  { %v472_v0 = vld [vmem:[#allocation7 + $0xa78] sm:$0xff]  ;;  %6584 = vmatpush1.bf16.msra.mxu0 %v9681_v63 }
 0x32a   :  { %6547 = vmatpush2.bf16.msra.mxu1 %v9617_v35  ;;  %6585 = vmatprep.subr.bf16.mxu0 %v9674_v15  ;;  %v9602_v10 = vcombine.high %v468_v5, %v472_v0  ;;  %v524_v13 = vld [vmem:[#allocation7 + $0xc18] sm:$0xff]  ;;  %v9601_v34 = vcombine.low %v468_v5, %v472_v0 }
 0x32b   :  { %6548 = vmatprep.subr.bf16.mxu1 %v9610_v9  ;;  %v528_v8 = vld [vmem:[#allocation7 + $0xc38] sm:$0xff] }
 0x32c   :  { %v460_v4 = vld [vmem:[#allocation7 + $0xa18] sm:$0xff]  ;;  %v9658_v47 = vcombine.high %v524_v13, %v528_v8  ;;  %v9657_v45 = vcombine.low %v524_v13, %v528_v8 }
 0x32d   :  { %v464_v59 = vld [vmem:[#allocation7 + $0xa38] sm:$0xff]  ;;  %6586 = vmatpush1.bf16.msra.mxu0 %v9673_v32 }
 0x32e   :  { %6549 = vmatpush2.bf16.msra.mxu1 %v9609_v22  ;;  %6587 = vmatprep.subr.bf16.mxu0 %v9666_v23  ;;  %v9594_v11 = vcombine.high %v460_v4, %v464_v59  ;;  %v644_v44 = vld [vmem:[#allocation7 + $0xfd8] sm:$0xff]  ;;  %v9593_v63 = vcombine.low %v460_v4, %v464_v59 }
 0x32f   :  { %6550 = vmatprep.subr.bf16.mxu1 %v9602_v10  ;;  %v648_v12 = vld [vmem:[#allocation7 + $0xff8] sm:$0xff] }
 0x330   :  { %v708_v51 = vld [vmem:[#allocation7 + $0x11d8] sm:$0xff]  ;;  %v9778_v35 = vcombine.high %v644_v44, %v648_v12  ;;  %v9777_v0 = vcombine.low %v644_v44, %v648_v12 }
 0x331   :  { %v712_v7 = vld [vmem:[#allocation7 + $0x11f8] sm:$0xff]  ;;  %6588 = vmatpush1.bf16.msra.mxu0 %v9665_v6 }
 0x332   :  { %6551 = vmatpush2.bf16.msra.mxu1 %v9601_v34  ;;  %6589 = vmatprep.subr.bf16.mxu0 %v9658_v47  ;;  %v9842_v15 = vcombine.high %v708_v51, %v712_v7  ;;  %v636_v9 = vld [vmem:[#allocation7 + $0xf98] sm:$0xff]  ;;  %v9841_v32 = vcombine.low %v708_v51, %v712_v7  ;;  %v10874_v47 = vld [vmem:[#allocation4 + $0x10] ss:$52 sps:$4 sm:$0xff]  }
 0x333   :  { %6552 = vmatprep.subr.bf16.mxu1 %v9594_v11  ;;  %v640_v30 = vld [vmem:[#allocation7 + $0xfb8] sm:$0xff] }
 0x334   :  { %v700_v38 = vld [vmem:[#allocation7 + $0x1198] sm:$0xff]  ;;  %v9770_v22 = vcombine.high %v636_v9, %v640_v30  ;;  %v9769_v11 = vcombine.low %v636_v9, %v640_v30 }
 0x335   :  { %v704_v5 = vld [vmem:[#allocation7 + $0x11b8] sm:$0xff]  ;;  %6590 = vmatpush1.bf16.msra.mxu0 %v9657_v45 }
 0x336   :  { %6553 = vmatpush2.bf16.msra.mxu1 %v9593_v63  ;;  %6591 = vmatprep.subr.bf16.mxu0 %v9778_v35  ;;  %v9834_v23 = vcombine.high %v700_v38, %v704_v5  ;;  %v628_v10 = vld [vmem:[#allocation7 + $0xf58] sm:$0xff]  ;;  %v9833_v12 = vcombine.low %v700_v38, %v704_v5  ;;  %v10875_v63 = vld [vmem:[#allocation4 + $0x7c] ss:$52 sps:$4 sm:$0xff]  }
 0x337   :  { %6628 = vmatprep.subr.bf16.mxu1 %v9842_v15  ;;  %v632_v13 = vld [vmem:[#allocation7 + $0xf78] sm:$0xff] }
 0x338   :  { %v6185_v8 = vpop.f32.mrf.mxu0  ;;  %v692_v4 = vld [vmem:[#allocation7 + $0x1158] sm:$0xff]  ;;  %v9762_v51 = vcombine.high %v628_v10, %v632_v13 }
 0x339   :  { %v696_v59 = vld [vmem:[#allocation7 + $0x1178] sm:$0xff]  ;;  %v6186_v6 = vadd.f32 %v6185_v8, %v11376_v39  ;;  %v6238_v34 = vpop.f32.mrf.mxu1  ;;  %6555 = vmatmul.mubr.bf16.vlgmr.msra.gmra.mxu1 %v10874_v47  ;;  %6592 = vmatpush2.bf16.msra.mxu0 %v9777_v0 }
 0x33a   :  { %6629 = vmatpush1.bf16.msra.mxu1 %v9841_v32  ;;  %v11403_v44 = vpop.f32.mrf.mxu0  ;;  %6593 = vmatprep.subr.bf16.mxu0 %v9770_v22  ;;  %v9826_v35 = vcombine.high %v692_v4, %v696_v59  ;;  %v620_v39 = vld [vmem:[#allocation7 + $0xf18] sm:$0xff]  ;;  %v9761_v32 = vcombine.low %v628_v10, %v632_v13  ;;  %v9825_v5 = vcombine.low %v692_v4, %v696_v59 }
 0x33b   :  { %11844 = vst [vmem:[#allocation51_spill] sm:$0xff] %v11403_v44  ;;  %v11405_v7 = vadd.f32 %v6238_v34, %v6186_v6  ;;  %v11407_v45 = vpop.f32.mrf.mxu1  ;;  %6630 = vmatprep.subr.bf16.mxu1 %v9834_v23  ;;  %6564 = vmatprep.mubr.bf16.mxu1 %v10875_v63  ;;  %v624_v15 = vld [vmem:[#allocation7 + $0xf38] sm:$0xff] }
 0x33c   :  { %11845 = vst [vmem:[#allocation52_spill] sm:$0xff] %v11407_v45  ;;  %v6189_v8 = vpop.f32.mrf.mxu0  ;;  %v684_v47 = vld [vmem:[#allocation7 + $0x1118] sm:$0xff]  ;;  %v9754_v22 = vcombine.high %v620_v39, %v624_v15 }
 0x33d   :  { %v688_v0 = vld [vmem:[#allocation7 + $0x1138] sm:$0xff]  ;;  %v6190_v9 = vadd.f32 %v6189_v8, %v11384_v3  ;;  %v6242_v30 = vpop.f32.mrf.mxu1  ;;  %6594 = vmatpush2.bf16.msra.mxu0 %v9769_v11 }
 0x33e   :  { %6631 = vmatpush1.bf16.msra.mxu1 %v9833_v12  ;;  %v11410_v38 = vpop.f32.mrf.mxu0  ;;  %6595 = vmatprep.subr.bf16.mxu0 %v9762_v51  ;;  %v9818_v34 = vcombine.high %v684_v47, %v688_v0  ;;  %v612_v63 = vld [vmem:[#allocation7 + $0xed8] sm:$0xff]  ;;  %v9753_v12 = vcombine.low %v620_v39, %v624_v15  ;;  %v9817_v59 = vcombine.low %v684_v47, %v688_v0 }
 0x33f   :  { %11846 = vst [vmem:[#allocation53_spill] sm:$0xff] %v11410_v38  ;;  %v11412_v23 = vadd.f32 %v6242_v30, %v6190_v9  ;;  %v11414_v6 = vpop.f32.mrf.mxu1  ;;  %6632 = vmatprep.subr.bf16.mxu1 %v9826_v35  ;;  %v616_v45 = vld [vmem:[#allocation7 + $0xef8] sm:$0xff] }
 0x340   :  { %11847 = vst [vmem:[#allocation54_spill] sm:$0xff] %v11414_v6  ;;  %v6195_v44 = vpop.f32.mrf.mxu0  ;;  %v676_v31 = vld [vmem:[#allocation7 + $0x10d8] sm:$0xff]  ;;  %v9746_v51 = vcombine.high %v612_v63, %v616_v45  ;;  %v9745_v0 = vcombine.low %v612_v63, %v616_v45 }
 0x341   :  { %v680_v3 = vld [vmem:[#allocation7 + $0x10f8] sm:$0xff]  ;;  %v6196_v11 = vadd.f32 %v6195_v44, %v11392_v53  ;;  %6596 = vmatpush2.bf16.msra.mxu0 %v9761_v32  ;;  %v6248_v13 = vpop.f32.mrf.mxu1  ;;  %v10877_v53 = vld [vmem:[#allocation4 + $0x24] ss:$52 sps:$4 sm:$0xff]  }
 0x342   :  { %v10876_v10 = vld [vmem:[#allocation4 + $0x78] ss:$52 sps:$4 sm:$0xff]   ;;  %6633 = vmatpush1.bf16.msra.mxu1 %v9825_v5  ;;  %v6197_v4 = vpop.f32.mrf.mxu0  ;;  %6597 = vmatprep.subr.bf16.mxu0 %v9754_v22  ;;  %v9810_v30 = vcombine.high %v676_v31, %v680_v3  ;;  %v9809_v5 = vcombine.low %v676_v31, %v680_v3 }
 0x343   :  { %6565 = vmatmul.mubr.bf16.gmra.mxu1 %v10876_v10  ;;  %v6198_v35 = vadd.f32 %v6197_v4, %v11395_v2  ;;  %v11418_v8 = vadd.f32 %v6248_v13, %v6196_v11  ;;  %v6250_v9 = vpop.f32.mrf.mxu1  ;;  %6634 = vmatprep.subr.bf16.mxu1 %v9818_v34  ;;  %v604_v6 = vld [vmem:[#allocation7 + $0xe98] sm:$0xff] }
 0x344   :  { %v608_v38 = vld [vmem:[#allocation7 + $0xeb8] sm:$0xff]  ;;  %6660 = vmatprep.mubr.bf16.mxu1 %v10877_v53  ;;  %v6199_v44 = vpop.f32.mrf.mxu0 }
 0x345   :  { %v668_v32 = vld [vmem:[#allocation7 + $0x1098] sm:$0xff]  ;;  %v6200_v39 = vadd.f32 %v6199_v44, %v11398_v61  ;;  %v11421_v15 = vadd.f32 %v6250_v9, %v6198_v35  ;;  %6598 = vmatpush2.bf16.msra.mxu0 %v9753_v12  ;;  %v6252_v47 = vpop.f32.mrf.mxu1  ;;  %v9738_v22 = vcombine.high %v604_v6, %v608_v38  ;;  %v9737_v12 = vcombine.low %v604_v6, %v608_v38 }
 0x346   :  { %v672_v10 = vld [vmem:[#allocation7 + $0x10b8] sm:$0xff]  ;;  %6635 = vmatpush1.bf16.msra.mxu1 %v9817_v59  ;;  %v6201_v2 = vpop.f32.mrf.mxu0  ;;  %6599 = vmatprep.subr.bf16.mxu0 %v9746_v51 }
 0x347   :  { %v11424_v34 = vadd.f32 %v6201_v2, %v11400_v56  ;;  %v11426_v11 = vadd.f32 %v6252_v47, %v6200_v39  ;;  %6636 = vmatprep.subr.bf16.mxu1 %v9810_v30  ;;  %v9802_v13 = vcombine.high %v668_v32, %v672_v10  ;;  %v596_v4 = vld [vmem:[#allocation7 + $0xe58] sm:$0xff]  ;;  %v9801_v45 = vcombine.low %v668_v32, %v672_v10 }
 0x348   :  { %v600_v53 = vld [vmem:[#allocation7 + $0xe78] sm:$0xff] }
 0x349   :  { %v660_v61 = vld [vmem:[#allocation7 + $0x1058] sm:$0xff]  ;;  %6600 = vmatpush2.bf16.msra.mxu0 %v9745_v0  ;;  %v9730_v63 = vcombine.high %v596_v4, %v600_v53  ;;  %v9729_v9 = vcombine.low %v596_v4, %v600_v53 }
 0x34a   :  { %v664_v35 = vld [vmem:[#allocation7 + $0x1078] sm:$0xff]  ;;  %6637 = vmatpush1.bf16.msra.mxu1 %v9809_v5  ;;  %6601 = vmatprep.subr.bf16.mxu0 %v9738_v22 }
 0x34b   :  { %6638 = vmatprep.subr.bf16.mxu1 %v9802_v13  ;;  %v9794_v31 = vcombine.high %v660_v61, %v664_v35  ;;  %v588_v3 = vld [vmem:[#allocation7 + $0xe18] sm:$0xff]  ;;  %v9793_v30 = vcombine.low %v660_v61, %v664_v35 }
 0x34c   :  { %v592_v59 = vld [vmem:[#allocation7 + $0xe38] sm:$0xff] }
 0x34d   :  { %v652_v56 = vld [vmem:[#allocation7 + $0x1018] sm:$0xff]  ;;  %6602 = vmatpush2.bf16.msra.mxu0 %v9737_v12  ;;  %v9722_v44 = vcombine.high %v588_v3, %v592_v59  ;;  %v9721_v32 = vcombine.low %v588_v3, %v592_v59 }
 0x34e   :  { %v656_v51 = vld [vmem:[#allocation7 + $0x1038] sm:$0xff]  ;;  %6639 = vmatpush1.bf16.msra.mxu1 %v9801_v45  ;;  %6603 = vmatprep.subr.bf16.mxu0 %v9730_v63 }
 0x34f   :  { %6640 = vmatprep.subr.bf16.mxu1 %v9794_v31  ;;  %v9786_v39 = vcombine.high %v652_v56, %v656_v51  ;;  %v836_v47 = vld [vmem:[#allocation7 + $0x15d8] sm:$0xff]  ;;  %v9785_v10 = vcombine.low %v652_v56, %v656_v51 }
 0x350   :  { %v840_v38 = vld [vmem:[#allocation7 + $0x15f8] sm:$0xff] }
 0x351   :  { %v772_v6 = vld [vmem:[#allocation7 + $0x13d8] sm:$0xff]  ;;  %6604 = vmatpush2.bf16.msra.mxu0 %v9729_v9  ;;  %v9970_v2 = vcombine.high %v836_v47, %v840_v38  ;;  %v9969_v61 = vcombine.low %v836_v47, %v840_v38  ;;  %v10879_v9 = vld [vmem:[#allocation4 + $0x84] ss:$52 sps:$4 sm:$0xff]  }
 0x352   :  { %v776_v0 = vld [vmem:[#allocation7 + $0x13f8] sm:$0xff]  ;;  %6641 = vmatpush1.bf16.msra.mxu1 %v9793_v30  ;;  %6605 = vmatprep.subr.bf16.mxu0 %v9722_v44 }
 0x353   :  { %6642 = vmatprep.subr.bf16.mxu1 %v9786_v39  ;;  %v9906_v5 = vcombine.high %v772_v6, %v776_v0  ;;  %v828_v22 = vld [vmem:[#allocation7 + $0x1598] sm:$0xff]  ;;  %v9905_v35 = vcombine.low %v772_v6, %v776_v0 }
 0x354   :  { %v832_v13 = vld [vmem:[#allocation7 + $0x15b8] sm:$0xff] }
 0x355   :  { %v764_v4 = vld [vmem:[#allocation7 + $0x1398] sm:$0xff]  ;;  %6606 = vmatpush2.bf16.msra.mxu0 %v9721_v32  ;;  %v9962_v12 = vcombine.high %v828_v22, %v832_v13  ;;  %v9961_v51 = vcombine.low %v828_v22, %v832_v13 }
 0x356   :  { %v768_v53 = vld [vmem:[#allocation7 + $0x13b8] sm:$0xff]  ;;  %6643 = vmatpush1.bf16.msra.mxu1 %v9785_v10  ;;  %6681 = vmatprep.subr.bf16.mxu0 %v9970_v2 }
 0x357   :  { %6644 = vmatprep.subr.bf16.mxu1 %v9906_v5  ;;  %v9898_v45 = vcombine.high %v764_v4, %v768_v53  ;;  %v820_v63 = vld [vmem:[#allocation7 + $0x1558] sm:$0xff]  ;;  %v9897_v30 = vcombine.low %v764_v4, %v768_v53 }
 0x358   :  { %v824_v31 = vld [vmem:[#allocation7 + $0x1578] sm:$0xff] }
 0x359   :  { %v10878_v3 = vld [vmem:[#allocation4 + $0x18] ss:$52 sps:$4 sm:$0xff]   ;;  %v9954_v44 = vcombine.high %v820_v63, %v824_v31  ;;  %v9953_v32 = vcombine.low %v820_v63, %v824_v31 }
 0x35a   :  { %6608 = vmatmul.mubr.bf16.vlgmr.msra.gmra.mxu0 %v10878_v3  ;;  %v756_v59 = vld [vmem:[#allocation7 + $0x1358] sm:$0xff]  ;;  %6645 = vmatpush2.bf16.msra.mxu1 %v9905_v35 }
 0x35b   :  { %v760_v56 = vld [vmem:[#allocation7 + $0x1378] sm:$0xff]  ;;  %6682 = vmatpush1.bf16.msra.mxu0 %v9969_v61  ;;  %6617 = vmatprep.mubr.bf16.mxu0 %v10879_v9  ;;  %v10880_v61 = vld [vmem:[#allocation4 + $0x80] ss:$52 sps:$4 sm:$0xff]  }
 0x35c   :  { %6683 = vmatprep.subr.bf16.mxu0 %v9962_v12  ;;  %6646 = vmatprep.subr.bf16.mxu1 %v9898_v45  ;;  %v9890_v39 = vcombine.high %v756_v59, %v760_v56  ;;  %v812_v47 = vld [vmem:[#allocation7 + $0x1518] sm:$0xff]  ;;  %v9889_v10 = vcombine.low %v756_v59, %v760_v56 }
 0x35d   :  { %v816_v38 = vld [vmem:[#allocation7 + $0x1538] sm:$0xff] }
 0x35e   :  { %v748_v6 = vld [vmem:[#allocation7 + $0x1318] sm:$0xff]  ;;  %6647 = vmatpush2.bf16.msra.mxu1 %v9897_v30  ;;  %v9946_v2 = vcombine.high %v812_v47, %v816_v38  ;;  %v9945_v35 = vcombine.low %v812_v47, %v816_v38 }
 0x35f   :  { %v752_v0 = vld [vmem:[#allocation7 + $0x1338] sm:$0xff]  ;;  %6684 = vmatpush1.bf16.msra.mxu0 %v9961_v51  ;;  %6648 = vmatprep.subr.bf16.mxu1 %v9890_v39 }
 0x360   :  { %6685 = vmatprep.subr.bf16.mxu0 %v9954_v44  ;;  %v9882_v5 = vcombine.high %v748_v6, %v752_v0  ;;  %v804_v22 = vld [vmem:[#allocation7 + $0x14d8] sm:$0xff]  ;;  %v9881_v45 = vcombine.low %v748_v6, %v752_v0 }
 0x361   :  { %v808_v13 = vld [vmem:[#allocation7 + $0x14f8] sm:$0xff] }
 0x362   :  { %6618 = vmatmul.mubr.bf16.gmra.mxu0 %v10880_v61  ;;  %v740_v4 = vld [vmem:[#allocation7 + $0x12d8] sm:$0xff]  ;;  %6649 = vmatpush2.bf16.msra.mxu1 %v9889_v10  ;;  %v9938_v63 = vcombine.high %v804_v22, %v808_v13  ;;  %v9937_v9 = vcombine.low %v804_v22, %v808_v13 }
 0x363   :  { %v744_v53 = vld [vmem:[#allocation7 + $0x12f8] sm:$0xff]  ;;  %6686 = vmatpush1.bf16.msra.mxu0 %v9953_v32  ;;  %6650 = vmatprep.subr.bf16.mxu1 %v9882_v5 }
 0x364   :  { %v10881_v12 = vld [vmem:[#allocation4 + $0x2c] ss:$52 sps:$4 sm:$0xff]   ;;  %6687 = vmatprep.subr.bf16.mxu0 %v9946_v2  ;;  %v9874_v31 = vcombine.high %v740_v4, %v744_v53  ;;  %v9873_v30 = vcombine.low %v740_v4, %v744_v53 }
 0x365   :  { %6713 = vmatprep.mubr.bf16.mxu0 %v10881_v12  ;;  %v796_v3 = vld [vmem:[#allocation7 + $0x1498] sm:$0xff] }
 0x366   :  { %v800_v59 = vld [vmem:[#allocation7 + $0x14b8] sm:$0xff]  ;;  %6651 = vmatpush2.bf16.msra.mxu1 %v9881_v45 }
 0x367   :  { %v732_v56 = vld [vmem:[#allocation7 + $0x1298] sm:$0xff]  ;;  %6688 = vmatpush1.bf16.msra.mxu0 %v9945_v35  ;;  %v9930_v44 = vcombine.high %v796_v3, %v800_v59  ;;  %6652 = vmatprep.subr.bf16.mxu1 %v9874_v31  ;;  %v9929_v0 = vcombine.low %v796_v3, %v800_v59 }
 0x368   :  { %v736_v51 = vld [vmem:[#allocation7 + $0x12b8] sm:$0xff]  ;;  %6689 = vmatprep.subr.bf16.mxu0 %v9938_v63 }
 0x369   :  { %v9866_v39 = vcombine.high %v732_v56, %v736_v51  ;;  %v788_v47 = vld [vmem:[#allocation7 + $0x1458] sm:$0xff]  ;;  %v9865_v10 = vcombine.low %v732_v56, %v736_v51 }
 0x36a   :  { %v792_v38 = vld [vmem:[#allocation7 + $0x1478] sm:$0xff]  ;;  %6653 = vmatpush2.bf16.msra.mxu1 %v9873_v30 }
 0x36b   :  { %v724_v32 = vld [vmem:[#allocation7 + $0x1258] sm:$0xff]  ;;  %6690 = vmatpush1.bf16.msra.mxu0 %v9937_v9  ;;  %v9922_v2 = vcombine.high %v788_v47, %v792_v38  ;;  %6654 = vmatprep.subr.bf16.mxu1 %v9866_v39  ;;  %v9921_v53 = vcombine.low %v788_v47, %v792_v38 }
 0x36c   :  { %v728_v6 = vld [vmem:[#allocation7 + $0x1278] sm:$0xff]  ;;  %6691 = vmatprep.subr.bf16.mxu0 %v9930_v44 }
 0x36d   :  { %v9858_v5 = vcombine.high %v724_v32, %v728_v6  ;;  %v780_v61 = vld [vmem:[#allocation7 + $0x1418] sm:$0xff]  ;;  %v9857_v35 = vcombine.low %v724_v32, %v728_v6 }
 0x36e   :  { %v784_v22 = vld [vmem:[#allocation7 + $0x1438] sm:$0xff]  ;;  %6655 = vmatpush2.bf16.msra.mxu1 %v9865_v10 }
 0x36f   :  { %v716_v13 = vld [vmem:[#allocation7 + $0x1218] sm:$0xff]  ;;  %6692 = vmatpush1.bf16.msra.mxu0 %v9929_v0  ;;  %v9914_v12 = vcombine.high %v780_v61, %v784_v22  ;;  %6656 = vmatprep.subr.bf16.mxu1 %v9858_v5  ;;  %v9913_v56 = vcombine.low %v780_v61, %v784_v22 }
 0x370   :  { %v720_v4 = vld [vmem:[#allocation7 + $0x1238] sm:$0xff]  ;;  %6693 = vmatprep.subr.bf16.mxu0 %v9922_v2 }
 0x371   :  { %v9850_v45 = vcombine.high %v716_v13, %v720_v4  ;;  %v900_v63 = vld [vmem:[#allocation7 + $0x17d8] sm:$0xff]  ;;  %v9849_v51 = vcombine.low %v716_v13, %v720_v4 }
 0x372   :  { %v904_v31 = vld [vmem:[#allocation7 + $0x17f8] sm:$0xff]  ;;  %6657 = vmatpush2.bf16.msra.mxu1 %v9857_v35 }
 0x373   :  { %v964_v3 = vld [vmem:[#allocation7 + $0x19d8] sm:$0xff]  ;;  %6694 = vmatpush1.bf16.msra.mxu0 %v9921_v53  ;;  %v10034_v9 = vcombine.high %v900_v63, %v904_v31  ;;  %6658 = vmatprep.subr.bf16.mxu1 %v9850_v45  ;;  %v10033_v32 = vcombine.low %v900_v63, %v904_v31  ;;  %v10882_v53 = vld [vmem:[#allocation4 + $0x20] ss:$52 sps:$4 sm:$0xff]  }
 0x374   :  { %v968_v59 = vld [vmem:[#allocation7 + $0x19f8] sm:$0xff]  ;;  %6695 = vmatprep.subr.bf16.mxu0 %v9914_v12 }
 0x375   :  { %v10098_v30 = vcombine.high %v964_v3, %v968_v59  ;;  %v892_v44 = vld [vmem:[#allocation7 + $0x1798] sm:$0xff]  ;;  %v10097_v6 = vcombine.low %v964_v3, %v968_v59 }
 0x376   :  { %v896_v39 = vld [vmem:[#allocation7 + $0x17b8] sm:$0xff]  ;;  %6659 = vmatpush2.bf16.msra.mxu1 %v9849_v51 }
 0x377   :  { %v956_v47 = vld [vmem:[#allocation7 + $0x1998] sm:$0xff]  ;;  %6696 = vmatpush1.bf16.msra.mxu0 %v9913_v56  ;;  %v10026_v0 = vcombine.high %v892_v44, %v896_v39  ;;  %6734 = vmatprep.subr.bf16.mxu1 %v10098_v30  ;;  %v10025_v35 = vcombine.low %v892_v44, %v896_v39 }
 0x378   :  { %v960_v38 = vld [vmem:[#allocation7 + $0x19b8] sm:$0xff]  ;;  %6697 = vmatprep.subr.bf16.mxu0 %v10034_v9  ;;  %v6291_v61 = vpop.f32.mrf.mxu0 }
 0x379   :  { %v10090_v10 = vcombine.high %v956_v47, %v960_v38  ;;  %v884_v2 = vld [vmem:[#allocation7 + $0x1758] sm:$0xff]  ;;  %v11429_v4 = vadd.f32 %v6291_v61, %v11405_v7  ;;  %6661 = vmatmul.mubr.bf16.vlgmr.msra.gmra.mxu1 %v10882_v53  ;;  %v10089_v45 = vcombine.low %v956_v47, %v960_v38 }
 0x37a   :  { %v888_v5 = vld [vmem:[#allocation7 + $0x1778] sm:$0xff]  ;;  %6735 = vmatpush1.bf16.msra.mxu1 %v10097_v6  ;;  %v11431_v12 = vpop.f32.mrf.mxu0 }
 0x37b   :  { %v948_v22 = vld [vmem:[#allocation7 + $0x1958] sm:$0xff]  ;;  %6698 = vmatpush2.bf16.msra.mxu0 %v10033_v32  ;;  %v10018_v63 = vcombine.high %v884_v2, %v888_v5  ;;  %6736 = vmatprep.subr.bf16.mxu1 %v10090_v10  ;;  %v10017_v44 = vcombine.low %v884_v2, %v888_v5 }
 0x37c   :  { %v952_v13 = vld [vmem:[#allocation7 + $0x1978] sm:$0xff]  ;;  %6699 = vmatprep.subr.bf16.mxu0 %v10026_v0  ;;  %v6295_v51 = vpop.f32.mrf.mxu0 }
 0x37d   :  { %v10883_v31 = vld [vmem:[#allocation4 + $0x8c] ss:$52 sps:$4 sm:$0xff]   ;;  %v10082_v3 = vcombine.high %v948_v22, %v952_v13  ;;  %v11434_v30 = vadd.f32 %v6295_v51, %v11412_v23  ;;  %v10081_v47 = vcombine.low %v948_v22, %v952_v13  ;;  %v10884_v2 = vld [vmem:[#allocation4 + $0x88] ss:$52 sps:$4 sm:$0xff]  }
 0x37e   :  { %6670 = vmatprep.mubr.bf16.mxu1 %v10883_v31  ;;  %v876_v59 = vld [vmem:[#allocation7 + $0x1718] sm:$0xff]  ;;  %6737 = vmatpush1.bf16.msra.mxu1 %v10089_v45  ;;  %v11436_v39 = vpop.f32.mrf.mxu0  ;;  %v11439_v31 = vsub.s32 3, %v11124_v26  ;;  %v5344_v45 = vadd.f32 %v11145_v14, %v11136_v49 }
 0x37f   :  { %v880_v56 = vld [vmem:[#allocation7 + $0x1738] sm:$0xff]  ;;  %6700 = vmatpush2.bf16.msra.mxu0 %v10025_v35  ;;  %6738 = vmatprep.subr.bf16.mxu1 %v10082_v3 }
 0x380   :  { %v940_v9 = vld [vmem:[#allocation7 + $0x1918] sm:$0xff]  ;;  %6701 = vmatprep.subr.bf16.mxu0 %v10018_v63  ;;  %v10010_v38 = vcombine.high %v876_v59, %v880_v56  ;;  %v6301_v10 = vpop.f32.mrf.mxu0  ;;  %11848 = vst [vmem:[#allocation55_spill] sm:$0xff] %v11439_v31  ;;  %v10009_v5 = vcombine.low %v876_v59, %v880_v56  ;;  %v10885_v56 = vld [vmem:[#allocation9] sm:$0xff] }
 0x381   :  { %v944_v7 = vld [vmem:[#allocation7 + $0x1938] sm:$0xff]  ;;  %v11442_v23 = vadd.f32 %v6301_v10, %v11418_v8  ;;  %6671 = vmatmul.mubr.bf16.gmra.mxu1 %v10884_v2 }
 0x382   :  { %v10074_v32 = vcombine.high %v940_v9, %v944_v7  ;;  %v868_v6 = vld [vmem:[#allocation7 + $0x16d8] sm:$0xff]  ;;  %6739 = vmatpush1.bf16.msra.mxu1 %v10081_v47  ;;  %v6303_v22 = vpop.f32.mrf.mxu0  ;;  %v10073_v13 = vcombine.low %v940_v9, %v944_v7  ;;  %6766 = vmatprep.mubr.bf16.mxu1 %v11834_v20  ;;  %v11451_v47 = vrot.slane %v10885_v56, %v11439_v31 }
 0x383   :  { %v872_v0 = vld [vmem:[#allocation7 + $0x16f8] sm:$0xff]  ;;  %6702 = vmatpush2.bf16.msra.mxu0 %v10017_v44  ;;  %v11447_v63 = vadd.f32 %v6303_v22, %v11421_v15  ;;  %v11456_v15 = vpop.f32.mrf.mxu1 }
 0x384   :  { %v932_v61 = vld [vmem:[#allocation7 + $0x18d8] sm:$0xff]  ;;  %6703 = vmatprep.subr.bf16.mxu0 %v10010_v38  ;;  %v10002_v35 = vcombine.high %v868_v6, %v872_v0  ;;  %6740 = vmatprep.subr.bf16.mxu1 %v10074_v32  ;;  %v6305_v10 = vpop.f32.mrf.mxu0  ;;  %v10001_v14 = vcombine.low %v868_v6, %v872_v0  ;;  %v5397_v32 = vadd.f32 %v11149_v19, %v5344_v45 }
 0x385   :  { %v936_v53 = vld [vmem:[#allocation7 + $0x18f8] sm:$0xff]  ;;  %v11454_v9 = vadd.f32 %v6305_v10, %v11426_v11  ;;  %v5715_v2 = vadd.f32 %v11253_v16, %v11451_v47  ;;  %v6344_v26 = vpop.f32.mrf.mxu1  ;;  %v5711_v0 = vadd.f32 %v11243_v42, %v11451_v47 }
 0x386   :  { %v10066_v3 = vcombine.high %v932_v61, %v936_v53  ;;  %v860_v51 = vld [vmem:[#allocation7 + $0x1698] sm:$0xff]  ;;  %6741 = vmatpush1.bf16.msra.mxu1 %v10073_v13  ;;  %v10065_v7 = vcombine.low %v932_v61, %v936_v53  ;;  %v5450_v6 = vadd.f32 %v11171_v25, %v5397_v32 }
 0x387   :  { %v864_v8 = vld [vmem:[#allocation7 + $0x16b8] sm:$0xff]  ;;  %6704 = vmatpush2.bf16.msra.mxu0 %v10009_v5  ;;  %v5768_v61 = vadd.f32 %v11266_v62, %v5715_v2  ;;  %v5764_v5 = vadd.f32 %v11258_v41, %v5711_v0  ;;  %v11467_v25 = vpop.f32.mrf.mxu1  ;;  %v6307_v0 = vpop.f32.mrf.mxu0 }
 0x388   :  { %v924_v44 = vld [vmem:[#allocation7 + $0x1898] sm:$0xff]  ;;  %6705 = vmatprep.subr.bf16.mxu0 %v10002_v35  ;;  %v9994_v38 = vcombine.high %v860_v51, %v864_v8  ;;  %6742 = vmatprep.subr.bf16.mxu1 %v10066_v3  ;;  %v9993_v53 = vcombine.low %v860_v51, %v864_v8  ;;  %v5503_v62 = vadd.f32 %v11175_v29, %v5450_v6 }
 0x389   :  { %v928_v59 = vld [vmem:[#allocation7 + $0x18b8] sm:$0xff]  ;;  %v5821_v13 = vadd.f32 %v11285_v50, %v5768_v61  ;;  %v5817_v51 = vadd.f32 %v11280_v43, %v5764_v5  ;;  %v6348_v2 = vpop.f32.mrf.mxu1 }
 0x38a   :  { %v10058_v22 = vcombine.high %v924_v44, %v928_v59  ;;  %v852_v56 = vld [vmem:[#allocation7 + $0x1658] sm:$0xff]  ;;  %6743 = vmatpush1.bf16.msra.mxu1 %v10065_v7  ;;  %v10057_v19 = vcombine.low %v924_v44, %v928_v59  ;;  %v5556_v59 = vadd.f32 %v11197_v54, %v5503_v62 }
 0x38b   :  { %v856_v31 = vld [vmem:[#allocation7 + $0x1678] sm:$0xff]  ;;  %6706 = vmatpush2.bf16.msra.mxu0 %v10001_v14  ;;  %v5874_v8 = vadd.f32 %v11305_v60, %v5821_v13  ;;  %v5870_v14 = vadd.f32 %v11300_v37, %v5817_v51 }
 0x38c   :  { %v916_v11 = vld [vmem:[#allocation7 + $0x1858] sm:$0xff]  ;;  %6707 = vmatprep.subr.bf16.mxu0 %v9994_v38  ;;  %v9986_v16 = vcombine.high %v852_v56, %v856_v31  ;;  %6744 = vmatprep.subr.bf16.mxu1 %v10058_v22  ;;  %v9985_v44 = vcombine.low %v852_v56, %v856_v31  ;;  %v5609_v56 = vadd.f32 %v11201_v58, %v5556_v59 }
 0x38d   :  { %v920_v10 = vld [vmem:[#allocation7 + $0x1878] sm:$0xff]  ;;  %v5927_v7 = vadd.f32 %v11325_v1, %v5874_v8  ;;  %v5923_v29 = vadd.f32 %v11320_v24, %v5870_v14  ;;  %v11479_v1 = vpop.f32.mrf.mxu1 }
 0x38e   :  { %v10050_v35 = vcombine.high %v916_v11, %v920_v10  ;;  %v844_v45 = vld [vmem:[#allocation7 + $0x1618] sm:$0xff]  ;;  %6745 = vmatpush1.bf16.msra.mxu1 %v10057_v19  ;;  %v10049_v41 = vcombine.low %v916_v11, %v920_v10  ;;  %v5662_v11 = vadd.f32 %v11226_v21, %v5609_v56  ;;  %v5658_v10 = vadd.f32 %v11221_v36, %v11194_v46  ;;  %v10887_v36 = vld [vmem:[#allocation4 + $0x30] ss:$52 sps:$4 sm:$0xff]  }
 0x38f   :  { %v848_v3 = vld [vmem:[#allocation7 + $0x1638] sm:$0xff]  ;;  %6708 = vmatpush2.bf16.msra.mxu0 %v9993_v53  ;;  %v5980_v43 = vadd.f32 %v11345_v40, %v5927_v7  ;;  %v5976_v54 = vadd.f32 %v11340_v17, %v5923_v29  ;;  %v6354_v6 = vpop.f32.mrf.mxu1  ;;  %v6345_v53 = vadd.f32 %v6344_v26, %v11429_v4 }
 0x390   :  { %v908_v32 = vld [vmem:[#allocation7 + $0x1818] sm:$0xff]  ;;  %6709 = vmatprep.subr.bf16.mxu0 %v9986_v16  ;;  %v9978_v50 = vcombine.high %v844_v45, %v848_v3  ;;  %6746 = vmatprep.subr.bf16.mxu1 %v10050_v35  ;;  %v9977_v60 = vcombine.low %v844_v45, %v848_v3  ;;  %v6822_v35 = vmul.f32 %v11219_v18, %v5658_v10  ;;  %vm6797_vm8 = vcmp.ge.f32.partialorder %v5662_v11, 0.0 }
 0x391   :  { %v912_v42 = vld [vmem:[#allocation7 + $0x1838] sm:$0xff]  ;;  %v6033_v24 = vadd.f32 %v11348_v48, %v5980_v43  ;;  %v6029_v17 = vadd.f32 %v11342_v27, %v5976_v54  ;;  %v6830_v48 = vmul.f32 %v11219_v18, %v5662_v11  ;;  %v6356_v27 = vpop.f32.mrf.mxu1  ;;  %vm6789_vm10 = vcmp.ge.f32.partialorder %v5658_v10, 0.0 }
 0x392   :  { %v10042_v38 = vcombine.high %v908_v32, %v912_v42  ;;  %6747 = vmatpush1.bf16.msra.mxu1 %v10049_v41  ;;  %v10041_v31 = vcombine.low %v908_v32, %v912_v42  ;;  %v10412_v22 = vld [vmem:[#allocation10 + $0xe4] ss:$16 sps:$4 sm:$0xff]   ;;  %v10410_v40 = vld [vmem:[#allocation10 + $0xe0] ss:$16 sps:$4 sm:$0xff]   ;;  %v6349_v32 = vadd.f32 %v6348_v2, %v11434_v30  ;;  %v6255_v30 = vadd.f32 %v11456_v15, %v11424_v34 }
 0x393   :  { %6710 = vmatpush2.bf16.msra.mxu0 %v9985_v44  ;;  %v10415_v37 = vld [vmem:[#allocation10 + $0x2e4] ss:$16 sps:$4 sm:$0xff]   ;;  %v10413_v58 = vld [vmem:[#allocation10 + $0x2e0] ss:$16 sps:$4 sm:$0xff]   ;;  %v6832_v5 = vmul.f32 %v11219_v18, %v6033_v24  ;;  %vm6799_vm9 = vcmp.ge.f32.partialorder %v6033_v24, 0.0  ;;  %v6824_v3 = vmul.f32 %v11219_v18, %v6029_v17  ;;  %vm6791_vm11 = vcmp.ge.f32.partialorder %v6029_v17, 0.0  ;;  %v6358_v14 = vpop.f32.mrf.mxu1 }
 0x394   :  { %6711 = vmatprep.subr.bf16.mxu0 %v9978_v50  ;;  %6748 = vmatprep.subr.bf16.mxu1 %v10042_v38  ;;  %v10418_v61 = vld [vmem:[#allocation10 + $0xc4] ss:$16 sps:$4 sm:$0xff]   ;;  %v10416_v13 = vld [vmem:[#allocation10 + $0xc0] ss:$16 sps:$4 sm:$0xff]   ;;  %v6862_v50 = vsel %vm6797_vm8, %v5662_v11, %v6830_v48  ;;  %v6355_v2 = vadd.f32 %v6354_v6, %v11442_v23  ;;  %v6357_v34 = vadd.f32 %v6356_v27, %v11447_v63 }
 0x395   :  { %v10421_v19 = vld [vmem:[#allocation10 + $0x2c4] ss:$16 sps:$4 sm:$0xff]   ;;  %v10419_v4 = vld [vmem:[#allocation10 + $0x2c0] ss:$16 sps:$4 sm:$0xff]   ;;  %v6864_v59 = vsel %vm6799_vm9, %v6033_v24, %v6832_v5  ;;  %v6856_v43 = vsel %vm6791_vm11, %v6029_v17, %v6824_v3  ;;  %v6308_v15 = vadd.f32 %v6307_v0, %v6255_v30  ;;  %v6360_v6 = vpop.f32.mrf.mxu1  ;;  %v6359_v17 = vadd.f32 %v6358_v14, %v11454_v9 }
 0x396   :  { %6749 = vmatpush1.bf16.msra.mxu1 %v10041_v31  ;;  %v10886_v16 = vld [vmem:[#allocation4 + $0x28] ss:$52 sps:$4 sm:$0xff]   ;;  %v11509_v54 = vpack.c.bf16 %v6864_v59, %v6856_v43 }
 0x397   :  { %6712 = vmatpush2.bf16.msra.mxu0 %v9977_v60  ;;  %8512 = vmatprep.subr.bf16.mxu1 %v10415_v37  ;;  %v10424_v45 = vld [vmem:[#allocation10 + $0xa4] ss:$16 sps:$4 sm:$0xff]   ;;  %v10888_v42 = vld [vmem:[#allocation4 + $0x94] ss:$52 sps:$4 sm:$0xff]  }
 0x398   :  { %8459 = vmatprep.subr.bf16.mxu0 %v10412_v22  ;;  %v6397_v21 = vpop.f32.mrf.mxu0  ;;  %v10427_v62 = vld [vmem:[#allocation10 + $0x2a4] ss:$16 sps:$4 sm:$0xff]   ;;  %v10422_v41 = vld [vmem:[#allocation10 + $0xa0] ss:$16 sps:$4 sm:$0xff]   ;;  %v10889_v22 = vld [vmem:[#allocation4 + $0x90] ss:$52 sps:$4 sm:$0xff]  }
 0x399   :  { %v6398_v46 = vadd.f32 %v6397_v21, %v6345_v53  ;;  %6767 = vmatmul.mubr.bf16.vlgmr.msra.gmra.mxu1 %v10887_v36  ;;  %v10425_v38 = vld [vmem:[#allocation10 + $0x2a0] ss:$16 sps:$4 sm:$0xff]   ;;  %v10430_v60 = vld [vmem:[#allocation10 + $0x84] ss:$16 sps:$4 sm:$0xff]  }
 0x39a   :  { %6714 = vmatmul.mubr.bf16.vlgmr.msra.gmra.mxu0 %v10886_v16  ;;  %8513 = vmatpush1.bf16.msra.mxu1 %v10413_v58  ;;  %v11490_v26 = vpop.f32.mrf.mxu0  ;;  %v10433_v37 = vld [vmem:[#allocation10 + $0x284] ss:$16 sps:$4 sm:$0xff]   ;;  %v10431_v0 = vld [vmem:[#allocation10 + $0x280] ss:$16 sps:$4 sm:$0xff]   ;;  %v6361_v16 = vadd.f32 %v6360_v6, %v6308_v15  ;;  %v5725_v6 = vadd.f32 %v11275_v33, %v11451_v47 }
 0x39b   :  { %8460 = vmatpush1.bf16.msra.mxu0 %v10410_v40  ;;  %8514 = vmatprep.subr.bf16.mxu1 %v10421_v19  ;;  %v6825_v8 = vmul.f32 %v11219_v18, %v6398_v46  ;;  %vm6792_vm12 = vcmp.ge.f32.partialorder %v6398_v46, 0.0  ;;  %v10890_v40 = vld [vmem:[#allocation4 + $0x98] ss:$52 sps:$4 sm:$0xff]  }
 0x39c   :  { %8461 = vmatprep.subr.bf16.mxu0 %v10418_v61  ;;  %6723 = vmatprep.mubr.bf16.mxu0 %v10888_v42  ;;  %v6401_v51 = vpop.f32.mrf.mxu0  ;;  %v10436_v61 = vld [vmem:[#allocation10 + $0x64] ss:$16 sps:$4 sm:$0xff]   ;;  %v10446_v14 = vld [vmem:[#allocation10 + $0x20] ss:$16 sps:$4 sm:$0xff]  }
 0x39d   :  { %6776 = vmatprep.mubr.bf16.mxu1 %v11834_v20  ;;  %v6402_v44 = vadd.f32 %v6401_v51, %v6349_v32  ;;  %v6854_v20 = vsel %vm6789_vm10, %v5658_v10, %v6822_v35  ;;  %v6857_v23 = vsel %vm6792_vm12, %v6398_v46, %v6825_v8  ;;  %v10428_v10 = vld [vmem:[#allocation10 + $0x80] ss:$16 sps:$4 sm:$0xff]   ;;  %v10439_v19 = vld [vmem:[#allocation10 + $0x264] ss:$16 sps:$4 sm:$0xff]  }
 0x39e   :  { %8515 = vmatpush1.bf16.msra.mxu1 %v10419_v4  ;;  %v11500_v7 = vpop.f32.mrf.mxu0  ;;  %v11507_v56 = vpack.c.bf16 %v6862_v50, %v6854_v20  ;;  %v10434_v46 = vld [vmem:[#allocation10 + $0x60] ss:$16 sps:$4 sm:$0xff]   ;;  %v10442_v35 = vld [vmem:[#allocation10 + $0x44] ss:$16 sps:$4 sm:$0xff]  }
 0x39f   :  { %8462 = vmatpush1.bf16.msra.mxu0 %v10416_v13  ;;  %vm6800_vm13 = vcmp.ge.f32.partialorder %v6402_v44, 0.0  ;;  %v6833_v29 = vmul.f32 %v11219_v18, %v6402_v44  ;;  %8516 = vmatprep.subr.bf16.mxu1 %v10427_v62  ;;  %v10437_v13 = vld [vmem:[#allocation10 + $0x260] ss:$16 sps:$4 sm:$0xff]   ;;  %v10454_v20 = vld [vmem:[#allocation10 + $0x4] ss:$16 sps:$4 sm:$0xff]  }
 0x3a0   :  { %8463 = vmatprep.subr.bf16.mxu0 %v10424_v45  ;;  %v6407_v31 = vpop.f32.mrf.mxu0  ;;  %v10445_v45 = vld [vmem:[#allocation10 + $0x244] ss:$16 sps:$4 sm:$0xff]   ;;  %v10440_v62 = vld [vmem:[#allocation10 + $0x40] ss:$16 sps:$4 sm:$0xff]  }
 0x3a1   :  { %v6865_v11 = vsel %vm6800_vm13, %v6402_v44, %v6833_v29  ;;  %v6408_v24 = vadd.f32 %v6407_v31, %v6355_v2  ;;  %6777 = vmatmul.mubr.bf16.gmra.mxu1 %v10890_v40  ;;  %v10443_v8 = vld [vmem:[#allocation10 + $0x240] ss:$16 sps:$4 sm:$0xff]   ;;  %v10448_v44 = vld [vmem:[#allocation10 + $0x24] ss:$16 sps:$4 sm:$0xff]  }
 0x3a2   :  { %6724 = vmatmul.mubr.bf16.gmra.mxu0 %v10889_v22  ;;  %v11512_v58 = vpack.c.bf16 %v6865_v11, %v6857_v23  ;;  %8517 = vmatpush1.bf16.msra.mxu1 %v10425_v38  ;;  %v6409_v63 = vpop.f32.mrf.mxu0  ;;  %v10449_v38 = vld [vmem:[#allocation10 + $0x220] ss:$16 sps:$4 sm:$0xff]   ;;  %v10457_v2 = vld [vmem:[#allocation10 + $0x204] ss:$16 sps:$4 sm:$0xff]   ;;  %v5354_v11 = vadd.f32 %v11160_v52, %v11136_v49  ;;  %v5721_v49 = vadd.f32 %v11261_v28, %v11451_v47 }
 0x3a3   :  { %8464 = vmatpush1.bf16.msra.mxu0 %v10422_v41  ;;  %8491 = vmatprep.mubr.bf16.mxu0 %v11507_v56  ;;  %v6410_v53 = vadd.f32 %v6409_v63, %v6357_v34  ;;  %v6841_v48 = vmul.f32 %v11219_v18, %v6408_v24  ;;  %vm6808_vm14 = vcmp.ge.f32.partialorder %v6408_v24, 0.0  ;;  %v10451_v41 = vld [vmem:[#allocation10 + $0x224] ss:$16 sps:$4 sm:$0xff]   ;;  %v10452_v29 = vld [vmem:[#allocation10] ss:$16 sps:$4 sm:$0xff]  }
 0x3a4   :  { %8544 = vmatprep.mubr.bf16.mxu1 %v11509_v54  ;;  %8465 = vmatprep.subr.bf16.mxu0 %v10430_v60  ;;  %v6411_v21 = vpop.f32.mrf.mxu0  ;;  %v10455_v43 = vld [vmem:[#allocation10 + $0x200] ss:$16 sps:$4 sm:$0xff]   ;;  %v10460_v60 = vld [vmem:[#allocation10 + $0x1e4] ss:$16 sps:$4 sm:$0xff]  }
 0x3a5   :  { %8518 = vmatprep.subr.bf16.mxu1 %v10433_v37  ;;  %v6412_v5 = vadd.f32 %v6411_v21, %v6359_v17  ;;  %v6842_v9 = vmul.f32 %v11219_v18, %v6410_v53  ;;  %vm6809_vm0 = vcmp.ge.f32.partialorder %v6410_v53, 0.0  ;;  %v6873_v3 = vsel %vm6808_vm14, %v6408_v24, %v6841_v48  ;;  %v10463_v34 = vld [vmem:[#allocation10 + $0x3e4] ss:$16 sps:$4 sm:$0xff]   ;;  %v10458_v15 = vld [vmem:[#allocation10 + $0x1e0] ss:$16 sps:$4 sm:$0xff]  }
 0x3a6   :  { %8519 = vmatpush1.bf16.msra.mxu1 %v10431_v0  ;;  %v6413_v36 = vpop.f32.mrf.mxu0  ;;  %v10461_v31 = vld [vmem:[#allocation10 + $0x3e0] ss:$16 sps:$4 sm:$0xff]   ;;  %v10466_v22 = vld [vmem:[#allocation10 + $0x1c4] ss:$16 sps:$4 sm:$0xff]   ;;  %v5407_v0 = vadd.f32 %v11162_v55, %v5354_v11 }
 0x3a7   :  { %8466 = vmatpush1.bf16.msra.mxu0 %v10428_v10  ;;  %vm6816_vm15 = vcmp.ge.f32.partialorder %v6412_v5, 0.0  ;;  %v6849_v27 = vmul.f32 %v11219_v18, %v6412_v5  ;;  %v6414_v4 = vadd.f32 %v6413_v36, %v6361_v16  ;;  %8520 = vmatprep.subr.bf16.mxu1 %v10439_v19  ;;  %v6874_v50 = vsel %vm6809_vm0, %v6410_v53, %v6842_v9  ;;  %v10469_v37 = vld [vmem:[#allocation10 + $0x3c4] ss:$16 sps:$4 sm:$0xff]   ;;  %v10464_v23 = vld [vmem:[#allocation10 + $0x1c0] ss:$16 sps:$4 sm:$0xff]  }
 0x3a8   :  { %8467 = vmatprep.subr.bf16.mxu0 %v10436_v61  ;;  %v10467_v24 = vld [vmem:[#allocation10 + $0x3c0] ss:$16 sps:$4 sm:$0xff]   ;;  %v10472_v40 = vld [vmem:[#allocation10 + $0x1a4] ss:$16 sps:$4 sm:$0xff]   ;;  %v5460_v53 = vadd.f32 %v11186_v57, %v5407_v0 }
 0x3a9   :  { %v6881_v32 = vsel %vm6816_vm15, %v6412_v5, %v6849_v27  ;;  %vm6817_vm1 = vcmp.ge.f32.partialorder %v6414_v4, 0.0  ;;  %v6850_v42 = vmul.f32 %v11219_v18, %v6414_v4  ;;  %v10475_v10 = vld [vmem:[#allocation10 + $0x3a4] ss:$16 sps:$4 sm:$0xff]   ;;  %v10470_v63 = vld [vmem:[#allocation10 + $0x1a0] ss:$16 sps:$4 sm:$0xff]  }
 0x3aa   :  { %v11521_v51 = vpack.c.bf16 %v6881_v32, %v6873_v3  ;;  %8521 = vmatpush1.bf16.msra.mxu1 %v10437_v13  ;;  %v10473_v61 = vld [vmem:[#allocation10 + $0x3a0] ss:$16 sps:$4 sm:$0xff]   ;;  %v10478_v17 = vld [vmem:[#allocation10 + $0x184] ss:$16 sps:$4 sm:$0xff]  }
 0x3ab   :  { %8468 = vmatpush1.bf16.msra.mxu0 %v10434_v46  ;;  %8522 = vmatprep.subr.bf16.mxu1 %v10445_v45  ;;  %v6882_v59 = vsel %vm6817_vm1, %v6414_v4, %v6850_v42  ;;  %v10481_v52 = vld [vmem:[#allocation10 + $0x384] ss:$16 sps:$4 sm:$0xff]   ;;  %v10476_v16 = vld [vmem:[#allocation10 + $0x180] ss:$16 sps:$4 sm:$0xff]   ;;  %v11856_v45 = vld [vmem:[#allocation33_spill] sm:$0xff] }
 0x3ac   :  { %8469 = vmatprep.subr.bf16.mxu0 %v10442_v35  ;;  %v11523_v30 = vpack.c.bf16 %v6882_v59, %v6874_v50  ;;  %v11849_v19 = vld [vmem:[#allocation34_spill] sm:$0xff]  ;;  %v11851_v48 = vld [vmem:[#allocation48_spill] sm:$0xff] }
 0x3ad   :  { %v5778_v21 = vadd.f32 %v11849_v19, %v5725_v6  ;;  %v11850_v33 = vld [vmem:[#allocation50_spill] sm:$0xff]  ;;  %v11852_v36 = vld [vmem:[#allocation32_spill] sm:$0xff]  ;;  %v11867_v6 = vld [vmem:[#allocation51_spill] sm:$0xff] }
 0x3ae   :  { %8523 = vmatpush1.bf16.msra.mxu1 %v10443_v8  ;;  %v6086_v5 = vadd.f32 %v11851_v48, %v11850_v33  ;;  %v10479_v55 = vld [vmem:[#allocation10 + $0x380] ss:$16 sps:$4 sm:$0xff]   ;;  %v10484_v46 = vld [vmem:[#allocation10 + $0x164] ss:$16 sps:$4 sm:$0xff]   ;;  %v5774_v13 = vadd.f32 %v11852_v36, %v5721_v49  ;;  %v11858_v8 = vld [vmem:[#allocation25_spill] sm:$0xff] }
 0x3af   :  { %8470 = vmatpush1.bf16.msra.mxu0 %v10440_v62  ;;  %8524 = vmatprep.subr.bf16.mxu1 %v10451_v41  ;;  %v11853_v35 = vld [vmem:[#allocation36_spill] sm:$0xff]  ;;  %v11855_v57 = vld [vmem:[#allocation46_spill] sm:$0xff]  ;;  %v11859_v41 = vld [vmem:[#allocation49_spill] sm:$0xff] }
 0x3b0   :  { %8471 = vmatprep.subr.bf16.mxu0 %v10448_v44  ;;  %v5831_v9 = vadd.f32 %v11853_v35, %v5778_v21  ;;  %v10487_v28 = vld [vmem:[#allocation10 + $0x364] ss:$16 sps:$4 sm:$0xff]   ;;  %v6082_v4 = vadd.f32 %v11855_v57, %v11850_v33  ;;  %v5827_v3 = vadd.f32 %v11856_v45, %v5774_v13  ;;  %v10482_v62 = vld [vmem:[#allocation10 + $0x160] ss:$16 sps:$4 sm:$0xff]   ;;  %v6139_v50 = vadd.f32 %v11859_v41, %v6086_v5  ;;  %v11871_v33 = vld [vmem:[#allocation45_spill] sm:$0xff] }
 0x3b1   :  { %v11854_v47 = vld [vmem:[#allocation24_spill] sm:$0xff]  ;;  %v11857_v32 = vld [vmem:[#allocation38_spill] sm:$0xff] }
 0x3b2   :  { %8525 = vmatpush1.bf16.msra.mxu1 %v10449_v38  ;;  %v5513_v27 = vadd.f32 %v11854_v47, %v5460_v53  ;;  %v5884_v42 = vadd.f32 %v11857_v32, %v5831_v9  ;;  %v10485_v59 = vld [vmem:[#allocation10 + $0x360] ss:$16 sps:$4 sm:$0xff]   ;;  %v11860_v38 = vld [vmem:[#allocation35_spill] sm:$0xff]  ;;  %v10502_v35 = vld [vmem:[#allocation10 + $0x104] ss:$16 sps:$4 sm:$0xff]  }
 0x3b3   :  { %8472 = vmatpush1.bf16.msra.mxu0 %v10446_v14  ;;  %8526 = vmatprep.subr.bf16.mxu1 %v10457_v2  ;;  %v10490_v14 = vld [vmem:[#allocation10 + $0x144] ss:$16 sps:$4 sm:$0xff]   ;;  %v11861_v2 = vld [vmem:[#allocation39_spill] sm:$0xff]  ;;  %v10491_v0 = vld [vmem:[#allocation10 + $0x340] ss:$16 sps:$4 sm:$0xff]  }
 0x3b4   :  { %8473 = vmatprep.subr.bf16.mxu0 %v10454_v20  ;;  %v5566_v44 = vadd.f32 %v11858_v8, %v5513_v27  ;;  %v5880_v20 = vadd.f32 %v11860_v38, %v5827_v3  ;;  %v11869_v53 = vld [vmem:[#allocation31_spill] sm:$0xff]  ;;  %v11870_v21 = vld [vmem:[#allocation54_spill] sm:$0xff]  ;;  %v11873_v9 = vld [vmem:[#allocation41_spill] sm:$0xff] }
 0x3b5   :  { %v10494_v5 = vld [vmem:[#allocation10 + $0x120] ss:$16 sps:$4 sm:$0xff]   ;;  %v10505_v47 = vld [vmem:[#allocation10 + $0x304] ss:$16 sps:$4 sm:$0xff]   ;;  %v11874_v3 = vld [vmem:[#allocation27_spill] sm:$0xff] }
 0x3b6   :  { %8527 = vmatpush1.bf16.msra.mxu1 %v10455_v43  ;;  %v10493_v43 = vld [vmem:[#allocation10 + $0x344] ss:$16 sps:$4 sm:$0xff]   ;;  %v10497_v13 = vld [vmem:[#allocation10 + $0x320] ss:$16 sps:$4 sm:$0xff]   ;;  %vm6805_vm4 = vcmp.ge.f32.partialorder %v11874_v3, 0.0 }
 0x3b7   :  { %8474 = vmatpush1.bf16.msra.mxu0 %v10452_v29  ;;  %8528 = vmatprep.subr.bf16.mxu1 %v10463_v34  ;;  %v5937_v29 = vadd.f32 %v11861_v2, %v5884_v42  ;;  %v10500_v45 = vld [vmem:[#allocation10 + $0x100] ss:$16 sps:$4 sm:$0xff]  }
 0x3b8   :  { %8475 = vmatprep.subr.bf16.mxu0 %v10460_v60  ;;  %v11862_v60 = vld [vmem:[#allocation47_spill] sm:$0xff]  ;;  %v10503_v42 = vld [vmem:[#allocation10 + $0x300] ss:$16 sps:$4 sm:$0xff]  }
 0x3b9   :  { %v6135_v34 = vadd.f32 %v11862_v60, %v6082_v4 }
 0x3ba   :  { %8529 = vmatpush2.bf16.msra.mxu1 %v10461_v31 }
 0x3bb   :  { %8476 = vmatpush2.bf16.msra.mxu0 %v10458_v15  ;;  %8530 = vmatprep.subr.bf16.mxu1 %v10469_v37  ;;  %v11863_v15 = vld [vmem:[#allocation53_spill] sm:$0xff] }
 0x3bc   :  { %8477 = vmatprep.subr.bf16.mxu0 %v10466_v22  ;;  %v6192_v31 = vadd.f32 %v11863_v15, %v6139_v50  ;;  %v11864_v22 = vld [vmem:[#allocation37_spill] sm:$0xff] }
 0x3bd   :  { %v5933_v37 = vadd.f32 %v11864_v22, %v5880_v20  ;;  %v10514_v22 = vld [vmem:[#allocation10 + $0x4a4] ss:$16 sps:$4 sm:$0xff]  }
 0x3be   :  { %8531 = vmatpush2.bf16.msra.mxu1 %v10467_v24  ;;  %v10488_v24 = vld [vmem:[#allocation10 + $0x140] ss:$16 sps:$4 sm:$0xff]  }
 0x3bf   :  { %8478 = vmatpush2.bf16.msra.mxu0 %v10464_v23  ;;  %8532 = vmatprep.subr.bf16.mxu1 %v10475_v10  ;;  %v11865_v23 = vld [vmem:[#allocation44_spill] sm:$0xff] }
 0x3c0   :  { %8479 = vmatprep.subr.bf16.mxu0 %v10472_v40  ;;  %v5990_v11 = vadd.f32 %v11865_v23, %v5937_v29  ;;  %v11866_v40 = vld [vmem:[#allocation29_spill] sm:$0xff]  ;;  %v10511_v29 = vld [vmem:[#allocation10 + $0x4c4] ss:$16 sps:$4 sm:$0xff]  }
 0x3c1   :  { %v5619_v10 = vadd.f32 %v11866_v40, %v5566_v44 }
 0x3c2   :  { %8533 = vmatpush2.bf16.msra.mxu1 %v10473_v61  ;;  %v10496_v61 = vld [vmem:[#allocation10 + $0x124] ss:$16 sps:$4 sm:$0xff]   ;;  %v6043_v48 = vadd.f32 %v11871_v33, %v5990_v11  ;;  %v10590_v33 = vld [vmem:[#allocation10 + $0x660] ss:$16 sps:$4 sm:$0xff]  }
 0x3c3   :  { %8480 = vmatpush2.bf16.msra.mxu0 %v10470_v63  ;;  %8534 = vmatprep.subr.bf16.mxu1 %v10481_v52  ;;  %v6188_v63 = vadd.f32 %v11867_v6, %v6135_v34  ;;  %v10499_v52 = vld [vmem:[#allocation10 + $0x324] ss:$16 sps:$4 sm:$0xff]   ;;  %v5672_v19 = vadd.f32 %v11869_v53, %v5619_v10  ;;  %v10584_v53 = vld [vmem:[#allocation10 + $0x680] ss:$16 sps:$4 sm:$0xff]  }
 0x3c4   :  { %8481 = vmatprep.subr.bf16.mxu0 %v10478_v17  ;;  %v11868_v17 = vld [vmem:[#allocation40_spill] sm:$0xff]  ;;  %v6848_v4 = vmul.f32 %v11219_v18, %v6043_v48  ;;  %vm6815_vm3 = vcmp.ge.f32.partialorder %v6043_v48, 0.0 }
 0x3c5   :  { %v5986_v49 = vadd.f32 %v11868_v17, %v5933_v37  ;;  %v6846_v27 = vmul.f32 %v11219_v18, %v5672_v19  ;;  %vm6813_vm2 = vcmp.ge.f32.partialorder %v5672_v19, 0.0  ;;  %v10574_v34 = vld [vmem:[#allocation10 + $0x6c4] ss:$16 sps:$4 sm:$0xff]   ;;  %v10572_v37 = vld [vmem:[#allocation10 + $0x6c0] ss:$16 sps:$4 sm:$0xff]   ;;  %v11878_v17 = vld [vmem:[#allocation43_spill] sm:$0xff] }
 0x3c6   :  { %8535 = vmatpush2.bf16.msra.mxu1 %v10479_v55  ;;  %v11872_v55 = vld [vmem:[#allocation52_spill] sm:$0xff] }
 0x3c7   :  { %8482 = vmatpush2.bf16.msra.mxu0 %v10476_v16  ;;  %8536 = vmatprep.subr.bf16.mxu1 %v10487_v28  ;;  %v6245_v16 = vadd.f32 %v11870_v21, %v6192_v31  ;;  %v6039_v28 = vadd.f32 %v11873_v9, %v5986_v49  ;;  %v6878_v50 = vsel %vm6813_vm2, %v5672_v19, %v6846_v27  ;;  %v10509_v31 = vld [vmem:[#allocation10 + $0x4c0] ss:$16 sps:$4 sm:$0xff]   ;;  %v10580_v11 = vld [vmem:[#allocation10 + $0x6a4] ss:$16 sps:$4 sm:$0xff]  }
 0x3c8   :  { %8483 = vmatprep.subr.bf16.mxu0 %v10484_v46  ;;  %v6241_v46 = vadd.f32 %v11872_v55, %v6188_v63  ;;  %v10517_v6 = vld [vmem:[#allocation10 + $0x484] ss:$16 sps:$4 sm:$0xff]   ;;  %v10578_v63 = vld [vmem:[#allocation10 + $0x6a0] ss:$16 sps:$4 sm:$0xff]  }
 0x3c9   :  { %v6298_v36 = vadd.f32 %v11436_v39, %v6245_v16  ;;  %v6838_v39 = vmul.f32 %v11219_v18, %v11874_v3  ;;  %v6840_v8 = vmul.f32 %v11219_v18, %v6039_v28  ;;  %vm6807_vm5 = vcmp.ge.f32.partialorder %v6039_v28, 0.0  ;;  %v10515_v49 = vld [vmem:[#allocation10 + $0x480] ss:$16 sps:$4 sm:$0xff]   ;;  %v10592_v19 = vld [vmem:[#allocation10 + $0x664] ss:$16 sps:$4 sm:$0xff]  }
 0x3ca   :  { %8537 = vmatpush2.bf16.msra.mxu1 %v10485_v59  ;;  %v6294_v57 = vadd.f32 %v11431_v12, %v6241_v46  ;;  %v10568_v12 = vld [vmem:[#allocation10 + $0x6e4] ss:$16 sps:$4 sm:$0xff]   ;;  %v6880_v59 = vsel %vm6815_vm3, %v6043_v48, %v6848_v4  ;;  %v10518_v21 = vld [vmem:[#allocation10 + $0x460] ss:$16 sps:$4 sm:$0xff]  }
 0x3cb   :  { %8484 = vmatpush2.bf16.msra.mxu0 %v10482_v62  ;;  %8538 = vmatprep.subr.bf16.mxu1 %v10493_v43  ;;  %v6351_v32 = vadd.f32 %v11479_v1, %v6298_v36  ;;  %v10508_v62 = vld [vmem:[#allocation10 + $0x4e4] ss:$16 sps:$4 sm:$0xff]   ;;  %v6870_v38 = vsel %vm6805_vm4, %v11874_v3, %v6838_v39  ;;  %v6872_v2 = vsel %vm6807_vm5, %v6039_v28, %v6840_v8  ;;  %v10566_v43 = vld [vmem:[#allocation10 + $0x6e0] ss:$16 sps:$4 sm:$0xff]   ;;  %vm9216_vm4 = vcmask 261120  }
 0x3cc   :  { %8485 = vmatprep.subr.bf16.mxu0 %v10490_v14  ;;  %v6347_v44 = vadd.f32 %v11467_v25, %v6294_v57  ;;  %v10506_v14 = vld [vmem:[#allocation10 + $0x4e0] ss:$16 sps:$4 sm:$0xff]   ;;  %v11573_v20 = vpack.c.bf16 %v6878_v50, %v6870_v38  ;;  %v11577_v60 = vpack.c.bf16 %v6880_v59, %v6872_v2  ;;  %v10523_v16 = vld [vmem:[#allocation10 + $0x444] ss:$16 sps:$4 sm:$0xff]  }
 0x3cd   :  { %v6404_v41 = vadd.f32 %v11500_v7, %v6351_v32  ;;  %v11875_v7 = vld [vmem:[#allocation26_spill] sm:$0xff] }
 0x3ce   :  { %8539 = vmatpush2.bf16.msra.mxu1 %v10491_v0  ;;  %v6400_v1 = vadd.f32 %v11490_v26, %v6347_v44  ;;  %v11876_v26 = vld [vmem:[#allocation42_spill] sm:$0xff]  ;;  %v11877_v0 = vld [vmem:[#allocation28_spill] sm:$0xff] }
 0x3cf   :  { %8486 = vmatpush2.bf16.msra.mxu0 %v10488_v24  ;;  %8540 = vmatprep.subr.bf16.mxu1 %v10499_v52  ;;  %v6834_v25 = vmul.f32 %v11219_v18, %v6404_v41  ;;  %vm6801_vm6 = vcmp.ge.f32.partialorder %v6404_v41, 0.0  ;;  %v10512_v24 = vld [vmem:[#allocation10 + $0x4a0] ss:$16 sps:$4 sm:$0xff]   ;;  %v10520_v52 = vld [vmem:[#allocation10 + $0x464] ss:$16 sps:$4 sm:$0xff]  }
 0x3d0   :  { %8487 = vmatprep.subr.bf16.mxu0 %v10496_v61  ;;  %v6826_v15 = vmul.f32 %v11219_v18, %v6400_v1  ;;  %vm6793_vm7 = vcmp.ge.f32.partialorder %v6400_v1, 0.0  ;;  %v10586_v61 = vld [vmem:[#allocation10 + $0x684] ss:$16 sps:$4 sm:$0xff]   ;;  %v10596_v46 = vld [vmem:[#allocation10 + $0x640] ss:$16 sps:$4 sm:$0xff]  }
 0x3d1   :  { %v6866_v23 = vsel %vm6801_vm6, %v6404_v41, %v6834_v25  ;;  %v10598_v48 = vld [vmem:[#allocation10 + $0x644] ss:$16 sps:$4 sm:$0xff]   ;;  %v10602_v9 = vld [vmem:[#allocation10 + $0x620] ss:$16 sps:$4 sm:$0xff]  }
 0x3d2   :  { %8541 = vmatpush2.bf16.msra.mxu1 %v10497_v13  ;;  %v6858_v40 = vsel %vm6793_vm7, %v6400_v1, %v6826_v15  ;;  %v10526_v55 = vld [vmem:[#allocation10 + $0x424] ss:$16 sps:$4 sm:$0xff]   ;;  %v10524_v13 = vld [vmem:[#allocation10 + $0x420] ss:$16 sps:$4 sm:$0xff]   ;;  %v11588_v1 = vpop.f32.mrf.mxu1 }
 0x3d3   :  { %8488 = vmatpush2.bf16.msra.mxu0 %v10494_v5  ;;  %8542 = vmatprep.subr.bf16.mxu1 %v10505_v47  ;;  %v11583_v10 = vpack.c.bf16 %v6866_v23, %v6858_v40  ;;  %v10521_v5 = vld [vmem:[#allocation10 + $0x440] ss:$16 sps:$4 sm:$0xff]   ;;  %v10604_v36 = vld [vmem:[#allocation10 + $0x624] ss:$16 sps:$4 sm:$0xff]  }
 0x3d4   :  { %8489 = vmatprep.subr.bf16.mxu0 %v10502_v35  ;;  %v10529_v35 = vld [vmem:[#allocation10 + $0x404] ss:$16 sps:$4 sm:$0xff]   ;;  %v10527_v47 = vld [vmem:[#allocation10 + $0x400] ss:$16 sps:$4 sm:$0xff]  }
 0x3d5   :  { %v10610_v28 = vld [vmem:[#allocation10 + $0x604] ss:$16 sps:$4 sm:$0xff]   ;;  %v10608_v57 = vld [vmem:[#allocation10 + $0x600] ss:$16 sps:$4 sm:$0xff]  }
 0x3d6   :  { %8543 = vmatpush2.bf16.msra.mxu1 %v10503_v42  ;;  %v10532_v27 = vld [vmem:[#allocation10 + $0x5e4] ss:$16 sps:$4 sm:$0xff]   ;;  %v10614_v39 = vld [vmem:[#allocation10 + $0x7e0] ss:$16 sps:$4 sm:$0xff]  }
 0x3d7   :  { %8490 = vmatpush2.bf16.msra.mxu0 %v10500_v45  ;;  %8618 = vmatprep.subr.bf16.mxu1 %v10568_v12  ;;  %v10616_v4 = vld [vmem:[#allocation10 + $0x7e4] ss:$16 sps:$4 sm:$0xff]   ;;  %v10530_v45 = vld [vmem:[#allocation10 + $0x5e0] ss:$16 sps:$4 sm:$0xff]  }
 0x3d8   :  { %8565 = vmatprep.subr.bf16.mxu0 %v10508_v62  ;;  %v10535_v3 = vld [vmem:[#allocation10 + $0x5c4] ss:$16 sps:$4 sm:$0xff]   ;;  %v10533_v42 = vld [vmem:[#allocation10 + $0x5c0] ss:$16 sps:$4 sm:$0xff]  }
 0x3d9   :  { %8545 = vmatmul.mubr.bf16.vlgmr.msra.gmra.mxu1 %v11876_v26  ;;  %v10622_v32 = vld [vmem:[#allocation10 + $0x7c4] ss:$16 sps:$4 sm:$0xff]   ;;  %v10620_v8 = vld [vmem:[#allocation10 + $0x7c0] ss:$16 sps:$4 sm:$0xff]  }
 0x3da   :  { %8492 = vmatmul.mubr.bf16.vlgmr.msra.gmra.mxu0 %v11875_v7  ;;  %8554 = vmatprep.mubr.bf16.mxu1 %v11577_v60  ;;  %v10538_v62 = vld [vmem:[#allocation10 + $0x5a4] ss:$16 sps:$4 sm:$0xff]   ;;  %v10536_v44 = vld [vmem:[#allocation10 + $0x5a0] ss:$16 sps:$4 sm:$0xff]  }
 0x3db   :  { %8501 = vmatprep.mubr.bf16.mxu0 %v11573_v20  ;;  %8566 = vmatpush1.bf16.msra.mxu0 %v10506_v14  ;;  %v10628_v12 = vld [vmem:[#allocation10 + $0x7a4] ss:$16 sps:$4 sm:$0xff]   ;;  %v10626_v50 = vld [vmem:[#allocation10 + $0x7a0] ss:$16 sps:$4 sm:$0xff]  }
 0x3dc   :  { %8567 = vmatprep.subr.bf16.mxu0 %v10511_v29  ;;  %8619 = vmatpush1.bf16.msra.mxu1 %v10566_v43  ;;  %v10541_v41 = vld [vmem:[#allocation10 + $0x584] ss:$16 sps:$4 sm:$0xff]   ;;  %v10539_v14 = vld [vmem:[#allocation10 + $0x580] ss:$16 sps:$4 sm:$0xff]   ;;  %v11590_v43 = vpop.f32.mrf.mxu1 }
 0x3dd   :  { %8620 = vmatprep.subr.bf16.mxu1 %v10574_v34  ;;  %v10634_v59 = vld [vmem:[#allocation10 + $0x784] ss:$16 sps:$4 sm:$0xff]   ;;  %v10632_v2 = vld [vmem:[#allocation10 + $0x780] ss:$16 sps:$4 sm:$0xff]  }
 0x3de   :  { %v10544_v38 = vld [vmem:[#allocation10 + $0x564] ss:$16 sps:$4 sm:$0xff]   ;;  %v10542_v25 = vld [vmem:[#allocation10 + $0x560] ss:$16 sps:$4 sm:$0xff]  }
 0x3df   :  { %8568 = vmatpush1.bf16.msra.mxu0 %v10509_v31  ;;  %v10640_v29 = vld [vmem:[#allocation10 + $0x764] ss:$16 sps:$4 sm:$0xff]   ;;  %v10638_v15 = vld [vmem:[#allocation10 + $0x760] ss:$16 sps:$4 sm:$0xff]  }
 0x3e0   :  { %8569 = vmatprep.subr.bf16.mxu0 %v10514_v22  ;;  %8621 = vmatpush1.bf16.msra.mxu1 %v10572_v37  ;;  %v10547_v34 = vld [vmem:[#allocation10 + $0x544] ss:$16 sps:$4 sm:$0xff]   ;;  %v11592_v22 = vpop.f32.mrf.mxu1  ;;  %v10545_v37 = vld [vmem:[#allocation10 + $0x540] ss:$16 sps:$4 sm:$0xff]  }
 0x3e1   :  { %8622 = vmatprep.subr.bf16.mxu1 %v10580_v11  ;;  %8555 = vmatmul.mubr.bf16.gmra.mxu1 %v11878_v17  ;;  %v10646_v31 = vld [vmem:[#allocation10 + $0x744] ss:$16 sps:$4 sm:$0xff]   ;;  %v10644_v11 = vld [vmem:[#allocation10 + $0x740] ss:$16 sps:$4 sm:$0xff]  }
 0x3e2   :  { %8502 = vmatmul.mubr.bf16.gmra.mxu0 %v11877_v0  ;;  %v10550_v23 = vld [vmem:[#allocation10 + $0x524] ss:$16 sps:$4 sm:$0xff]   ;;  %v11594_v40 = vpop.f32.mrf.mxu1 }
 0x3e3   :  { %8597 = vmatprep.mubr.bf16.mxu0 %v11583_v10  ;;  %8570 = vmatpush1.bf16.msra.mxu0 %v10512_v24  ;;  %v10652_v24 = vld [vmem:[#allocation10 + $0x724] ss:$16 sps:$4 sm:$0xff]  }
 0x3e4   :  { %8571 = vmatprep.subr.bf16.mxu0 %v10517_v6  ;;  %8623 = vmatpush1.bf16.msra.mxu1 %v10578_v63  ;;  %v10548_v6 = vld [vmem:[#allocation10 + $0x520] ss:$16 sps:$4 sm:$0xff]   ;;  %v11596_v63 = vpop.f32.mrf.mxu1 }
 0x3e5   :  { %8624 = vmatprep.subr.bf16.mxu1 %v10586_v61  ;;  %v10553_v61 = vld [vmem:[#allocation10 + $0x504] ss:$16 sps:$4 sm:$0xff]  }
 0x3e7   :  { %8572 = vmatpush1.bf16.msra.mxu0 %v10515_v49  ;;  %v10650_v49 = vld [vmem:[#allocation10 + $0x720] ss:$16 sps:$4 sm:$0xff]  }
 0x3e8   :  { %8573 = vmatprep.subr.bf16.mxu0 %v10520_v52  ;;  %8625 = vmatpush1.bf16.msra.mxu1 %v10584_v53  ;;  %v10658_v52 = vld [vmem:[#allocation10 + $0x704] ss:$16 sps:$4 sm:$0xff]   ;;  %v10551_v53 = vld [vmem:[#allocation10 + $0x500] ss:$16 sps:$4 sm:$0xff]  }
 0x3e9   :  { %8626 = vmatprep.subr.bf16.mxu1 %v10592_v19  ;;  %v11598_v19 = vpop.f32.mrf.mxu1 }
 0x3eb   :  { %8574 = vmatpush1.bf16.msra.mxu0 %v10518_v21  ;;  %v10556_v21 = vld [vmem:[#allocation10 + $0xec] ss:$16 sps:$4 sm:$0xff]  }
 0x3ec   :  { %8575 = vmatprep.subr.bf16.mxu0 %v10523_v16  ;;  %8627 = vmatpush1.bf16.msra.mxu1 %v10590_v33  ;;  %v10656_v16 = vld [vmem:[#allocation10 + $0x700] ss:$16 sps:$4 sm:$0xff]   ;;  %v10664_v33 = vld [vmem:[#allocation10 + $0x2ec] ss:$16 sps:$4 sm:$0xff]  }
 0x3ed   :  { %8628 = vmatprep.subr.bf16.mxu1 %v10598_v48  ;;  %v10554_v48 = vld [vmem:[#allocation10 + $0xe8] ss:$16 sps:$4 sm:$0xff]  }
 0x3ef   :  { %8576 = vmatpush1.bf16.msra.mxu0 %v10521_v5  ;;  %v11600_v5 = vpop.f32.mrf.mxu1 }
 0x3f0   :  { %8577 = vmatprep.subr.bf16.mxu0 %v10526_v55  ;;  %8629 = vmatpush1.bf16.msra.mxu1 %v10596_v46  ;;  %v10559_v55 = vld [vmem:[#allocation10 + $0xcc] ss:$16 sps:$4 sm:$0xff]   ;;  %v10557_v46 = vld [vmem:[#allocation10 + $0xc8] ss:$16 sps:$4 sm:$0xff]  }
 0x3f1   :  { %8630 = vmatprep.subr.bf16.mxu1 %v10604_v36  ;;  %v11604_v36 = vpop.f32.mrf.mxu1 }
 0x3f3   :  { %8578 = vmatpush1.bf16.msra.mxu0 %v10524_v13  ;;  %v10562_v13 = vld [vmem:[#allocation10 + $0xac] ss:$16 sps:$4 sm:$0xff]  }
 0x3f4   :  { %8579 = vmatprep.subr.bf16.mxu0 %v10529_v35  ;;  %8631 = vmatpush1.bf16.msra.mxu1 %v10602_v9  ;;  %v11608_v9 = vpop.f32.mrf.mxu0 }
 0x3f5   :  { %8632 = vmatprep.subr.bf16.mxu1 %v10610_v28  ;;  %v10560_v28 = vld [vmem:[#allocation10 + $0xa8] ss:$16 sps:$4 sm:$0xff]  }
 0x3f7   :  { %8580 = vmatpush1.bf16.msra.mxu0 %v10527_v47  ;;  %v10565_v47 = vld [vmem:[#allocation10 + $0x8c] ss:$16 sps:$4 sm:$0xff]  }
 0x3f8   :  { %8581 = vmatprep.subr.bf16.mxu0 %v10532_v27  ;;  %8633 = vmatpush1.bf16.msra.mxu1 %v10608_v57  ;;  %v11613_v57 = vpop.f32.mrf.mxu0 }
 0x3f9   :  { %8634 = vmatprep.subr.bf16.mxu1 %v10616_v4  ;;  %v11606_v35 = vpop.f32.mrf.mxu1  ;;  %v10563_v4 = vld [vmem:[#allocation10 + $0x88] ss:$16 sps:$4 sm:$0xff]  }
 0x3fb   :  { %8582 = vmatpush2.bf16.msra.mxu0 %v10530_v45  ;;  %v11610_v27 = vpop.f32.mrf.mxu1  ;;  %v10571_v45 = vld [vmem:[#allocation10 + $0x6c] ss:$16 sps:$4 sm:$0xff]  }
 0x3fc   :  { %8583 = vmatprep.subr.bf16.mxu0 %v10535_v3  ;;  %8635 = vmatpush2.bf16.msra.mxu1 %v10614_v39  ;;  %v11618_v39 = vpop.f32.mrf.mxu0 }
 0x3fd   :  { %8636 = vmatprep.subr.bf16.mxu1 %v10622_v32  ;;  %v11616_v3 = vpop.f32.mrf.mxu1  ;;  %v10569_v32 = vld [vmem:[#allocation10 + $0x68] ss:$16 sps:$4 sm:$0xff]  }
 0x3ff   :  { %8584 = vmatpush2.bf16.msra.mxu0 %v10533_v42  ;;  %v10577_v42 = vld [vmem:[#allocation10 + $0x4c] ss:$16 sps:$4 sm:$0xff]  }
 0x400   :  { %8585 = vmatprep.subr.bf16.mxu0 %v10538_v62  ;;  %8637 = vmatpush2.bf16.msra.mxu1 %v10620_v8  ;;  %v11620_v62 = vpop.f32.mrf.mxu1  ;;  %v11622_v8 = vpop.f32.mrf.mxu0 }
 0x401   :  { %8638 = vmatprep.subr.bf16.mxu1 %v10628_v12  ;;  %v10575_v12 = vld [vmem:[#allocation10 + $0x48] ss:$16 sps:$4 sm:$0xff]  }
 0x403   :  { %8586 = vmatpush2.bf16.msra.mxu0 %v10536_v44  ;;  %v10583_v44 = vld [vmem:[#allocation10 + $0x2c] ss:$16 sps:$4 sm:$0xff]  }
 0x404   :  { %8587 = vmatprep.subr.bf16.mxu0 %v10541_v41  ;;  %8639 = vmatpush2.bf16.msra.mxu1 %v10626_v50  ;;  %v11626_v41 = vpop.f32.mrf.mxu1  ;;  %v10581_v50 = vld [vmem:[#allocation10 + $0x28] ss:$16 sps:$4 sm:$0xff]  }
 0x405   :  { %8640 = vmatprep.subr.bf16.mxu1 %v10634_v59  ;;  %v10589_v59 = vld [vmem:[#allocation10 + $0xc] ss:$16 sps:$4 sm:$0xff]  }
 0x407   :  { %8588 = vmatpush2.bf16.msra.mxu0 %v10539_v14 }
 0x408   :  { %8589 = vmatprep.subr.bf16.mxu0 %v10544_v38  ;;  %8641 = vmatpush2.bf16.msra.mxu1 %v10632_v2  ;;  %v11630_v38 = vpop.f32.mrf.mxu1  ;;  %v10587_v2 = vld [vmem:[#allocation10 + $0x8] ss:$16 sps:$4 sm:$0xff]  }
 0x409   :  { %8642 = vmatprep.subr.bf16.mxu1 %v10640_v29  ;;  %v10595_v29 = vld [vmem:[#allocation10 + $0x1ec] ss:$16 sps:$4 sm:$0xff]  }
 0x40b   :  { %8590 = vmatpush2.bf16.msra.mxu0 %v10542_v25 }
 0x40c   :  { %8591 = vmatprep.subr.bf16.mxu0 %v10547_v34  ;;  %8643 = vmatpush2.bf16.msra.mxu1 %v10638_v15  ;;  %v11634_v34 = vpop.f32.mrf.mxu1  ;;  %v10593_v15 = vld [vmem:[#allocation10 + $0x1e8] ss:$16 sps:$4 sm:$0xff]  }
 0x40d   :  { %8644 = vmatprep.subr.bf16.mxu1 %v10646_v31  ;;  %v10601_v31 = vld [vmem:[#allocation10 + $0x1cc] ss:$16 sps:$4 sm:$0xff]  }
 0x40f   :  { %8592 = vmatpush2.bf16.msra.mxu0 %v10545_v37 }
 0x410   :  { %8593 = vmatprep.subr.bf16.mxu0 %v10550_v23  ;;  %8645 = vmatpush2.bf16.msra.mxu1 %v10644_v11  ;;  %v11638_v23 = vpop.f32.mrf.mxu1 }
 0x411   :  { %8646 = vmatprep.subr.bf16.mxu1 %v10652_v24  ;;  %v10599_v24 = vld [vmem:[#allocation10 + $0x1c8] ss:$16 sps:$4 sm:$0xff]  }
 0x413   :  { %8594 = vmatpush2.bf16.msra.mxu0 %v10548_v6 }
 0x414   :  { %8595 = vmatprep.subr.bf16.mxu0 %v10553_v61  ;;  %8647 = vmatpush2.bf16.msra.mxu1 %v10650_v49  ;;  %v10607_v61 = vld [vmem:[#allocation10 + $0x1ac] ss:$16 sps:$4 sm:$0xff]  }
 0x415   :  { %8648 = vmatprep.subr.bf16.mxu1 %v10658_v52  ;;  %v10605_v52 = vld [vmem:[#allocation10 + $0x1a8] ss:$16 sps:$4 sm:$0xff]  }
 0x417   :  { %8596 = vmatpush2.bf16.msra.mxu0 %v10551_v53 }
 0x418   :  { %8671 = vmatprep.subr.bf16.mxu0 %v10556_v21  ;;  %8649 = vmatpush2.bf16.msra.mxu1 %v10656_v16  ;;  %v10613_v21 = vld [vmem:[#allocation10 + $0x18c] ss:$16 sps:$4 sm:$0xff]  }
 0x419   :  { %8724 = vmatprep.subr.bf16.mxu1 %v10664_v33  ;;  %v10611_v33 = vld [vmem:[#allocation10 + $0x188] ss:$16 sps:$4 sm:$0xff]  }
 0x41a   :  { %8598 = vmatmul.mubr.bf16.vlgmr.msra.gmra.mxu0 %v11512_v58 }
 0x41b   :  { %8607 = vmatprep.mubr.bf16.mxu0 %v11523_v30  ;;  %8672 = vmatpush1.bf16.msra.mxu0 %v10554_v48 }
 0x41c   :  { %8673 = vmatprep.subr.bf16.mxu0 %v10559_v55  ;;  %v10619_v55 = vld [vmem:[#allocation10 + $0x16c] ss:$16 sps:$4 sm:$0xff]  }
 0x41f   :  { %8674 = vmatpush1.bf16.msra.mxu0 %v10557_v46 }
 0x420   :  { %8675 = vmatprep.subr.bf16.mxu0 %v10562_v13  ;;  %v10617_v13 = vld [vmem:[#allocation10 + $0x168] ss:$16 sps:$4 sm:$0xff]  }
 0x422   :  { %8608 = vmatmul.mubr.bf16.gmra.mxu0 %v11521_v51 }
 0x423   :  { %8676 = vmatpush1.bf16.msra.mxu0 %v10560_v28  ;;  %8703 = vmatprep.mubr.bf16.mxu0 %v11507_v56  ;;  %v11624_v56 = vpop.f32.mrf.mxu0 }
 0x424   :  { %8677 = vmatprep.subr.bf16.mxu0 %v10565_v47  ;;  %v10625_v47 = vld [vmem:[#allocation10 + $0x14c] ss:$16 sps:$4 sm:$0xff]  }
 0x425   :  { %v11628_v14 = vpop.f32.mrf.mxu0 }
 0x427   :  { %8678 = vmatpush1.bf16.msra.mxu0 %v10563_v4  ;;  %v11632_v25 = vpop.f32.mrf.mxu0  ;;  %v11879_v4 = vld [vmem:[#allocation21_spill] sm:$0xff] }
 0x428   :  { %8679 = vmatprep.subr.bf16.mxu0 %v10571_v45  ;;  %v997_v45 = vsub.s32 6, %v11879_v4 }
 0x429   :  { %v11636_v37 = vpop.f32.mrf.mxu0 }
 0x42b   :  { %8680 = vmatpush1.bf16.msra.mxu0 %v10569_v32  ;;  %v6609_v11 = vpop.f32.mrf.mxu0  ;;  %v1001_v32 = vsub.s32 7, %v11879_v4 }
 0x42c   :  { %8681 = vmatprep.subr.bf16.mxu0 %v10577_v42 }
 0x42d   :  { %v6611_v49 = vpop.f32.mrf.mxu0 }
 0x42f   :  { %8682 = vmatpush1.bf16.msra.mxu0 %v10575_v12  ;;  %v6613_v16 = vpop.f32.mrf.mxu0  ;;  %v10623_v12 = vld [vmem:[#allocation10 + $0x148] ss:$16 sps:$4 sm:$0xff]  }
 0x430   :  { %8683 = vmatprep.subr.bf16.mxu0 %v10583_v44 }
 0x431   :  { %v11646_v46 = vpop.f32.mrf.mxu0 }
 0x433   :  { %8684 = vmatpush1.bf16.msra.mxu0 %v10581_v50  ;;  %v11652_v42 = vpop.f32.mrf.mxu0  ;;  %v10631_v50 = vld [vmem:[#allocation10 + $0x12c] ss:$16 sps:$4 sm:$0xff]  }
 0x434   :  { %8685 = vmatprep.subr.bf16.mxu0 %v10589_v59  ;;  %v10891_v59 = vld [vmem:[#allocation9] sm:$0xff] }
 0x437   :  { %8686 = vmatpush1.bf16.msra.mxu0 %v10587_v2  ;;  %v998_v2 = vrot.slane %v10891_v59, %v997_v45 }
 0x438   :  { %8687 = vmatprep.subr.bf16.mxu0 %v10595_v29  ;;  %v1002_v29 = vrot.slane %v10891_v59, %v1001_v32 }
 0x439   :  { %v11640_v6 = vpop.f32.mrf.mxu1 }
 0x43a   :  { %v6457_v59 = vadd.f32 %v11594_v40, %v1002_v29  ;;  %v6467_v40 = vadd.f32 %v11604_v36, %v1002_v29 }
 0x43b   :  { %8688 = vmatpush2.bf16.msra.mxu0 %v10593_v15  ;;  %v11642_v53 = vpop.f32.mrf.mxu1  ;;  %v11656_v15 = vpop.f32.mrf.mxu0 }
 0x43c   :  { %8689 = vmatprep.subr.bf16.mxu0 %v10601_v31  ;;  %v10629_v31 = vld [vmem:[#allocation10 + $0x128] ss:$16 sps:$4 sm:$0xff]  }
 0x43d   :  { %v11644_v48 = vpop.f32.mrf.mxu1 }
 0x43f   :  { %8690 = vmatpush2.bf16.msra.mxu0 %v10599_v24  ;;  %v11648_v28 = vpop.f32.mrf.mxu1 }
 0x440   :  { %8691 = vmatprep.subr.bf16.mxu0 %v10607_v61  ;;  %v10637_v61 = vld [vmem:[#allocation10 + $0x10c] ss:$16 sps:$4 sm:$0xff]  }
 0x441   :  { %v11654_v44 = vpop.f32.mrf.mxu1 }
 0x443   :  { %8692 = vmatpush2.bf16.msra.mxu0 %v10605_v52  ;;  %v11658_v24 = vpop.f32.mrf.mxu1  ;;  %v6451_v52 = vadd.f32 %v11588_v1, %v998_v2 }
 0x444   :  { %8693 = vmatprep.subr.bf16.mxu0 %v10613_v21  ;;  %v6453_v21 = vadd.f32 %v11590_v43, %v1002_v29 }
 0x445   :  { %v11667_v32 = vpop.f32.mrf.mxu1 }
 0x446   :  { %v6506_v45 = vadd.f32 %v11613_v57, %v6453_v21 }
 0x447   :  { %8694 = vmatpush2.bf16.msra.mxu0 %v10611_v33  ;;  %v11662_v33 = vpop.f32.mrf.mxu0  ;;  %v11676_v21 = vpop.f32.mrf.mxu1 }
 0x448   :  { %8695 = vmatprep.subr.bf16.mxu0 %v10619_v55  ;;  %v10635_v55 = vld [vmem:[#allocation10 + $0x108] ss:$16 sps:$4 sm:$0xff]   ;;  %v6559_v43 = vadd.f32 %v11610_v27, %v6506_v45  ;;  %v6465_v27 = vadd.f32 %v11600_v5, %v998_v2 }
 0x449   :  { %v6625_v4 = vpop.f32.mrf.mxu0  ;;  %v10647_v5 = vld [vmem:[#allocation10 + $0x4c8] ss:$16 sps:$4 sm:$0xff]  }
 0x44b   :  { %8696 = vmatpush2.bf16.msra.mxu0 %v10617_v13  ;;  %v6455_v13 = vadd.f32 %v11592_v22, %v998_v2  ;;  %v10641_v22 = vld [vmem:[#allocation10 + $0x4e8] ss:$16 sps:$4 sm:$0xff]  }
 0x44c   :  { %8697 = vmatprep.subr.bf16.mxu0 %v10625_v47  ;;  %v6504_v47 = vadd.f32 %v11608_v9, %v6451_v52  ;;  %v6463_v9 = vadd.f32 %v11598_v19, %v1002_v29 }
 0x44e   :  { %v6557_v1 = vadd.f32 %v11606_v35, %v6504_v47  ;;  %v6510_v35 = vadd.f32 %v11622_v8, %v6457_v59  ;;  %v6516_v36 = vadd.f32 %v11628_v14, %v6463_v9 }
 0x44f   :  { %8698 = vmatpush2.bf16.msra.mxu0 %v10623_v12  ;;  %v10643_v12 = vld [vmem:[#allocation10 + $0x4ec] ss:$16 sps:$4 sm:$0xff]  }
 0x450   :  { %8699 = vmatprep.subr.bf16.mxu0 %v10631_v50  ;;  %v6508_v50 = vadd.f32 %v11618_v39, %v6455_v13  ;;  %v6610_v52 = vadd.f32 %v6609_v11, %v6557_v1  ;;  %v10649_v39 = vld [vmem:[#allocation10 + $0x4cc] ss:$16 sps:$4 sm:$0xff]   ;;  %v6563_v11 = vadd.f32 %v11620_v62, %v6510_v35  ;;  %v6569_v45 = vadd.f32 %v11630_v38, %v6516_v36 }
 0x451   :  { %v10661_v38 = vld [vmem:[#allocation10 + $0x48c] ss:$16 sps:$4 sm:$0xff]  }
 0x452   :  { %v6561_v57 = vadd.f32 %v11616_v3, %v6508_v50 }
 0x453   :  { %8700 = vmatpush2.bf16.msra.mxu0 %v10629_v31  ;;  %v6461_v31 = vadd.f32 %v11596_v63, %v998_v2 }
 0x454   :  { %8701 = vmatprep.subr.bf16.mxu0 %v10637_v61  ;;  %v6612_v61 = vadd.f32 %v6611_v49, %v6559_v43  ;;  %v6614_v13 = vadd.f32 %v6613_v16, %v6561_v57 }
 0x455   :  { %v6514_v3 = vadd.f32 %v11624_v56, %v6461_v31  ;;  %v6520_v56 = vadd.f32 %v11636_v37, %v6467_v40  ;;  %v10653_v37 = vld [vmem:[#allocation10 + $0x4a8] ss:$16 sps:$4 sm:$0xff]  }
 0x456   :  { %v6665_v19 = vadd.f32 %v11642_v53, %v6612_v61  ;;  %v6667_v49 = vadd.f32 %v11644_v48, %v6614_v13  ;;  %v10655_v53 = vld [vmem:[#allocation10 + $0x4ac] ss:$16 sps:$4 sm:$0xff]  }
 0x457   :  { %8702 = vmatpush2.bf16.msra.mxu0 %v10635_v55  ;;  %v6663_v55 = vadd.f32 %v11640_v6, %v6610_v52  ;;  %v6567_v62 = vadd.f32 %v11626_v41, %v6514_v3  ;;  %v6573_v50 = vadd.f32 %v11638_v23, %v6520_v56  ;;  %v6622_v41 = vadd.f32 %v11656_v15, %v6569_v45 }
 0x458   :  { %8777 = vmatprep.subr.bf16.mxu0 %v10643_v12 }
 0x459   :  { %v6768_v47 = vpop.f32.mrf.mxu1  ;;  %v6620_v1 = vadd.f32 %v11652_v42, %v6567_v62  ;;  %v6626_v23 = vadd.f32 %v6625_v4, %v6573_v50 }
 0x45a   :  { %v6715_v63 = vpop.f32.mrf.mxu0  ;;  %8704 = vmatmul.mubr.bf16.vlgmr.msra.gmra.mxu0 %v11875_v7  ;;  %v6518_v7 = vadd.f32 %v11632_v25, %v6465_v27 }
 0x45b   :  { %8713 = vmatprep.mubr.bf16.mxu0 %v11573_v20  ;;  %8778 = vmatpush1.bf16.msra.mxu0 %v10641_v22  ;;  %v6716_v16 = vadd.f32 %v6715_v63, %v6663_v55  ;;  %v6770_v2 = vpop.f32.mrf.mxu1  ;;  %v6616_v20 = vadd.f32 %v11646_v46, %v6563_v11  ;;  %v6673_v42 = vadd.f32 %v11654_v44, %v6620_v1  ;;  %v10668_v1 = vld [vmem:[#allocation10 + $0x2c8] ss:$16 sps:$4 sm:$0xff]  }
 0x45c   :  { %v6717_v8 = vpop.f32.mrf.mxu0  ;;  %8779 = vmatprep.subr.bf16.mxu0 %v10649_v39  ;;  %v6571_v48 = vadd.f32 %v11634_v34, %v6518_v7  ;;  %v6679_v13 = vadd.f32 %v11676_v21, %v6626_v23  ;;  %v10662_v21 = vld [vmem:[#allocation10 + $0x2e8] ss:$16 sps:$4 sm:$0xff]  }
 0x45d   :  { %v6718_v6 = vadd.f32 %v6717_v8, %v6665_v19  ;;  %v6772_v14 = vpop.f32.mrf.mxu1  ;;  %v6669_v43 = vadd.f32 %v11648_v28, %v6616_v20  ;;  %v6769_v59 = vadd.f32 %v6768_v47, %v6716_v16  ;;  %v6675_v28 = vadd.f32 %v11658_v24, %v6622_v41  ;;  %v10665_v8 = vld [vmem:[#allocation10 + $0x468] ss:$16 sps:$4 sm:$0xff]   ;;  %v10673_v16 = vld [vmem:[#allocation10 + $0x44c] ss:$16 sps:$4 sm:$0xff]  }
 0x45e   :  { %v6719_v29 = vpop.f32.mrf.mxu0  ;;  %v6624_v9 = vadd.f32 %v11662_v33, %v6571_v48  ;;  %v10659_v33 = vld [vmem:[#allocation10 + $0x488] ss:$16 sps:$4 sm:$0xff]   ;;  %v10679_v48 = vld [vmem:[#allocation10 + $0x42c] ss:$16 sps:$4 sm:$0xff]  }
 0x45f   :  { %v6720_v12 = vadd.f32 %v6719_v29, %v6667_v49  ;;  %8780 = vmatpush1.bf16.msra.mxu0 %v10647_v5  ;;  %v6771_v46 = vadd.f32 %v6770_v2, %v6718_v6  ;;  %v6774_v22 = vpop.f32.mrf.mxu1  ;;  %v6827_v27 = vmul.f32 %v11219_v18, %v6769_v59  ;;  %vm6794_vm11 = vcmp.ge.f32.partialorder %v6769_v59, 0.0  ;;  %v10670_v29 = vld [vmem:[#allocation10 + $0x2cc] ss:$16 sps:$4 sm:$0xff]   ;;  %v10680_v23 = vld [vmem:[#allocation10 + $0x288] ss:$16 sps:$4 sm:$0xff]  }
 0x460   :  { %v6721_v25 = vpop.f32.mrf.mxu0  ;;  %8781 = vmatprep.subr.bf16.mxu0 %v10655_v53  ;;  %v6677_v15 = vadd.f32 %v11667_v32, %v6624_v9  ;;  %v10682_v9 = vld [vmem:[#allocation10 + $0x28c] ss:$16 sps:$4 sm:$0xff]  }
 0x461   :  { %v6773_v31 = vadd.f32 %v6772_v14, %v6720_v12  ;;  %v6722_v34 = vadd.f32 %v6721_v25, %v6669_v43  ;;  %v6778_v52 = vpop.f32.mrf.mxu1  ;;  %v6828_v4 = vmul.f32 %v11219_v18, %v6771_v46  ;;  %vm6795_vm9 = vcmp.ge.f32.partialorder %v6771_v46, 0.0  ;;  %v10671_v12 = vld [vmem:[#allocation10 + $0x448] ss:$16 sps:$4 sm:$0xff]  }
 0x462   :  { %v6725_v57 = vpop.f32.mrf.mxu0  ;;  %8714 = vmatmul.mubr.bf16.gmra.mxu0 %v11877_v0  ;;  %v10667_v0 = vld [vmem:[#allocation10 + $0x46c] ss:$16 sps:$4 sm:$0xff]   ;;  %v6859_v6 = vsel %vm6794_vm11, %v6769_v59, %v6827_v27 }
 0x463   :  { %v6835_v61 = vmul.f32 %v11219_v18, %v6773_v31  ;;  %v6775_v39 = vadd.f32 %v6774_v22, %v6722_v34  ;;  %8782 = vmatpush1.bf16.msra.mxu0 %v10653_v37  ;;  %8809 = vmatprep.mubr.bf16.mxu0 %v11583_v10  ;;  %vm6802_vm8 = vcmp.ge.f32.partialorder %v6773_v31, 0.0  ;;  %v6780_v24 = vpop.f32.mrf.mxu1  ;;  %v6726_v40 = vadd.f32 %v6725_v57, %v6673_v42  ;;  %v10676_v37 = vld [vmem:[#allocation10 + $0x2ac] ss:$16 sps:$4 sm:$0xff]   ;;  %v10683_v34 = vld [vmem:[#allocation10 + $0x408] ss:$16 sps:$4 sm:$0xff]  }
 0x464   :  { %v6727_v35 = vpop.f32.mrf.mxu0  ;;  %8783 = vmatprep.subr.bf16.mxu0 %v10661_v38  ;;  %v6860_v49 = vsel %vm6795_vm9, %v6771_v46, %v6828_v4  ;;  %v10677_v46 = vld [vmem:[#allocation10 + $0x428] ss:$16 sps:$4 sm:$0xff]   ;;  %v10691_v57 = vld [vmem:[#allocation10 + $0x5ec] ss:$16 sps:$4 sm:$0xff]  }
 0x465   :  { %v6728_v44 = vadd.f32 %v6727_v35, %v6675_v28  ;;  %vm6803_vm10 = vcmp.ge.f32.partialorder %v6775_v39, 0.0  ;;  %v6836_v32 = vmul.f32 %v11219_v18, %v6775_v39  ;;  %v6782_v19 = vpop.f32.mrf.mxu1  ;;  %v6867_v47 = vsel %vm6802_vm8, %v6773_v31, %v6835_v61  ;;  %v10685_v31 = vld [vmem:[#allocation10 + $0x40c] ss:$16 sps:$4 sm:$0xff]   ;;  %v10689_v28 = vld [vmem:[#allocation10 + $0x5e8] ss:$16 sps:$4 sm:$0xff]  }
 0x466   :  { %v6729_v63 = vpop.f32.mrf.mxu0  ;;  %v6779_v2 = vadd.f32 %v6778_v52, %v6726_v40  ;;  %v11713_v56 = vpack.c.bf16 %v6867_v47, %v6859_v6  ;;  %v10688_v42 = vld [vmem:[#allocation10 + $0x26c] ss:$16 sps:$4 sm:$0xff]   ;;  %v10704_v40 = vld [vmem:[#allocation10 + $0x208] ss:$16 sps:$4 sm:$0xff]  }
 0x467   :  { %v6730_v10 = vadd.f32 %v6729_v63, %v6677_v15  ;;  %v6781_v55 = vadd.f32 %v6780_v24, %v6728_v44  ;;  %8784 = vmatpush1.bf16.msra.mxu0 %v10659_v33  ;;  %v6868_v11 = vsel %vm6803_vm10, %v6775_v39, %v6836_v32  ;;  %v6784_v36 = vpop.f32.mrf.mxu1  ;;  %v10697_v52 = vld [vmem:[#allocation10 + $0x5cc] ss:$16 sps:$4 sm:$0xff]   ;;  %v10686_v15 = vld [vmem:[#allocation10 + $0x268] ss:$16 sps:$4 sm:$0xff]  }
 0x468   :  { %v6731_v3 = vpop.f32.mrf.mxu0  ;;  %8785 = vmatprep.subr.bf16.mxu0 %v10667_v0  ;;  %v11711_v7 = vpack.c.bf16 %v6868_v11, %v6860_v49  ;;  %v6843_v50 = vmul.f32 %v11219_v18, %v6779_v2  ;;  %vm6810_vm15 = vcmp.ge.f32.partialorder %v6779_v2, 0.0  ;;  %v10694_v61 = vld [vmem:[#allocation10 + $0x24c] ss:$16 sps:$4 sm:$0xff]   ;;  %v10695_v39 = vld [vmem:[#allocation10 + $0x5c8] ss:$16 sps:$4 sm:$0xff]  }
 0x469   :  { %v6732_v5 = vadd.f32 %v6731_v3, %v6679_v13  ;;  %v6783_v53 = vadd.f32 %v6782_v19, %v6730_v10  ;;  %v6844_v62 = vmul.f32 %v11219_v18, %v6781_v55  ;;  %vm6811_vm12 = vcmp.ge.f32.partialorder %v6781_v55, 0.0  ;;  %v10703_v35 = vld [vmem:[#allocation10 + $0x5ac] ss:$16 sps:$4 sm:$0xff]   ;;  %v10692_v33 = vld [vmem:[#allocation10 + $0x248] ss:$16 sps:$4 sm:$0xff]  }
 0x46a   :  { %8650 = vmatprep.mubr.bf16.mxu1 %v11711_v7  ;;  %v6875_v22 = vsel %vm6810_vm15, %v6779_v2, %v6843_v50  ;;  %v10700_v27 = vld [vmem:[#allocation10 + $0x22c] ss:$16 sps:$4 sm:$0xff]   ;;  %v10698_v44 = vld [vmem:[#allocation10 + $0x228] ss:$16 sps:$4 sm:$0xff]  }
 0x46b   :  { %v6785_v20 = vadd.f32 %v6784_v36, %v6732_v5  ;;  %v6851_v45 = vmul.f32 %v11219_v18, %v6783_v53  ;;  %8786 = vmatpush1.bf16.msra.mxu0 %v10665_v8  ;;  %vm6818_vm13 = vcmp.ge.f32.partialorder %v6783_v53, 0.0  ;;  %8651 = vmatmul.mubr.bf16.vlgmr.msra.gmra.mxu1 %v11713_v56  ;;  %v6876_v43 = vsel %vm6811_vm12, %v6781_v55, %v6844_v62  ;;  %v10709_v4 = vld [vmem:[#allocation10 + $0x58c] ss:$16 sps:$4 sm:$0xff]   ;;  %v10707_v0 = vld [vmem:[#allocation10 + $0x588] ss:$16 sps:$4 sm:$0xff]  }
 0x46c   :  { %8787 = vmatprep.subr.bf16.mxu0 %v10673_v16  ;;  %8725 = vmatpush1.bf16.msra.mxu1 %v10662_v21  ;;  %v10706_v24 = vld [vmem:[#allocation10 + $0x20c] ss:$16 sps:$4 sm:$0xff]   ;;  %v10713_v13 = vld [vmem:[#allocation10 + $0x568] ss:$16 sps:$4 sm:$0xff]  }
 0x46d   :  { %vm6819_vm14 = vcmp.ge.f32.partialorder %v6785_v20, 0.0  ;;  %v6852_v14 = vmul.f32 %v11219_v18, %v6785_v20  ;;  %8726 = vmatprep.subr.bf16.mxu1 %v10670_v29  ;;  %v6883_v41 = vsel %vm6818_vm13, %v6783_v53, %v6851_v45  ;;  %v10674_v18 = vld [vmem:[#allocation10 + $0x2a8] ss:$16 sps:$4 sm:$0xff]   ;;  %v10715_v32 = vld [vmem:[#allocation10 + $0x56c] ss:$16 sps:$4 sm:$0xff]  }
 0x46e   :  { %v11725_v38 = vpack.c.bf16 %v6883_v41, %v6875_v22  ;;  %v10712_v63 = vld [vmem:[#allocation10 + $0x3ec] ss:$16 sps:$4 sm:$0xff]   ;;  %v10710_v55 = vld [vmem:[#allocation10 + $0x3e8] ss:$16 sps:$4 sm:$0xff]  }
 0x46f   :  { %v6884_v25 = vsel %vm6819_vm14, %v6785_v20, %v6852_v14  ;;  %8788 = vmatpush1.bf16.msra.mxu0 %v10671_v12  ;;  %v10721_v10 = vld [vmem:[#allocation10 + $0x54c] ss:$16 sps:$4 sm:$0xff]   ;;  %v10719_v47 = vld [vmem:[#allocation10 + $0x548] ss:$16 sps:$4 sm:$0xff]  }
 0x470   :  { %v11722_v59 = vpack.c.bf16 %v6884_v25, %v6876_v43  ;;  %8789 = vmatprep.subr.bf16.mxu0 %v10679_v48  ;;  %8727 = vmatpush1.bf16.msra.mxu1 %v10668_v1  ;;  %v10718_v19 = vld [vmem:[#allocation10 + $0x3cc] ss:$16 sps:$4 sm:$0xff]   ;;  %v10716_v11 = vld [vmem:[#allocation10 + $0x3c8] ss:$16 sps:$4 sm:$0xff]  }
 0x471   :  { %8728 = vmatprep.subr.bf16.mxu1 %v10676_v37  ;;  %v10727_v3 = vld [vmem:[#allocation10 + $0x52c] ss:$16 sps:$4 sm:$0xff]   ;;  %v10725_v5 = vld [vmem:[#allocation10 + $0x528] ss:$16 sps:$4 sm:$0xff]  }
 0x472   :  { %8660 = vmatprep.mubr.bf16.mxu1 %v11722_v59  ;;  %v10724_v8 = vld [vmem:[#allocation10 + $0x3ac] ss:$16 sps:$4 sm:$0xff]   ;;  %v10722_v49 = vld [vmem:[#allocation10 + $0x3a8] ss:$16 sps:$4 sm:$0xff]  }
 0x473   :  { %8790 = vmatpush1.bf16.msra.mxu0 %v10677_v46  ;;  %8661 = vmatmul.mubr.bf16.gmra.mxu1 %v11725_v38  ;;  %v10733_v36 = vld [vmem:[#allocation10 + $0x50c] ss:$16 sps:$4 sm:$0xff]   ;;  %v10731_v6 = vld [vmem:[#allocation10 + $0x508] ss:$16 sps:$4 sm:$0xff]  }
 0x474   :  { %8791 = vmatprep.subr.bf16.mxu0 %v10685_v31  ;;  %8729 = vmatpush1.bf16.msra.mxu1 %v10674_v18  ;;  %v10730_v16 = vld [vmem:[#allocation10 + $0x38c] ss:$16 sps:$4 sm:$0xff]   ;;  %v10728_v2 = vld [vmem:[#allocation10 + $0x388] ss:$16 sps:$4 sm:$0xff]  }
 0x475   :  { %8756 = vmatprep.mubr.bf16.mxu1 %v11509_v54  ;;  %8730 = vmatprep.subr.bf16.mxu1 %v10682_v9  ;;  %v10701_v54 = vld [vmem:[#allocation10 + $0x5a8] ss:$16 sps:$4 sm:$0xff]   ;;  %v10736_v53 = vld [vmem:[#allocation10 + $0x36c] ss:$16 sps:$4 sm:$0xff]  }
 0x476   :  { %v10734_v21 = vld [vmem:[#allocation10 + $0x368] ss:$16 sps:$4 sm:$0xff]   ;;  %v10739_v62 = vld [vmem:[#allocation10 + $0x34c] ss:$16 sps:$4 sm:$0xff]  }
 0x477   :  { %8792 = vmatpush1.bf16.msra.mxu0 %v10683_v34  ;;  %v10737_v20 = vld [vmem:[#allocation10 + $0x348] ss:$16 sps:$4 sm:$0xff]   ;;  %v10742_v29 = vld [vmem:[#allocation10 + $0x32c] ss:$16 sps:$4 sm:$0xff]  }
 0x478   :  { %8793 = vmatprep.subr.bf16.mxu0 %v10691_v57  ;;  %8731 = vmatpush1.bf16.msra.mxu1 %v10680_v23  ;;  %v10740_v45 = vld [vmem:[#allocation10 + $0x328] ss:$16 sps:$4 sm:$0xff]   ;;  %v10745_v12 = vld [vmem:[#allocation10 + $0x30c] ss:$16 sps:$4 sm:$0xff]  }
 0x479   :  { %8732 = vmatprep.subr.bf16.mxu1 %v10688_v42  ;;  %v10743_v14 = vld [vmem:[#allocation10 + $0x308] ss:$16 sps:$4 sm:$0xff]   ;;  %v10748_v48 = vld [vmem:[#allocation10 + $0x6ec] ss:$16 sps:$4 sm:$0xff]  }
 0x47a   :  { %v10746_v50 = vld [vmem:[#allocation10 + $0x6e8] ss:$16 sps:$4 sm:$0xff]   ;;  %v10754_v1 = vld [vmem:[#allocation10 + $0x6ac] ss:$16 sps:$4 sm:$0xff]  }
 0x47b   :  { %8794 = vmatpush2.bf16.msra.mxu0 %v10689_v28  ;;  %v10752_v43 = vld [vmem:[#allocation10 + $0x6a8] ss:$16 sps:$4 sm:$0xff]   ;;  %v10760_v37 = vld [vmem:[#allocation10 + $0x66c] ss:$16 sps:$4 sm:$0xff]  }
 0x47c   :  { %8795 = vmatprep.subr.bf16.mxu0 %v10697_v52  ;;  %8733 = vmatpush1.bf16.msra.mxu1 %v10686_v15  ;;  %v10755_v25 = vld [vmem:[#allocation10 + $0x688] ss:$16 sps:$4 sm:$0xff]   ;;  %v10766_v46 = vld [vmem:[#allocation10 + $0x62c] ss:$16 sps:$4 sm:$0xff]  }
 0x47d   :  { %8734 = vmatprep.subr.bf16.mxu1 %v10694_v61  ;;  %v10761_v41 = vld [vmem:[#allocation10 + $0x648] ss:$16 sps:$4 sm:$0xff]   ;;  %v10769_v22 = vld [vmem:[#allocation10 + $0x60c] ss:$16 sps:$4 sm:$0xff]  }
 0x47e   :  { %v10764_v31 = vld [vmem:[#allocation10 + $0x628] ss:$16 sps:$4 sm:$0xff]   ;;  %v10772_v18 = vld [vmem:[#allocation10 + $0x7ec] ss:$16 sps:$4 sm:$0xff]  }
 0x47f   :  { %8796 = vmatpush2.bf16.msra.mxu0 %v10695_v39  ;;  %v10775_v9 = vld [vmem:[#allocation10 + $0x7cc] ss:$16 sps:$4 sm:$0xff]   ;;  %v10773_v34 = vld [vmem:[#allocation10 + $0x7c8] ss:$16 sps:$4 sm:$0xff]  }
 0x480   :  { %8797 = vmatprep.subr.bf16.mxu0 %v10703_v35  ;;  %8735 = vmatpush1.bf16.msra.mxu1 %v10692_v33  ;;  %v10778_v57 = vld [vmem:[#allocation10 + $0x7ac] ss:$16 sps:$4 sm:$0xff]   ;;  %v10776_v23 = vld [vmem:[#allocation10 + $0x7a8] ss:$16 sps:$4 sm:$0xff]  }
 0x481   :  { %8736 = vmatprep.subr.bf16.mxu1 %v10700_v27  ;;  %v10781_v42 = vld [vmem:[#allocation10 + $0x78c] ss:$16 sps:$4 sm:$0xff]   ;;  %v10779_v28 = vld [vmem:[#allocation10 + $0x788] ss:$16 sps:$4 sm:$0xff]  }
 0x482   :  { %v10784_v52 = vld [vmem:[#allocation10 + $0x76c] ss:$16 sps:$4 sm:$0xff]   ;;  %v10782_v15 = vld [vmem:[#allocation10 + $0x768] ss:$16 sps:$4 sm:$0xff]  }
 0x483   :  { %8798 = vmatpush2.bf16.msra.mxu0 %v10701_v54  ;;  %v10787_v61 = vld [vmem:[#allocation10 + $0x74c] ss:$16 sps:$4 sm:$0xff]   ;;  %v10785_v39 = vld [vmem:[#allocation10 + $0x748] ss:$16 sps:$4 sm:$0xff]  }
 0x484   :  { %8799 = vmatprep.subr.bf16.mxu0 %v10709_v4  ;;  %8737 = vmatpush1.bf16.msra.mxu1 %v10698_v44  ;;  %v10790_v35 = vld [vmem:[#allocation10 + $0x72c] ss:$16 sps:$4 sm:$0xff]   ;;  %v10788_v33 = vld [vmem:[#allocation10 + $0x728] ss:$16 sps:$4 sm:$0xff]  }
 0x485   :  { %8738 = vmatprep.subr.bf16.mxu1 %v10706_v24  ;;  %v10793_v27 = vld [vmem:[#allocation10 + $0x70c] ss:$16 sps:$4 sm:$0xff]   ;;  %v10791_v54 = vld [vmem:[#allocation10 + $0x708] ss:$16 sps:$4 sm:$0xff]  }
 0x487   :  { %8800 = vmatpush2.bf16.msra.mxu0 %v10707_v0 }
 0x488   :  { %8801 = vmatprep.subr.bf16.mxu0 %v10715_v32  ;;  %8739 = vmatpush1.bf16.msra.mxu1 %v10704_v40 }
 0x489   :  { %8740 = vmatprep.subr.bf16.mxu1 %v10712_v63 }
 0x48b   :  { %8802 = vmatpush2.bf16.msra.mxu0 %v10713_v13 }
 0x48c   :  { %8803 = vmatprep.subr.bf16.mxu0 %v10721_v10  ;;  %8741 = vmatpush2.bf16.msra.mxu1 %v10710_v55 }
 0x48d   :  { %8742 = vmatprep.subr.bf16.mxu1 %v10718_v19  ;;  %v11739_v19 = vld [vmem:[#allocation13] sm:$0xf] }
 0x48f   :  { %8804 = vmatpush2.bf16.msra.mxu0 %v10719_v47 }
 0x490   :  { %8805 = vmatprep.subr.bf16.mxu0 %v10727_v3  ;;  %8743 = vmatpush2.bf16.msra.mxu1 %v10716_v11 }
 0x491   :  { %8744 = vmatprep.subr.bf16.mxu1 %v10724_v8  ;;  %v11881_v8 = vld [vmem:[#allocation23_spill] sm:$0xff] }
 0x493   :  { %8806 = vmatpush2.bf16.msra.mxu0 %v10725_v5  ;;  %v11745_v5 = vld [vmem:[#allocation12] sm:$0xf] }
 0x494   :  { %8807 = vmatprep.subr.bf16.mxu0 %v10733_v36  ;;  %8745 = vmatpush2.bf16.msra.mxu1 %v10722_v49 }
 0x495   :  { %8746 = vmatprep.subr.bf16.mxu1 %v10730_v16 }
 0x497   :  { %8808 = vmatpush2.bf16.msra.mxu0 %v10731_v6 }
 0x498   :  { %8747 = vmatpush2.bf16.msra.mxu1 %v10728_v2 }
 0x499   :  { %8748 = vmatprep.subr.bf16.mxu1 %v10736_v53  ;;  %v8546_v40 = vpop.f32.mrf.mxu1  ;;  %v7166_v53 = vrot.slane %v11745_v5, %v11881_v8 }
 0x49a   :  { %8810 = vmatmul.mubr.bf16.vlgmr.msra.gmra.mxu0 %v11512_v58  ;;  %v10751_v58 = vld [vmem:[#allocation10 + $0x6cc] ss:$16 sps:$4 sm:$0xff]   ;;  %v8493_v4 = vpop.f32.mrf.mxu0 }
 0x49b   :  { %8819 = vmatprep.mubr.bf16.mxu0 %v11523_v30  ;;  %v10749_v30 = vld [vmem:[#allocation10 + $0x6c8] ss:$16 sps:$4 sm:$0xff]   ;;  %v8548_v13 = vpop.f32.mrf.mxu1 }
 0x49c   :  { %8749 = vmatpush2.bf16.msra.mxu1 %v10734_v21  ;;  %v8495_v44 = vpop.f32.mrf.mxu0 }
 0x49d   :  { %8750 = vmatprep.subr.bf16.mxu1 %v10739_v62  ;;  %v8550_v55 = vpop.f32.mrf.mxu1 }
 0x49e   :  { %v8497_v24 = vpop.f32.mrf.mxu0 }
 0x49f   :  { %v8552_v3 = vpop.f32.mrf.mxu1 }
 0x4a0   :  { %8751 = vmatpush2.bf16.msra.mxu1 %v10737_v20  ;;  %v8499_v0 = vpop.f32.mrf.mxu0 }
 0x4a1   :  { %8752 = vmatprep.subr.bf16.mxu1 %v10742_v29  ;;  %v8556_v36 = vpop.f32.mrf.mxu1  ;;  %v8496_v29 = vadd.f32 %v8495_v44, %v7166_v53 }
 0x4a2   :  { %8820 = vmatmul.mubr.bf16.gmra.mxu0 %v11521_v51  ;;  %v10757_v51 = vld [vmem:[#allocation10 + $0x68c] ss:$16 sps:$4 sm:$0xff]   ;;  %v8503_v32 = vpop.f32.mrf.mxu0 }
 0x4a3   :  { %v8558_v6 = vpop.f32.mrf.mxu1 }
 0x4a4   :  { %8753 = vmatpush2.bf16.msra.mxu1 %v10740_v45  ;;  %v8505_v63 = vpop.f32.mrf.mxu0 }
 0x4a5   :  { %8754 = vmatprep.subr.bf16.mxu1 %v10745_v12  ;;  %v8560_v62 = vpop.f32.mrf.mxu1 }
 0x4a6   :  { %v8507_v10 = vpop.f32.mrf.mxu0 }
 0x4a8   :  { %8755 = vmatpush2.bf16.msra.mxu1 %v10743_v14  ;;  %v8509_v47 = vpop.f32.mrf.mxu0  ;;  %v8562_v14 = vpop.f32.mrf.mxu1 }
 0x4a9   :  { %8830 = vmatprep.subr.bf16.mxu1 %v10748_v48 }
 0x4ab   :  { %8757 = vmatmul.mubr.bf16.vlgmr.msra.gmra.mxu1 %v11876_v26  ;;  %v10758_v26 = vld [vmem:[#allocation10 + $0x668] ss:$16 sps:$4 sm:$0xff]  }
 0x4ac   :  { %8766 = vmatprep.mubr.bf16.mxu1 %v11577_v60  ;;  %8831 = vmatpush1.bf16.msra.mxu1 %v10746_v50  ;;  %v10763_v60 = vld [vmem:[#allocation10 + $0x64c] ss:$16 sps:$4 sm:$0xff]   ;;  %v8549_v50 = vadd.f32 %v8548_v13, %v8496_v29 }
 0x4ad   :  { %8832 = vmatprep.subr.bf16.mxu1 %v10751_v58  ;;  %v8500_v58 = vadd.f32 %v8499_v0, %v7166_v53 }
 0x4b0   :  { %8833 = vmatpush1.bf16.msra.mxu1 %v10749_v30 }
 0x4b1   :  { %8834 = vmatprep.subr.bf16.mxu1 %v10754_v1 }
 0x4b3   :  { %8767 = vmatmul.mubr.bf16.gmra.mxu1 %v11878_v17  ;;  %v10767_v17 = vld [vmem:[#allocation10 + $0x608] ss:$16 sps:$4 sm:$0xff]  }
 0x4b4   :  { %8835 = vmatpush1.bf16.msra.mxu1 %v10752_v43  ;;  %8862 = vmatprep.mubr.bf16.mxu1 %v11711_v7  ;;  %v10770_v7 = vld [vmem:[#allocation10 + $0x7e8] ss:$16 sps:$4 sm:$0xff]  }
 0x4b5   :  { %8836 = vmatprep.subr.bf16.mxu1 %v10757_v51 }
 0x4b8   :  { %8837 = vmatpush1.bf16.msra.mxu1 %v10755_v25 }
 0x4b9   :  { %8838 = vmatprep.subr.bf16.mxu1 %v10760_v37 }
 0x4bc   :  { %8839 = vmatpush1.bf16.msra.mxu1 %v10758_v26 }
 0x4bd   :  { %8840 = vmatprep.subr.bf16.mxu1 %v10763_v60 }
 0x4c0   :  { %8841 = vmatpush1.bf16.msra.mxu1 %v10761_v41  ;;  %v8506_v41 = vadd.f32 %v8505_v63, %v7166_v53 }
 0x4c1   :  { %8842 = vmatprep.subr.bf16.mxu1 %v10766_v46 }
 0x4c4   :  { %8843 = vmatpush1.bf16.msra.mxu1 %v10764_v31 }
 0x4c5   :  { %8844 = vmatprep.subr.bf16.mxu1 %v10769_v22  ;;  %v8553_v22 = vadd.f32 %v8552_v3, %v8500_v58 }
 0x4c8   :  { %8845 = vmatpush1.bf16.msra.mxu1 %v10767_v17 }
 0x4c9   :  { %8846 = vmatprep.subr.bf16.mxu1 %v10772_v18 }
 0x4cc   :  { %8847 = vmatpush2.bf16.msra.mxu1 %v10770_v7 }
 0x4cd   :  { %8848 = vmatprep.subr.bf16.mxu1 %v10775_v9 }
 0x4d0   :  { %8849 = vmatpush2.bf16.msra.mxu1 %v10773_v34 }
 0x4d1   :  { %8850 = vmatprep.subr.bf16.mxu1 %v10778_v57 }
 0x4d4   :  { %8851 = vmatpush2.bf16.msra.mxu1 %v10776_v23 }
 0x4d5   :  { %8852 = vmatprep.subr.bf16.mxu1 %v10781_v42 }
 0x4d8   :  { %8853 = vmatpush2.bf16.msra.mxu1 %v10779_v28 }
 0x4d9   :  { %8854 = vmatprep.subr.bf16.mxu1 %v10784_v52  ;;  %v8559_v52 = vadd.f32 %v8558_v6, %v8506_v41 }
 0x4da   :  { %v8599_v11 = vpop.f32.mrf.mxu0 }
 0x4dc   :  { %8855 = vmatpush2.bf16.msra.mxu1 %v10782_v15  ;;  %v8601_v49 = vpop.f32.mrf.mxu0  ;;  %v8510_v15 = vadd.f32 %v8509_v47, %v7166_v53 }
 0x4dd   :  { %8856 = vmatprep.subr.bf16.mxu1 %v10787_v61  ;;  %v8602_v37 = vadd.f32 %v8601_v49, %v8549_v50 }
 0x4de   :  { %v8603_v2 = vpop.f32.mrf.mxu0  ;;  %v8563_v13 = vadd.f32 %v8562_v14, %v8510_v15 }
 0x4e0   :  { %8857 = vmatpush2.bf16.msra.mxu1 %v10785_v39  ;;  %v8605_v20 = vpop.f32.mrf.mxu0 }
 0x4e1   :  { %8858 = vmatprep.subr.bf16.mxu1 %v10790_v35  ;;  %v8606_v23 = vadd.f32 %v8605_v20, %v8553_v22 }
 0x4e2   :  { %v8609_v48 = vpop.f32.mrf.mxu0 }
 0x4e4   :  { %8859 = vmatpush2.bf16.msra.mxu1 %v10788_v33  ;;  %v8611_v46 = vpop.f32.mrf.mxu0 }
 0x4e5   :  { %8860 = vmatprep.subr.bf16.mxu1 %v10793_v27  ;;  %v8612_v0 = vadd.f32 %v8611_v46, %v8559_v52 }
 0x4e6   :  { %v8613_v39 = vpop.f32.mrf.mxu0 }
 0x4e8   :  { %8861 = vmatpush2.bf16.msra.mxu1 %v10791_v54 }
 0x4eb   :  { %8863 = vmatmul.mubr.bf16.vlgmr.msra.gmra.mxu1 %v11713_v56  ;;  %v11880_v56 = vld [vmem:[#allocation22_spill] sm:$0xff] }
 0x4ec   :  { %8872 = vmatprep.mubr.bf16.mxu1 %v11722_v59  ;;  %v8888_v59 = vrot.slane %v11739_v19, %v11880_v56  ;;  %v7162_v16 = vrot.slane %v11745_v5, %v11880_v56 }
 0x4ee   :  { %10794 = vrcp.f32 %v8888_v59  ;;  %v8494_v21 = vadd.f32 %v8493_v4, %v7162_v16  ;;  %v8498_v12 = vadd.f32 %v8497_v24, %v7162_v16  ;;  %v8504_v43 = vadd.f32 %v8503_v32, %v7162_v16 }
 0x4ef   :  { %v8508_v34 = vadd.f32 %v8507_v10, %v7162_v16 }
 0x4f0   :  { %v8547_v45 = vadd.f32 %v8546_v40, %v8494_v21  ;;  %v8551_v25 = vadd.f32 %v8550_v55, %v8498_v12  ;;  %v8557_v9 = vadd.f32 %v8556_v36, %v8504_v43  ;;  %v8615_v55 = vpop.f32.mrf.mxu0 }
 0x4f1   :  { %v8561_v44 = vadd.f32 %v8560_v62, %v8508_v34  ;;  %v8616_v36 = vadd.f32 %v8615_v55, %v8563_v13 }
 0x4f2   :  { %v8600_v30 = vadd.f32 %v8599_v11, %v8547_v45  ;;  %v8604_v17 = vadd.f32 %v8603_v2, %v8551_v25  ;;  %v8610_v61 = vadd.f32 %v8609_v48, %v8557_v9 }
 0x4f3   :  { %8873 = vmatmul.mubr.bf16.gmra.mxu1 %v11725_v38  ;;  %v8892_v38 = vrot.slane %v11739_v19, %v11881_v8  ;;  %v8614_v10 = vadd.f32 %v8613_v39, %v8561_v44 }
 0x4f5   :  { %10796 = vrcp.f32 %v8892_v38 }
 0x4fb   :  { %v10795_v1 = vpop.eup %10794 }
 0x502   :  { %v10797_v60 = vpop.eup %10796 }
 0x51a   :  { %v8705_v50 = vpop.f32.mrf.mxu0 }
 0x51c   :  { %v8707_v58 = vpop.f32.mrf.mxu0 }
 0x52b   :  { %v8652_v51 = vpop.f32.mrf.mxu1 }
 0x52c   :  { %v8653_v26 = vadd.f32 %v8652_v51, %v8600_v30  ;;  %v8709_v30 = vpop.f32.mrf.mxu0 }
 0x52d   :  { %v8654_v31 = vpop.f32.mrf.mxu1 }
 0x52e   :  { %v8906_v18 = vmul.f32 %v10795_v1, %v8653_v26  ;;  %v8655_v7 = vadd.f32 %v8654_v31, %v8602_v37  ;;  %v11882_v31 = vld [vmem:[#allocation30_spill] sm:$0xff] }
 0x52f   :  { %v8656_v57 = vpop.f32.mrf.mxu1  ;;  %v8896_v22 = vrot.slane %v11739_v19, %v11882_v31 }
 0x530   :  { %v8908_v42 = vmul.f32 %v10797_v60, %v8655_v7  ;;  %v8657_v28 = vadd.f32 %v8656_v57, %v8604_v17  ;;  %v8925_v54 = vmul.f32 %v8906_v18, %v8906_v18  ;;  %v7170_v57 = vrot.slane %v11745_v5, %v11882_v31 }
 0x531   :  { %v8658_v35 = vpop.f32.mrf.mxu1  ;;  %10798 = vrcp.f32 %v8896_v22 }
 0x532   :  { %v8913_v33 = vmul.f32 %v10795_v1, %v8657_v28  ;;  %v8659_v27 = vadd.f32 %v8658_v35, %v8606_v23  ;;  %9025 = vmatprep.mubr.f32.mxu0 %v8908_v42  ;;  %v8926_v4 = vmul.f32 %v8908_v42, %v8908_v42  ;;  %v8706_v52 = vadd.f32 %v8705_v50, %v7170_v57 }
 0x533   :  { %v8662_v24 = vpop.f32.mrf.mxu1 }
 0x534   :  { %v8914_v32 = vmul.f32 %v10797_v60, %v8659_v27  ;;  %v8663_v40 = vadd.f32 %v8662_v24, %v8610_v61  ;;  %v11751_v63 = vadd.f32 %v8926_v4, %v8925_v54  ;;  %v8929_v47 = vmul.f32 %v8913_v33, %v8913_v33 }
 0x535   :  { %v8664_v3 = vpop.f32.mrf.mxu1 }
 0x536   :  { %v8930_v11 = vmul.f32 %v8914_v32, %v8914_v32  ;;  %v8917_v59 = vmul.f32 %v10795_v1, %v8663_v40  ;;  %v8665_v8 = vadd.f32 %v8664_v3, %v8612_v0 }
 0x537   :  { %v8666_v38 = vpop.f32.mrf.mxu1 }
 0x538   :  { %v8918_v49 = vmul.f32 %v10797_v60, %v8665_v8  ;;  %v8667_v16 = vadd.f32 %v8666_v38, %v8614_v10  ;;  %v11753_v6 = vadd.f32 %v8930_v11, %v8929_v47  ;;  %v8933_v62 = vmul.f32 %v8917_v59, %v8917_v59 }
 0x539   :  { %v8668_v2 = vpop.f32.mrf.mxu1 }
 0x53a   :  { %v8921_v53 = vmul.f32 %v10795_v1, %v8667_v16  ;;  %v8669_v21 = vadd.f32 %v8668_v2, %v8616_v36  ;;  %v8934_v20 = vmul.f32 %v8918_v49, %v8918_v49  ;;  %v8711_v1 = vpop.f32.mrf.mxu0 }
 0x53c   :  { %v8922_v29 = vmul.f32 %v10797_v60, %v8669_v21  ;;  %v11755_v45 = vadd.f32 %v8934_v20, %v8933_v62  ;;  %v8937_v12 = vmul.f32 %v8921_v53, %v8921_v53  ;;  %v8715_v43 = vpop.f32.mrf.mxu0 }
 0x53e   :  { %v8938_v14 = vmul.f32 %v8922_v29, %v8922_v29  ;;  %8985 = vmatprep.subr.mxu0 %v8922_v29  ;;  %v8717_v25 = vpop.f32.mrf.mxu0  ;;  %v10799_v0 = vpop.eup %10798 }
 0x53f   :  { %8986 = vmatpush1.xpose.msra.mxu0 %v8921_v53 }
 0x540   :  { %8987 = vmatprep.subr.mxu0 %v8918_v49  ;;  %v11757_v48 = vadd.f32 %v8938_v14, %v8937_v12  ;;  %v8719_v26 = vpop.f32.mrf.mxu0 }
 0x542   :  { %v8721_v41 = vpop.f32.mrf.mxu0 }
 0x543   :  { %8988 = vmatpush1.xpose.msra.mxu0 %v8917_v59 }
 0x544   :  { %8989 = vmatprep.subr.mxu0 %v8914_v32 }
 0x547   :  { %8990 = vmatpush1.xpose.msra.mxu0 %v8913_v33 }
 0x548   :  { %8991 = vmatprep.subr.mxu0 %v8908_v42 }
 0x54b   :  { %8992 = vmatpush1.xpose.msra.mxu0 %v8906_v18 }
 0x54e   :  { %9026 = vmatmul.mubr.f32.vlgmr.msra.gmra.mxu0 %v8906_v18  ;;  %v11883_v18 = vld [vmem:[#allocation55_spill] sm:$0xff] }
 0x54f   :  { %9030 = vmatprep.mubr.f32.mxu0 %v8914_v32  ;;  %v8900_v7 = vrot.slane %v11739_v19, %v11883_v18  ;;  %v7174_v42 = vrot.slane %v11745_v5, %v11883_v18  ;;  %v8716_v32 = vadd.f32 %v8715_v43, %v7170_v57 }
 0x551   :  { %10800 = vrcp.f32 %v8900_v7  ;;  %v8708_v61 = vadd.f32 %v8707_v58, %v7174_v42  ;;  %v8712_v54 = vadd.f32 %v8711_v1, %v7174_v42  ;;  %v8718_v3 = vadd.f32 %v8717_v25, %v7174_v42 }
 0x552   :  { %9031 = vmatmul.mubr.f32.gmra.mxu0 %v8913_v33  ;;  %v8710_v33 = vadd.f32 %v8709_v30, %v7170_v57 }
 0x553   :  { %9035 = vmatprep.mubr.f32.mxu0 %v8918_v49  ;;  %v8720_v49 = vadd.f32 %v8719_v26, %v7170_v57 }
 0x556   :  { %9036 = vmatmul.mubr.f32.gmra.mxu0 %v8917_v59 }
 0x557   :  { %9040 = vmatprep.mubr.f32.mxu0 %v8922_v29  ;;  %v8722_v29 = vadd.f32 %v8721_v41, %v7174_v42 }
 0x55a   :  { %9041 = vmatmul.mubr.f32.gmra.mxu0 %v8921_v53  ;;  %v8811_v17 = vpop.f32.mrf.mxu0 }
 0x55c   :  { %v8813_v34 = vpop.f32.mrf.mxu0 }
 0x55e   :  { %v8815_v28 = vpop.f32.mrf.mxu0  ;;  %v10801_v5 = vpop.eup %10800 }
 0x560   :  { %v8817_v39 = vpop.f32.mrf.mxu0 }
 0x562   :  { %v8821_v4 = vpop.f32.mrf.mxu0 }
 0x564   :  { %v8823_v59 = vpop.f32.mrf.mxu0 }
 0x566   :  { %v8825_v58 = vpop.f32.mrf.mxu0 }
 0x568   :  { %v8827_v41 = vpop.f32.mrf.mxu0 }
 0x56b   :  { %v8758_v51 = vpop.f32.mrf.mxu1 }
 0x56c   :  { %v8759_v35 = vadd.f32 %v8758_v51, %v8706_v52 }
 0x56d   :  { %v8760_v37 = vpop.f32.mrf.mxu1 }
 0x56e   :  { %v8761_v27 = vadd.f32 %v8760_v37, %v8708_v61  ;;  %v8812_v24 = vadd.f32 %v8811_v17, %v8759_v35 }
 0x56f   :  { %v8762_v60 = vpop.f32.mrf.mxu1 }
 0x570   :  { %v8763_v44 = vadd.f32 %v8762_v60, %v8710_v33  ;;  %v8814_v55 = vadd.f32 %v8813_v34, %v8761_v27 }
 0x571   :  { %v8764_v46 = vpop.f32.mrf.mxu1 }
 0x572   :  { %v8765_v13 = vadd.f32 %v8764_v46, %v8712_v54  ;;  %v8816_v36 = vadd.f32 %v8815_v28, %v8763_v44 }
 0x573   :  { %v8768_v9 = vpop.f32.mrf.mxu1 }
 0x574   :  { %v8769_v47 = vadd.f32 %v8768_v9, %v8716_v32  ;;  %v8818_v62 = vadd.f32 %v8817_v39, %v8765_v13 }
 0x575   :  { %v8770_v23 = vpop.f32.mrf.mxu1 }
 0x576   :  { %v8771_v16 = vadd.f32 %v8770_v23, %v8718_v3  ;;  %v8822_v50 = vadd.f32 %v8821_v4, %v8769_v47 }
 0x577   :  { %v8772_v15 = vpop.f32.mrf.mxu1 }
 0x578   :  { %v8773_v12 = vadd.f32 %v8772_v15, %v8720_v49  ;;  %v8824_v26 = vadd.f32 %v8823_v59, %v8771_v16 }
 0x579   :  { %v8774_v19 = vpop.f32.mrf.mxu1 }
 0x57a   :  { %v8775_v25 = vadd.f32 %v8774_v19, %v8722_v29  ;;  %v8826_v18 = vadd.f32 %v8825_v58, %v8773_v12  ;;  %v11884_v12 = vld [vmem:[#allocation21_spill] sm:$0xff] }
 0x57b   :  { %v9186_v58 = vadd.s32 16, %v11884_v12 }
 0x57c   :  { %v8828_v42 = vadd.f32 %v8827_v41, %v8775_v25 }
 0x5ab   :  { %v8864_v40 = vpop.f32.mrf.mxu1 }
 0x5ac   :  { %v8865_v10 = vadd.f32 %v8864_v40, %v8812_v24 }
 0x5ad   :  { %v8866_v11 = vpop.f32.mrf.mxu1 }
 0x5ae   :  { %v8910_v8 = vmul.f32 %v10799_v0, %v8865_v10  ;;  %v8867_v38 = vadd.f32 %v8866_v11, %v8814_v55 }
 0x5af   :  { %v8868_v2 = vpop.f32.mrf.mxu1 }
 0x5b0   :  { %v8912_v53 = vmul.f32 %v10801_v5, %v8867_v38  ;;  %v8869_v21 = vadd.f32 %v8868_v2, %v8816_v36  ;;  %v8927_v20 = vmul.f32 %v8910_v8, %v8910_v8 }
 0x5b1   :  { %v8870_v14 = vpop.f32.mrf.mxu1 }
 0x5b2   :  { %v8915_v30 = vmul.f32 %v10799_v0, %v8869_v21  ;;  %v8871_v1 = vadd.f32 %v8870_v14, %v8818_v62  ;;  %9110 = vmatprep.mubr.f32.mxu1 %v8912_v53  ;;  %v8928_v43 = vmul.f32 %v8912_v53, %v8912_v53  ;;  %v8942_v51 = vadd.f32 %v11751_v63, %v8927_v20 }
 0x5b3   :  { %v8874_v37 = vpop.f32.mrf.mxu1  ;;  %v9185_v14 = vadd.s32 8, %v11884_v12 }
 0x5b4   :  { %v8916_v60 = vmul.f32 %v10801_v5, %v8871_v1  ;;  %v8875_v46 = vadd.f32 %v8874_v37, %v8822_v50  ;;  %v8943_v31 = vadd.f32 %v8942_v51, %v8928_v43  ;;  %v8931_v22 = vmul.f32 %v8915_v30, %v8915_v30 }
 0x5b5   :  { %v8876_v17 = vpop.f32.mrf.mxu1  ;;  %v11885_v1 = vlaneseq }
 0x5b6   :  { %v8919_v7 = vmul.f32 %v10799_v0, %v8875_v46  ;;  %v8877_v9 = vadd.f32 %v8876_v17, %v8824_v26  ;;  %8944 = vadd.xlane.f32.xlu0 %v8943_v31  ;;  %v8932_v34 = vmul.f32 %v8916_v60, %v8916_v60  ;;  %v8947_v57 = vadd.f32 %v11753_v6, %v8931_v22 }
 0x5b7   :  { %v8878_v23 = vpop.f32.mrf.mxu1  ;;  %v9189_v43 = vand.u32 127, %v11885_v1 }
 0x5b8   :  { %v8920_v28 = vmul.f32 %v10801_v5, %v8877_v9  ;;  %v8879_v63 = vadd.f32 %v8878_v23, %v8826_v18  ;;  %v8948_v52 = vadd.f32 %v8947_v57, %v8932_v34  ;;  %v8935_v15 = vmul.f32 %v8919_v7, %v8919_v7 }
 0x5b9   :  { %v8880_v61 = vpop.f32.mrf.mxu1  ;;  %vm9190_vm0 = vcmp.eq.s32.totalorder %v11884_v12, %v9189_v43  ;;  %vm9191_vm1 = vcmp.eq.s32.totalorder %v9185_v14, %v9189_v43  ;;  %vm9192_vm2 = vcmp.eq.s32.totalorder %v9186_v58, %v9189_v43 }
 0x5ba   :  { %v8923_v39 = vmul.f32 %v10799_v0, %v8879_v63  ;;  %v8881_v35 = vadd.f32 %v8880_v61, %v8828_v42  ;;  %8949 = vadd.xlane.f32.xlu0 %v8948_v52  ;;  %v8936_v33 = vmul.f32 %v8920_v28, %v8920_v28  ;;  %v8952_v27 = vadd.f32 %v11755_v45, %v8935_v15 }
 0x5bc   :  { %v8924_v19 = vmul.f32 %v10801_v5, %v8881_v35  ;;  %v8953_v54 = vadd.f32 %v8952_v27, %v8936_v33  ;;  %v8939_v4 = vmul.f32 %v8923_v39, %v8923_v39 }
 0x5be   :  { %9070 = vmatprep.subr.mxu1 %v8924_v19  ;;  %8954 = vadd.xlane.f32.xlu1 %v8953_v54  ;;  %v8940_v44 = vmul.f32 %v8924_v19, %v8924_v19  ;;  %v8957_v6 = vadd.f32 %v11757_v48, %v8939_v4  ;;  %v9211_v4 = vstv %s11790_s7 }
 0x5bf   :  { %9071 = vmatpush1.xpose.msra.mxu1 %v8923_v39 }
 0x5c0   :  { %9072 = vmatprep.subr.mxu1 %v8920_v28  ;;  %v8958_v24 = vadd.f32 %v8957_v6, %v8940_v44 }
 0x5c2   :  { %8959 = vadd.xlane.f32.xlu1 %v8958_v24 }
 0x5c3   :  { %9073 = vmatpush1.xpose.msra.mxu1 %v8919_v7 }
 0x5c4   :  { %9074 = vmatprep.subr.mxu1 %v8916_v60 }
 0x5c7   :  { %9075 = vmatpush1.xpose.msra.mxu1 %v8915_v30 }
 0x5c8   :  { %9076 = vmatprep.subr.mxu1 %v8912_v53 }
 0x5cb   :  { %9077 = vmatpush1.xpose.msra.mxu1 %v8910_v8 }
 0x5ce   :  { %9111 = vmatmul.mubr.f32.vlgmr.msra.gmra.mxu1 %v8910_v8 }
 0x5cf   :  { %9115 = vmatprep.mubr.f32.mxu1 %v8916_v60 }
 0x5d2   :  { %9116 = vmatmul.mubr.f32.gmra.mxu1 %v8915_v30  ;;  %v9187_v30 = vadd.s32 24, %v11884_v12 }
 0x5d3   :  { %9120 = vmatprep.mubr.f32.mxu1 %v8920_v28 }
 0x5d4   :  { %vm9193_vm3 = vcmp.eq.s32.totalorder %v9187_v30, %v9189_v43 }
 0x5d6   :  { %9121 = vmatmul.mubr.f32.gmra.mxu1 %v8919_v7 }
 0x5d7   :  { %9125 = vmatprep.mubr.f32.mxu1 %v8924_v19 }
 0x5da   :  { %9126 = vmatmul.mubr.f32.gmra.mxu1 %v8923_v39 }
 0x60e   :  { %v9027_v45 = vpop.f32.mrf.mxu0 }
 0x610   :  { %v9029_v0 = vpop.f32.mrf.mxu0 }
 0x612   :  { %v9032_v32 = vpop.f32.mrf.mxu0 }
 0x614   :  { %v9034_v48 = vpop.f32.mrf.mxu0 }
 0x616   :  { %v9037_v40 = vpop.f32.mrf.mxu0 }
 0x618   :  { %v9039_v13 = vpop.f32.mrf.mxu0 }
 0x61a   :  { %v9042_v10 = vpop.f32.mrf.mxu0 }
 0x61c   :  { %v9044_v55 = vpop.f32.mrf.mxu0 }
 0x63f   :  { %v8945_v5 = vpop.xlane.xlu0 %8944 }
 0x640   :  { %9131 = vxpose.xlu0.b32.start [1/4] (short) (narrow) %v8945_v5, 8 }
 0x643   :  { %v8950_v3 = vpop.xlane.xlu0 %8949 }
 0x644   :  { %9132 = vxpose.xlu0.b32.cont [2/4] (short) (narrow) %v8950_v3, 8 }
 0x647   :  { %v8955_v47 = vpop.xlane.xlu1 %8954 }
 0x648   :  { %9133 = vxpose.xlu0.b32.cont [3/4] (short) (narrow) %v8955_v47, 8 }
 0x64b   :  { %v8960_v11 = vpop.xlane.xlu1 %8959 }
 0x64c   :  { %9134 = vxpose.xlu0.b32.end [4/4] (short) (narrow) %v8960_v11, 8 }
 0x68e   :  { %v9112_v59 = vpop.f32.mrf.mxu1 }
 0x68f   :  { %v9113_v21 = vadd.f32 %v9112_v59, %v9027_v45 }
 0x690   :  { %v9114_v8 = vpop.f32.mrf.mxu1 }
 0x691   :  { %v9171_v25 = vmul.f32 2.0, %v9113_v21 }
 0x692   :  { %v9117_v38 = vpop.f32.mrf.mxu1 }
 0x693   :  { %v9118_v62 = vadd.f32 %v9117_v38, %v9032_v32 }
 0x694   :  { %v9119_v36 = vpop.f32.mrf.mxu1 }
 0x695   :  { %v9172_v37 = vmul.f32 2.0, %v9118_v62 }
 0x696   :  { %v9122_v49 = vpop.f32.mrf.mxu1 }
 0x697   :  { %v9123_v20 = vadd.f32 %v9122_v49, %v9037_v40 }
 0x698   :  { %v9124_v16 = vpop.f32.mrf.mxu1 }
 0x699   :  { %v9173_v26 = vmul.f32 2.0, %v9123_v20 }
 0x69a   :  { %v9127_v2 = vpop.f32.mrf.mxu1 }
 0x69b   :  { %v9128_v29 = vadd.f32 %v9127_v2, %v9042_v10 }
 0x69c   :  { %v9129_v53 = vpop.f32.mrf.mxu1 }
 0x69d   :  { %v9174_v60 = vmul.f32 2.0, %v9128_v29 }
 0x6bc   :  { %v9147_v50 = vpop.trf.xlu0 }
 0x6bd   :  { %v9166_v51 = vrot.slane %v9147_v50, %v11880_v56 }
 0x6bf   :  { %v9167_v46 = vadd.f32 %v9166_v51, %v8945_v5  ;;  %v9168_v31 = vadd.f32 %v9166_v51, %v8950_v3  ;;  %v9169_v22 = vadd.f32 %v9166_v51, %v8955_v47  ;;  %v9170_v17 = vadd.f32 %v9166_v51, %v8960_v11 }
 0x6c1   :  { %v9175_v18 = vsub.f32 %v9167_v46, %v9171_v25  ;;  %v9176_v41 = vsub.f32 %v9168_v31, %v9172_v37  ;;  %v9177_v7 = vsub.f32 %v9169_v22, %v9173_v26  ;;  %v9178_v9 = vsub.f32 %v9170_v17, %v9174_v60 }
 0x6c3   :  { %v9179_v34 = vmax.f32 %v9175_v18, 0.0  ;;  %v9180_v57 = vmax.f32 %v9176_v41, 0.0  ;;  %v9181_v56 = vmax.f32 %v9177_v7, 0.0  ;;  %v9182_v23 = vmax.f32 %v9178_v9, 0.0 }
 0x6c5   :  { %v9194_v42 = vsel %vm9190_vm0, 0.0, %v9179_v34  ;;  %v9195_v28 = vsel %vm9191_vm1, 0.0, %v9180_v57  ;;  %v9196_v63 = vsel %vm9192_vm2, 0.0, %v9181_v56  ;;  %v9197_v52 = vsel %vm9193_vm3, 0.0, %v9182_v23 }
 0x6c6   :  { %v9199_v15 = vmul.f32 -0.5, %v9194_v42  ;;  %v9200_v61 = vmul.f32 -0.5, %v9195_v28  ;;  %v9201_v39 = vmul.f32 -0.5, %v9196_v63  ;;  %v9202_v35 = vmul.f32 -0.5, %v9197_v52 }
 0x6c8   :  { %v9203_v33 = vmul.f32 1.442695, %v9199_v15  ;;  %v9205_v27 = vmul.f32 1.442695, %v9200_v61  ;;  %v9207_v19 = vmul.f32 1.442695, %v9201_v39 }
 0x6c9   :  { %v9209_v54 = vmul.f32 1.442695, %v9202_v35 }
 0x6ca   :  { %10802 = vpow2.f32 %v9203_v33 }
 0x6cb   :  { %10804 = vpow2.f32 %v9205_v27 }
 0x6cc   :  { %10806 = vpow2.f32 %v9207_v19 }
 0x6cd   :  { %10808 = vpow2.f32 %v9209_v54 }
 0x6d7   :  { %v10803_v44 = vpop.eup %10802 }
 0x6d8   :  { %v10805_v6 = vpop.eup %10804  ;;  %v9212_v24 = vmul.f32 %v10803_v44, %v9211_v4 }
 0x6d9   :  { %v10807_v45 = vpop.eup %10806  ;;  %v9213_v0 = vmul.f32 %v10805_v6, %v9211_v4 }
 0x6da   :  { %v10809_v32 = vpop.eup %10808  ;;  %v9214_v48 = vmul.f32 %v10807_v45, %v9211_v4  ;;  %9217 = vst.msk [vmem:[#allocation15] sm:$0xff] %vm9216_vm4, %v9212_v24 }
 0x6db   :  { %v9215_v40 = vmul.f32 %v10809_v32, %v9211_v4  ;;  %9218 = vst.msk [vmem:[#allocation15 + $0x8] sm:$0xff] %vm9216_vm4, %v9213_v0 }
 0x6dc   :  { %9219 = vst.msk [vmem:[#allocation15 + $0x10] sm:$0xff] %vm9216_vm4, %v9214_v48 }
 0x6dd   :  { %9220 = vst.msk [vmem:[#allocation15 + $0x18] sm:$0xff] %vm9216_vm4, %v9215_v40 }
 0x6de   :  { %11023 = shalt.err (!%p11020_p6)
}
 0x6df   :  { %s11056_s7 = smov 128   ;;  %s11057_s19 = smov 8  }
 0x6e0   :  { %9232 = dma.vmem_to_hbm [thread:$0]  %s9227_s17, 512, %s11791_s8, [#allocation6], %s11056_s7, %s11056_s7, %s11057_s19  }
 0x6e1   :  { %11040 = dma.done.wait [#allocation6], 512  }
 0x6e2   :  { %11041 = vsyncadd [#allocation6], 4294966784 }
 0x6e3   :  { %9236 = vsyncpa [#allocation5], 1 }
 0x6e4   :  { %9237 = vsyncpa [#allocation8], 1 }
 0x6e5   :  { %9238 = vsyncpa [#allocation11], 1 }
 0x6e6   :  { %9239 = vsyncpa [#allocation14], 1 }
 0x6e7   :  { %9240 = vsyncpa [#allocation6], 1 }

</bundles_post_ra>
